<compile_context>
chip_gen: v6e
topology: v6e:2x2x1
jax: 0.10.0
libtpu: 0.0.40
codegen_flags: <defaults>
</compile_context>

<pallas_src>
import functools
import math

import jax
import jax.numpy as jnp
from jax.experimental import pallas as pl
from jax.experimental.pallas import tpu as pltpu

# ----------------------------- tiny T5 config --------------------------------
VOCAB = 64
V_PAD = ((VOCAB + 127) // 128) * 128   # lane-dense LM-head width (=128)
D_MODEL = 32
N_HEADS = 4
D_KV = D_MODEL // N_HEADS              # 8
HD = N_HEADS * D_KV                    # 32
D_FF = 64
N_LAYERS = 2
REL_BUCKETS = 8
REL_MAX_DIST = 16
PAD_ID = 0
DECODER_START_ID = 0                   # T5: decoder_start_token_id == pad_token_id
EPS = 1e-6
NEG_INF = -1e9
NEG_BIG = -1e30
NOFACT_TOKEN_ID = 5                    # required by the torch module __init__; unused in forward

# -------- packed-weight layout (static offsets shared by prepare() and kernel) --------
_ENC_ABLK = 4 * N_HEADS                # [q(H) k(H) v(H) woT(H)] per encoder layer
_DEC_ABLK = 8 * N_HEADS                # + [cq(H) ck(H) cv(H) coT(H)] per decoder layer


def _aw_enc(l): return l * _ENC_ABLK
def _aw_dec(l): return N_LAYERS * _ENC_ABLK + l * _DEC_ABLK
def _fw_enc(l): return 2 * l
def _fw_dec(l): return 2 * N_LAYERS + 2 * l
def _ln_enc_sa(l): return 2 * l
def _ln_enc_ff(l): return 2 * l + 1


_LN_ENC_FINAL = 2 * N_LAYERS


def _ln_dec_sa(l): return _LN_ENC_FINAL + 1 + 3 * l
def _ln_dec_ca(l): return _LN_ENC_FINAL + 2 + 3 * l
def _ln_dec_ff(l): return _LN_ENC_FINAL + 3 + 3 * l


_LN_DEC_FINAL = _LN_ENC_FINAL + 1 + 3 * N_LAYERS
_N_LN = _LN_DEC_FINAL + 1


# ------------------------------ fused kernel ----------------------------------
def _t5_fused_kernel(x_ref, y_ref, encb_ref, crossb_ref, decb_ref, emb_ref,
                     ln_ref, aw_ref, fw_ref, out_ref, *, bs, le, ld):
    """One grid step == `bs` batch elements.  Everything stays on-chip."""
    f32 = jnp.float32
    H = N_HEADS

    def rms(rows, ln_idx):                       # T5 LayerNorm: no mean subtraction, no bias
        w = ln_ref[ln_idx:ln_idx + 1, :]         # (1, D)
        var = jnp.mean(rows * rows, axis=-1, keepdims=True)
        return rows * jax.lax.rsqrt(var + EPS) * w

    def bdot(lhs, rhs, cl, cr):                  # head-batched matmul (batch dim 0)
        return jax.lax.dot_general(lhs, rhs, (((cl,), (cr,)), ((0,), (0,))),
                                   preferred_element_type=f32)

    def project(rows, w_stack):                  # (R, D) x (n, D, Dk) -> (n, R, Dk)
        rb = jnp.broadcast_to(rows, (w_stack.shape[0],) + rows.shape)
        return bdot(rb, w_stack, 2, 1)

    def attn_core(q3, k3, v3, woT, bias):
        # q3 (H,Lq,Dk), k3/v3 (H,Lk,Dk), woT (H,D,Dk), bias (H,Lq,Lk)
        # NOTE: T5 attention does NOT scale scores by 1/sqrt(d_kv).
        s = bdot(q3, k3, 2, 2) + bias                               # (H, Lq, Lk)
        m = jnp.max(s, axis=-1, keepdims=True)
        p = jnp.exp(s - m)
        p = p * pl.reciprocal(jnp.sum(p, axis=-1, keepdims=True), approx=True)
        o = bdot(p, v3, 2, 1)                                       # (H, Lq, Dk)
        po = bdot(o, woT, 2, 2)                                     # (H, Lq, D): o_h @ Wo[h]
        return jnp.sum(po, axis=0)                                  # (Lq, D) == concat @ Wo

    def self_block(rows, L, ln_idx, aw_base, bias_of):
        xn = rms(rows, ln_idx)
        qkv_w = aw_ref[aw_base:aw_base + 3 * H, :, :]               # (3H, D, Dk)
        woT = aw_ref[aw_base + 3 * H:aw_base + 4 * H, :, :]         # (H, D, Dk)
        qkv = project(xn, qkv_w)                                    # (3H, bs*L, Dk)
        outs = []
        for b in range(bs):                                         # attention core per example
            r0, r1 = b * L, (b + 1) * L
            outs.append(attn_core(qkv[:H, r0:r1], qkv[H:2 * H, r0:r1],
                                  qkv[2 * H:, r0:r1], woT, bias_of(b)))
        return rows + jnp.concatenate(outs, axis=0)

    def cross_block(y_rows, enc_rows, ln_idx, aw_base, cross_bias):
        yn = rms(y_rows, ln_idx)
        cq_w = aw_ref[aw_base + 4 * H:aw_base + 5 * H, :, :]        # (H, D, Dk)
        ckv_w = aw_ref[aw_base + 5 * H:aw_base + 7 * H, :, :]       # (2H, D, Dk)
        coT = aw_ref[aw_base + 7 * H:aw_base + 8 * H, :, :]         # (H, D, Dk)
        q = project(yn, cq_w)                                       # (H,  bs*Ld, Dk)
        kv = project(enc_rows, ckv_w)                               # (2H, bs*Le, Dk)
        outs = []
        for b in range(bs):
            rq0, rq1 = b * ld, (b + 1) * ld
            rk0, rk1 = b * le, (b + 1) * le
            outs.append(attn_core(q[:, rq0:rq1], kv[:H, rk0:rk1],
                                  kv[H:, rk0:rk1], coT, cross_bias[b]))
        return y_rows + jnp.concatenate(outs, axis=0)

    def ffn_block(rows, ln_idx, fw_base):
        xn = rms(rows, ln_idx)
        wi = fw_ref[fw_base, :, :]                                  # (D, FF)
        wfT = fw_ref[fw_base + 1, :, :]                             # (D, FF)  (= wf^T)
        h = jnp.maximum(jnp.dot(xn, wi, preferred_element_type=f32), 0.0)
        return rows + jax.lax.dot_general(h, wfT, (((1,), (1,)), ((), ())),
                                          preferred_element_type=f32)

    enc_bias = encb_ref[...]        # (bs, H, le, le)  rel-pos + padding mask
    cross_bias = crossb_ref[...]    # (bs, H, ld, le)  padding mask
    dec_bias = decb_ref[...]        # (H, ld, ld)      rel-pos + causal mask

    # ----- encoder (rows = all bs examples stacked) -----
    x = x_ref[...]                                                  # (bs*le, D)
    for l in range(N_LAYERS):
        x = self_block(x, le, _ln_enc_sa(l), _aw_enc(l), lambda b: enc_bias[b])
        x = ffn_block(x, _ln_enc_ff(l), _fw_enc(l))
    enc_out = rms(x, _LN_ENC_FINAL)                                 # (bs*le, D)

    # ----- decoder -----
    y = y_ref[...]                                                  # (bs*ld, D)
    for l in range(N_LAYERS):
        base = _aw_dec(l)
        y = self_block(y, ld, _ln_dec_sa(l), base, lambda b: dec_bias)
        y = cross_block(y, enc_out, _ln_dec_ca(l), base, cross_bias)
        y = ffn_block(y, _ln_dec_ff(l), _fw_dec(l))
    yf = rms(y, _LN_DEC_FINAL) * (D_MODEL ** -0.5)                  # tied-embedding scaling

    # ----- tied LM head (lane-padded to 128) + exact LogSoftmax(dim=-1) -----
    logits = jnp.dot(yf, emb_ref[...], preferred_element_type=f32)  # (bs*ld, V_PAD)
    if VOCAB < V_PAD:
        lane = jax.lax.broadcasted_iota(jnp.int32, (1, V_PAD), 1)
        logits = jnp.where(lane < VOCAB, logits, NEG_BIG)           # kill zero-padded vocab lanes
    m = jnp.max(logits, axis=-1, keepdims=True)
    s = logits - m
    lse = jnp.log(jnp.sum(jnp.exp(s), axis=-1, keepdims=True))
    out_ref[...] = s - lse


# --------------------------- plain-JAX glue (T5) -------------------------------
def _relative_position_bucket(relative_position, bidirectional, num_buckets, max_distance):
    relative_buckets = jnp.zeros_like(relative_position)
    if bidirectional:
        num_buckets //= 2
        relative_buckets = relative_buckets + (relative_position > 0).astype(jnp.int32) * num_buckets
        relative_position = jnp.abs(relative_position)
    else:
        relative_position = -jnp.minimum(relative_position, 0)
    max_exact = num_buckets // 2
    is_small = relative_position < max_exact
    rp_safe = jnp.maximum(relative_position, 1).astype(jnp.float32)
    rp_if_large = max_exact + (
        jnp.log(rp_safe / max_exact) / math.log(max_distance / max_exact)
        * (num_buckets - max_exact)
    ).astype(jnp.int32)
    rp_if_large = jnp.minimum(rp_if_large, num_buckets - 1)
    return relative_buckets + jnp.where(is_small, relative_position, rp_if_large)


def compute_position_bias(rel_bias_weight, q_len, k_len, bidirectional):
    context = jnp.arange(q_len, dtype=jnp.int32)[:, None]
    memory = jnp.arange(k_len, dtype=jnp.int32)[None, :]
    buckets = _relative_position_bucket(memory - context, bidirectional,
                                        REL_BUCKETS, REL_MAX_DIST)
    values = jnp.take(rel_bias_weight, buckets, axis=0)              # (q, k, H)
    return jnp.transpose(values, (2, 0, 1))                          # (H, q, k)


def prepare(params, enc_len, dec_len):
    """One-time packing / precompute (outside the steady-state jitted path):
    head-major attention weights, transposed out-proj/FFN/LM-head weights, stacked
    RMSNorm gains, lane-padded LM head, and static relative-position bias tensors."""
    def heads_in(w):        # (D, H*Dk) -> (H, D, Dk)
        return jnp.transpose(w.reshape(D_MODEL, N_HEADS, D_KV), (1, 0, 2))

    def heads_out_T(w):     # (H*Dk, D) -> (H, D, Dk)   (stores Wo[h]^T)
        return jnp.transpose(w.reshape(N_HEADS, D_KV, D_MODEL), (0, 2, 1))

    attn, ffn, lns = [], [], []
    for l in range(N_LAYERS):
        e = params["enc"]["layers"][l]
        attn += [heads_in(e["wq"]), heads_in(e["wk"]), heads_in(e["wv"]), heads_out_T(e["wo"])]
        ffn += [e["wi"], e["wf"].T]
        lns += [e["ln_sa"], e["ln_ff"]]
    lns += [params["enc_final_ln"]]
    for l in range(N_LAYERS):
        d = params["dec"]["layers"][l]
        attn += [heads_in(d["wq"]), heads_in(d["wk"]), heads_in(d["wv"]), heads_out_T(d["wo"]),
                 heads_in(d["cq"]), heads_in(d["ck"]), heads_in(d["cv"]), heads_out_T(d["co"])]
        ffn += [d["wi"], d["wf"].T]
        lns += [d["ln_sa"], d["ln_ca"], d["ln_ff"]]
    lns += [params["dec_final_ln"]]

    embed = params["embed"]
    emb_lm = jnp.pad(embed.T, ((0, 0), (0, V_PAD - VOCAB)))          # (D, 128)

    enc_pos = compute_position_bias(params["rel_bias_enc"], enc_len, enc_len, True)
    causal = (jnp.arange(dec_len)[None, :] <= jnp.arange(dec_len)[:, None]).astype(jnp.float32)
    dec_bias = (compute_position_bias(params["rel_bias_dec"], dec_len, dec_len, False)
                + (1.0 - causal)[None] * NEG_INF)                    # (H, Ld, Ld)

    return dict(embed=embed, emb_lm=emb_lm,
                attn_w=jnp.concatenate(attn, axis=0),                # (96, D, Dk)
                ffn_w=jnp.stack(ffn, axis=0),                        # (8, D, FF)
                ln_all=jnp.stack(lns, axis=0),                       # (12, D)
                enc_pos=enc_pos, dec_bias=dec_bias)


def _batch_splits(batch):
    """v7x-like chips have 2 TensorCores -> split the batch across them; v5e/v6e are
    single-TC so a batch grid is only serial per-step overhead (collapse to 1 step)."""
    try:
        kind = jax.devices()[0].device_kind.lower()
    except Exception:
        kind = ""
    if batch % 2 == 0 and ("v7" in kind or "7x" in kind):
        return 2
    return 1


def t5_extractor_forward(prepared, input_ids, attention_mask, labels):
    """Matches T5Extractor.forward: log_softmax(T5(input_ids, attention_mask, labels).logits)."""
    b, le = input_ids.shape
    ld = labels.shape[1]
    assert prepared["enc_pos"].shape[-1] == le and prepared["dec_bias"].shape[-1] == ld

    embed = prepared["embed"]

    # decoder input = shift_right(labels), -100 -> pad
    dec_in = jnp.concatenate(
        [jnp.full((b, 1), DECODER_START_ID, labels.dtype), labels[:, :-1]], axis=1)
    dec_in = jnp.where(dec_in == -100, PAD_ID, dec_in)

    # one-time glue: embedding gathers (row-stacked) + pre-combined attention biases
    x_rows = jnp.take(embed, input_ids.reshape(-1), axis=0)          # (B*Le, D)
    y_rows = jnp.take(embed, dec_in.reshape(-1), axis=0)             # (B*Ld, D)

    pad = (1.0 - attention_mask.astype(jnp.float32)) * NEG_INF       # (B, Le)
    enc_bias = prepared["enc_pos"][None] + pad[:, None, None, :]     # (B, H, Le, Le)
    cross_bias = jnp.broadcast_to(pad[:, None, None, :], (b, N_HEADS, ld, le))
    dec_bias = prepared["dec_bias"]                                  # (H, Ld, Ld)

    emb_lm, ln_all = prepared["emb_lm"], prepared["ln_all"]
    attn_w, ffn_w = prepared["attn_w"], prepared["ffn_w"]

    splits = _batch_splits(b)
    bs = b // splits
    kernel = functools.partial(_t5_fused_kernel, bs=bs, le=le, ld=ld)

    packed = pl.pallas_call(
        kernel,
        out_shape=jax.ShapeDtypeStruct((b * ld, V_PAD), jnp.float32),
        grid=(splits,),
        in_specs=[
            pl.BlockSpec((bs * le, D_MODEL), lambda i: (i, 0)),            # x rows (per split)
            pl.BlockSpec((bs * ld, D_MODEL), lambda i: (i, 0)),            # y rows (per split)
            pl.BlockSpec((bs, N_HEADS, le, le), lambda i: (i, 0, 0, 0)),   # enc self-attn bias
            pl.BlockSpec((bs, N_HEADS, ld, le), lambda i: (i, 0, 0, 0)),   # cross-attn bias
            pl.BlockSpec(dec_bias.shape, lambda i: (0, 0, 0)),             # dec self-attn bias
            pl.BlockSpec(emb_lm.shape, lambda i: (0, 0)),                  # LM head (D, 128)
            pl.BlockSpec(ln_all.shape, lambda i: (0, 0)),                  # all RMSNorm gains
            pl.BlockSpec(attn_w.shape, lambda i: (0, 0, 0)),               # packed attn weights
            pl.BlockSpec(ffn_w.shape, lambda i: (0, 0, 0)),                # packed FFN weights
        ],
        out_specs=pl.BlockSpec((bs * ld, V_PAD), lambda i: (i, 0)),
        compiler_params=pltpu.CompilerParams(dimension_semantics=("parallel",)),
    )(x_rows, y_rows, enc_bias, cross_bias, dec_bias, emb_lm, ln_all, attn_w, ffn_w)

    return packed[:, :VOCAB].reshape(b, ld, VOCAB)


# ------------------------------ parameter init --------------------------------
def init_params(key):
    keys = iter(jax.random.split(key, 64))

    def dense(shape, scale=0.05):
        return jax.random.normal(next(keys), shape, jnp.float32) * scale

    def ln():
        return jnp.ones((D_MODEL,), jnp.float32)

    def enc_layer():
        return dict(ln_sa=ln(),
                    wq=dense((D_MODEL, HD)), wk=dense((D_MODEL, HD)), wv=dense((D_MODEL, HD)),
                    wo=dense((HD, D_MODEL)),
                    ln_ff=ln(), wi=dense((D_MODEL, D_FF)), wf=dense((D_FF, D_MODEL)))

    def dec_layer():
        d = enc_layer()
        d.update(ln_ca=ln(),
                 cq=dense((D_MODEL, HD)), ck=dense((D_MODEL, HD)), cv=dense((D_MODEL, HD)),
                 co=dense((HD, D_MODEL)))
        return d

    return dict(
        embed=dense((VOCAB, D_MODEL), 0.1),
        rel_bias_enc=dense((REL_BUCKETS, N_HEADS), 0.1),
        rel_bias_dec=dense((REL_BUCKETS, N_HEADS), 0.1),
        enc_final_ln=ln(), dec_final_ln=ln(),
        enc=dict(layers=[enc_layer() for _ in range(N_LAYERS)]),
        dec=dict(layers=[dec_layer() for _ in range(N_LAYERS)]),
    )


# TODO(synk): generate()/beam-search, prefix_allowed_tokens_fn and the train/valid loss &
# metric steps have no Pallas equivalent here; only the forward pass (logits -> log-probs)
# is implemented.

if __name__ == "__main__":
    B, L_ENC, L_DEC = 2, 8, 8
    root = jax.random.PRNGKey(0)
    k_param, k_in, k_lab = jax.random.split(root, 3)

    params = init_params(k_param)
    prepared = prepare(params, L_ENC, L_DEC)   # one-time packing, outside the jitted step

    input_ids = jax.random.randint(k_in, (B, L_ENC), 0, VOCAB, dtype=jnp.int32)
    attention_mask = jnp.ones((B, L_ENC), jnp.int32).at[1, 6:].set(0)  # pad tail of example 1
    labels = jax.random.randint(k_lab, (B, L_DEC), 1, VOCAB, dtype=jnp.int32)

    fwd = jax.jit(t5_extractor_forward)
    lm_logprobs = fwd(prepared, input_ids, attention_mask, labels)
    jax.block_until_ready(lm_logprobs)

    assert lm_logprobs.shape == (B, L_DEC, VOCAB)
    # log-softmax rows must (log-)sum to ~0
    row_lse = jax.scipy.special.logsumexp(lm_logprobs, axis=-1)
    assert bool(jnp.all(jnp.abs(row_lse) < 1e-4))
    print("KERNEL_OK")
</pallas_src>

<mosaic_0001>
module attributes {stable_mosaic.version = 11 : i64} {
  func.func @_t5_fused_kernel(%arg0: i32, %arg1: memref<16x32xf32, #tpu.memory_space<vmem>>, %arg2: memref<16x32xf32, #tpu.memory_space<vmem>>, %arg3: memref<2x4x8x8xf32, #tpu.memory_space<vmem>>, %arg4: memref<2x4x8x8xf32, #tpu.memory_space<vmem>>, %arg5: memref<4x8x8xf32, #tpu.memory_space<vmem>>, %arg6: memref<32x128xf32, #tpu.memory_space<vmem>>, %arg7: memref<12x32xf32, #tpu.memory_space<vmem>>, %arg8: memref<96x32x8xf32, #tpu.memory_space<vmem>>, %arg9: memref<8x32x64xf32, #tpu.memory_space<vmem>>, %arg10: memref<16x128xf32, #tpu.memory_space<vmem>>) attributes {dimension_semantics = [#tpu.dimension_semantics<parallel>], iteration_bounds = array<i64: 1>, scalar_prefetch = 0 : i64, scratch_operands = 0 : i64, tpu.core_type = #tpu.core_type<tc>, window_params = [{transform_indices = @transform_0, window_bounds = array<i64: 16, 32>}, {transform_indices = @transform_1, window_bounds = array<i64: 16, 32>}, {transform_indices = @transform_2, window_bounds = array<i64: 2, 4, 8, 8>}, {transform_indices = @transform_3, window_bounds = array<i64: 2, 4, 8, 8>}, {pipeline_mode = #tpu.pipeline_mode<synchronous>, transform_indices = @transform_4, window_bounds = array<i64: 4, 8, 8>}, {pipeline_mode = #tpu.pipeline_mode<synchronous>, transform_indices = @transform_5, window_bounds = array<i64: 32, 128>}, {pipeline_mode = #tpu.pipeline_mode<synchronous>, transform_indices = @transform_6, window_bounds = array<i64: 12, 32>}, {pipeline_mode = #tpu.pipeline_mode<synchronous>, transform_indices = @transform_7, window_bounds = array<i64: 96, 32, 8>}, {pipeline_mode = #tpu.pipeline_mode<synchronous>, transform_indices = @transform_8, window_bounds = array<i64: 8, 32, 64>}, {transform_indices = @transform_9, window_bounds = array<i64: 16, 128>}]} {
    %c0 = arith.constant 0 : index
    %c0_0 = arith.constant 0 : index
    %c0_1 = arith.constant 0 : index
    %c0_2 = arith.constant 0 : index
    %0 = vector.load %arg3[%c0, %c0_0, %c0_1, %c0_2] : memref<2x4x8x8xf32, #tpu.memory_space<vmem>>, vector<2x4x8x8xf32>
    %c0_3 = arith.constant 0 : index
    %c0_4 = arith.constant 0 : index
    %c0_5 = arith.constant 0 : index
    %c0_6 = arith.constant 0 : index
    %1 = vector.load %arg4[%c0_3, %c0_4, %c0_5, %c0_6] : memref<2x4x8x8xf32, #tpu.memory_space<vmem>>, vector<2x4x8x8xf32>
    %c0_7 = arith.constant 0 : index
    %c0_8 = arith.constant 0 : index
    %c0_9 = arith.constant 0 : index
    %2 = vector.load %arg5[%c0_7, %c0_8, %c0_9] : memref<4x8x8xf32, #tpu.memory_space<vmem>>, vector<4x8x8xf32>
    %c0_10 = arith.constant 0 : index
    %c0_11 = arith.constant 0 : index
    %3 = vector.load %arg1[%c0_10, %c0_11] : memref<16x32xf32, #tpu.memory_space<vmem>>, vector<16x32xf32>
    %c0_12 = arith.constant 0 : index
    %c0_13 = arith.constant 0 : index
    %4 = vector.load %arg7[%c0_12, %c0_13] : memref<12x32xf32, #tpu.memory_space<vmem>>, vector<1x32xf32>
    %5 = arith.mulf %3, %3 : vector<16x32xf32>
    %cst = arith.constant dense<0.000000e+00> : vector<16xf32>
    %6 = vector.multi_reduction <add>, %5, %cst [1] : vector<16x32xf32> to vector<16xf32>
    %7 = vector.shape_cast %6 : vector<16xf32> to vector<16x1xf32>
    %cst_14 = arith.constant 3.200000e+01 : f32
    %8 = vector.broadcast %cst_14 : f32 to vector<16x1xf32>
    %9 = arith.divf %7, %8 : vector<16x1xf32>
    %cst_15 = arith.constant 9.99999997E-7 : f32
    %10 = vector.broadcast %cst_15 : f32 to vector<16x1xf32>
    %11 = arith.addf %9, %10 : vector<16x1xf32>
    %12 = math.rsqrt %11 : vector<16x1xf32>
    %13 = vector.broadcast %12 : vector<16x1xf32> to vector<16x32xf32>
    %14 = arith.mulf %3, %13 : vector<16x32xf32>
    %15 = vector.broadcast %4 : vector<1x32xf32> to vector<16x32xf32>
    %16 = arith.mulf %14, %15 : vector<16x32xf32>
    %c0_16 = arith.constant 0 : index
    %c0_17 = arith.constant 0 : index
    %c0_18 = arith.constant 0 : index
    %17 = vector.load %arg8[%c0_16, %c0_17, %c0_18] : memref<96x32x8xf32, #tpu.memory_space<vmem>>, vector<12x32x8xf32>
    %c12 = arith.constant 12 : index
    %c0_19 = arith.constant 0 : index
    %c0_20 = arith.constant 0 : index
    %18 = vector.load %arg8[%c12, %c0_19, %c0_20] : memref<96x32x8xf32, #tpu.memory_space<vmem>>, vector<4x32x8xf32>
    %19 = vector.shape_cast %16 : vector<16x32xf32> to vector<1x16x32xf32>
    %20 = vector.broadcast %19 : vector<1x16x32xf32> to vector<12x16x32xf32>
    %cst_21 = arith.constant dense<0.000000e+00> : vector<12x16x8xf32>
    %21 = tpu.matmul %20, %17, %cst_21 {dimension_numbers = #tpu.dot_dimension_numbers<[2], [1], [1], [2], [0, 0, 0, 1, 1, 2], [0], [0]>} : vector<12x16x32xf32>, vector<12x32x8xf32>, vector<12x16x8xf32> -> vector<12x16x8xf32>
    %22 = vector.extract_strided_slice %21 {offsets = [0, 0, 0], sizes = [4, 8, 8], strides = [1, 1, 1]} : vector<12x16x8xf32> to vector<4x8x8xf32>
    %23 = vector.extract_strided_slice %21 {offsets = [4, 0, 0], sizes = [4, 8, 8], strides = [1, 1, 1]} : vector<12x16x8xf32> to vector<4x8x8xf32>
    %24 = vector.extract_strided_slice %21 {offsets = [8, 0, 0], sizes = [4, 8, 8], strides = [1, 1, 1]} : vector<12x16x8xf32> to vector<4x8x8xf32>
    %25 = vector.extract_strided_slice %0 {offsets = [0, 0, 0, 0], sizes = [1, 4, 8, 8], strides = [1, 1, 1, 1]} : vector<2x4x8x8xf32> to vector<1x4x8x8xf32>
    %26 = vector.shape_cast %25 : vector<1x4x8x8xf32> to vector<4x8x8xf32>
    %cst_22 = arith.constant dense<0.000000e+00> : vector<4x8x8xf32>
    %27 = tpu.matmul %22, %23, %cst_22 {dimension_numbers = #tpu.dot_dimension_numbers<[2], [2], [1], [1], [0, 0, 0, 1, 1, 1], [0], [0]>} : vector<4x8x8xf32>, vector<4x8x8xf32>, vector<4x8x8xf32> -> vector<4x8x8xf32>
    %28 = arith.addf %27, %26 : vector<4x8x8xf32>
    %cst_23 = arith.constant dense<0xFF800000> : vector<4x8xf32>
    %29 = vector.multi_reduction <maximumf>, %28, %cst_23 [2] : vector<4x8x8xf32> to vector<4x8xf32>
    %30 = vector.shape_cast %29 : vector<4x8xf32> to vector<4x8x1xf32>
    %31 = vector.broadcast %30 : vector<4x8x1xf32> to vector<4x8x8xf32>
    %32 = arith.subf %28, %31 : vector<4x8x8xf32>
    %33 = math.exp %32 : vector<4x8x8xf32>
    %cst_24 = arith.constant dense<0.000000e+00> : vector<4x8xf32>
    %34 = vector.multi_reduction <add>, %33, %cst_24 [2] : vector<4x8x8xf32> to vector<4x8xf32>
    %35 = vector.shape_cast %34 : vector<4x8xf32> to vector<4x8x1xf32>
    %36 = tpu.reciprocal %35 {approx = true} : vector<4x8x1xf32> -> vector<4x8x1xf32>
    %37 = vector.broadcast %36 : vector<4x8x1xf32> to vector<4x8x8xf32>
    %38 = arith.mulf %33, %37 : vector<4x8x8xf32>
    %cst_25 = arith.constant dense<0.000000e+00> : vector<4x8x8xf32>
    %39 = tpu.matmul %38, %24, %cst_25 {dimension_numbers = #tpu.dot_dimension_numbers<[2], [1], [1], [2], [0, 0, 0, 1, 1, 2], [0], [0]>} : vector<4x8x8xf32>, vector<4x8x8xf32>, vector<4x8x8xf32> -> vector<4x8x8xf32>
    %cst_26 = arith.constant dense<0.000000e+00> : vector<4x8x32xf32>
    %40 = tpu.matmul %39, %18, %cst_26 {dimension_numbers = #tpu.dot_dimension_numbers<[2], [2], [1], [1], [0, 0, 0, 1, 1, 1], [0], [0]>} : vector<4x8x8xf32>, vector<4x32x8xf32>, vector<4x8x32xf32> -> vector<4x8x32xf32>
    %cst_27 = arith.constant dense<0.000000e+00> : vector<8x32xf32>
    %41 = vector.multi_reduction <add>, %40, %cst_27 [0] : vector<4x8x32xf32> to vector<8x32xf32>
    %42 = vector.extract_strided_slice %21 {offsets = [0, 8, 0], sizes = [4, 8, 8], strides = [1, 1, 1]} : vector<12x16x8xf32> to vector<4x8x8xf32>
    %43 = vector.extract_strided_slice %21 {offsets = [4, 8, 0], sizes = [4, 8, 8], strides = [1, 1, 1]} : vector<12x16x8xf32> to vector<4x8x8xf32>
    %44 = vector.extract_strided_slice %21 {offsets = [8, 8, 0], sizes = [4, 8, 8], strides = [1, 1, 1]} : vector<12x16x8xf32> to vector<4x8x8xf32>
    %45 = vector.extract_strided_slice %0 {offsets = [1, 0, 0, 0], sizes = [1, 4, 8, 8], strides = [1, 1, 1, 1]} : vector<2x4x8x8xf32> to vector<1x4x8x8xf32>
    %46 = vector.shape_cast %45 : vector<1x4x8x8xf32> to vector<4x8x8xf32>
    %cst_28 = arith.constant dense<0.000000e+00> : vector<4x8x8xf32>
    %47 = tpu.matmul %42, %43, %cst_28 {dimension_numbers = #tpu.dot_dimension_numbers<[2], [2], [1], [1], [0, 0, 0, 1, 1, 1], [0], [0]>} : vector<4x8x8xf32>, vector<4x8x8xf32>, vector<4x8x8xf32> -> vector<4x8x8xf32>
    %48 = arith.addf %47, %46 : vector<4x8x8xf32>
    %cst_29 = arith.constant dense<0xFF800000> : vector<4x8xf32>
    %49 = vector.multi_reduction <maximumf>, %48, %cst_29 [2] : vector<4x8x8xf32> to vector<4x8xf32>
    %50 = vector.shape_cast %49 : vector<4x8xf32> to vector<4x8x1xf32>
    %51 = vector.broadcast %50 : vector<4x8x1xf32> to vector<4x8x8xf32>
    %52 = arith.subf %48, %51 : vector<4x8x8xf32>
    %53 = math.exp %52 : vector<4x8x8xf32>
    %cst_30 = arith.constant dense<0.000000e+00> : vector<4x8xf32>
    %54 = vector.multi_reduction <add>, %53, %cst_30 [2] : vector<4x8x8xf32> to vector<4x8xf32>
    %55 = vector.shape_cast %54 : vector<4x8xf32> to vector<4x8x1xf32>
    %56 = tpu.reciprocal %55 {approx = true} : vector<4x8x1xf32> -> vector<4x8x1xf32>
    %57 = vector.broadcast %56 : vector<4x8x1xf32> to vector<4x8x8xf32>
    %58 = arith.mulf %53, %57 : vector<4x8x8xf32>
    %cst_31 = arith.constant dense<0.000000e+00> : vector<4x8x8xf32>
    %59 = tpu.matmul %58, %44, %cst_31 {dimension_numbers = #tpu.dot_dimension_numbers<[2], [1], [1], [2], [0, 0, 0, 1, 1, 2], [0], [0]>} : vector<4x8x8xf32>, vector<4x8x8xf32>, vector<4x8x8xf32> -> vector<4x8x8xf32>
    %cst_32 = arith.constant dense<0.000000e+00> : vector<4x8x32xf32>
    %60 = tpu.matmul %59, %18, %cst_32 {dimension_numbers = #tpu.dot_dimension_numbers<[2], [2], [1], [1], [0, 0, 0, 1, 1, 1], [0], [0]>} : vector<4x8x8xf32>, vector<4x32x8xf32>, vector<4x8x32xf32> -> vector<4x8x32xf32>
    %cst_33 = arith.constant dense<0.000000e+00> : vector<8x32xf32>
    %61 = vector.multi_reduction <add>, %60, %cst_33 [0] : vector<4x8x32xf32> to vector<8x32xf32>
    %62 = tpu.concatenate %41, %61 in 0 : vector<8x32xf32>, vector<8x32xf32> -> vector<16x32xf32>
    %63 = arith.addf %3, %62 : vector<16x32xf32>
    %c1 = arith.constant 1 : index
    %c0_34 = arith.constant 0 : index
    %64 = vector.load %arg7[%c1, %c0_34] : memref<12x32xf32, #tpu.memory_space<vmem>>, vector<1x32xf32>
    %65 = arith.mulf %63, %63 : vector<16x32xf32>
    %cst_35 = arith.constant dense<0.000000e+00> : vector<16xf32>
    %66 = vector.multi_reduction <add>, %65, %cst_35 [1] : vector<16x32xf32> to vector<16xf32>
    %67 = vector.shape_cast %66 : vector<16xf32> to vector<16x1xf32>
    %cst_36 = arith.constant 3.200000e+01 : f32
    %68 = vector.broadcast %cst_36 : f32 to vector<16x1xf32>
    %69 = arith.divf %67, %68 : vector<16x1xf32>
    %cst_37 = arith.constant 9.99999997E-7 : f32
    %70 = vector.broadcast %cst_37 : f32 to vector<16x1xf32>
    %71 = arith.addf %69, %70 : vector<16x1xf32>
    %72 = math.rsqrt %71 : vector<16x1xf32>
    %73 = vector.broadcast %72 : vector<16x1xf32> to vector<16x32xf32>
    %74 = arith.mulf %63, %73 : vector<16x32xf32>
    %75 = vector.broadcast %64 : vector<1x32xf32> to vector<16x32xf32>
    %76 = arith.mulf %74, %75 : vector<16x32xf32>
    %c0_38 = arith.constant 0 : index
    %c0_39 = arith.constant 0 : index
    %c0_40 = arith.constant 0 : index
    %77 = vector.load %arg9[%c0_38, %c0_39, %c0_40] : memref<8x32x64xf32, #tpu.memory_space<vmem>>, vector<1x32x64xf32>
    %78 = vector.shape_cast %77 : vector<1x32x64xf32> to vector<32x64xf32>
    %c1_41 = arith.constant 1 : index
    %c0_42 = arith.constant 0 : index
    %c0_43 = arith.constant 0 : index
    %79 = vector.load %arg9[%c1_41, %c0_42, %c0_43] : memref<8x32x64xf32, #tpu.memory_space<vmem>>, vector<1x32x64xf32>
    %80 = vector.shape_cast %79 : vector<1x32x64xf32> to vector<32x64xf32>
    %cst_44 = arith.constant dense<0.000000e+00> : vector<16x64xf32>
    %81 = tpu.matmul %76, %78, %cst_44 {dimension_numbers = #tpu.dot_dimension_numbers<[1], [0], [0], [1], [0, 0, 1, 1], [], []>} : vector<16x32xf32>, vector<32x64xf32>, vector<16x64xf32> -> vector<16x64xf32>
    %cst_45 = arith.constant 0.000000e+00 : f32
    %82 = vector.broadcast %cst_45 : f32 to vector<16x64xf32>
    %83 = arith.maximumf %81, %82 : vector<16x64xf32>
    %cst_46 = arith.constant dense<0.000000e+00> : vector<16x32xf32>
    %84 = tpu.matmul %83, %80, %cst_46 {dimension_numbers = #tpu.dot_dimension_numbers<[1], [1], [0], [0], [0, 0, 1, 0], [], []>} : vector<16x64xf32>, vector<32x64xf32>, vector<16x32xf32> -> vector<16x32xf32>
    %85 = arith.addf %63, %84 : vector<16x32xf32>
    %c2 = arith.constant 2 : index
    %c0_47 = arith.constant 0 : index
    %86 = vector.load %arg7[%c2, %c0_47] : memref<12x32xf32, #tpu.memory_space<vmem>>, vector<1x32xf32>
    %87 = arith.mulf %85, %85 : vector<16x32xf32>
    %cst_48 = arith.constant dense<0.000000e+00> : vector<16xf32>
    %88 = vector.multi_reduction <add>, %87, %cst_48 [1] : vector<16x32xf32> to vector<16xf32>
    %89 = vector.shape_cast %88 : vector<16xf32> to vector<16x1xf32>
    %cst_49 = arith.constant 3.200000e+01 : f32
    %90 = vector.broadcast %cst_49 : f32 to vector<16x1xf32>
    %91 = arith.divf %89, %90 : vector<16x1xf32>
    %cst_50 = arith.constant 9.99999997E-7 : f32
    %92 = vector.broadcast %cst_50 : f32 to vector<16x1xf32>
    %93 = arith.addf %91, %92 : vector<16x1xf32>
    %94 = math.rsqrt %93 : vector<16x1xf32>
    %95 = vector.broadcast %94 : vector<16x1xf32> to vector<16x32xf32>
    %96 = arith.mulf %85, %95 : vector<16x32xf32>
    %97 = vector.broadcast %86 : vector<1x32xf32> to vector<16x32xf32>
    %98 = arith.mulf %96, %97 : vector<16x32xf32>
    %c16 = arith.constant 16 : index
    %c0_51 = arith.constant 0 : index
    %c0_52 = arith.constant 0 : index
    %99 = vector.load %arg8[%c16, %c0_51, %c0_52] : memref<96x32x8xf32, #tpu.memory_space<vmem>>, vector<12x32x8xf32>
    %c28 = arith.constant 28 : index
    %c0_53 = arith.constant 0 : index
    %c0_54 = arith.constant 0 : index
    %100 = vector.load %arg8[%c28, %c0_53, %c0_54] : memref<96x32x8xf32, #tpu.memory_space<vmem>>, vector<4x32x8xf32>
    %101 = vector.shape_cast %98 : vector<16x32xf32> to vector<1x16x32xf32>
    %102 = vector.broadcast %101 : vector<1x16x32xf32> to vector<12x16x32xf32>
    %cst_55 = arith.constant dense<0.000000e+00> : vector<12x16x8xf32>
    %103 = tpu.matmul %102, %99, %cst_55 {dimension_numbers = #tpu.dot_dimension_numbers<[2], [1], [1], [2], [0, 0, 0, 1, 1, 2], [0], [0]>} : vector<12x16x32xf32>, vector<12x32x8xf32>, vector<12x16x8xf32> -> vector<12x16x8xf32>
    %104 = vector.extract_strided_slice %103 {offsets = [0, 0, 0], sizes = [4, 8, 8], strides = [1, 1, 1]} : vector<12x16x8xf32> to vector<4x8x8xf32>
    %105 = vector.extract_strided_slice %103 {offsets = [4, 0, 0], sizes = [4, 8, 8], strides = [1, 1, 1]} : vector<12x16x8xf32> to vector<4x8x8xf32>
    %106 = vector.extract_strided_slice %103 {offsets = [8, 0, 0], sizes = [4, 8, 8], strides = [1, 1, 1]} : vector<12x16x8xf32> to vector<4x8x8xf32>
    %107 = vector.extract_strided_slice %0 {offsets = [0, 0, 0, 0], sizes = [1, 4, 8, 8], strides = [1, 1, 1, 1]} : vector<2x4x8x8xf32> to vector<1x4x8x8xf32>
    %108 = vector.shape_cast %107 : vector<1x4x8x8xf32> to vector<4x8x8xf32>
    %cst_56 = arith.constant dense<0.000000e+00> : vector<4x8x8xf32>
    %109 = tpu.matmul %104, %105, %cst_56 {dimension_numbers = #tpu.dot_dimension_numbers<[2], [2], [1], [1], [0, 0, 0, 1, 1, 1], [0], [0]>} : vector<4x8x8xf32>, vector<4x8x8xf32>, vector<4x8x8xf32> -> vector<4x8x8xf32>
    %110 = arith.addf %109, %108 : vector<4x8x8xf32>
    %cst_57 = arith.constant dense<0xFF800000> : vector<4x8xf32>
    %111 = vector.multi_reduction <maximumf>, %110, %cst_57 [2] : vector<4x8x8xf32> to vector<4x8xf32>
    %112 = vector.shape_cast %111 : vector<4x8xf32> to vector<4x8x1xf32>
    %113 = vector.broadcast %112 : vector<4x8x1xf32> to vector<4x8x8xf32>
    %114 = arith.subf %110, %113 : vector<4x8x8xf32>
    %115 = math.exp %114 : vector<4x8x8xf32>
    %cst_58 = arith.constant dense<0.000000e+00> : vector<4x8xf32>
    %116 = vector.multi_reduction <add>, %115, %cst_58 [2] : vector<4x8x8xf32> to vector<4x8xf32>
    %117 = vector.shape_cast %116 : vector<4x8xf32> to vector<4x8x1xf32>
    %118 = tpu.reciprocal %117 {approx = true} : vector<4x8x1xf32> -> vector<4x8x1xf32>
    %119 = vector.broadcast %118 : vector<4x8x1xf32> to vector<4x8x8xf32>
    %120 = arith.mulf %115, %119 : vector<4x8x8xf32>
    %cst_59 = arith.constant dense<0.000000e+00> : vector<4x8x8xf32>
    %121 = tpu.matmul %120, %106, %cst_59 {dimension_numbers = #tpu.dot_dimension_numbers<[2], [1], [1], [2], [0, 0, 0, 1, 1, 2], [0], [0]>} : vector<4x8x8xf32>, vector<4x8x8xf32>, vector<4x8x8xf32> -> vector<4x8x8xf32>
    %cst_60 = arith.constant dense<0.000000e+00> : vector<4x8x32xf32>
    %122 = tpu.matmul %121, %100, %cst_60 {dimension_numbers = #tpu.dot_dimension_numbers<[2], [2], [1], [1], [0, 0, 0, 1, 1, 1], [0], [0]>} : vector<4x8x8xf32>, vector<4x32x8xf32>, vector<4x8x32xf32> -> vector<4x8x32xf32>
    %cst_61 = arith.constant dense<0.000000e+00> : vector<8x32xf32>
    %123 = vector.multi_reduction <add>, %122, %cst_61 [0] : vector<4x8x32xf32> to vector<8x32xf32>
    %124 = vector.extract_strided_slice %103 {offsets = [0, 8, 0], sizes = [4, 8, 8], strides = [1, 1, 1]} : vector<12x16x8xf32> to vector<4x8x8xf32>
    %125 = vector.extract_strided_slice %103 {offsets = [4, 8, 0], sizes = [4, 8, 8], strides = [1, 1, 1]} : vector<12x16x8xf32> to vector<4x8x8xf32>
    %126 = vector.extract_strided_slice %103 {offsets = [8, 8, 0], sizes = [4, 8, 8], strides = [1, 1, 1]} : vector<12x16x8xf32> to vector<4x8x8xf32>
    %127 = vector.extract_strided_slice %0 {offsets = [1, 0, 0, 0], sizes = [1, 4, 8, 8], strides = [1, 1, 1, 1]} : vector<2x4x8x8xf32> to vector<1x4x8x8xf32>
    %128 = vector.shape_cast %127 : vector<1x4x8x8xf32> to vector<4x8x8xf32>
    %cst_62 = arith.constant dense<0.000000e+00> : vector<4x8x8xf32>
    %129 = tpu.matmul %124, %125, %cst_62 {dimension_numbers = #tpu.dot_dimension_numbers<[2], [2], [1], [1], [0, 0, 0, 1, 1, 1], [0], [0]>} : vector<4x8x8xf32>, vector<4x8x8xf32>, vector<4x8x8xf32> -> vector<4x8x8xf32>
    %130 = arith.addf %129, %128 : vector<4x8x8xf32>
    %cst_63 = arith.constant dense<0xFF800000> : vector<4x8xf32>
    %131 = vector.multi_reduction <maximumf>, %130, %cst_63 [2] : vector<4x8x8xf32> to vector<4x8xf32>
    %132 = vector.shape_cast %131 : vector<4x8xf32> to vector<4x8x1xf32>
    %133 = vector.broadcast %132 : vector<4x8x1xf32> to vector<4x8x8xf32>
    %134 = arith.subf %130, %133 : vector<4x8x8xf32>
    %135 = math.exp %134 : vector<4x8x8xf32>
    %cst_64 = arith.constant dense<0.000000e+00> : vector<4x8xf32>
    %136 = vector.multi_reduction <add>, %135, %cst_64 [2] : vector<4x8x8xf32> to vector<4x8xf32>
    %137 = vector.shape_cast %136 : vector<4x8xf32> to vector<4x8x1xf32>
    %138 = tpu.reciprocal %137 {approx = true} : vector<4x8x1xf32> -> vector<4x8x1xf32>
    %139 = vector.broadcast %138 : vector<4x8x1xf32> to vector<4x8x8xf32>
    %140 = arith.mulf %135, %139 : vector<4x8x8xf32>
    %cst_65 = arith.constant dense<0.000000e+00> : vector<4x8x8xf32>
    %141 = tpu.matmul %140, %126, %cst_65 {dimension_numbers = #tpu.dot_dimension_numbers<[2], [1], [1], [2], [0, 0, 0, 1, 1, 2], [0], [0]>} : vector<4x8x8xf32>, vector<4x8x8xf32>, vector<4x8x8xf32> -> vector<4x8x8xf32>
    %cst_66 = arith.constant dense<0.000000e+00> : vector<4x8x32xf32>
    %142 = tpu.matmul %141, %100, %cst_66 {dimension_numbers = #tpu.dot_dimension_numbers<[2], [2], [1], [1], [0, 0, 0, 1, 1, 1], [0], [0]>} : vector<4x8x8xf32>, vector<4x32x8xf32>, vector<4x8x32xf32> -> vector<4x8x32xf32>
    %cst_67 = arith.constant dense<0.000000e+00> : vector<8x32xf32>
    %143 = vector.multi_reduction <add>, %142, %cst_67 [0] : vector<4x8x32xf32> to vector<8x32xf32>
    %144 = tpu.concatenate %123, %143 in 0 : vector<8x32xf32>, vector<8x32xf32> -> vector<16x32xf32>
    %145 = arith.addf %85, %144 : vector<16x32xf32>
    %c3 = arith.constant 3 : index
    %c0_68 = arith.constant 0 : index
    %146 = vector.load %arg7[%c3, %c0_68] : memref<12x32xf32, #tpu.memory_space<vmem>>, vector<1x32xf32>
    %147 = arith.mulf %145, %145 : vector<16x32xf32>
    %cst_69 = arith.constant dense<0.000000e+00> : vector<16xf32>
    %148 = vector.multi_reduction <add>, %147, %cst_69 [1] : vector<16x32xf32> to vector<16xf32>
    %149 = vector.shape_cast %148 : vector<16xf32> to vector<16x1xf32>
    %cst_70 = arith.constant 3.200000e+01 : f32
    %150 = vector.broadcast %cst_70 : f32 to vector<16x1xf32>
    %151 = arith.divf %149, %150 : vector<16x1xf32>
    %cst_71 = arith.constant 9.99999997E-7 : f32
    %152 = vector.broadcast %cst_71 : f32 to vector<16x1xf32>
    %153 = arith.addf %151, %152 : vector<16x1xf32>
    %154 = math.rsqrt %153 : vector<16x1xf32>
    %155 = vector.broadcast %154 : vector<16x1xf32> to vector<16x32xf32>
    %156 = arith.mulf %145, %155 : vector<16x32xf32>
    %157 = vector.broadcast %146 : vector<1x32xf32> to vector<16x32xf32>
    %158 = arith.mulf %156, %157 : vector<16x32xf32>
    %c2_72 = arith.constant 2 : index
    %c0_73 = arith.constant 0 : index
    %c0_74 = arith.constant 0 : index
    %159 = vector.load %arg9[%c2_72, %c0_73, %c0_74] : memref<8x32x64xf32, #tpu.memory_space<vmem>>, vector<1x32x64xf32>
    %160 = vector.shape_cast %159 : vector<1x32x64xf32> to vector<32x64xf32>
    %c3_75 = arith.constant 3 : index
    %c0_76 = arith.constant 0 : index
    %c0_77 = arith.constant 0 : index
    %161 = vector.load %arg9[%c3_75, %c0_76, %c0_77] : memref<8x32x64xf32, #tpu.memory_space<vmem>>, vector<1x32x64xf32>
    %162 = vector.shape_cast %161 : vector<1x32x64xf32> to vector<32x64xf32>
    %cst_78 = arith.constant dense<0.000000e+00> : vector<16x64xf32>
    %163 = tpu.matmul %158, %160, %cst_78 {dimension_numbers = #tpu.dot_dimension_numbers<[1], [0], [0], [1], [0, 0, 1, 1], [], []>} : vector<16x32xf32>, vector<32x64xf32>, vector<16x64xf32> -> vector<16x64xf32>
    %cst_79 = arith.constant 0.000000e+00 : f32
    %164 = vector.broadcast %cst_79 : f32 to vector<16x64xf32>
    %165 = arith.maximumf %163, %164 : vector<16x64xf32>
    %cst_80 = arith.constant dense<0.000000e+00> : vector<16x32xf32>
    %166 = tpu.matmul %165, %162, %cst_80 {dimension_numbers = #tpu.dot_dimension_numbers<[1], [1], [0], [0], [0, 0, 1, 0], [], []>} : vector<16x64xf32>, vector<32x64xf32>, vector<16x32xf32> -> vector<16x32xf32>
    %167 = arith.addf %145, %166 : vector<16x32xf32>
    %c4 = arith.constant 4 : index
    %c0_81 = arith.constant 0 : index
    %168 = vector.load %arg7[%c4, %c0_81] : memref<12x32xf32, #tpu.memory_space<vmem>>, vector<1x32xf32>
    %169 = arith.mulf %167, %167 : vector<16x32xf32>
    %cst_82 = arith.constant dense<0.000000e+00> : vector<16xf32>
    %170 = vector.multi_reduction <add>, %169, %cst_82 [1] : vector<16x32xf32> to vector<16xf32>
    %171 = vector.shape_cast %170 : vector<16xf32> to vector<16x1xf32>
    %cst_83 = arith.constant 3.200000e+01 : f32
    %172 = vector.broadcast %cst_83 : f32 to vector<16x1xf32>
    %173 = arith.divf %171, %172 : vector<16x1xf32>
    %cst_84 = arith.constant 9.99999997E-7 : f32
    %174 = vector.broadcast %cst_84 : f32 to vector<16x1xf32>
    %175 = arith.addf %173, %174 : vector<16x1xf32>
    %176 = math.rsqrt %175 : vector<16x1xf32>
    %177 = vector.broadcast %176 : vector<16x1xf32> to vector<16x32xf32>
    %178 = arith.mulf %167, %177 : vector<16x32xf32>
    %179 = vector.broadcast %168 : vector<1x32xf32> to vector<16x32xf32>
    %180 = arith.mulf %178, %179 : vector<16x32xf32>
    %c0_85 = arith.constant 0 : index
    %c0_86 = arith.constant 0 : index
    %181 = vector.load %arg2[%c0_85, %c0_86] : memref<16x32xf32, #tpu.memory_space<vmem>>, vector<16x32xf32>
    %c5 = arith.constant 5 : index
    %c0_87 = arith.constant 0 : index
    %182 = vector.load %arg7[%c5, %c0_87] : memref<12x32xf32, #tpu.memory_space<vmem>>, vector<1x32xf32>
    %183 = arith.mulf %181, %181 : vector<16x32xf32>
    %cst_88 = arith.constant dense<0.000000e+00> : vector<16xf32>
    %184 = vector.multi_reduction <add>, %183, %cst_88 [1] : vector<16x32xf32> to vector<16xf32>
    %185 = vector.shape_cast %184 : vector<16xf32> to vector<16x1xf32>
    %cst_89 = arith.constant 3.200000e+01 : f32
    %186 = vector.broadcast %cst_89 : f32 to vector<16x1xf32>
    %187 = arith.divf %185, %186 : vector<16x1xf32>
    %cst_90 = arith.constant 9.99999997E-7 : f32
    %188 = vector.broadcast %cst_90 : f32 to vector<16x1xf32>
    %189 = arith.addf %187, %188 : vector<16x1xf32>
    %190 = math.rsqrt %189 : vector<16x1xf32>
    %191 = vector.broadcast %190 : vector<16x1xf32> to vector<16x32xf32>
    %192 = arith.mulf %181, %191 : vector<16x32xf32>
    %193 = vector.broadcast %182 : vector<1x32xf32> to vector<16x32xf32>
    %194 = arith.mulf %192, %193 : vector<16x32xf32>
    %c32 = arith.constant 32 : index
    %c0_91 = arith.constant 0 : index
    %c0_92 = arith.constant 0 : index
    %195 = vector.load %arg8[%c32, %c0_91, %c0_92] : memref<96x32x8xf32, #tpu.memory_space<vmem>>, vector<12x32x8xf32>
    %c44 = arith.constant 44 : index
    %c0_93 = arith.constant 0 : index
    %c0_94 = arith.constant 0 : index
    %196 = vector.load %arg8[%c44, %c0_93, %c0_94] : memref<96x32x8xf32, #tpu.memory_space<vmem>>, vector<4x32x8xf32>
    %197 = vector.shape_cast %194 : vector<16x32xf32> to vector<1x16x32xf32>
    %198 = vector.broadcast %197 : vector<1x16x32xf32> to vector<12x16x32xf32>
    %cst_95 = arith.constant dense<0.000000e+00> : vector<12x16x8xf32>
    %199 = tpu.matmul %198, %195, %cst_95 {dimension_numbers = #tpu.dot_dimension_numbers<[2], [1], [1], [2], [0, 0, 0, 1, 1, 2], [0], [0]>} : vector<12x16x32xf32>, vector<12x32x8xf32>, vector<12x16x8xf32> -> vector<12x16x8xf32>
    %200 = vector.extract_strided_slice %199 {offsets = [0, 0, 0], sizes = [4, 8, 8], strides = [1, 1, 1]} : vector<12x16x8xf32> to vector<4x8x8xf32>
    %201 = vector.extract_strided_slice %199 {offsets = [4, 0, 0], sizes = [4, 8, 8], strides = [1, 1, 1]} : vector<12x16x8xf32> to vector<4x8x8xf32>
    %202 = vector.extract_strided_slice %199 {offsets = [8, 0, 0], sizes = [4, 8, 8], strides = [1, 1, 1]} : vector<12x16x8xf32> to vector<4x8x8xf32>
    %cst_96 = arith.constant dense<0.000000e+00> : vector<4x8x8xf32>
    %203 = tpu.matmul %200, %201, %cst_96 {dimension_numbers = #tpu.dot_dimension_numbers<[2], [2], [1], [1], [0, 0, 0, 1, 1, 1], [0], [0]>} : vector<4x8x8xf32>, vector<4x8x8xf32>, vector<4x8x8xf32> -> vector<4x8x8xf32>
    %204 = arith.addf %203, %2 : vector<4x8x8xf32>
    %cst_97 = arith.constant dense<0xFF800000> : vector<4x8xf32>
    %205 = vector.multi_reduction <maximumf>, %204, %cst_97 [2] : vector<4x8x8xf32> to vector<4x8xf32>
    %206 = vector.shape_cast %205 : vector<4x8xf32> to vector<4x8x1xf32>
    %207 = vector.broadcast %206 : vector<4x8x1xf32> to vector<4x8x8xf32>
    %208 = arith.subf %204, %207 : vector<4x8x8xf32>
    %209 = math.exp %208 : vector<4x8x8xf32>
    %cst_98 = arith.constant dense<0.000000e+00> : vector<4x8xf32>
    %210 = vector.multi_reduction <add>, %209, %cst_98 [2] : vector<4x8x8xf32> to vector<4x8xf32>
    %211 = vector.shape_cast %210 : vector<4x8xf32> to vector<4x8x1xf32>
    %212 = tpu.reciprocal %211 {approx = true} : vector<4x8x1xf32> -> vector<4x8x1xf32>
    %213 = vector.broadcast %212 : vector<4x8x1xf32> to vector<4x8x8xf32>
    %214 = arith.mulf %209, %213 : vector<4x8x8xf32>
    %cst_99 = arith.constant dense<0.000000e+00> : vector<4x8x8xf32>
    %215 = tpu.matmul %214, %202, %cst_99 {dimension_numbers = #tpu.dot_dimension_numbers<[2], [1], [1], [2], [0, 0, 0, 1, 1, 2], [0], [0]>} : vector<4x8x8xf32>, vector<4x8x8xf32>, vector<4x8x8xf32> -> vector<4x8x8xf32>
    %cst_100 = arith.constant dense<0.000000e+00> : vector<4x8x32xf32>
    %216 = tpu.matmul %215, %196, %cst_100 {dimension_numbers = #tpu.dot_dimension_numbers<[2], [2], [1], [1], [0, 0, 0, 1, 1, 1], [0], [0]>} : vector<4x8x8xf32>, vector<4x32x8xf32>, vector<4x8x32xf32> -> vector<4x8x32xf32>
    %cst_101 = arith.constant dense<0.000000e+00> : vector<8x32xf32>
    %217 = vector.multi_reduction <add>, %216, %cst_101 [0] : vector<4x8x32xf32> to vector<8x32xf32>
    %218 = vector.extract_strided_slice %199 {offsets = [0, 8, 0], sizes = [4, 8, 8], strides = [1, 1, 1]} : vector<12x16x8xf32> to vector<4x8x8xf32>
    %219 = vector.extract_strided_slice %199 {offsets = [4, 8, 0], sizes = [4, 8, 8], strides = [1, 1, 1]} : vector<12x16x8xf32> to vector<4x8x8xf32>
    %220 = vector.extract_strided_slice %199 {offsets = [8, 8, 0], sizes = [4, 8, 8], strides = [1, 1, 1]} : vector<12x16x8xf32> to vector<4x8x8xf32>
    %cst_102 = arith.constant dense<0.000000e+00> : vector<4x8x8xf32>
    %221 = tpu.matmul %218, %219, %cst_102 {dimension_numbers = #tpu.dot_dimension_numbers<[2], [2], [1], [1], [0, 0, 0, 1, 1, 1], [0], [0]>} : vector<4x8x8xf32>, vector<4x8x8xf32>, vector<4x8x8xf32> -> vector<4x8x8xf32>
    %222 = arith.addf %221, %2 : vector<4x8x8xf32>
    %cst_103 = arith.constant dense<0xFF800000> : vector<4x8xf32>
    %223 = vector.multi_reduction <maximumf>, %222, %cst_103 [2] : vector<4x8x8xf32> to vector<4x8xf32>
    %224 = vector.shape_cast %223 : vector<4x8xf32> to vector<4x8x1xf32>
    %225 = vector.broadcast %224 : vector<4x8x1xf32> to vector<4x8x8xf32>
    %226 = arith.subf %222, %225 : vector<4x8x8xf32>
    %227 = math.exp %226 : vector<4x8x8xf32>
    %cst_104 = arith.constant dense<0.000000e+00> : vector<4x8xf32>
    %228 = vector.multi_reduction <add>, %227, %cst_104 [2] : vector<4x8x8xf32> to vector<4x8xf32>
    %229 = vector.shape_cast %228 : vector<4x8xf32> to vector<4x8x1xf32>
    %230 = tpu.reciprocal %229 {approx = true} : vector<4x8x1xf32> -> vector<4x8x1xf32>
    %231 = vector.broadcast %230 : vector<4x8x1xf32> to vector<4x8x8xf32>
    %232 = arith.mulf %227, %231 : vector<4x8x8xf32>
    %cst_105 = arith.constant dense<0.000000e+00> : vector<4x8x8xf32>
    %233 = tpu.matmul %232, %220, %cst_105 {dimension_numbers = #tpu.dot_dimension_numbers<[2], [1], [1], [2], [0, 0, 0, 1, 1, 2], [0], [0]>} : vector<4x8x8xf32>, vector<4x8x8xf32>, vector<4x8x8xf32> -> vector<4x8x8xf32>
    %cst_106 = arith.constant dense<0.000000e+00> : vector<4x8x32xf32>
    %234 = tpu.matmul %233, %196, %cst_106 {dimension_numbers = #tpu.dot_dimension_numbers<[2], [2], [1], [1], [0, 0, 0, 1, 1, 1], [0], [0]>} : vector<4x8x8xf32>, vector<4x32x8xf32>, vector<4x8x32xf32> -> vector<4x8x32xf32>
    %cst_107 = arith.constant dense<0.000000e+00> : vector<8x32xf32>
    %235 = vector.multi_reduction <add>, %234, %cst_107 [0] : vector<4x8x32xf32> to vector<8x32xf32>
    %236 = tpu.concatenate %217, %235 in 0 : vector<8x32xf32>, vector<8x32xf32> -> vector<16x32xf32>
    %237 = arith.addf %181, %236 : vector<16x32xf32>
    %c6 = arith.constant 6 : index
    %c0_108 = arith.constant 0 : index
    %238 = vector.load %arg7[%c6, %c0_108] : memref<12x32xf32, #tpu.memory_space<vmem>>, vector<1x32xf32>
    %239 = arith.mulf %237, %237 : vector<16x32xf32>
    %cst_109 = arith.constant dense<0.000000e+00> : vector<16xf32>
    %240 = vector.multi_reduction <add>, %239, %cst_109 [1] : vector<16x32xf32> to vector<16xf32>
    %241 = vector.shape_cast %240 : vector<16xf32> to vector<16x1xf32>
    %cst_110 = arith.constant 3.200000e+01 : f32
    %242 = vector.broadcast %cst_110 : f32 to vector<16x1xf32>
    %243 = arith.divf %241, %242 : vector<16x1xf32>
    %cst_111 = arith.constant 9.99999997E-7 : f32
    %244 = vector.broadcast %cst_111 : f32 to vector<16x1xf32>
    %245 = arith.addf %243, %244 : vector<16x1xf32>
    %246 = math.rsqrt %245 : vector<16x1xf32>
    %247 = vector.broadcast %246 : vector<16x1xf32> to vector<16x32xf32>
    %248 = arith.mulf %237, %247 : vector<16x32xf32>
    %249 = vector.broadcast %238 : vector<1x32xf32> to vector<16x32xf32>
    %250 = arith.mulf %248, %249 : vector<16x32xf32>
    %c48 = arith.constant 48 : index
    %c0_112 = arith.constant 0 : index
    %c0_113 = arith.constant 0 : index
    %251 = vector.load %arg8[%c48, %c0_112, %c0_113] : memref<96x32x8xf32, #tpu.memory_space<vmem>>, vector<4x32x8xf32>
    %c52 = arith.constant 52 : index
    %c0_114 = arith.constant 0 : index
    %c0_115 = arith.constant 0 : index
    %252 = vector.load %arg8[%c52, %c0_114, %c0_115] : memref<96x32x8xf32, #tpu.memory_space<vmem>>, vector<8x32x8xf32>
    %c60 = arith.constant 60 : index
    %c0_116 = arith.constant 0 : index
    %c0_117 = arith.constant 0 : index
    %253 = vector.load %arg8[%c60, %c0_116, %c0_117] : memref<96x32x8xf32, #tpu.memory_space<vmem>>, vector<4x32x8xf32>
    %254 = vector.shape_cast %250 : vector<16x32xf32> to vector<1x16x32xf32>
    %255 = vector.broadcast %254 : vector<1x16x32xf32> to vector<4x16x32xf32>
    %cst_118 = arith.constant dense<0.000000e+00> : vector<4x16x8xf32>
    %256 = tpu.matmul %255, %251, %cst_118 {dimension_numbers = #tpu.dot_dimension_numbers<[2], [1], [1], [2], [0, 0, 0, 1, 1, 2], [0], [0]>} : vector<4x16x32xf32>, vector<4x32x8xf32>, vector<4x16x8xf32> -> vector<4x16x8xf32>
    %257 = vector.shape_cast %180 : vector<16x32xf32> to vector<1x16x32xf32>
    %258 = vector.broadcast %257 : vector<1x16x32xf32> to vector<8x16x32xf32>
    %cst_119 = arith.constant dense<0.000000e+00> : vector<8x16x8xf32>
    %259 = tpu.matmul %258, %252, %cst_119 {dimension_numbers = #tpu.dot_dimension_numbers<[2], [1], [1], [2], [0, 0, 0, 1, 1, 2], [0], [0]>} : vector<8x16x32xf32>, vector<8x32x8xf32>, vector<8x16x8xf32> -> vector<8x16x8xf32>
    %260 = vector.extract_strided_slice %256 {offsets = [0, 0, 0], sizes = [4, 8, 8], strides = [1, 1, 1]} : vector<4x16x8xf32> to vector<4x8x8xf32>
    %261 = vector.extract_strided_slice %259 {offsets = [0, 0, 0], sizes = [4, 8, 8], strides = [1, 1, 1]} : vector<8x16x8xf32> to vector<4x8x8xf32>
    %262 = vector.extract_strided_slice %259 {offsets = [4, 0, 0], sizes = [4, 8, 8], strides = [1, 1, 1]} : vector<8x16x8xf32> to vector<4x8x8xf32>
    %263 = vector.extract_strided_slice %1 {offsets = [0, 0, 0, 0], sizes = [1, 4, 8, 8], strides = [1, 1, 1, 1]} : vector<2x4x8x8xf32> to vector<1x4x8x8xf32>
    %264 = vector.shape_cast %263 : vector<1x4x8x8xf32> to vector<4x8x8xf32>
    %cst_120 = arith.constant dense<0.000000e+00> : vector<4x8x8xf32>
    %265 = tpu.matmul %260, %261, %cst_120 {dimension_numbers = #tpu.dot_dimension_numbers<[2], [2], [1], [1], [0, 0, 0, 1, 1, 1], [0], [0]>} : vector<4x8x8xf32>, vector<4x8x8xf32>, vector<4x8x8xf32> -> vector<4x8x8xf32>
    %266 = arith.addf %265, %264 : vector<4x8x8xf32>
    %cst_121 = arith.constant dense<0xFF800000> : vector<4x8xf32>
    %267 = vector.multi_reduction <maximumf>, %266, %cst_121 [2] : vector<4x8x8xf32> to vector<4x8xf32>
    %268 = vector.shape_cast %267 : vector<4x8xf32> to vector<4x8x1xf32>
    %269 = vector.broadcast %268 : vector<4x8x1xf32> to vector<4x8x8xf32>
    %270 = arith.subf %266, %269 : vector<4x8x8xf32>
    %271 = math.exp %270 : vector<4x8x8xf32>
    %cst_122 = arith.constant dense<0.000000e+00> : vector<4x8xf32>
    %272 = vector.multi_reduction <add>, %271, %cst_122 [2] : vector<4x8x8xf32> to vector<4x8xf32>
    %273 = vector.shape_cast %272 : vector<4x8xf32> to vector<4x8x1xf32>
    %274 = tpu.reciprocal %273 {approx = true} : vector<4x8x1xf32> -> vector<4x8x1xf32>
    %275 = vector.broadcast %274 : vector<4x8x1xf32> to vector<4x8x8xf32>
    %276 = arith.mulf %271, %275 : vector<4x8x8xf32>
    %cst_123 = arith.constant dense<0.000000e+00> : vector<4x8x8xf32>
    %277 = tpu.matmul %276, %262, %cst_123 {dimension_numbers = #tpu.dot_dimension_numbers<[2], [1], [1], [2], [0, 0, 0, 1, 1, 2], [0], [0]>} : vector<4x8x8xf32>, vector<4x8x8xf32>, vector<4x8x8xf32> -> vector<4x8x8xf32>
    %cst_124 = arith.constant dense<0.000000e+00> : vector<4x8x32xf32>
    %278 = tpu.matmul %277, %253, %cst_124 {dimension_numbers = #tpu.dot_dimension_numbers<[2], [2], [1], [1], [0, 0, 0, 1, 1, 1], [0], [0]>} : vector<4x8x8xf32>, vector<4x32x8xf32>, vector<4x8x32xf32> -> vector<4x8x32xf32>
    %cst_125 = arith.constant dense<0.000000e+00> : vector<8x32xf32>
    %279 = vector.multi_reduction <add>, %278, %cst_125 [0] : vector<4x8x32xf32> to vector<8x32xf32>
    %280 = vector.extract_strided_slice %256 {offsets = [0, 8, 0], sizes = [4, 8, 8], strides = [1, 1, 1]} : vector<4x16x8xf32> to vector<4x8x8xf32>
    %281 = vector.extract_strided_slice %259 {offsets = [0, 8, 0], sizes = [4, 8, 8], strides = [1, 1, 1]} : vector<8x16x8xf32> to vector<4x8x8xf32>
    %282 = vector.extract_strided_slice %259 {offsets = [4, 8, 0], sizes = [4, 8, 8], strides = [1, 1, 1]} : vector<8x16x8xf32> to vector<4x8x8xf32>
    %283 = vector.extract_strided_slice %1 {offsets = [1, 0, 0, 0], sizes = [1, 4, 8, 8], strides = [1, 1, 1, 1]} : vector<2x4x8x8xf32> to vector<1x4x8x8xf32>
    %284 = vector.shape_cast %283 : vector<1x4x8x8xf32> to vector<4x8x8xf32>
    %cst_126 = arith.constant dense<0.000000e+00> : vector<4x8x8xf32>
    %285 = tpu.matmul %280, %281, %cst_126 {dimension_numbers = #tpu.dot_dimension_numbers<[2], [2], [1], [1], [0, 0, 0, 1, 1, 1], [0], [0]>} : vector<4x8x8xf32>, vector<4x8x8xf32>, vector<4x8x8xf32> -> vector<4x8x8xf32>
    %286 = arith.addf %285, %284 : vector<4x8x8xf32>
    %cst_127 = arith.constant dense<0xFF800000> : vector<4x8xf32>
    %287 = vector.multi_reduction <maximumf>, %286, %cst_127 [2] : vector<4x8x8xf32> to vector<4x8xf32>
    %288 = vector.shape_cast %287 : vector<4x8xf32> to vector<4x8x1xf32>
    %289 = vector.broadcast %288 : vector<4x8x1xf32> to vector<4x8x8xf32>
    %290 = arith.subf %286, %289 : vector<4x8x8xf32>
    %291 = math.exp %290 : vector<4x8x8xf32>
    %cst_128 = arith.constant dense<0.000000e+00> : vector<4x8xf32>
    %292 = vector.multi_reduction <add>, %291, %cst_128 [2] : vector<4x8x8xf32> to vector<4x8xf32>
    %293 = vector.shape_cast %292 : vector<4x8xf32> to vector<4x8x1xf32>
    %294 = tpu.reciprocal %293 {approx = true} : vector<4x8x1xf32> -> vector<4x8x1xf32>
    %295 = vector.broadcast %294 : vector<4x8x1xf32> to vector<4x8x8xf32>
    %296 = arith.mulf %291, %295 : vector<4x8x8xf32>
    %cst_129 = arith.constant dense<0.000000e+00> : vector<4x8x8xf32>
    %297 = tpu.matmul %296, %282, %cst_129 {dimension_numbers = #tpu.dot_dimension_numbers<[2], [1], [1], [2], [0, 0, 0, 1, 1, 2], [0], [0]>} : vector<4x8x8xf32>, vector<4x8x8xf32>, vector<4x8x8xf32> -> vector<4x8x8xf32>
    %cst_130 = arith.constant dense<0.000000e+00> : vector<4x8x32xf32>
    %298 = tpu.matmul %297, %253, %cst_130 {dimension_numbers = #tpu.dot_dimension_numbers<[2], [2], [1], [1], [0, 0, 0, 1, 1, 1], [0], [0]>} : vector<4x8x8xf32>, vector<4x32x8xf32>, vector<4x8x32xf32> -> vector<4x8x32xf32>
    %cst_131 = arith.constant dense<0.000000e+00> : vector<8x32xf32>
    %299 = vector.multi_reduction <add>, %298, %cst_131 [0] : vector<4x8x32xf32> to vector<8x32xf32>
    %300 = tpu.concatenate %279, %299 in 0 : vector<8x32xf32>, vector<8x32xf32> -> vector<16x32xf32>
    %301 = arith.addf %237, %300 : vector<16x32xf32>
    %c7 = arith.constant 7 : index
    %c0_132 = arith.constant 0 : index
    %302 = vector.load %arg7[%c7, %c0_132] : memref<12x32xf32, #tpu.memory_space<vmem>>, vector<1x32xf32>
    %303 = arith.mulf %301, %301 : vector<16x32xf32>
    %cst_133 = arith.constant dense<0.000000e+00> : vector<16xf32>
    %304 = vector.multi_reduction <add>, %303, %cst_133 [1] : vector<16x32xf32> to vector<16xf32>
    %305 = vector.shape_cast %304 : vector<16xf32> to vector<16x1xf32>
    %cst_134 = arith.constant 3.200000e+01 : f32
    %306 = vector.broadcast %cst_134 : f32 to vector<16x1xf32>
    %307 = arith.divf %305, %306 : vector<16x1xf32>
    %cst_135 = arith.constant 9.99999997E-7 : f32
    %308 = vector.broadcast %cst_135 : f32 to vector<16x1xf32>
    %309 = arith.addf %307, %308 : vector<16x1xf32>
    %310 = math.rsqrt %309 : vector<16x1xf32>
    %311 = vector.broadcast %310 : vector<16x1xf32> to vector<16x32xf32>
    %312 = arith.mulf %301, %311 : vector<16x32xf32>
    %313 = vector.broadcast %302 : vector<1x32xf32> to vector<16x32xf32>
    %314 = arith.mulf %312, %313 : vector<16x32xf32>
    %c4_136 = arith.constant 4 : index
    %c0_137 = arith.constant 0 : index
    %c0_138 = arith.constant 0 : index
    %315 = vector.load %arg9[%c4_136, %c0_137, %c0_138] : memref<8x32x64xf32, #tpu.memory_space<vmem>>, vector<1x32x64xf32>
    %316 = vector.shape_cast %315 : vector<1x32x64xf32> to vector<32x64xf32>
    %c5_139 = arith.constant 5 : index
    %c0_140 = arith.constant 0 : index
    %c0_141 = arith.constant 0 : index
    %317 = vector.load %arg9[%c5_139, %c0_140, %c0_141] : memref<8x32x64xf32, #tpu.memory_space<vmem>>, vector<1x32x64xf32>
    %318 = vector.shape_cast %317 : vector<1x32x64xf32> to vector<32x64xf32>
    %cst_142 = arith.constant dense<0.000000e+00> : vector<16x64xf32>
    %319 = tpu.matmul %314, %316, %cst_142 {dimension_numbers = #tpu.dot_dimension_numbers<[1], [0], [0], [1], [0, 0, 1, 1], [], []>} : vector<16x32xf32>, vector<32x64xf32>, vector<16x64xf32> -> vector<16x64xf32>
    %cst_143 = arith.constant 0.000000e+00 : f32
    %320 = vector.broadcast %cst_143 : f32 to vector<16x64xf32>
    %321 = arith.maximumf %319, %320 : vector<16x64xf32>
    %cst_144 = arith.constant dense<0.000000e+00> : vector<16x32xf32>
    %322 = tpu.matmul %321, %318, %cst_144 {dimension_numbers = #tpu.dot_dimension_numbers<[1], [1], [0], [0], [0, 0, 1, 0], [], []>} : vector<16x64xf32>, vector<32x64xf32>, vector<16x32xf32> -> vector<16x32xf32>
    %323 = arith.addf %301, %322 : vector<16x32xf32>
    %c8 = arith.constant 8 : index
    %c0_145 = arith.constant 0 : index
    %324 = vector.load %arg7[%c8, %c0_145] : memref<12x32xf32, #tpu.memory_space<vmem>>, vector<1x32xf32>
    %325 = arith.mulf %323, %323 : vector<16x32xf32>
    %cst_146 = arith.constant dense<0.000000e+00> : vector<16xf32>
    %326 = vector.multi_reduction <add>, %325, %cst_146 [1] : vector<16x32xf32> to vector<16xf32>
    %327 = vector.shape_cast %326 : vector<16xf32> to vector<16x1xf32>
    %cst_147 = arith.constant 3.200000e+01 : f32
    %328 = vector.broadcast %cst_147 : f32 to vector<16x1xf32>
    %329 = arith.divf %327, %328 : vector<16x1xf32>
    %cst_148 = arith.constant 9.99999997E-7 : f32
    %330 = vector.broadcast %cst_148 : f32 to vector<16x1xf32>
    %331 = arith.addf %329, %330 : vector<16x1xf32>
    %332 = math.rsqrt %331 : vector<16x1xf32>
    %333 = vector.broadcast %332 : vector<16x1xf32> to vector<16x32xf32>
    %334 = arith.mulf %323, %333 : vector<16x32xf32>
    %335 = vector.broadcast %324 : vector<1x32xf32> to vector<16x32xf32>
    %336 = arith.mulf %334, %335 : vector<16x32xf32>
    %c64 = arith.constant 64 : index
    %c0_149 = arith.constant 0 : index
    %c0_150 = arith.constant 0 : index
    %337 = vector.load %arg8[%c64, %c0_149, %c0_150] : memref<96x32x8xf32, #tpu.memory_space<vmem>>, vector<12x32x8xf32>
    %c76 = arith.constant 76 : index
    %c0_151 = arith.constant 0 : index
    %c0_152 = arith.constant 0 : index
    %338 = vector.load %arg8[%c76, %c0_151, %c0_152] : memref<96x32x8xf32, #tpu.memory_space<vmem>>, vector<4x32x8xf32>
    %339 = vector.shape_cast %336 : vector<16x32xf32> to vector<1x16x32xf32>
    %340 = vector.broadcast %339 : vector<1x16x32xf32> to vector<12x16x32xf32>
    %cst_153 = arith.constant dense<0.000000e+00> : vector<12x16x8xf32>
    %341 = tpu.matmul %340, %337, %cst_153 {dimension_numbers = #tpu.dot_dimension_numbers<[2], [1], [1], [2], [0, 0, 0, 1, 1, 2], [0], [0]>} : vector<12x16x32xf32>, vector<12x32x8xf32>, vector<12x16x8xf32> -> vector<12x16x8xf32>
    %342 = vector.extract_strided_slice %341 {offsets = [0, 0, 0], sizes = [4, 8, 8], strides = [1, 1, 1]} : vector<12x16x8xf32> to vector<4x8x8xf32>
    %343 = vector.extract_strided_slice %341 {offsets = [4, 0, 0], sizes = [4, 8, 8], strides = [1, 1, 1]} : vector<12x16x8xf32> to vector<4x8x8xf32>
    %344 = vector.extract_strided_slice %341 {offsets = [8, 0, 0], sizes = [4, 8, 8], strides = [1, 1, 1]} : vector<12x16x8xf32> to vector<4x8x8xf32>
    %cst_154 = arith.constant dense<0.000000e+00> : vector<4x8x8xf32>
    %345 = tpu.matmul %342, %343, %cst_154 {dimension_numbers = #tpu.dot_dimension_numbers<[2], [2], [1], [1], [0, 0, 0, 1, 1, 1], [0], [0]>} : vector<4x8x8xf32>, vector<4x8x8xf32>, vector<4x8x8xf32> -> vector<4x8x8xf32>
    %346 = arith.addf %345, %2 : vector<4x8x8xf32>
    %cst_155 = arith.constant dense<0xFF800000> : vector<4x8xf32>
    %347 = vector.multi_reduction <maximumf>, %346, %cst_155 [2] : vector<4x8x8xf32> to vector<4x8xf32>
    %348 = vector.shape_cast %347 : vector<4x8xf32> to vector<4x8x1xf32>
    %349 = vector.broadcast %348 : vector<4x8x1xf32> to vector<4x8x8xf32>
    %350 = arith.subf %346, %349 : vector<4x8x8xf32>
    %351 = math.exp %350 : vector<4x8x8xf32>
    %cst_156 = arith.constant dense<0.000000e+00> : vector<4x8xf32>
    %352 = vector.multi_reduction <add>, %351, %cst_156 [2] : vector<4x8x8xf32> to vector<4x8xf32>
    %353 = vector.shape_cast %352 : vector<4x8xf32> to vector<4x8x1xf32>
    %354 = tpu.reciprocal %353 {approx = true} : vector<4x8x1xf32> -> vector<4x8x1xf32>
    %355 = vector.broadcast %354 : vector<4x8x1xf32> to vector<4x8x8xf32>
    %356 = arith.mulf %351, %355 : vector<4x8x8xf32>
    %cst_157 = arith.constant dense<0.000000e+00> : vector<4x8x8xf32>
    %357 = tpu.matmul %356, %344, %cst_157 {dimension_numbers = #tpu.dot_dimension_numbers<[2], [1], [1], [2], [0, 0, 0, 1, 1, 2], [0], [0]>} : vector<4x8x8xf32>, vector<4x8x8xf32>, vector<4x8x8xf32> -> vector<4x8x8xf32>
    %cst_158 = arith.constant dense<0.000000e+00> : vector<4x8x32xf32>
    %358 = tpu.matmul %357, %338, %cst_158 {dimension_numbers = #tpu.dot_dimension_numbers<[2], [2], [1], [1], [0, 0, 0, 1, 1, 1], [0], [0]>} : vector<4x8x8xf32>, vector<4x32x8xf32>, vector<4x8x32xf32> -> vector<4x8x32xf32>
    %cst_159 = arith.constant dense<0.000000e+00> : vector<8x32xf32>
    %359 = vector.multi_reduction <add>, %358, %cst_159 [0] : vector<4x8x32xf32> to vector<8x32xf32>
    %360 = vector.extract_strided_slice %341 {offsets = [0, 8, 0], sizes = [4, 8, 8], strides = [1, 1, 1]} : vector<12x16x8xf32> to vector<4x8x8xf32>
    %361 = vector.extract_strided_slice %341 {offsets = [4, 8, 0], sizes = [4, 8, 8], strides = [1, 1, 1]} : vector<12x16x8xf32> to vector<4x8x8xf32>
    %362 = vector.extract_strided_slice %341 {offsets = [8, 8, 0], sizes = [4, 8, 8], strides = [1, 1, 1]} : vector<12x16x8xf32> to vector<4x8x8xf32>
    %cst_160 = arith.constant dense<0.000000e+00> : vector<4x8x8xf32>
    %363 = tpu.matmul %360, %361, %cst_160 {dimension_numbers = #tpu.dot_dimension_numbers<[2], [2], [1], [1], [0, 0, 0, 1, 1, 1], [0], [0]>} : vector<4x8x8xf32>, vector<4x8x8xf32>, vector<4x8x8xf32> -> vector<4x8x8xf32>
    %364 = arith.addf %363, %2 : vector<4x8x8xf32>
    %cst_161 = arith.constant dense<0xFF800000> : vector<4x8xf32>
    %365 = vector.multi_reduction <maximumf>, %364, %cst_161 [2] : vector<4x8x8xf32> to vector<4x8xf32>
    %366 = vector.shape_cast %365 : vector<4x8xf32> to vector<4x8x1xf32>
    %367 = vector.broadcast %366 : vector<4x8x1xf32> to vector<4x8x8xf32>
    %368 = arith.subf %364, %367 : vector<4x8x8xf32>
    %369 = math.exp %368 : vector<4x8x8xf32>
    %cst_162 = arith.constant dense<0.000000e+00> : vector<4x8xf32>
    %370 = vector.multi_reduction <add>, %369, %cst_162 [2] : vector<4x8x8xf32> to vector<4x8xf32>
    %371 = vector.shape_cast %370 : vector<4x8xf32> to vector<4x8x1xf32>
    %372 = tpu.reciprocal %371 {approx = true} : vector<4x8x1xf32> -> vector<4x8x1xf32>
    %373 = vector.broadcast %372 : vector<4x8x1xf32> to vector<4x8x8xf32>
    %374 = arith.mulf %369, %373 : vector<4x8x8xf32>
    %cst_163 = arith.constant dense<0.000000e+00> : vector<4x8x8xf32>
    %375 = tpu.matmul %374, %362, %cst_163 {dimension_numbers = #tpu.dot_dimension_numbers<[2], [1], [1], [2], [0, 0, 0, 1, 1, 2], [0], [0]>} : vector<4x8x8xf32>, vector<4x8x8xf32>, vector<4x8x8xf32> -> vector<4x8x8xf32>
    %cst_164 = arith.constant dense<0.000000e+00> : vector<4x8x32xf32>
    %376 = tpu.matmul %375, %338, %cst_164 {dimension_numbers = #tpu.dot_dimension_numbers<[2], [2], [1], [1], [0, 0, 0, 1, 1, 1], [0], [0]>} : vector<4x8x8xf32>, vector<4x32x8xf32>, vector<4x8x32xf32> -> vector<4x8x32xf32>
    %cst_165 = arith.constant dense<0.000000e+00> : vector<8x32xf32>
    %377 = vector.multi_reduction <add>, %376, %cst_165 [0] : vector<4x8x32xf32> to vector<8x32xf32>
    %378 = tpu.concatenate %359, %377 in 0 : vector<8x32xf32>, vector<8x32xf32> -> vector<16x32xf32>
    %379 = arith.addf %323, %378 : vector<16x32xf32>
    %c9 = arith.constant 9 : index
    %c0_166 = arith.constant 0 : index
    %380 = vector.load %arg7[%c9, %c0_166] : memref<12x32xf32, #tpu.memory_space<vmem>>, vector<1x32xf32>
    %381 = arith.mulf %379, %379 : vector<16x32xf32>
    %cst_167 = arith.constant dense<0.000000e+00> : vector<16xf32>
    %382 = vector.multi_reduction <add>, %381, %cst_167 [1] : vector<16x32xf32> to vector<16xf32>
    %383 = vector.shape_cast %382 : vector<16xf32> to vector<16x1xf32>
    %cst_168 = arith.constant 3.200000e+01 : f32
    %384 = vector.broadcast %cst_168 : f32 to vector<16x1xf32>
    %385 = arith.divf %383, %384 : vector<16x1xf32>
    %cst_169 = arith.constant 9.99999997E-7 : f32
    %386 = vector.broadcast %cst_169 : f32 to vector<16x1xf32>
    %387 = arith.addf %385, %386 : vector<16x1xf32>
    %388 = math.rsqrt %387 : vector<16x1xf32>
    %389 = vector.broadcast %388 : vector<16x1xf32> to vector<16x32xf32>
    %390 = arith.mulf %379, %389 : vector<16x32xf32>
    %391 = vector.broadcast %380 : vector<1x32xf32> to vector<16x32xf32>
    %392 = arith.mulf %390, %391 : vector<16x32xf32>
    %c80 = arith.constant 80 : index
    %c0_170 = arith.constant 0 : index
    %c0_171 = arith.constant 0 : index
    %393 = vector.load %arg8[%c80, %c0_170, %c0_171] : memref<96x32x8xf32, #tpu.memory_space<vmem>>, vector<4x32x8xf32>
    %c84 = arith.constant 84 : index
    %c0_172 = arith.constant 0 : index
    %c0_173 = arith.constant 0 : index
    %394 = vector.load %arg8[%c84, %c0_172, %c0_173] : memref<96x32x8xf32, #tpu.memory_space<vmem>>, vector<8x32x8xf32>
    %c92 = arith.constant 92 : index
    %c0_174 = arith.constant 0 : index
    %c0_175 = arith.constant 0 : index
    %395 = vector.load %arg8[%c92, %c0_174, %c0_175] : memref<96x32x8xf32, #tpu.memory_space<vmem>>, vector<4x32x8xf32>
    %396 = vector.shape_cast %392 : vector<16x32xf32> to vector<1x16x32xf32>
    %397 = vector.broadcast %396 : vector<1x16x32xf32> to vector<4x16x32xf32>
    %cst_176 = arith.constant dense<0.000000e+00> : vector<4x16x8xf32>
    %398 = tpu.matmul %397, %393, %cst_176 {dimension_numbers = #tpu.dot_dimension_numbers<[2], [1], [1], [2], [0, 0, 0, 1, 1, 2], [0], [0]>} : vector<4x16x32xf32>, vector<4x32x8xf32>, vector<4x16x8xf32> -> vector<4x16x8xf32>
    %399 = vector.shape_cast %180 : vector<16x32xf32> to vector<1x16x32xf32>
    %400 = vector.broadcast %399 : vector<1x16x32xf32> to vector<8x16x32xf32>
    %cst_177 = arith.constant dense<0.000000e+00> : vector<8x16x8xf32>
    %401 = tpu.matmul %400, %394, %cst_177 {dimension_numbers = #tpu.dot_dimension_numbers<[2], [1], [1], [2], [0, 0, 0, 1, 1, 2], [0], [0]>} : vector<8x16x32xf32>, vector<8x32x8xf32>, vector<8x16x8xf32> -> vector<8x16x8xf32>
    %402 = vector.extract_strided_slice %398 {offsets = [0, 0, 0], sizes = [4, 8, 8], strides = [1, 1, 1]} : vector<4x16x8xf32> to vector<4x8x8xf32>
    %403 = vector.extract_strided_slice %401 {offsets = [0, 0, 0], sizes = [4, 8, 8], strides = [1, 1, 1]} : vector<8x16x8xf32> to vector<4x8x8xf32>
    %404 = vector.extract_strided_slice %401 {offsets = [4, 0, 0], sizes = [4, 8, 8], strides = [1, 1, 1]} : vector<8x16x8xf32> to vector<4x8x8xf32>
    %405 = vector.extract_strided_slice %1 {offsets = [0, 0, 0, 0], sizes = [1, 4, 8, 8], strides = [1, 1, 1, 1]} : vector<2x4x8x8xf32> to vector<1x4x8x8xf32>
    %406 = vector.shape_cast %405 : vector<1x4x8x8xf32> to vector<4x8x8xf32>
    %cst_178 = arith.constant dense<0.000000e+00> : vector<4x8x8xf32>
    %407 = tpu.matmul %402, %403, %cst_178 {dimension_numbers = #tpu.dot_dimension_numbers<[2], [2], [1], [1], [0, 0, 0, 1, 1, 1], [0], [0]>} : vector<4x8x8xf32>, vector<4x8x8xf32>, vector<4x8x8xf32> -> vector<4x8x8xf32>
    %408 = arith.addf %407, %406 : vector<4x8x8xf32>
    %cst_179 = arith.constant dense<0xFF800000> : vector<4x8xf32>
    %409 = vector.multi_reduction <maximumf>, %408, %cst_179 [2] : vector<4x8x8xf32> to vector<4x8xf32>
    %410 = vector.shape_cast %409 : vector<4x8xf32> to vector<4x8x1xf32>
    %411 = vector.broadcast %410 : vector<4x8x1xf32> to vector<4x8x8xf32>
    %412 = arith.subf %408, %411 : vector<4x8x8xf32>
    %413 = math.exp %412 : vector<4x8x8xf32>
    %cst_180 = arith.constant dense<0.000000e+00> : vector<4x8xf32>
    %414 = vector.multi_reduction <add>, %413, %cst_180 [2] : vector<4x8x8xf32> to vector<4x8xf32>
    %415 = vector.shape_cast %414 : vector<4x8xf32> to vector<4x8x1xf32>
    %416 = tpu.reciprocal %415 {approx = true} : vector<4x8x1xf32> -> vector<4x8x1xf32>
    %417 = vector.broadcast %416 : vector<4x8x1xf32> to vector<4x8x8xf32>
    %418 = arith.mulf %413, %417 : vector<4x8x8xf32>
    %cst_181 = arith.constant dense<0.000000e+00> : vector<4x8x8xf32>
    %419 = tpu.matmul %418, %404, %cst_181 {dimension_numbers = #tpu.dot_dimension_numbers<[2], [1], [1], [2], [0, 0, 0, 1, 1, 2], [0], [0]>} : vector<4x8x8xf32>, vector<4x8x8xf32>, vector<4x8x8xf32> -> vector<4x8x8xf32>
    %cst_182 = arith.constant dense<0.000000e+00> : vector<4x8x32xf32>
    %420 = tpu.matmul %419, %395, %cst_182 {dimension_numbers = #tpu.dot_dimension_numbers<[2], [2], [1], [1], [0, 0, 0, 1, 1, 1], [0], [0]>} : vector<4x8x8xf32>, vector<4x32x8xf32>, vector<4x8x32xf32> -> vector<4x8x32xf32>
    %cst_183 = arith.constant dense<0.000000e+00> : vector<8x32xf32>
    %421 = vector.multi_reduction <add>, %420, %cst_183 [0] : vector<4x8x32xf32> to vector<8x32xf32>
    %422 = vector.extract_strided_slice %398 {offsets = [0, 8, 0], sizes = [4, 8, 8], strides = [1, 1, 1]} : vector<4x16x8xf32> to vector<4x8x8xf32>
    %423 = vector.extract_strided_slice %401 {offsets = [0, 8, 0], sizes = [4, 8, 8], strides = [1, 1, 1]} : vector<8x16x8xf32> to vector<4x8x8xf32>
    %424 = vector.extract_strided_slice %401 {offsets = [4, 8, 0], sizes = [4, 8, 8], strides = [1, 1, 1]} : vector<8x16x8xf32> to vector<4x8x8xf32>
    %425 = vector.extract_strided_slice %1 {offsets = [1, 0, 0, 0], sizes = [1, 4, 8, 8], strides = [1, 1, 1, 1]} : vector<2x4x8x8xf32> to vector<1x4x8x8xf32>
    %426 = vector.shape_cast %425 : vector<1x4x8x8xf32> to vector<4x8x8xf32>
    %cst_184 = arith.constant dense<0.000000e+00> : vector<4x8x8xf32>
    %427 = tpu.matmul %422, %423, %cst_184 {dimension_numbers = #tpu.dot_dimension_numbers<[2], [2], [1], [1], [0, 0, 0, 1, 1, 1], [0], [0]>} : vector<4x8x8xf32>, vector<4x8x8xf32>, vector<4x8x8xf32> -> vector<4x8x8xf32>
    %428 = arith.addf %427, %426 : vector<4x8x8xf32>
    %cst_185 = arith.constant dense<0xFF800000> : vector<4x8xf32>
    %429 = vector.multi_reduction <maximumf>, %428, %cst_185 [2] : vector<4x8x8xf32> to vector<4x8xf32>
    %430 = vector.shape_cast %429 : vector<4x8xf32> to vector<4x8x1xf32>
    %431 = vector.broadcast %430 : vector<4x8x1xf32> to vector<4x8x8xf32>
    %432 = arith.subf %428, %431 : vector<4x8x8xf32>
    %433 = math.exp %432 : vector<4x8x8xf32>
    %cst_186 = arith.constant dense<0.000000e+00> : vector<4x8xf32>
    %434 = vector.multi_reduction <add>, %433, %cst_186 [2] : vector<4x8x8xf32> to vector<4x8xf32>
    %435 = vector.shape_cast %434 : vector<4x8xf32> to vector<4x8x1xf32>
    %436 = tpu.reciprocal %435 {approx = true} : vector<4x8x1xf32> -> vector<4x8x1xf32>
    %437 = vector.broadcast %436 : vector<4x8x1xf32> to vector<4x8x8xf32>
    %438 = arith.mulf %433, %437 : vector<4x8x8xf32>
    %cst_187 = arith.constant dense<0.000000e+00> : vector<4x8x8xf32>
    %439 = tpu.matmul %438, %424, %cst_187 {dimension_numbers = #tpu.dot_dimension_numbers<[2], [1], [1], [2], [0, 0, 0, 1, 1, 2], [0], [0]>} : vector<4x8x8xf32>, vector<4x8x8xf32>, vector<4x8x8xf32> -> vector<4x8x8xf32>
    %cst_188 = arith.constant dense<0.000000e+00> : vector<4x8x32xf32>
    %440 = tpu.matmul %439, %395, %cst_188 {dimension_numbers = #tpu.dot_dimension_numbers<[2], [2], [1], [1], [0, 0, 0, 1, 1, 1], [0], [0]>} : vector<4x8x8xf32>, vector<4x32x8xf32>, vector<4x8x32xf32> -> vector<4x8x32xf32>
    %cst_189 = arith.constant dense<0.000000e+00> : vector<8x32xf32>
    %441 = vector.multi_reduction <add>, %440, %cst_189 [0] : vector<4x8x32xf32> to vector<8x32xf32>
    %442 = tpu.concatenate %421, %441 in 0 : vector<8x32xf32>, vector<8x32xf32> -> vector<16x32xf32>
    %443 = arith.addf %379, %442 : vector<16x32xf32>
    %c10 = arith.constant 10 : index
    %c0_190 = arith.constant 0 : index
    %444 = vector.load %arg7[%c10, %c0_190] : memref<12x32xf32, #tpu.memory_space<vmem>>, vector<1x32xf32>
    %445 = arith.mulf %443, %443 : vector<16x32xf32>
    %cst_191 = arith.constant dense<0.000000e+00> : vector<16xf32>
    %446 = vector.multi_reduction <add>, %445, %cst_191 [1] : vector<16x32xf32> to vector<16xf32>
    %447 = vector.shape_cast %446 : vector<16xf32> to vector<16x1xf32>
    %cst_192 = arith.constant 3.200000e+01 : f32
    %448 = vector.broadcast %cst_192 : f32 to vector<16x1xf32>
    %449 = arith.divf %447, %448 : vector<16x1xf32>
    %cst_193 = arith.constant 9.99999997E-7 : f32
    %450 = vector.broadcast %cst_193 : f32 to vector<16x1xf32>
    %451 = arith.addf %449, %450 : vector<16x1xf32>
    %452 = math.rsqrt %451 : vector<16x1xf32>
    %453 = vector.broadcast %452 : vector<16x1xf32> to vector<16x32xf32>
    %454 = arith.mulf %443, %453 : vector<16x32xf32>
    %455 = vector.broadcast %444 : vector<1x32xf32> to vector<16x32xf32>
    %456 = arith.mulf %454, %455 : vector<16x32xf32>
    %c6_194 = arith.constant 6 : index
    %c0_195 = arith.constant 0 : index
    %c0_196 = arith.constant 0 : index
    %457 = vector.load %arg9[%c6_194, %c0_195, %c0_196] : memref<8x32x64xf32, #tpu.memory_space<vmem>>, vector<1x32x64xf32>
    %458 = vector.shape_cast %457 : vector<1x32x64xf32> to vector<32x64xf32>
    %c7_197 = arith.constant 7 : index
    %c0_198 = arith.constant 0 : index
    %c0_199 = arith.constant 0 : index
    %459 = vector.load %arg9[%c7_197, %c0_198, %c0_199] : memref<8x32x64xf32, #tpu.memory_space<vmem>>, vector<1x32x64xf32>
    %460 = vector.shape_cast %459 : vector<1x32x64xf32> to vector<32x64xf32>
    %cst_200 = arith.constant dense<0.000000e+00> : vector<16x64xf32>
    %461 = tpu.matmul %456, %458, %cst_200 {dimension_numbers = #tpu.dot_dimension_numbers<[1], [0], [0], [1], [0, 0, 1, 1], [], []>} : vector<16x32xf32>, vector<32x64xf32>, vector<16x64xf32> -> vector<16x64xf32>
    %cst_201 = arith.constant 0.000000e+00 : f32
    %462 = vector.broadcast %cst_201 : f32 to vector<16x64xf32>
    %463 = arith.maximumf %461, %462 : vector<16x64xf32>
    %cst_202 = arith.constant dense<0.000000e+00> : vector<16x32xf32>
    %464 = tpu.matmul %463, %460, %cst_202 {dimension_numbers = #tpu.dot_dimension_numbers<[1], [1], [0], [0], [0, 0, 1, 0], [], []>} : vector<16x64xf32>, vector<32x64xf32>, vector<16x32xf32> -> vector<16x32xf32>
    %465 = arith.addf %443, %464 : vector<16x32xf32>
    %c11 = arith.constant 11 : index
    %c0_203 = arith.constant 0 : index
    %466 = vector.load %arg7[%c11, %c0_203] : memref<12x32xf32, #tpu.memory_space<vmem>>, vector<1x32xf32>
    %467 = arith.mulf %465, %465 : vector<16x32xf32>
    %cst_204 = arith.constant dense<0.000000e+00> : vector<16xf32>
    %468 = vector.multi_reduction <add>, %467, %cst_204 [1] : vector<16x32xf32> to vector<16xf32>
    %469 = vector.shape_cast %468 : vector<16xf32> to vector<16x1xf32>
    %cst_205 = arith.constant 3.200000e+01 : f32
    %470 = vector.broadcast %cst_205 : f32 to vector<16x1xf32>
    %471 = arith.divf %469, %470 : vector<16x1xf32>
    %cst_206 = arith.constant 9.99999997E-7 : f32
    %472 = vector.broadcast %cst_206 : f32 to vector<16x1xf32>
    %473 = arith.addf %471, %472 : vector<16x1xf32>
    %474 = math.rsqrt %473 : vector<16x1xf32>
    %475 = vector.broadcast %474 : vector<16x1xf32> to vector<16x32xf32>
    %476 = arith.mulf %465, %475 : vector<16x32xf32>
    %477 = vector.broadcast %466 : vector<1x32xf32> to vector<16x32xf32>
    %478 = arith.mulf %476, %477 : vector<16x32xf32>
    %cst_207 = arith.constant 0.176776692 : f32
    %479 = vector.broadcast %cst_207 : f32 to vector<16x32xf32>
    %480 = arith.mulf %478, %479 : vector<16x32xf32>
    %c0_208 = arith.constant 0 : index
    %c0_209 = arith.constant 0 : index
    %481 = vector.load %arg6[%c0_208, %c0_209] : memref<32x128xf32, #tpu.memory_space<vmem>>, vector<32x128xf32>
    %cst_210 = arith.constant dense<0.000000e+00> : vector<16x128xf32>
    %482 = tpu.matmul %480, %481, %cst_210 {dimension_numbers = #tpu.dot_dimension_numbers<[1], [0], [0], [1], [0, 0, 1, 1], [], []>} : vector<16x32xf32>, vector<32x128xf32>, vector<16x128xf32> -> vector<16x128xf32>
    %483 = tpu.iota {dimensions = array<i32: 1>} : vector<1x128xi32>
    %c64_i32 = arith.constant 64 : i32
    %484 = vector.broadcast %c64_i32 : i32 to vector<1x128xi32>
    %485 = arith.cmpi slt, %483, %484 : vector<1x128xi32>
    %cst_211 = arith.constant -1.000000e+30 : f32
    %486 = vector.shape_cast %485 : vector<1x128xi1> to vector<1x128xi1>
    %487 = vector.broadcast %486 : vector<1x128xi1> to vector<16x128xi1>
    %488 = vector.broadcast %cst_211 : f32 to vector<16x128xf32>
    %489 = arith.select %487, %482, %488 : vector<16x128xi1>, vector<16x128xf32>
    %cst_212 = arith.constant dense<0xFF800000> : vector<16xf32>
    %490 = vector.multi_reduction <maximumf>, %489, %cst_212 [1] : vector<16x128xf32> to vector<16xf32>
    %491 = vector.shape_cast %490 : vector<16xf32> to vector<16x1xf32>
    %492 = vector.broadcast %491 : vector<16x1xf32> to vector<16x128xf32>
    %493 = arith.subf %489, %492 : vector<16x128xf32>
    %494 = math.exp %493 : vector<16x128xf32>
    %cst_213 = arith.constant dense<0.000000e+00> : vector<16xf32>
    %495 = vector.multi_reduction <add>, %494, %cst_213 [1] : vector<16x128xf32> to vector<16xf32>
    %496 = vector.shape_cast %495 : vector<16xf32> to vector<16x1xf32>
    %497 = math.log %496 : vector<16x1xf32>
    %498 = vector.broadcast %497 : vector<16x1xf32> to vector<16x128xf32>
    %499 = arith.subf %493, %498 : vector<16x128xf32>
    %c0_214 = arith.constant 0 : index
    %c0_215 = arith.constant 0 : index
    %500 = vector.load %arg10[%c0_214, %c0_215] : memref<16x128xf32, #tpu.memory_space<vmem>>, vector<16x128xf32>
    tpu.vector_store %arg10[%c0_214, %c0_215], %499 {strides = array<i32>} : memref<16x128xf32, #tpu.memory_space<vmem>>, vector<16x128xf32>,
    return
  }
  func.func @transform_0(%arg0: i32) -> (i32, i32) {
    %c0_i32 = arith.constant 0 : i32
    %c0_i32_0 = arith.constant 0 : i32
    return %arg0, %c0_i32 : i32, i32
  }
  func.func @transform_1(%arg0: i32) -> (i32, i32) {
    %c0_i32 = arith.constant 0 : i32
    %c0_i32_0 = arith.constant 0 : i32
    return %arg0, %c0_i32 : i32, i32
  }
  func.func @transform_2(%arg0: i32) -> (i32, i32, i32, i32) {
    %c0_i32 = arith.constant 0 : i32
    %c0_i32_0 = arith.constant 0 : i32
    %c0_i32_1 = arith.constant 0 : i32
    %c0_i32_2 = arith.constant 0 : i32
    return %arg0, %c0_i32, %c0_i32_0, %c0_i32_1 : i32, i32, i32, i32
  }
  func.func @transform_3(%arg0: i32) -> (i32, i32, i32, i32) {
    %c0_i32 = arith.constant 0 : i32
    %c0_i32_0 = arith.constant 0 : i32
    %c0_i32_1 = arith.constant 0 : i32
    %c0_i32_2 = arith.constant 0 : i32
    return %arg0, %c0_i32, %c0_i32_0, %c0_i32_1 : i32, i32, i32, i32
  }
  func.func @transform_4(%arg0: i32) -> (i32, i32, i32) {
    %c0_i32 = arith.constant 0 : i32
    %c0_i32_0 = arith.constant 0 : i32
    %c0_i32_1 = arith.constant 0 : i32
    %c0_i32_2 = arith.constant 0 : i32
    return %c0_i32, %c0_i32_0, %c0_i32_1 : i32, i32, i32
  }
  func.func @transform_5(%arg0: i32) -> (i32, i32) {
    %c0_i32 = arith.constant 0 : i32
    %c0_i32_0 = arith.constant 0 : i32
    %c0_i32_1 = arith.constant 0 : i32
    return %c0_i32, %c0_i32_0 : i32, i32
  }
  func.func @transform_6(%arg0: i32) -> (i32, i32) {
    %c0_i32 = arith.constant 0 : i32
    %c0_i32_0 = arith.constant 0 : i32
    %c0_i32_1 = arith.constant 0 : i32
    return %c0_i32, %c0_i32_0 : i32, i32
  }
  func.func @transform_7(%arg0: i32) -> (i32, i32, i32) {
    %c0_i32 = arith.constant 0 : i32
    %c0_i32_0 = arith.constant 0 : i32
    %c0_i32_1 = arith.constant 0 : i32
    %c0_i32_2 = arith.constant 0 : i32
    return %c0_i32, %c0_i32_0, %c0_i32_1 : i32, i32, i32
  }
  func.func @transform_8(%arg0: i32) -> (i32, i32, i32) {
    %c0_i32 = arith.constant 0 : i32
    %c0_i32_0 = arith.constant 0 : i32
    %c0_i32_1 = arith.constant 0 : i32
    %c0_i32_2 = arith.constant 0 : i32
    return %c0_i32, %c0_i32_0, %c0_i32_1 : i32, i32, i32
  }
  func.func @transform_9(%arg0: i32) -> (i32, i32) {
    %c0_i32 = arith.constant 0 : i32
    %c0_i32_0 = arith.constant 0 : i32
    return %arg0, %c0_i32 : i32, i32
  }
}

</mosaic_0001>

<bundles_post_ra>
// kernel: t5_extractor_forward.1
= control target key start
LH: loop header
LB: loop body
LE: loop exit
PB: predicated region body
PF: predicated region fallthrough
CT: control target
= control target key end

     0   :  { %vm57_vm0 = vcmask 261120   ;;  %vm22642_vm1 = vmmov 0   ;;  %vm1050_vm2 = vcmask 64512   ;;  %vm3094_vm3 = vcmask 523264   ;;  %s26392_s0 = inlined_call_operand.vmem [shape: f32[16,32], index: 0, kind: input, shape index: {}]   ;;  %s26393_s7 = inlined_call_operand.vmem [shape: f32[96,32,8], index: 7, kind: input, shape index: {}]   ;;  %s26394_s6 = inlined_call_operand.vmem [shape: f32[12,32], index: 6, kind: input, shape index: {}]   ;;  %s26395_s2 = inlined_call_operand.vmem [shape: f32[2,4,8,8], index: 2, kind: input, shape index: {}]   ;;  %s26396_s8 = inlined_call_operand.vmem [shape: f32[8,32,64], index: 8, kind: input, shape index: {}]   ;;  %s26397_s1 = inlined_call_operand.vmem [shape: f32[16,32], index: 1, kind: input, shape index: {}]   ;;  %s26398_s4 = inlined_call_operand.vmem [shape: f32[4,8,8], index: 4, kind: input, shape index: {}]   ;;  %s26399_s3 = inlined_call_operand.vmem [shape: f32[2,4,8,8], index: 3, kind: input, shape index: {}]   ;;  %s26400_s5 = inlined_call_operand.vmem [shape: f32[32,128], index: 5, kind: input, shape index: {}]   ;;  %s26401_s9 = inlined_call_operand.vmem [shape: f32[16,128], index: 9, kind: output, shape index: {}]  }
   0x1   :  { %v22696_v0 = vld [vmem:[%s26392_s0] sm:$0xff]  ;;  %v53_v1 = vld [vmem:[%s26392_s0 + $0x8] sm:$0xff]  ;;  %v82_v6 = vld [vmem:[%s26393_s7 + $0x18] sm:$0xff] }
   0x2   :  { %v55_v2 = vmul.f32 %v22696_v0, %v22696_v0  ;;  %v56_v3 = vmul.f32 %v53_v1, %v53_v1  ;;  %v86_v7 = vld [vmem:[%s26393_s7 + $0x38] sm:$0xff]  ;;  %20470 = vmatprep.subr.mxu0 %v82_v6  ;;  %v81_v8 = vld [vmem:[%s26393_s7 + $0x10] sm:$0xff]  ;;  %v80_v10 = vld [vmem:[%s26393_s7 + $0x8] sm:$0xff] }
   0x3   :  { %20481 = vmatprep.subr.mxu1 %v86_v7  ;;  %20471 = vmatpush3.msra.mxu0 %v82_v6  ;;  %v85_v9 = vld [vmem:[%s26393_s7 + $0x30] sm:$0xff]  ;;  %v84_v11 = vld [vmem:[%s26393_s7 + $0x28] sm:$0xff]  ;;  %v79_v12 = vld [vmem:[%s26393_s7] sm:$0xff] }
   0x4   :  { %v58_v4 = vsel %vm57_vm0, %v55_v2, 0.0  ;;  %v61_v5 = vsel %vm57_vm0, %v56_v3, 0.0  ;;  %20482 = vmatpush3.msra.mxu1 %v86_v7  ;;  %20472 = vmatprep.subr.mxu0 %v81_v8  ;;  %v83_v13 = vld [vmem:[%s26393_s7 + $0x20] sm:$0xff]  ;;  %v90_v14 = vld [vmem:[%s26393_s7 + $0x58] sm:$0xff]  ;;  %v89_v29 = vld [vmem:[%s26393_s7 + $0x50] sm:$0xff] }
   0x5   :  { %59 = vadd.xlane.f32.xlu0 %v58_v4  ;;  %20483 = vmatprep.subr.mxu1 %v85_v9  ;;  %v94_v15 = vld [vmem:[%s26393_s7 + $0x78] sm:$0xff]  ;;  %v18614_v23 = vld [vmem:[%s26394_s6] ss:$0 sm:$0xff]  ;;  %v93_v30 = vld [vmem:[%s26393_s7 + $0x70] sm:$0xff]  ;;  %v22641_v4 = vmov 0.0  }
   0x6   :  { %20473 = vmatpush3.msra.mxu0 %v81_v8  ;;  %20484 = vmatpush3.msra.mxu1 %v85_v9  ;;  %v88_v31 = vld [vmem:[%s26393_s7 + $0x48] sm:$0xff]  ;;  %v87_v33 = vld [vmem:[%s26393_s7 + $0x40] sm:$0xff]  ;;  %v98_v35 = vld [vmem:[%s26393_s7 + $0x98] sm:$0xff] }
   0x7   :  { %20474 = vmatprep.subr.mxu0 %v80_v10  ;;  %20485 = vmatprep.subr.mxu1 %v84_v11  ;;  %v92_v32 = vld [vmem:[%s26393_s7 + $0x68] sm:$0xff]  ;;  %v91_v34 = vld [vmem:[%s26393_s7 + $0x60] sm:$0xff]  ;;  %v102_v36 = vld [vmem:[%s26393_s7 + $0xb8] sm:$0xff] }
   0x8   :  { %20475 = vmatpush3.msra.mxu0 %v80_v10  ;;  %20486 = vmatpush3.msra.mxu1 %v84_v11  ;;  %v97_v37 = vld [vmem:[%s26393_s7 + $0x90] sm:$0xff]  ;;  %v96_v39 = vld [vmem:[%s26393_s7 + $0x88] sm:$0xff]  ;;  %v95_v41 = vld [vmem:[%s26393_s7 + $0x80] sm:$0xff] }
   0x9   :  { %62 = vadd.xlane.f32.xlu0 %v61_v5  ;;  %20476 = vmatprep.subr.mxu0 %v79_v12  ;;  %v101_v38 = vld [vmem:[%s26393_s7 + $0xb0] sm:$0xff]  ;;  %v100_v40 = vld [vmem:[%s26393_s7 + $0xa8] sm:$0xff]  ;;  %v99_v42 = vld [vmem:[%s26393_s7 + $0xa0] sm:$0xff] }
   0xa   :  { %20487 = vmatprep.subr.mxu1 %v83_v13  ;;  %20477 = vmatpush3.msra.mxu0 %v79_v12  ;;  %v106_v43 = vld [vmem:[%s26393_s7 + $0xd8] sm:$0xff]  ;;  %v105_v45 = vld [vmem:[%s26393_s7 + $0xd0] sm:$0xff]  ;;  %v104_v47 = vld [vmem:[%s26393_s7 + $0xc8] sm:$0xff] }
   0xb   :  { %20488 = vmatpush3.msra.mxu1 %v83_v13  ;;  %20492 = vmatprep.subr.mxu0 %v90_v14  ;;  %v110_v44 = vld [vmem:[%s26393_s7 + $0xf8] sm:$0xff]  ;;  %v109_v46 = vld [vmem:[%s26393_s7 + $0xf0] sm:$0xff]  ;;  %v108_v48 = vld [vmem:[%s26393_s7 + $0xe8] sm:$0xff] }
   0xc   :  { %20503 = vmatprep.subr.mxu1 %v94_v15  ;;  %v103_v49 = vld [vmem:[%s26393_s7 + $0xc0] sm:$0xff]  ;;  %v114_v51 = vld [vmem:[%s26393_s7 + $0x118] sm:$0xff]  ;;  %v113_v53 = vld [vmem:[%s26393_s7 + $0x110] sm:$0xff] }
   0xd   :  { %v107_v50 = vld [vmem:[%s26393_s7 + $0xe0] sm:$0xff]  ;;  %v118_v52 = vld [vmem:[%s26393_s7 + $0x138] sm:$0xff]  ;;  %v117_v54 = vld [vmem:[%s26393_s7 + $0x130] sm:$0xff] }
   0xe   :  { %v112_v55 = vld [vmem:[%s26393_s7 + $0x108] sm:$0xff]  ;;  %v111_v57 = vld [vmem:[%s26393_s7 + $0x100] sm:$0xff]  ;;  %v122_v59 = vld [vmem:[%s26393_s7 + $0x158] sm:$0xff] }
   0xf   :  { %v116_v56 = vld [vmem:[%s26393_s7 + $0x128] sm:$0xff]  ;;  %v115_v58 = vld [vmem:[%s26393_s7 + $0x120] sm:$0xff]  ;;  %v126_v60 = vld [vmem:[%s26393_s7 + $0x178] sm:$0xff] }
  0x10   :  { %v121_v61 = vld [vmem:[%s26393_s7 + $0x150] sm:$0xff]  ;;  %v120_v63 = vld [vmem:[%s26393_s7 + $0x148] sm:$0xff]  ;;  %v119_v2 = vld [vmem:[%s26393_s7 + $0x140] sm:$0xff] }
  0x11   :  { %v125_v62 = vld [vmem:[%s26393_s7 + $0x170] sm:$0xff]  ;;  %v123_v3 = vld [vmem:[%s26393_s7 + $0x160] sm:$0xff] }
  0x8e   :  { %v60_v16 = vpop.xlane.xlu0 %59 }
  0x8f   :  { %v65_v17 = vmul.f32 0.03125, %v60_v16 }
  0x91   :  { %v67_v18 = vadd.f32 1e-06, %v65_v17 }
  0x92   :  { %v63_v19 = vpop.xlane.xlu0 %62 }
  0x93   :  { %22371 = vrsqrt.f32 %v67_v18  ;;  %v66_v20 = vmul.f32 0.03125, %v63_v19 }
  0x95   :  { %v68_v21 = vadd.f32 1e-06, %v66_v20 }
  0x97   :  { %22373 = vrsqrt.f32 %v68_v21 }
  0xa0   :  { %v22372_v22 = vpop.eup %22371 }
  0xa1   :  { %v71_v24 = vmul.f32 %v22372_v22, %v22696_v0 }
  0xa3   :  { %v22739_v25 = vmul.f32 %v18614_v23, %v71_v24 }
  0xa4   :  { %v22374_v26 = vpop.eup %22373 }
  0xa5   :  { %v72_v27 = vmul.f32 %v22374_v26, %v53_v1  ;;  %20478 = vmatprep.mubr.msk.f32.mxu0 %vm57_vm0, %v22739_v25  ;;  %20489 = vmatprep.mubr.msk.f32.mxu1 %vm57_vm0, %v22739_v25  ;;  %v124_v1 = vld [vmem:[%s26393_s7 + $0x168] sm:$0xff] }
  0xa7   :  { %v22745_v28 = vmul.f32 %v18614_v23, %v72_v27 }
  0xa9   :  { %20479 = vmatmul.mubr.msk.f32.vlgmr.msra.gmra.mxu0 %vm57_vm0, %v22745_v28  ;;  %20490 = vmatmul.mubr.msk.f32.vlgmr.msra.gmra.mxu1 %vm57_vm0, %v22745_v28 }
  0xaa   :  { %20493 = vmatpush3.msra.mxu0 %v90_v14  ;;  %20504 = vmatpush3.msra.mxu1 %v94_v15 }
  0xab   :  { %20494 = vmatprep.subr.mxu0 %v89_v29  ;;  %20500 = vmatprep.mubr.msk.f32.mxu0 %vm57_vm0, %v22739_v25 }
  0xac   :  { %20505 = vmatprep.subr.mxu1 %v93_v30  ;;  %20511 = vmatprep.mubr.msk.f32.mxu1 %vm57_vm0, %v22739_v25 }
  0xad   :  { %20495 = vmatpush3.msra.mxu0 %v89_v29  ;;  %20506 = vmatpush3.msra.mxu1 %v93_v30  ;;  %v32_v29 = vld [vmem:[%s26395_s2] sm:$0xff] }
  0xae   :  { %20496 = vmatprep.subr.mxu0 %v88_v31  ;;  %20507 = vmatprep.subr.mxu1 %v92_v32 }
  0xaf   :  { %20497 = vmatpush3.msra.mxu0 %v88_v31  ;;  %20508 = vmatpush3.msra.mxu1 %v92_v32  ;;  %v33_v31 = vld [vmem:[%s26395_s2 + $0x8] sm:$0xff] }
  0xb0   :  { %20498 = vmatprep.subr.mxu0 %v87_v33  ;;  %20509 = vmatprep.subr.mxu1 %v91_v34 }
  0xb1   :  { %20499 = vmatpush3.msra.mxu0 %v87_v33  ;;  %20510 = vmatpush3.msra.mxu1 %v91_v34 }
  0xb2   :  { %20501 = vmatmul.mubr.msk.f32.vlgmr.msra.gmra.mxu0 %vm57_vm0, %v22745_v28  ;;  %20512 = vmatmul.mubr.msk.f32.vlgmr.msra.gmra.mxu1 %vm57_vm0, %v22745_v28 }
  0xb3   :  { %20514 = vmatprep.subr.mxu0 %v98_v35  ;;  %20525 = vmatprep.subr.mxu1 %v102_v36 }
  0xb4   :  { %20515 = vmatpush3.msra.mxu0 %v98_v35  ;;  %20522 = vmatprep.mubr.msk.f32.mxu0 %vm57_vm0, %v22739_v25 }
  0xb5   :  { %20526 = vmatpush3.msra.mxu1 %v102_v36  ;;  %20533 = vmatprep.mubr.msk.f32.mxu1 %vm57_vm0, %v22739_v25 }
  0xb6   :  { %20516 = vmatprep.subr.mxu0 %v97_v37  ;;  %20527 = vmatprep.subr.mxu1 %v101_v38 }
  0xb7   :  { %20517 = vmatpush3.msra.mxu0 %v97_v37  ;;  %20528 = vmatpush3.msra.mxu1 %v101_v38 }
  0xb8   :  { %20518 = vmatprep.subr.mxu0 %v96_v39  ;;  %20529 = vmatprep.subr.mxu1 %v100_v40 }
  0xb9   :  { %20519 = vmatpush3.msra.mxu0 %v96_v39  ;;  %20530 = vmatpush3.msra.mxu1 %v100_v40  ;;  %v35_v39 = vld [vmem:[%s26395_s2 + $0x18] sm:$0xff]  ;;  %v34_v40 = vld [vmem:[%s26395_s2 + $0x10] sm:$0xff] }
  0xba   :  { %20520 = vmatprep.subr.mxu0 %v95_v41  ;;  %20531 = vmatprep.subr.mxu1 %v99_v42 }
  0xbb   :  { %20521 = vmatpush3.msra.mxu0 %v95_v41  ;;  %20532 = vmatpush3.msra.mxu1 %v99_v42 }
  0xbc   :  { %20523 = vmatmul.mubr.msk.f32.vlgmr.msra.gmra.mxu0 %vm57_vm0, %v22745_v28  ;;  %20534 = vmatmul.mubr.msk.f32.vlgmr.msra.gmra.mxu1 %vm57_vm0, %v22745_v28 }
  0xbd   :  { %20536 = vmatprep.subr.mxu0 %v106_v43  ;;  %20547 = vmatprep.subr.mxu1 %v110_v44 }
  0xbe   :  { %20537 = vmatpush3.msra.mxu0 %v106_v43  ;;  %20544 = vmatprep.mubr.msk.f32.mxu0 %vm57_vm0, %v22739_v25 }
  0xbf   :  { %20548 = vmatpush3.msra.mxu1 %v110_v44  ;;  %20555 = vmatprep.mubr.msk.f32.mxu1 %vm57_vm0, %v22739_v25 }
  0xc0   :  { %20538 = vmatprep.subr.mxu0 %v105_v45  ;;  %20549 = vmatprep.subr.mxu1 %v109_v46 }
  0xc1   :  { %20539 = vmatpush3.msra.mxu0 %v105_v45  ;;  %20550 = vmatpush3.msra.mxu1 %v109_v46 }
  0xc2   :  { %20540 = vmatprep.subr.mxu0 %v104_v47  ;;  %20551 = vmatprep.subr.mxu1 %v108_v48 }
  0xc3   :  { %20541 = vmatpush3.msra.mxu0 %v104_v47  ;;  %20552 = vmatpush3.msra.mxu1 %v108_v48 }
  0xc4   :  { %20542 = vmatprep.subr.mxu0 %v103_v49  ;;  %20553 = vmatprep.subr.mxu1 %v107_v50 }
  0xc5   :  { %20543 = vmatpush3.msra.mxu0 %v103_v49  ;;  %20554 = vmatpush3.msra.mxu1 %v107_v50 }
  0xc6   :  { %20545 = vmatmul.mubr.msk.f32.vlgmr.msra.gmra.mxu0 %vm57_vm0, %v22745_v28  ;;  %20556 = vmatmul.mubr.msk.f32.vlgmr.msra.gmra.mxu1 %vm57_vm0, %v22745_v28 }
  0xc7   :  { %20558 = vmatprep.subr.mxu0 %v114_v51  ;;  %20569 = vmatprep.subr.mxu1 %v118_v52 }
  0xc8   :  { %20559 = vmatpush3.msra.mxu0 %v114_v51  ;;  %20566 = vmatprep.mubr.msk.f32.mxu0 %vm57_vm0, %v22739_v25 }
  0xc9   :  { %20570 = vmatpush3.msra.mxu1 %v118_v52  ;;  %20577 = vmatprep.mubr.msk.f32.mxu1 %vm57_vm0, %v22739_v25 }
  0xca   :  { %20560 = vmatprep.subr.mxu0 %v113_v53  ;;  %20571 = vmatprep.subr.mxu1 %v117_v54 }
  0xcb   :  { %20561 = vmatpush3.msra.mxu0 %v113_v53  ;;  %20572 = vmatpush3.msra.mxu1 %v117_v54 }
  0xcc   :  { %20562 = vmatprep.subr.mxu0 %v112_v55  ;;  %20573 = vmatprep.subr.mxu1 %v116_v56 }
  0xcd   :  { %20563 = vmatpush3.msra.mxu0 %v112_v55  ;;  %20574 = vmatpush3.msra.mxu1 %v116_v56 }
  0xce   :  { %20564 = vmatprep.subr.mxu0 %v111_v57  ;;  %20575 = vmatprep.subr.mxu1 %v115_v58 }
  0xcf   :  { %20565 = vmatpush3.msra.mxu0 %v111_v57  ;;  %20576 = vmatpush3.msra.mxu1 %v115_v58 }
  0xd0   :  { %20567 = vmatmul.mubr.msk.f32.vlgmr.msra.gmra.mxu0 %vm57_vm0, %v22745_v28  ;;  %20578 = vmatmul.mubr.msk.f32.vlgmr.msra.gmra.mxu1 %vm57_vm0, %v22745_v28 }
  0xd1   :  { %20580 = vmatprep.subr.mxu0 %v122_v59  ;;  %20591 = vmatprep.subr.mxu1 %v126_v60 }
  0xd2   :  { %20581 = vmatpush3.msra.mxu0 %v122_v59  ;;  %20588 = vmatprep.mubr.msk.f32.mxu0 %vm57_vm0, %v22739_v25 }
  0xd3   :  { %20592 = vmatpush3.msra.mxu1 %v126_v60  ;;  %20599 = vmatprep.mubr.msk.f32.mxu1 %vm57_vm0, %v22739_v25 }
  0xd4   :  { %20582 = vmatprep.subr.mxu0 %v121_v61  ;;  %20593 = vmatprep.subr.mxu1 %v125_v62 }
  0xd5   :  { %20583 = vmatpush3.msra.mxu0 %v121_v61  ;;  %20594 = vmatpush3.msra.mxu1 %v125_v62 }
  0xd6   :  { %20584 = vmatprep.subr.mxu0 %v120_v63  ;;  %20595 = vmatprep.subr.mxu1 %v124_v1 }
  0xd7   :  { %20585 = vmatpush3.msra.mxu0 %v120_v63  ;;  %20596 = vmatpush3.msra.mxu1 %v124_v1 }
  0xd8   :  { %20586 = vmatprep.subr.mxu0 %v119_v2  ;;  %20597 = vmatprep.subr.mxu1 %v123_v3 }
  0xd9   :  { %20587 = vmatpush3.msra.mxu0 %v119_v2  ;;  %20598 = vmatpush3.msra.mxu1 %v123_v3 }
  0xda   :  { %20589 = vmatmul.mubr.msk.f32.vlgmr.msra.gmra.mxu0 %vm57_vm0, %v22745_v28  ;;  %20600 = vmatmul.mubr.msk.f32.vlgmr.msra.gmra.mxu1 %vm57_vm0, %v22745_v28 }
  0xdb   :  { %20602 = vmatprep.subr.mxu0 %v22641_v4  ;;  %20607 = vmatprep.subr.mxu1 %v22641_v4 }
  0xdc   :  { %20604 = vmatprep.mubr.msk.f32.mxu0 %vm22642_vm1, %v22641_v4  ;;  %20609 = vmatprep.mubr.msk.f32.mxu1 %vm22642_vm1, %v22641_v4 }
 0x169   :  { %v22911_v5 = vpop.f32.mrf.mxu0  ;;  %v22913_v6 = vpop.f32.mrf.mxu1 }
 0x16b   :  { %v216_v7 = vpop.f32.mrf.mxu0  ;;  %v291_v8 = vpop.f32.mrf.mxu1 }
 0x172   :  { %v22915_v9 = vpop.f32.mrf.mxu0  ;;  %v22917_v10 = vpop.f32.mrf.mxu1 }
 0x174   :  { %v366_v11 = vpop.f32.mrf.mxu0  ;;  %v441_v12 = vpop.f32.mrf.mxu1 }
 0x17c   :  { %v22919_v13 = vpop.f32.mrf.mxu0  ;;  %v22921_v14 = vpop.f32.mrf.mxu1 }
 0x17e   :  { %v516_v15 = vpop.f32.mrf.mxu0  ;;  %v591_v16 = vpop.f32.mrf.mxu1 }
 0x17f   :  { %20603 = vmatpush3.xpose.msk.msra.mxu0 %vm1050_vm2, %v516_v15  ;;  %20608 = vmatpush3.xpose.msk.msra.mxu1 %vm1050_vm2, %v591_v16 }
 0x180   :  { %20612 = vmatprep.subr.mxu0 %v22641_v4  ;;  %20617 = vmatprep.subr.mxu1 %v22641_v4 }
 0x182   :  { %20605 = vmatmul.mubr.msk.f32.vlgmr.msra.gmra.mxu0 %vm1050_vm2, %v216_v7  ;;  %20610 = vmatmul.mubr.msk.f32.vlgmr.msra.gmra.mxu1 %vm1050_vm2, %v291_v8 }
 0x183   :  { %20614 = vmatprep.mubr.msk.f32.mxu0 %vm22642_vm1, %v22641_v4  ;;  %20619 = vmatprep.mubr.msk.f32.mxu1 %vm22642_vm1, %v22641_v4 }
 0x186   :  { %v22933_v17 = vpop.f32.mrf.mxu0  ;;  %v22935_v18 = vpop.f32.mrf.mxu1 }
 0x188   :  { %v666_v19 = vpop.f32.mrf.mxu0  ;;  %v741_v20 = vpop.f32.mrf.mxu1 }
 0x189   :  { %20613 = vmatpush3.xpose.msk.msra.mxu0 %vm1050_vm2, %v666_v19  ;;  %20618 = vmatpush3.xpose.msk.msra.mxu1 %vm1050_vm2, %v741_v20 }
 0x18a   :  { %20622 = vmatprep.subr.mxu0 %v22641_v4  ;;  %20627 = vmatprep.subr.mxu1 %v22641_v4 }
 0x18c   :  { %20615 = vmatmul.mubr.msk.f32.vlgmr.msra.gmra.mxu0 %vm1050_vm2, %v366_v11  ;;  %20620 = vmatmul.mubr.msk.f32.vlgmr.msra.gmra.mxu1 %vm1050_vm2, %v441_v12 }
 0x18d   :  { %20624 = vmatprep.mubr.msk.f32.mxu0 %vm22642_vm1, %v22641_v4  ;;  %20629 = vmatprep.mubr.msk.f32.mxu1 %vm22642_vm1, %v22641_v4 }
 0x190   :  { %v22947_v21 = vpop.f32.mrf.mxu0  ;;  %v22949_v22 = vpop.f32.mrf.mxu1 }
 0x192   :  { %v816_v23 = vpop.f32.mrf.mxu0  ;;  %v891_v24 = vpop.f32.mrf.mxu1 }
 0x193   :  { %20623 = vmatpush3.msra.mxu0 %v816_v23  ;;  %20628 = vmatpush3.msra.mxu1 %v891_v24 }
 0x194   :  { %20632 = vmatprep.subr.mxu0 %v22641_v4  ;;  %20637 = vmatprep.subr.mxu1 %v22641_v4 }
 0x19a   :  { %v22953_v25 = vpop.f32.mrf.mxu0  ;;  %v22955_v26 = vpop.f32.mrf.mxu1 }
 0x19c   :  { %v22957_v27 = vpop.f32.mrf.mxu0  ;;  %v22959_v28 = vpop.f32.mrf.mxu1 }
 0x242   :  { %v1123_v30 = vpop.f32.mrf.mxu0  ;;  %v1199_v32 = vpop.f32.mrf.mxu1 }
 0x243   :  { %v1124_v33 = vadd.f32 %v1123_v30, %v32_v29  ;;  %v1200_v36 = vadd.f32 %v1199_v32, %v33_v31 }
 0x244   :  { %v20606_v34 = vpop.f32.mrf.mxu0  ;;  %v20611_v35 = vpop.f32.mrf.mxu1 }
 0x245   :  { %v1355_v37 = vsel %vm1050_vm2, %v1124_v33, -inf  ;;  %v1358_v38 = vsel %vm1050_vm2, %v1200_v36, -inf  ;;  %v23017_v34 = vld [vmem:[%s26393_s7 + $0x190] sm:$0xff]  ;;  %v23031_v35 = vld [vmem:[%s26393_s7 + $0x1a8] sm:$0xff] }
 0x246   :  { %1356 = vmax.xlane.f32.xlu1 %v1355_v37  ;;  %v23048_v37 = vld [vmem:[%s26393_s7 + $0x180] sm:$0xff] }
 0x24a   :  { %1359 = vmax.xlane.f32.xlu1 %v1358_v38  ;;  %v23056_v38 = vld [vmem:[%s26393_s7 + $0x1a0] sm:$0xff] }
 0x24c   :  { %v1351_v41 = vpop.f32.mrf.mxu1  ;;  %v1275_v42 = vpop.f32.mrf.mxu0 }
 0x24d   :  { %v1352_v43 = vadd.f32 %v1351_v41, %v35_v39  ;;  %v1276_v44 = vadd.f32 %v1275_v42, %v34_v40  ;;  %v23064_v39 = vld [vmem:[%s26393_s7 + $0x1d8] sm:$0xff]  ;;  %v23075_v42 = vld [vmem:[%s26393_s7 + $0x1d0] sm:$0xff] }
 0x24e   :  { %v20616_v45 = vpop.f32.mrf.mxu0  ;;  %v20621_v46 = vpop.f32.mrf.mxu1 }
 0x24f   :  { %v1364_v47 = vsel %vm1050_vm2, %v1352_v43, -inf  ;;  %v1361_v48 = vsel %vm1050_vm2, %v1276_v44, -inf  ;;  %v23092_v46 = vld [vmem:[%s26393_s7 + $0x1c8] sm:$0xff] }
 0x250   :  { %1365 = vmax.xlane.f32.xlu1 %v1364_v47  ;;  %1362 = vmax.xlane.f32.xlu0 %v1361_v48  ;;  %v23097_v47 = vld [vmem:[%s26393_s7 + $0x1f0] sm:$0xff] }
 0x2cf   :  { %v1357_v49 = vpop.xlane.xlu1 %1356 }
 0x2d0   :  { %v1367_v50 = vsub.f32 %v1124_v33, %v1357_v49  ;;  %v22999_v33 = vld [vmem:[%s26393_s7 + $0x198] sm:$0xff] }
 0x2d2   :  { %v1371_v51 = vmul.f32 1.442695, %v1367_v50  ;;  %v23110_v50 = vld [vmem:[%s26393_s7 + $0x1c0] sm:$0xff] }
 0x2d3   :  { %v1360_v52 = vpop.xlane.xlu1 %1359 }
 0x2d4   :  { %22375 = vpow2.f32 %v1371_v51  ;;  %v1368_v53 = vsub.f32 %v1200_v36, %v1360_v52  ;;  %v23037_v36 = vld [vmem:[%s26393_s7 + $0x188] sm:$0xff] }
 0x2d5   :  { %v23115_v51 = vld [vmem:[%s26393_s7 + $0x1e8] sm:$0xff] }
 0x2d6   :  { %v1373_v54 = vmul.f32 1.442695, %v1368_v53 }
 0x2d8   :  { %22377 = vpow2.f32 %v1373_v54  ;;  %v23126_v54 = vld [vmem:[%s26393_s7 + $0x1e0] sm:$0xff] }
 0x2d9   :  { %v1366_v55 = vpop.xlane.xlu1 %1365  ;;  %v1363_v56 = vpop.xlane.xlu0 %1362 }
 0x2da   :  { %v1370_v57 = vsub.f32 %v1352_v43, %v1366_v55  ;;  %v1369_v58 = vsub.f32 %v1276_v44, %v1363_v56  ;;  %v23080_v43 = vld [vmem:[%s26393_s7 + $0x1f8] sm:$0xff] }
 0x2dc   :  { %v1377_v59 = vmul.f32 1.442695, %v1370_v57  ;;  %v1375_v60 = vmul.f32 1.442695, %v1369_v58 }
 0x2de   :  { %22379 = vpow2.f32 %v1377_v59 }
 0x2df   :  { %22381 = vpow2.f32 %v1375_v60 }
 0x2e1   :  { %v22376_v61 = vpop.eup %22375 }
 0x2e2   :  { %v1379_v62 = vsel %vm1050_vm2, %v22376_v61, 0.0 }
 0x2e3   :  { %1380 = vadd.xlane.f32.xlu0 %v1379_v62 }
 0x2e5   :  { %v22378_v63 = vpop.eup %22377 }
 0x2e6   :  { %v1382_v1 = vsel %vm1050_vm2, %v22378_v63, 0.0 }
 0x2e7   :  { %1383 = vadd.xlane.f32.xlu1 %v1382_v1  ;;  %v37_v1 = vld [vmem:[%s26395_s2 + $0x28] sm:$0xff] }
 0x2eb   :  { %v22380_v2 = vpop.eup %22379 }
 0x2ec   :  { %v22382_v3 = vpop.eup %22381  ;;  %v1388_v7 = vsel %vm1050_vm2, %v22380_v2, 0.0 }
 0x2ed   :  { %1389 = vadd.xlane.f32.xlu1 %v1388_v7  ;;  %v1385_v8 = vsel %vm1050_vm2, %v22382_v3, 0.0 }
 0x2ee   :  { %1386 = vadd.xlane.f32.xlu0 %v1385_v8 }
 0x36c   :  { %v1381_v11 = vpop.xlane.xlu0 %1380 }
 0x36d   :  { %22383 = vrcp.f32 %v1381_v11 }
 0x370   :  { %v1384_v12 = vpop.xlane.xlu1 %1383 }
 0x371   :  { %22385 = vrcp.f32 %v1384_v12 }
 0x376   :  { %v1390_v15 = vpop.xlane.xlu1 %1389 }
 0x377   :  { %22387 = vrcp.f32 %v1390_v15  ;;  %v1387_v16 = vpop.xlane.xlu0 %1386 }
 0x378   :  { %22389 = vrcp.f32 %v1387_v16 }
 0x37a   :  { %v22384_v19 = vpop.eup %22383 }
 0x37b   :  { %v1395_v20 = vmul.f32 %v22384_v19, %v22376_v61  ;;  %v39_v19 = vld [vmem:[%s26395_s2 + $0x38] sm:$0xff] }
 0x37d   :  { %20625 = vmatmul.mubr.msk.f32.vlgmr.msra.gmra.mxu0 %vm1050_vm2, %v1395_v20 }
 0x37e   :  { %v22386_v23 = vpop.eup %22385  ;;  %20633 = vmatpush3.msra.mxu0 %v22957_v27  ;;  %20634 = vmatprep.mubr.msk.f32.mxu0 %vm22642_vm1, %v22641_v4  ;;  %v22994_v27 = vld [vmem:[%s26393_s7 + $0x1b8] sm:$0xff] }
 0x37f   :  { %v1396_v24 = vmul.f32 %v22386_v23, %v22378_v63  ;;  %20642 = vmatprep.subr.mxu0 %v22641_v4 }
 0x381   :  { %20630 = vmatmul.mubr.msk.f32.vlgmr.msra.gmra.mxu1 %vm1050_vm2, %v1396_v24 }
 0x382   :  { %20638 = vmatpush3.msra.mxu1 %v22959_v28  ;;  %20639 = vmatprep.mubr.msk.f32.mxu1 %vm22642_vm1, %v22641_v4  ;;  %v23011_v28 = vld [vmem:[%s26393_s7 + $0x1b0] sm:$0xff] }
 0x383   :  { %20653 = vmatprep.subr.mxu1 %v22641_v4 }
 0x384   :  { %v22388_v29 = vpop.eup %22387 }
 0x385   :  { %v22390_v30 = vpop.eup %22389  ;;  %v1398_v31 = vmul.f32 %v22388_v29, %v22380_v2  ;;  %v38_v2 = vld [vmem:[%s26395_s2 + $0x30] sm:$0xff] }
 0x386   :  { %v1397_v32 = vmul.f32 %v22390_v30, %v22382_v3 }
 0x387   :  { %20640 = vmatmul.mubr.msk.f32.vlgmr.msra.gmra.mxu1 %vm1050_vm2, %v1398_v31 }
 0x388   :  { %20635 = vmatmul.mubr.msk.f32.vlgmr.msra.gmra.mxu0 %vm1050_vm2, %v1397_v32  ;;  %20654 = vmatpush3.xpose.msk.msra.mxu1 %vm1050_vm2, %v22994_v27 }
 0x389   :  { %20643 = vmatpush3.xpose.msk.msra.mxu0 %vm1050_vm2, %v22999_v33  ;;  %20655 = vmatprep.subr.mxu1 %v22641_v4 }
 0x38a   :  { %20644 = vmatprep.subr.mxu0 %v22641_v4  ;;  %20650 = vmatprep.mubr.msk.f32.mxu0 %vm22642_vm1, %v22641_v4 }
 0x38b   :  { %20661 = vmatprep.mubr.msk.f32.mxu1 %vm22642_vm1, %v22641_v4 }
 0x38c   :  { %20656 = vmatpush3.xpose.msk.msra.mxu1 %vm1050_vm2, %v23011_v28 }
 0x38d   :  { %20645 = vmatpush3.xpose.msk.msra.mxu0 %vm1050_vm2, %v23017_v34  ;;  %20657 = vmatprep.subr.mxu1 %v22641_v4 }
 0x38e   :  { %20646 = vmatprep.subr.mxu0 %v22641_v4 }
 0x390   :  { %20658 = vmatpush3.xpose.msk.msra.mxu1 %vm1050_vm2, %v23031_v35 }
 0x391   :  { %20647 = vmatpush3.xpose.msk.msra.mxu0 %vm1050_vm2, %v23037_v36  ;;  %20659 = vmatprep.subr.mxu1 %v22641_v4 }
 0x392   :  { %20648 = vmatprep.subr.mxu0 %v22641_v4 }
 0x394   :  { %20660 = vmatpush3.xpose.msk.msra.mxu1 %vm1050_vm2, %v23056_v38 }
 0x395   :  { %20649 = vmatpush3.xpose.msk.msra.mxu0 %vm1050_vm2, %v23048_v37  ;;  %20675 = vmatprep.subr.mxu1 %v22641_v4 }
 0x396   :  { %20664 = vmatprep.subr.mxu0 %v22641_v4 }
 0x43d   :  { %v1468_v40 = vpop.f32.mrf.mxu0 }
 0x43e   :  { %20651 = vmatmul.mubr.msk.f32.vlgmr.msra.gmra.mxu0 %vm1050_vm2, %v1468_v40 }
 0x43f   :  { %20665 = vmatpush3.xpose.msk.msra.mxu0 %vm1050_vm2, %v23064_v39  ;;  %v20626_v41 = vpop.f32.mrf.mxu0  ;;  %20672 = vmatprep.mubr.msk.f32.mxu0 %vm22642_vm1, %v22641_v4 }
 0x440   :  { %20666 = vmatprep.subr.mxu0 %v22641_v4 }
 0x441   :  { %v1541_v44 = vpop.f32.mrf.mxu1 }
 0x442   :  { %20662 = vmatmul.mubr.msk.f32.vlgmr.msra.gmra.mxu1 %vm1050_vm2, %v1541_v44 }
 0x443   :  { %20667 = vmatpush3.xpose.msk.msra.mxu0 %vm1050_vm2, %v23075_v42  ;;  %20676 = vmatpush3.xpose.msk.msra.mxu1 %vm1050_vm2, %v23080_v43  ;;  %v20631_v45 = vpop.f32.mrf.mxu1 }
 0x444   :  { %20668 = vmatprep.subr.mxu0 %v22641_v4  ;;  %20677 = vmatprep.subr.mxu1 %v22641_v4 }
 0x445   :  { %20683 = vmatprep.mubr.msk.f32.mxu1 %vm22642_vm1, %v22641_v4 }
 0x447   :  { %v1687_v48 = vpop.f32.mrf.mxu1  ;;  %20669 = vmatpush3.xpose.msk.msra.mxu0 %vm1050_vm2, %v23092_v46  ;;  %20678 = vmatpush3.xpose.msk.msra.mxu1 %vm1050_vm2, %v23097_v47 }
 0x448   :  { %v1614_v49 = vpop.f32.mrf.mxu0  ;;  %20670 = vmatprep.subr.mxu0 %v22641_v4  ;;  %20679 = vmatprep.subr.mxu1 %v22641_v4 }
 0x449   :  { %v20641_v52 = vpop.f32.mrf.mxu1 }
 0x44a   :  { %v20636_v53 = vpop.f32.mrf.mxu0 }
 0x44b   :  { %20671 = vmatpush3.xpose.msk.msra.mxu0 %vm1050_vm2, %v23110_v50  ;;  %20680 = vmatpush3.xpose.msk.msra.mxu1 %vm1050_vm2, %v23115_v51 }
 0x44c   :  { %20681 = vmatprep.subr.mxu1 %v22641_v4  ;;  %20686 = vmatprep.subr.mxu0 %v22641_v4 }
 0x44e   :  { %20673 = vmatmul.mubr.msk.f32.vlgmr.msra.gmra.mxu0 %vm1050_vm2, %v1614_v49 }
 0x44f   :  { %20682 = vmatpush3.xpose.msk.msra.mxu1 %vm1050_vm2, %v23126_v54  ;;  %20687 = vmatpush3.xpose.msk.msra.mxu0 %vm1050_vm2, %v22919_v13 }
 0x450   :  { %20688 = vmatprep.mubr.msk.f32.mxu0 %vm22642_vm1, %v22641_v4  ;;  %20691 = vmatprep.subr.mxu1 %v22641_v4 }
 0x451   :  { %20696 = vmatprep.subr.mxu0 %v22641_v4 }
 0x452   :  { %20684 = vmatmul.mubr.msk.f32.vlgmr.msra.gmra.mxu1 %vm1050_vm2, %v1687_v48  ;;  %20689 = vmatmul.mubr.msk.f32.vlgmr.msra.gmra.mxu0 %vm1050_vm2, %v22911_v5 }
 0x453   :  { %20692 = vmatpush3.xpose.msk.msra.mxu1 %vm1050_vm2, %v22921_v14  ;;  %20697 = vmatpush3.xpose.msk.msra.mxu0 %vm1050_vm2, %v22933_v17 }
 0x454   :  { %20693 = vmatprep.mubr.msk.f32.mxu1 %vm22642_vm1, %v22641_v4  ;;  %20698 = vmatprep.mubr.msk.f32.mxu0 %vm22642_vm1, %v22641_v4 }
 0x455   :  { %20701 = vmatprep.subr.mxu1 %v22641_v4  ;;  %20706 = vmatprep.subr.mxu0 %v22641_v4 }
 0x456   :  { %20694 = vmatmul.mubr.msk.f32.vlgmr.msra.gmra.mxu1 %vm1050_vm2, %v22913_v6  ;;  %20699 = vmatmul.mubr.msk.f32.vlgmr.msra.gmra.mxu0 %vm1050_vm2, %v22915_v9 }
 0x457   :  { %20702 = vmatpush3.xpose.msk.msra.mxu1 %vm1050_vm2, %v22935_v18  ;;  %20707 = vmatpush3.msra.mxu0 %v22947_v21 }
 0x458   :  { %20703 = vmatprep.mubr.msk.f32.mxu1 %vm22642_vm1, %v22641_v4  ;;  %20711 = vmatprep.subr.mxu1 %v22641_v4 }
 0x459   :  { %20708 = vmatprep.mubr.msk.f32.mxu0 %vm22642_vm1, %v22641_v4  ;;  %20716 = vmatprep.subr.mxu0 %v22641_v4 }
 0x45a   :  { %20704 = vmatmul.mubr.msk.f32.vlgmr.msra.gmra.mxu1 %vm1050_vm2, %v22917_v10 }
 0x45b   :  { %20712 = vmatpush3.msra.mxu1 %v22949_v22  ;;  %20713 = vmatprep.mubr.msk.f32.mxu1 %vm22642_vm1, %v22641_v4  ;;  %v36_v22 = vld [vmem:[%s26395_s2 + $0x20] sm:$0xff] }
 0x45c   :  { %20721 = vmatprep.subr.mxu1 %v22641_v4 }
 0x4fe   :  { %v1772_v5 = vpop.f32.mrf.mxu0 }
 0x4ff   :  { %v2031_v13 = vsel %vm57_vm0, %v1772_v5, 0.0 }
 0x500   :  { %v20652_v6 = vpop.f32.mrf.mxu0 }
 0x502   :  { %v1857_v9 = vpop.f32.mrf.mxu1 }
 0x503   :  { %v2032_v14 = vsel %vm57_vm0, %v1857_v9, 0.0 }
 0x504   :  { %v2033_v17 = vadd.f32 %v2032_v14, %v2031_v13  ;;  %v20663_v18 = vpop.f32.mrf.mxu1 }
 0x50e   :  { %v1942_v21 = vpop.f32.mrf.mxu0 }
 0x50f   :  { %v2034_v55 = vsel %vm57_vm0, %v1942_v21, 0.0 }
 0x510   :  { %v2035_v10 = vadd.f32 %v2034_v55, %v2033_v17  ;;  %v20674_v56 = vpop.f32.mrf.mxu0 }
 0x512   :  { %v2027_v57 = vpop.f32.mrf.mxu1  ;;  %v2110_v58 = vpop.f32.mrf.mxu0 }
 0x513   :  { %v2036_v59 = vsel %vm57_vm0, %v2027_v57, 0.0  ;;  %v2111_v60 = vadd.f32 %v2110_v58, %v36_v22 }
 0x514   :  { %v2037_v61 = vadd.f32 %v2036_v59, %v2035_v10  ;;  %v20685_v62 = vpop.f32.mrf.mxu1  ;;  %v20690_v63 = vpop.f32.mrf.mxu0 }
 0x515   :  { %v2342_v3 = vsel %vm1050_vm2, %v2111_v60, -inf }
 0x516   :  { %v2186_v7 = vpop.f32.mrf.mxu1  ;;  %2343 = vmax.xlane.f32.xlu0 %v2342_v3  ;;  %v2262_v8 = vpop.f32.mrf.mxu0  ;;  %v23191_v17 = vadd.f32 %v2037_v61, %v22696_v0 }
 0x517   :  { %v2187_v11 = vadd.f32 %v2186_v7, %v37_v1  ;;  %v2263_v12 = vadd.f32 %v2262_v8, %v38_v2 }
 0x518   :  { %v20695_v15 = vpop.f32.mrf.mxu1  ;;  %v20700_v16 = vpop.f32.mrf.mxu0  ;;  %v2980_v56 = vmul.f32 %v23191_v17, %v23191_v17 }
 0x519   :  { %v2345_v20 = vsel %vm1050_vm2, %v2187_v11, -inf  ;;  %v2348_v23 = vsel %vm1050_vm2, %v2263_v12, -inf }
 0x51a   :  { %2346 = vmax.xlane.f32.xlu1 %v2345_v20  ;;  %v2338_v24 = vpop.f32.mrf.mxu1  ;;  %2349 = vmax.xlane.f32.xlu0 %v2348_v23  ;;  %v2982_v58 = vsel %vm57_vm0, %v2980_v56, 0.0 }
 0x51b   :  { %v2339_v29 = vadd.f32 %v2338_v24, %v39_v19 }
 0x51c   :  { %v20705_v30 = vpop.f32.mrf.mxu1 }
 0x51d   :  { %v2351_v31 = vsel %vm1050_vm2, %v2339_v29, -inf }
 0x51e   :  { %2352 = vmax.xlane.f32.xlu1 %v2351_v31 }
 0x59f   :  { %v2344_v32 = vpop.xlane.xlu0 %2343 }
 0x5a0   :  { %v2354_v40 = vsub.f32 %v2111_v60, %v2344_v32 }
 0x5a2   :  { %v2358_v41 = vmul.f32 1.442695, %v2354_v40 }
 0x5a3   :  { %v2347_v44 = vpop.xlane.xlu1 %2346  ;;  %v2350_v45 = vpop.xlane.xlu0 %2349 }
 0x5a4   :  { %22391 = vpow2.f32 %v2358_v41  ;;  %v2355_v48 = vsub.f32 %v2187_v11, %v2347_v44  ;;  %v2356_v49 = vsub.f32 %v2263_v12, %v2350_v45  ;;  %v18719_v12 = vld [vmem:[%s26394_s6 + $0x1] ss:$0 sm:$0xff]  ;;  %v22619_v41 = vld [vmem:[%s26392_s0 + $0x8] sm:$0xff] }
 0x5a6   :  { %v2360_v52 = vmul.f32 1.442695, %v2355_v48  ;;  %v2362_v53 = vmul.f32 1.442695, %v2356_v49  ;;  %v3005_v49 = vld [vmem:[%s26396_s8 + $0x18] sm:$0xff] }
 0x5a7   :  { %v2353_v5 = vpop.xlane.xlu1 %2352 }
 0x5a8   :  { %22393 = vpow2.f32 %v2360_v52  ;;  %v2357_v6 = vsub.f32 %v2339_v29, %v2353_v5  ;;  %v3004_v52 = vld [vmem:[%s26396_s8 + $0x10] sm:$0xff]  ;;  %v3002_v5 = vld [vmem:[%s26396_s8] sm:$0xff] }
 0x5a9   :  { %22395 = vpow2.f32 %v2362_v53  ;;  %v3003_v53 = vld [vmem:[%s26396_s8 + $0x8] sm:$0xff] }
 0x5aa   :  { %v2364_v9 = vmul.f32 1.442695, %v2357_v6  ;;  %v18723_v6 = vld [vmem:[%s26396_s8 + $0x38] sm:$0xff] }
 0x5ac   :  { %22397 = vpow2.f32 %v2364_v9  ;;  %v18722_v9 = vld [vmem:[%s26396_s8 + $0x30] sm:$0xff] }
 0x5b1   :  { %v22392_v13 = vpop.eup %22391 }
 0x5b2   :  { %v2366_v14 = vsel %vm1050_vm2, %v22392_v13, 0.0 }
 0x5b3   :  { %2367 = vadd.xlane.f32.xlu0 %v2366_v14 }
 0x5b5   :  { %v22394_v18 = vpop.eup %22393 }
 0x5b6   :  { %v22396_v21 = vpop.eup %22395  ;;  %v2369_v55 = vsel %vm1050_vm2, %v22394_v18, 0.0 }
 0x5b7   :  { %2370 = vadd.xlane.f32.xlu1 %v2369_v55  ;;  %v2372_v10 = vsel %vm1050_vm2, %v22396_v21, 0.0 }
 0x5b8   :  { %2373 = vadd.xlane.f32.xlu0 %v2372_v10 }
 0x5b9   :  { %v22398_v22 = vpop.eup %22397 }
 0x5ba   :  { %v2375_v57 = vsel %vm1050_vm2, %v22398_v22, 0.0 }
 0x5bb   :  { %2376 = vadd.xlane.f32.xlu1 %v2375_v57 }
 0x5bc   :  { %2983 = vadd.xlane.f32.xlu0 %v2982_v58 }
 0x63c   :  { %v2368_v0 = vpop.xlane.xlu0 %2367 }
 0x63d   :  { %22399 = vrcp.f32 %v2368_v0 }
 0x640   :  { %v2371_v59 = vpop.xlane.xlu1 %2370 }
 0x641   :  { %22401 = vrcp.f32 %v2371_v59  ;;  %v2374_v60 = vpop.xlane.xlu0 %2373 }
 0x642   :  { %22403 = vrcp.f32 %v2374_v60 }
 0x644   :  { %v2377_v61 = vpop.xlane.xlu1 %2376 }
 0x645   :  { %22405 = vrcp.f32 %v2377_v61 }
 0x64a   :  { %v22400_v62 = vpop.eup %22399 }
 0x64b   :  { %v2382_v63 = vmul.f32 %v22400_v62, %v22392_v13  ;;  %v18721_v13 = vld [vmem:[%s26396_s8 + $0x28] sm:$0xff] }
 0x64d   :  { %20709 = vmatmul.mubr.msk.f32.vlgmr.msra.gmra.mxu0 %vm1050_vm2, %v2382_v63 }
 0x64e   :  { %v22402_v1 = vpop.eup %22401  ;;  %20717 = vmatpush3.msra.mxu0 %v22953_v25  ;;  %20718 = vmatprep.mubr.msk.f32.mxu0 %vm22642_vm1, %v22641_v4  ;;  %v2984_v25 = vpop.xlane.xlu0 %2983 }
 0x64f   :  { %v22404_v2 = vpop.eup %22403  ;;  %v2383_v3 = vmul.f32 %v22402_v1, %v22394_v18  ;;  %20726 = vmatprep.subr.mxu0 %v22641_v4 }
 0x650   :  { %v2384_v7 = vmul.f32 %v22404_v2, %v22396_v21 }
 0x651   :  { %20714 = vmatmul.mubr.msk.f32.vlgmr.msra.gmra.mxu1 %vm1050_vm2, %v2383_v3 }
 0x652   :  { %v22406_v8 = vpop.eup %22405  ;;  %20719 = vmatmul.mubr.msk.f32.vlgmr.msra.gmra.mxu0 %vm1050_vm2, %v2384_v7  ;;  %20722 = vmatpush3.msra.mxu1 %v22955_v26  ;;  %v2988_v26 = vmul.f32 0.03125, %v2984_v25  ;;  %v18743_v25 = vld [vmem:[%s26393_s7 + $0x250] sm:$0xff] }
 0x653   :  { %20723 = vmatprep.mubr.msk.f32.mxu1 %vm22642_vm1, %v22641_v4  ;;  %v2385_v11 = vmul.f32 %v22406_v8, %v22398_v22  ;;  %20727 = vmatpush3.xpose.msk.msra.mxu0 %vm1050_vm2, %v22999_v33  ;;  %v18720_v22 = vld [vmem:[%s26396_s8 + $0x20] sm:$0xff]  ;;  %v18736_v8 = vld [vmem:[%s26393_s7 + $0x218] sm:$0xff] }
 0x654   :  { %20728 = vmatprep.subr.mxu0 %v22641_v4  ;;  %20737 = vmatprep.subr.mxu1 %v22641_v4 }
 0x655   :  { %20724 = vmatmul.mubr.msk.f32.vlgmr.msra.gmra.mxu1 %vm1050_vm2, %v2385_v11  ;;  %20734 = vmatprep.mubr.msk.f32.mxu0 %vm22642_vm1, %v22641_v4  ;;  %v18735_v11 = vld [vmem:[%s26393_s7 + $0x210] sm:$0xff] }
 0x656   :  { %20738 = vmatpush3.xpose.msk.msra.mxu1 %vm1050_vm2, %v22994_v27  ;;  %20745 = vmatprep.mubr.msk.f32.mxu1 %vm22642_vm1, %v22641_v4  ;;  %v2990_v27 = vadd.f32 1e-06, %v2988_v26  ;;  %v18734_v26 = vld [vmem:[%s26393_s7 + $0x208] sm:$0xff] }
 0x657   :  { %20729 = vmatpush3.xpose.msk.msra.mxu0 %vm1050_vm2, %v23017_v34  ;;  %20739 = vmatprep.subr.mxu1 %v22641_v4 }
 0x658   :  { %20730 = vmatprep.subr.mxu0 %v22641_v4  ;;  %22407 = vrsqrt.f32 %v2990_v27  ;;  %v18742_v27 = vld [vmem:[%s26393_s7 + $0x248] sm:$0xff] }
 0x65a   :  { %20740 = vmatpush3.xpose.msk.msra.mxu1 %vm1050_vm2, %v23011_v28 }
 0x65b   :  { %20731 = vmatpush3.xpose.msk.msra.mxu0 %vm1050_vm2, %v23037_v36  ;;  %20741 = vmatprep.subr.mxu1 %v22641_v4 }
 0x65c   :  { %20732 = vmatprep.subr.mxu0 %v22641_v4 }
 0x65e   :  { %20742 = vmatpush3.xpose.msk.msra.mxu1 %vm1050_vm2, %v23031_v35 }
 0x65f   :  { %20733 = vmatpush3.xpose.msk.msra.mxu0 %vm1050_vm2, %v23048_v37  ;;  %20743 = vmatprep.subr.mxu1 %v22641_v4 }
 0x660   :  { %20748 = vmatprep.subr.mxu0 %v22641_v4 }
 0x662   :  { %20744 = vmatpush3.xpose.msk.msra.mxu1 %vm1050_vm2, %v23056_v38 }
 0x663   :  { %20759 = vmatprep.subr.mxu1 %v22641_v4 }
 0x70d   :  { %v2455_v33 = vpop.f32.mrf.mxu0 }
 0x70e   :  { %20735 = vmatmul.mubr.msk.f32.vlgmr.msra.gmra.mxu0 %vm1050_vm2, %v2455_v33  ;;  %v18733_v33 = vld [vmem:[%s26393_s7 + $0x200] sm:$0xff] }
 0x70f   :  { %20749 = vmatpush3.xpose.msk.msra.mxu0 %vm1050_vm2, %v23064_v39  ;;  %v20710_v28 = vpop.f32.mrf.mxu0  ;;  %20756 = vmatprep.mubr.msk.f32.mxu0 %vm22642_vm1, %v22641_v4  ;;  %v22408_v39 = vpop.eup %22407 }
 0x710   :  { %20750 = vmatprep.subr.mxu0 %v22641_v4  ;;  %v18741_v28 = vld [vmem:[%s26393_s7 + $0x240] sm:$0xff] }
 0x711   :  { %v2528_v34 = vpop.f32.mrf.mxu1 }
 0x712   :  { %v2601_v35 = vpop.f32.mrf.mxu0  ;;  %20746 = vmatmul.mubr.msk.f32.vlgmr.msra.gmra.mxu1 %vm1050_vm2, %v2528_v34  ;;  %v18740_v34 = vld [vmem:[%s26393_s7 + $0x238] sm:$0xff] }
 0x713   :  { %20751 = vmatpush3.xpose.msk.msra.mxu0 %vm1050_vm2, %v23075_v42  ;;  %20760 = vmatpush3.xpose.msk.msra.mxu1 %vm1050_vm2, %v23080_v43  ;;  %v20715_v36 = vpop.f32.mrf.mxu1  ;;  %v2994_v43 = vmul.f32 %v22408_v39, %v23191_v17 }
 0x714   :  { %v20720_v37 = vpop.f32.mrf.mxu0  ;;  %20752 = vmatprep.subr.mxu0 %v22641_v4  ;;  %20761 = vmatprep.subr.mxu1 %v22641_v4 }
 0x715   :  { %v2674_v38 = vpop.f32.mrf.mxu1  ;;  %20767 = vmatprep.mubr.msk.f32.mxu1 %vm22642_vm1, %v22641_v4 }
 0x717   :  { %20753 = vmatpush3.xpose.msk.msra.mxu0 %vm1050_vm2, %v23092_v46  ;;  %20762 = vmatpush3.xpose.msk.msra.mxu1 %vm1050_vm2, %v23097_v47  ;;  %v20725_v42 = vpop.f32.mrf.mxu1  ;;  %v3000_v46 = vmul.f32 %v18719_v12, %v2994_v43 }
 0x718   :  { %20754 = vmatprep.subr.mxu0 %v22641_v4  ;;  %20763 = vmatprep.subr.mxu1 %v22641_v4 }
 0x71b   :  { %20755 = vmatpush3.xpose.msk.msra.mxu0 %vm1050_vm2, %v23110_v50  ;;  %20764 = vmatpush3.xpose.msk.msra.mxu1 %vm1050_vm2, %v23115_v51 }
 0x71c   :  { %20765 = vmatprep.subr.mxu1 %v22641_v4  ;;  %20770 = vmatprep.subr.mxu0 %v3005_v49 }
 0x71e   :  { %20757 = vmatmul.mubr.msk.f32.vlgmr.msra.gmra.mxu0 %vm1050_vm2, %v2601_v35  ;;  %v18752_v35 = vld [vmem:[%s26393_s7 + $0x298] sm:$0xff] }
 0x71f   :  { %20766 = vmatpush3.xpose.msk.msra.mxu1 %vm1050_vm2, %v23126_v54  ;;  %20778 = vmatprep.mubr.msk.f32.mxu0 %vm57_vm0, %v3000_v46 }
 0x720   :  { %20771 = vmatpush3.msra.mxu0 %v3005_v49  ;;  %20781 = vmatprep.subr.msk.mxu1 %vm3094_vm3, %v18723_v6  ;;  %v18756_v49 = vld [vmem:[%s26393_s7 + $0x2b8] sm:$0xff] }
 0x721   :  { %20772 = vmatprep.subr.mxu0 %v3004_v52 }
 0x722   :  { %20768 = vmatmul.mubr.msk.f32.vlgmr.msra.gmra.mxu1 %vm1050_vm2, %v2674_v38  ;;  %20773 = vmatpush3.msra.mxu0 %v3004_v52  ;;  %v18768_v52 = vld [vmem:[%s26393_s7 + $0x318] sm:$0xff] }
 0x723   :  { %20774 = vmatprep.subr.mxu0 %v3003_v53  ;;  %20782 = vmatpush3.xpose.msk.msra.mxu1 %vm3094_vm3, %v18723_v6  ;;  %v18754_v6 = vld [vmem:[%s26393_s7 + $0x2a8] sm:$0xff] }
 0x724   :  { %20775 = vmatpush3.msra.mxu0 %v3003_v53  ;;  %20783 = vmatprep.subr.msk.mxu1 %vm3094_vm3, %v18722_v9  ;;  %v18755_v53 = vld [vmem:[%s26393_s7 + $0x2b0] sm:$0xff] }
 0x725   :  { %20776 = vmatprep.subr.mxu0 %v3002_v5 }
 0x726   :  { %20777 = vmatpush3.msra.mxu0 %v3002_v5  ;;  %v18767_v5 = vld [vmem:[%s26393_s7 + $0x310] sm:$0xff] }
 0x727   :  { %20784 = vmatpush3.xpose.msk.msra.mxu1 %vm3094_vm3, %v18722_v9  ;;  %20792 = vmatprep.subr.mxu0 %v18736_v8  ;;  %v18766_v9 = vld [vmem:[%s26393_s7 + $0x308] sm:$0xff] }
 0x728   :  { %20785 = vmatprep.subr.msk.mxu1 %vm3094_vm3, %v18721_v13 }
 0x72b   :  { %20786 = vmatpush3.xpose.msk.msra.mxu1 %vm3094_vm3, %v18721_v13  ;;  %v18753_v13 = vld [vmem:[%s26393_s7 + $0x2a0] sm:$0xff] }
 0x72c   :  { %20787 = vmatprep.subr.msk.mxu1 %vm3094_vm3, %v18720_v22 }
 0x72f   :  { %20788 = vmatpush3.xpose.msk.msra.mxu1 %vm3094_vm3, %v18720_v22  ;;  %v18774_v22 = vld [vmem:[%s26393_s7 + $0x348] sm:$0xff] }
 0x7ce   :  { %v2747_v47 = vpop.f32.mrf.mxu0 }
 0x7cf   :  { %v2970_v51 = vsel %vm57_vm0, %v2747_v47, 0.0 }
 0x7d0   :  { %v20736_v15 = vpop.f32.mrf.mxu0 }
 0x7d1   :  { %v18732_v15 = vld [vmem:[%s26394_s6 + $0x2] ss:$0 sm:$0xff] }
 0x7d2   :  { %v2820_v16 = vpop.f32.mrf.mxu1 }
 0x7d3   :  { %v2971_v50 = vsel %vm57_vm0, %v2820_v16, 0.0 }
 0x7d4   :  { %v20747_v19 = vpop.f32.mrf.mxu1  ;;  %v2972_v24 = vadd.f32 %v2971_v50, %v2970_v51  ;;  %v18751_v51 = vld [vmem:[%s26393_s7 + $0x290] sm:$0xff] }
 0x7de   :  { %v2893_v20 = vpop.f32.mrf.mxu0 }
 0x7df   :  { %v2973_v23 = vsel %vm57_vm0, %v2893_v20, 0.0  ;;  %v18739_v20 = vld [vmem:[%s26393_s7 + $0x230] sm:$0xff] }
 0x7e0   :  { %v20758_v29 = vpop.f32.mrf.mxu0  ;;  %v2974_v30 = vadd.f32 %v2973_v23, %v2972_v24  ;;  %v18738_v23 = vld [vmem:[%s26393_s7 + $0x228] sm:$0xff] }
 0x7e1   :  { %v18750_v24 = vld [vmem:[%s26393_s7 + $0x288] sm:$0xff]  ;;  %v18737_v29 = vld [vmem:[%s26393_s7 + $0x220] sm:$0xff] }
 0x7e2   :  { %v2966_v31 = vpop.f32.mrf.mxu1 }
 0x7e3   :  { %v2975_v54 = vsel %vm57_vm0, %v2966_v31, 0.0  ;;  %v18748_v31 = vld [vmem:[%s26393_s7 + $0x278] sm:$0xff] }
 0x7e4   :  { %v2976_v32 = vadd.f32 %v2975_v54, %v2974_v30  ;;  %v20769_v40 = vpop.f32.mrf.mxu1  ;;  %v18749_v30 = vld [vmem:[%s26393_s7 + $0x280] sm:$0xff]  ;;  %v18760_v54 = vld [vmem:[%s26393_s7 + $0x2d8] sm:$0xff] }
 0x7e5   :  { %v18759_v40 = vld [vmem:[%s26393_s7 + $0x2d0] sm:$0xff] }
 0x7e6   :  { %v2978_v44 = vadd.f32 %v22619_v41, %v2976_v32  ;;  %v18747_v32 = vld [vmem:[%s26393_s7 + $0x270] sm:$0xff]  ;;  %v18746_v41 = vld [vmem:[%s26393_s7 + $0x268] sm:$0xff] }
 0x7e8   :  { %v2981_v45 = vmul.f32 %v2978_v44, %v2978_v44 }
 0x7ea   :  { %v2985_v48 = vsel %vm57_vm0, %v2981_v45, 0.0  ;;  %v18745_v45 = vld [vmem:[%s26393_s7 + $0x260] sm:$0xff] }
 0x7eb   :  { %2986 = vadd.xlane.f32.xlu1 %v2985_v48  ;;  %v18757_v48 = vld [vmem:[%s26393_s7 + $0x2c0] sm:$0xff] }
 0x874   :  { %v2987_v14 = vpop.xlane.xlu1 %2986 }
 0x875   :  { %v2989_v18 = vmul.f32 0.03125, %v2987_v14  ;;  %v18765_v14 = vld [vmem:[%s26393_s7 + $0x300] sm:$0xff] }
 0x877   :  { %v2991_v21 = vadd.f32 1e-06, %v2989_v18  ;;  %v18764_v18 = vld [vmem:[%s26393_s7 + $0x2f8] sm:$0xff] }
 0x879   :  { %22409 = vrsqrt.f32 %v2991_v21  ;;  %v18776_v21 = vld [vmem:[%s26393_s7 + $0x358] sm:$0xff] }
 0x886   :  { %v22410_v55 = vpop.eup %22409 }
 0x887   :  { %v2995_v10 = vmul.f32 %v22410_v55, %v2978_v44  ;;  %v18763_v55 = vld [vmem:[%s26393_s7 + $0x2f0] sm:$0xff] }
 0x889   :  { %v3001_v56 = vmul.f32 %v18719_v12, %v2995_v10  ;;  %v18775_v10 = vld [vmem:[%s26393_s7 + $0x350] sm:$0xff] }
 0x88b   :  { %20779 = vmatmul.mubr.msk.f32.vlgmr.msra.gmra.mxu0 %vm57_vm0, %v3001_v56  ;;  %v18762_v56 = vld [vmem:[%s26393_s7 + $0x2e8] sm:$0xff] }
 0x88c   :  { %20793 = vmatpush3.msra.mxu0 %v18736_v8 }
 0x88d   :  { %20794 = vmatprep.subr.mxu0 %v18735_v11 }
 0x88e   :  { %20795 = vmatpush3.msra.mxu0 %v18735_v11 }
 0x88f   :  { %20796 = vmatprep.subr.mxu0 %v18734_v26 }
 0x890   :  { %20797 = vmatpush3.msra.mxu0 %v18734_v26 }
 0x891   :  { %20798 = vmatprep.subr.mxu0 %v18733_v33 }
 0x892   :  { %20799 = vmatpush3.msra.mxu0 %v18733_v33 }
 0x893   :  { %20803 = vmatprep.subr.mxu0 %v18740_v34 }
 0x94b   :  { %v20780_v57 = vpop.f32.mrf.mxu0 }
 0x94c   :  { %v3093_v59 = vmax.f32 %v20780_v57, 0.0  ;;  %v18761_v57 = vld [vmem:[%s26393_s7 + $0x2e0] sm:$0xff] }
 0x94d   :  { %v3083_v58 = vpop.f32.mrf.mxu0 }
 0x94e   :  { %v3092_v0 = vmax.f32 %v3083_v58, 0.0  ;;  %v18773_v58 = vld [vmem:[%s26393_s7 + $0x340] sm:$0xff] }
 0x950   :  { %20789 = vmatprep.mubr.msk.f32.mxu1 %vm3094_vm3, %v3092_v0  ;;  %v18772_v0 = vld [vmem:[%s26393_s7 + $0x338] sm:$0xff] }
 0x951   :  { %20790 = vmatmul.mubr.msk.f32.vlgmr.msra.gmra.mxu1 %vm3094_vm3, %v3093_v59  ;;  %v18771_v59 = vld [vmem:[%s26393_s7 + $0x330] sm:$0xff] }
 0xa11   :  { %v20791_v60 = vpop.f32.mrf.mxu1 }
 0xa12   :  { %v23317_v61 = vadd.f32 %v20791_v60, %v2978_v44  ;;  %v18758_v44 = vld [vmem:[%s26393_s7 + $0x2c8] sm:$0xff] }
 0xa13   :  { %v3179_v62 = vpop.f32.mrf.mxu1  ;;  %v18770_v60 = vld [vmem:[%s26393_s7 + $0x328] sm:$0xff] }
 0xa14   :  { %v23320_v63 = vadd.f32 %v3179_v62, %v23191_v17  ;;  %v3192_v1 = vmul.f32 %v23317_v61, %v23317_v61  ;;  %v18744_v17 = vld [vmem:[%s26393_s7 + $0x258] sm:$0xff]  ;;  %v18769_v62 = vld [vmem:[%s26393_s7 + $0x320] sm:$0xff] }
 0xa15   :  { %20814 = vmatprep.subr.mxu1 %v18744_v17 }
 0xa16   :  { %v3196_v2 = vsel %vm57_vm0, %v3192_v1, 0.0  ;;  %v3191_v3 = vmul.f32 %v23320_v63, %v23320_v63  ;;  %20815 = vmatpush3.msra.mxu1 %v18744_v17  ;;  %v18780_v1 = vld [vmem:[%s26393_s7 + $0x378] sm:$0xff] }
 0xa17   :  { %3197 = vadd.xlane.f32.xlu1 %v3196_v2  ;;  %20816 = vmatprep.subr.mxu1 %v18743_v25  ;;  %v18779_v2 = vld [vmem:[%s26393_s7 + $0x370] sm:$0xff] }
 0xa18   :  { %v3193_v7 = vsel %vm57_vm0, %v3191_v3, 0.0  ;;  %20817 = vmatpush3.msra.mxu1 %v18743_v25  ;;  %v18778_v3 = vld [vmem:[%s26393_s7 + $0x368] sm:$0xff] }
 0xa19   :  { %3194 = vadd.xlane.f32.xlu0 %v3193_v7  ;;  %20818 = vmatprep.subr.mxu1 %v18742_v27  ;;  %v18777_v7 = vld [vmem:[%s26393_s7 + $0x360] sm:$0xff] }
 0xa1a   :  { %20819 = vmatpush3.msra.mxu1 %v18742_v27 }
 0xa1b   :  { %20820 = vmatprep.subr.mxu1 %v18741_v28 }
 0xa1c   :  { %20821 = vmatpush3.msra.mxu1 %v18741_v28 }
 0xa1d   :  { %20836 = vmatprep.subr.mxu1 %v18752_v35 }
 0xaa0   :  { %v3198_v36 = vpop.xlane.xlu1 %3197 }
 0xaa1   :  { %v3200_v37 = vmul.f32 0.03125, %v3198_v36 }
 0xaa2   :  { %v3195_v38 = vpop.xlane.xlu0 %3194 }
 0xaa3   :  { %v3202_v39 = vadd.f32 1e-06, %v3200_v37  ;;  %v3199_v42 = vmul.f32 0.03125, %v3195_v38 }
 0xaa5   :  { %22411 = vrsqrt.f32 %v3202_v39  ;;  %v3201_v43 = vadd.f32 1e-06, %v3199_v42 }
 0xaa7   :  { %22413 = vrsqrt.f32 %v3201_v43 }
 0xab2   :  { %v22412_v12 = vpop.eup %22411 }
 0xab3   :  { %v3206_v47 = vmul.f32 %v22412_v12, %v23317_v61 }
 0xab4   :  { %v22414_v46 = vpop.eup %22413 }
 0xab5   :  { %v3205_v16 = vmul.f32 %v22414_v46, %v23320_v63  ;;  %v23365_v50 = vmul.f32 %v18732_v15, %v3206_v47 }
 0xab7   :  { %v23363_v19 = vmul.f32 %v18732_v15, %v3205_v16 }
 0xab9   :  { %20800 = vmatprep.mubr.msk.f32.mxu0 %vm57_vm0, %v23363_v19  ;;  %20822 = vmatprep.mubr.msk.f32.mxu1 %vm57_vm0, %v23363_v19 }
 0xaba   :  { %20801 = vmatmul.mubr.msk.f32.vlgmr.msra.gmra.mxu0 %vm57_vm0, %v23365_v50  ;;  %20823 = vmatmul.mubr.msk.f32.vlgmr.msra.gmra.mxu1 %vm57_vm0, %v23365_v50 }
 0xabb   :  { %20804 = vmatpush3.msra.mxu0 %v18740_v34  ;;  %20837 = vmatpush3.msra.mxu1 %v18752_v35 }
 0xabc   :  { %20805 = vmatprep.subr.mxu0 %v18739_v20  ;;  %20811 = vmatprep.mubr.msk.f32.mxu0 %vm57_vm0, %v23363_v19 }
 0xabd   :  { %20838 = vmatprep.subr.mxu1 %v18751_v51  ;;  %20844 = vmatprep.mubr.msk.f32.mxu1 %vm57_vm0, %v23363_v19 }
 0xabe   :  { %20806 = vmatpush3.msra.mxu0 %v18739_v20  ;;  %20839 = vmatpush3.msra.mxu1 %v18751_v51  ;;  %v22620_v20 = vld [vmem:[%s26395_s2] sm:$0xff] }
 0xabf   :  { %20807 = vmatprep.subr.mxu0 %v18738_v23  ;;  %20840 = vmatprep.subr.mxu1 %v18750_v24 }
 0xac0   :  { %20808 = vmatpush3.msra.mxu0 %v18738_v23  ;;  %20841 = vmatpush3.msra.mxu1 %v18750_v24 }
 0xac1   :  { %20809 = vmatprep.subr.mxu0 %v18737_v29  ;;  %20842 = vmatprep.subr.mxu1 %v18749_v30 }
 0xac2   :  { %20810 = vmatpush3.msra.mxu0 %v18737_v29  ;;  %20843 = vmatpush3.msra.mxu1 %v18749_v30 }
 0xac3   :  { %20812 = vmatmul.mubr.msk.f32.vlgmr.msra.gmra.mxu0 %vm57_vm0, %v23365_v50  ;;  %20825 = vmatprep.subr.mxu0 %v18748_v31 }
 0xac4   :  { %20845 = vmatmul.mubr.msk.f32.vlgmr.msra.gmra.mxu1 %vm57_vm0, %v23365_v50  ;;  %20858 = vmatprep.subr.mxu1 %v18760_v54 }
 0xac5   :  { %20826 = vmatpush3.msra.mxu0 %v18748_v31  ;;  %20833 = vmatprep.mubr.msk.f32.mxu0 %vm57_vm0, %v23363_v19 }
 0xac6   :  { %20859 = vmatpush3.msra.mxu1 %v18760_v54  ;;  %20866 = vmatprep.mubr.msk.f32.mxu1 %vm57_vm0, %v23363_v19  ;;  %v22621_v54 = vld [vmem:[%s26395_s2 + $0x10] sm:$0xff] }
 0xac7   :  { %20827 = vmatprep.subr.mxu0 %v18747_v32  ;;  %20860 = vmatprep.subr.mxu1 %v18759_v40 }
 0xac8   :  { %20828 = vmatpush3.msra.mxu0 %v18747_v32  ;;  %20861 = vmatpush3.msra.mxu1 %v18759_v40 }
 0xac9   :  { %20829 = vmatprep.subr.mxu0 %v18746_v41  ;;  %20862 = vmatprep.subr.mxu1 %v18758_v44 }
 0xaca   :  { %20830 = vmatpush3.msra.mxu0 %v18746_v41  ;;  %20863 = vmatpush3.msra.mxu1 %v18758_v44 }
 0xacb   :  { %20831 = vmatprep.subr.mxu0 %v18745_v45  ;;  %20864 = vmatprep.subr.mxu1 %v18757_v48 }
 0xacc   :  { %20832 = vmatpush3.msra.mxu0 %v18745_v45  ;;  %20865 = vmatpush3.msra.mxu1 %v18757_v48  ;;  %v22622_v45 = vld [vmem:[%s26395_s2 + $0x8] sm:$0xff] }
 0xacd   :  { %20834 = vmatmul.mubr.msk.f32.vlgmr.msra.gmra.mxu0 %vm57_vm0, %v23365_v50  ;;  %20847 = vmatprep.subr.mxu0 %v18756_v49 }
 0xace   :  { %20867 = vmatmul.mubr.msk.f32.vlgmr.msra.gmra.mxu1 %vm57_vm0, %v23365_v50  ;;  %20880 = vmatprep.subr.mxu1 %v18768_v52 }
 0xacf   :  { %20848 = vmatpush3.msra.mxu0 %v18756_v49  ;;  %20855 = vmatprep.mubr.msk.f32.mxu0 %vm57_vm0, %v23363_v19 }
 0xad0   :  { %20881 = vmatpush3.msra.mxu1 %v18768_v52  ;;  %20888 = vmatprep.mubr.msk.f32.mxu1 %vm57_vm0, %v23363_v19 }
 0xad1   :  { %20849 = vmatprep.subr.mxu0 %v18755_v53  ;;  %20882 = vmatprep.subr.mxu1 %v18767_v5 }
 0xad2   :  { %20850 = vmatpush3.msra.mxu0 %v18755_v53  ;;  %20883 = vmatpush3.msra.mxu1 %v18767_v5  ;;  %v22623_v5 = vld [vmem:[%s26395_s2 + $0x18] sm:$0xff] }
 0xad3   :  { %20851 = vmatprep.subr.mxu0 %v18754_v6  ;;  %20884 = vmatprep.subr.mxu1 %v18766_v9 }
 0xad4   :  { %20852 = vmatpush3.msra.mxu0 %v18754_v6  ;;  %20885 = vmatpush3.msra.mxu1 %v18766_v9 }
 0xad5   :  { %20853 = vmatprep.subr.mxu0 %v18753_v13  ;;  %20886 = vmatprep.subr.mxu1 %v18765_v14 }
 0xad6   :  { %20854 = vmatpush3.msra.mxu0 %v18753_v13  ;;  %20887 = vmatpush3.msra.mxu1 %v18765_v14 }
 0xad7   :  { %20856 = vmatmul.mubr.msk.f32.vlgmr.msra.gmra.mxu0 %vm57_vm0, %v23365_v50  ;;  %20869 = vmatprep.subr.mxu0 %v18764_v18 }
 0xad8   :  { %20889 = vmatmul.mubr.msk.f32.vlgmr.msra.gmra.mxu1 %vm57_vm0, %v23365_v50  ;;  %20902 = vmatprep.subr.mxu1 %v18776_v21 }
 0xad9   :  { %20870 = vmatpush3.msra.mxu0 %v18764_v18  ;;  %20877 = vmatprep.mubr.msk.f32.mxu0 %vm57_vm0, %v23363_v19 }
 0xada   :  { %20903 = vmatpush3.msra.mxu1 %v18776_v21  ;;  %20910 = vmatprep.mubr.msk.f32.mxu1 %vm57_vm0, %v23363_v19 }
 0xadb   :  { %20871 = vmatprep.subr.mxu0 %v18763_v55  ;;  %20904 = vmatprep.subr.mxu1 %v18775_v10 }
 0xadc   :  { %20872 = vmatpush3.msra.mxu0 %v18763_v55  ;;  %20905 = vmatpush3.msra.mxu1 %v18775_v10 }
 0xadd   :  { %20873 = vmatprep.subr.mxu0 %v18762_v56  ;;  %20906 = vmatprep.subr.mxu1 %v18774_v22 }
 0xade   :  { %20874 = vmatpush3.msra.mxu0 %v18762_v56  ;;  %20907 = vmatpush3.msra.mxu1 %v18774_v22 }
 0xadf   :  { %20875 = vmatprep.subr.mxu0 %v18761_v57  ;;  %20908 = vmatprep.subr.mxu1 %v18773_v58 }
 0xae0   :  { %20876 = vmatpush3.msra.mxu0 %v18761_v57  ;;  %20909 = vmatpush3.msra.mxu1 %v18773_v58 }
 0xae1   :  { %20878 = vmatmul.mubr.msk.f32.vlgmr.msra.gmra.mxu0 %vm57_vm0, %v23365_v50  ;;  %20891 = vmatprep.subr.mxu0 %v18772_v0 }
 0xae2   :  { %20911 = vmatmul.mubr.msk.f32.vlgmr.msra.gmra.mxu1 %vm57_vm0, %v23365_v50  ;;  %20892 = vmatpush3.msra.mxu0 %v18772_v0 }
 0xae3   :  { %20899 = vmatprep.mubr.msk.f32.mxu0 %vm57_vm0, %v23363_v19  ;;  %20893 = vmatprep.subr.mxu0 %v18771_v59 }
 0xae4   :  { %20894 = vmatpush3.msra.mxu0 %v18771_v59  ;;  %20924 = vmatprep.subr.mxu1 %v22641_v4 }
 0xae5   :  { %20895 = vmatprep.subr.mxu0 %v18770_v60  ;;  %20926 = vmatprep.mubr.msk.f32.mxu1 %vm22642_vm1, %v22641_v4 }
 0xae6   :  { %20896 = vmatpush3.msra.mxu0 %v18770_v60 }
 0xae7   :  { %20897 = vmatprep.subr.mxu0 %v18769_v62 }
 0xae8   :  { %20898 = vmatpush3.msra.mxu0 %v18769_v62 }
 0xae9   :  { %20900 = vmatmul.mubr.msk.f32.vlgmr.msra.gmra.mxu0 %vm57_vm0, %v23365_v50  ;;  %20913 = vmatprep.subr.mxu0 %v18780_v1 }
 0xaea   :  { %20914 = vmatpush3.msra.mxu0 %v18780_v1  ;;  %20921 = vmatprep.mubr.msk.f32.mxu0 %vm57_vm0, %v23363_v19 }
 0xaeb   :  { %20915 = vmatprep.subr.mxu0 %v18779_v2 }
 0xaec   :  { %20916 = vmatpush3.msra.mxu0 %v18779_v2 }
 0xaed   :  { %20917 = vmatprep.subr.mxu0 %v18778_v3 }
 0xaee   :  { %20918 = vmatpush3.msra.mxu0 %v18778_v3 }
 0xaef   :  { %20919 = vmatprep.subr.mxu0 %v18777_v7 }
 0xaf0   :  { %20920 = vmatpush3.msra.mxu0 %v18777_v7 }
 0xaf1   :  { %20922 = vmatmul.mubr.msk.f32.vlgmr.msra.gmra.mxu0 %vm57_vm0, %v23365_v50  ;;  %20934 = vmatprep.subr.mxu0 %v22641_v4 }
 0xaf2   :  { %20936 = vmatprep.mubr.msk.f32.mxu0 %vm22642_vm1, %v22641_v4 }
 0xb7a   :  { %v23535_v8 = vpop.f32.mrf.mxu1  ;;  %v23539_v25 = vpop.f32.mrf.mxu0 }
 0xb7c   :  { %v3501_v17 = vpop.f32.mrf.mxu1  ;;  %v3351_v27 = vpop.f32.mrf.mxu0 }
 0xb83   :  { %v23544_v33 = vpop.f32.mrf.mxu0 }
 0xb84   :  { %v23537_v11 = vpop.f32.mrf.mxu1 }
 0xb85   :  { %v3426_v34 = vpop.f32.mrf.mxu0 }
 0xb86   :  { %v3651_v26 = vpop.f32.mrf.mxu1 }
 0xb87   :  { %20925 = vmatpush3.xpose.msk.msra.mxu1 %vm1050_vm2, %v3651_v26 }
 0xb88   :  { %20929 = vmatprep.subr.mxu1 %v22641_v4 }
 0xb8a   :  { %20927 = vmatmul.mubr.msk.f32.vlgmr.msra.gmra.mxu1 %vm1050_vm2, %v3351_v27 }
 0xb8b   :  { %20931 = vmatprep.mubr.msk.f32.mxu1 %vm22642_vm1, %v22641_v4 }
 0xb8d   :  { %v23550_v36 = vpop.f32.mrf.mxu0 }
 0xb8e   :  { %v23548_v28 = vpop.f32.mrf.mxu1 }
 0xb8f   :  { %v3576_v37 = vpop.f32.mrf.mxu0 }
 0xb90   :  { %v3801_v35 = vpop.f32.mrf.mxu1 }
 0xb91   :  { %20935 = vmatpush3.xpose.msk.msra.mxu0 %vm1050_vm2, %v3801_v35 }
 0xb92   :  { %20944 = vmatprep.subr.mxu0 %v22641_v4 }
 0xb94   :  { %20937 = vmatmul.mubr.msk.f32.vlgmr.msra.gmra.mxu0 %vm1050_vm2, %v3501_v17 }
 0xb95   :  { %20946 = vmatprep.mubr.msk.f32.mxu0 %vm22642_vm1, %v22641_v4 }
 0xb97   :  { %v23557_v38 = vpop.f32.mrf.mxu0 }
 0xb98   :  { %v23559_v39 = vpop.f32.mrf.mxu1 }
 0xb99   :  { %v3726_v42 = vpop.f32.mrf.mxu0 }
 0xb9a   :  { %v3951_v43 = vpop.f32.mrf.mxu1  ;;  %20930 = vmatpush3.xpose.msk.msra.mxu1 %vm1050_vm2, %v3726_v42 }
 0xb9b   :  { %20945 = vmatpush3.msra.mxu0 %v3951_v43  ;;  %20939 = vmatprep.subr.mxu1 %v22641_v4 }
 0xb9c   :  { %20954 = vmatprep.subr.mxu0 %v22641_v4 }
 0xb9d   :  { %20932 = vmatmul.mubr.msk.f32.vlgmr.msra.gmra.mxu1 %vm1050_vm2, %v3426_v34 }
 0xb9e   :  { %20941 = vmatprep.mubr.msk.f32.mxu1 %vm22642_vm1, %v22641_v4 }
 0xba1   :  { %v23567_v12 = vpop.f32.mrf.mxu0 }
 0xba2   :  { %v23577_v16 = vpop.f32.mrf.mxu1 }
 0xba3   :  { %v3876_v46 = vpop.f32.mrf.mxu0 }
 0xba4   :  { %20940 = vmatpush3.xpose.msk.msra.mxu1 %vm1050_vm2, %v3876_v46  ;;  %v4101_v19 = vpop.f32.mrf.mxu1 }
 0xba5   :  { %20949 = vmatprep.subr.mxu1 %v22641_v4 }
 0xba7   :  { %20942 = vmatmul.mubr.msk.f32.vlgmr.msra.gmra.mxu1 %vm1050_vm2, %v3576_v37 }
 0xba8   :  { %20951 = vmatprep.mubr.msk.f32.mxu1 %vm22642_vm1, %v22641_v4 }
 0xba9   :  { %v23574_v47 = vpop.f32.mrf.mxu0 }
 0xbab   :  { %v4026_v15 = vpop.f32.mrf.mxu0 }
 0xbac   :  { %20950 = vmatpush3.msra.mxu1 %v4026_v15 }
 0xbad   :  { %20959 = vmatprep.subr.mxu1 %v22641_v4 }
 0xbb1   :  { %v23583_v29 = vpop.f32.mrf.mxu0 }
 0xbb3   :  { %v23585_v30 = vpop.f32.mrf.mxu0 }
 0xc4a   :  { %v4257_v50 = vpop.f32.mrf.mxu1 }
 0xc4b   :  { %v4258_v51 = vadd.f32 %v22620_v20, %v4257_v50  ;;  %v23610_v50 = vld [vmem:[%s26393_s7 + $0x398] sm:$0xff]  ;;  %v23621_v20 = vld [vmem:[%s26393_s7 + $0x390] sm:$0xff] }
 0xc4c   :  { %v20928_v23 = vpop.f32.mrf.mxu1 }
 0xc4d   :  { %v4489_v24 = vsel %vm1050_vm2, %v4258_v51, -inf  ;;  %v23629_v23 = vld [vmem:[%s26393_s7 + $0x388] sm:$0xff] }
 0xc4e   :  { %4490 = vmax.xlane.f32.xlu0 %v4489_v24 }
 0xc54   :  { %v4409_v31 = vpop.f32.mrf.mxu0 }
 0xc55   :  { %v4410_v32 = vadd.f32 %v22621_v54, %v4409_v31  ;;  %v23640_v31 = vld [vmem:[%s26393_s7 + $0x380] sm:$0xff] }
 0xc56   :  { %v20938_v40 = vpop.f32.mrf.mxu0 }
 0xc57   :  { %v4495_v41 = vsel %vm1050_vm2, %v4410_v32, -inf  ;;  %v23661_v40 = vld [vmem:[%s26393_s7 + $0x3b0] sm:$0xff] }
 0xc58   :  { %4496 = vmax.xlane.f32.xlu0 %v4495_v41  ;;  %v23669_v41 = vld [vmem:[%s26393_s7 + $0x3a8] sm:$0xff] }
 0xc5d   :  { %v4333_v44 = vpop.f32.mrf.mxu1 }
 0xc5e   :  { %v4334_v48 = vadd.f32 %v22622_v45, %v4333_v44  ;;  %v23677_v44 = vld [vmem:[%s26393_s7 + $0x3a0] sm:$0xff]  ;;  %v23685_v45 = vld [vmem:[%s26393_s7 + $0x3d8] sm:$0xff] }
 0xc5f   :  { %v20933_v49 = vpop.f32.mrf.mxu1 }
 0xc60   :  { %v4492_v52 = vsel %vm1050_vm2, %v4334_v48, -inf }
 0xc61   :  { %4493 = vmax.xlane.f32.xlu1 %v4492_v52  ;;  %v23696_v52 = vld [vmem:[%s26393_s7 + $0x3d0] sm:$0xff] }
 0xc67   :  { %v4485_v53 = vpop.f32.mrf.mxu1 }
 0xc68   :  { %v4486_v6 = vadd.f32 %v22623_v5, %v4485_v53  ;;  %v23704_v53 = vld [vmem:[%s26393_s7 + $0x3c8] sm:$0xff] }
 0xc69   :  { %v20943_v9 = vpop.f32.mrf.mxu1 }
 0xc6a   :  { %v4498_v13 = vsel %vm1050_vm2, %v4486_v6, -inf }
 0xc6b   :  { %4499 = vmax.xlane.f32.xlu1 %v4498_v13  ;;  %v23721_v13 = vld [vmem:[%s26393_s7 + $0x3f8] sm:$0xff] }
 0xcd7   :  { %v4491_v14 = vpop.xlane.xlu0 %4490 }
 0xcd8   :  { %v4501_v18 = vsub.f32 %v4258_v51, %v4491_v14 }
 0xcda   :  { %v4505_v21 = vmul.f32 1.442695, %v4501_v18 }
 0xcdc   :  { %22415 = vpow2.f32 %v4505_v21 }
 0xce1   :  { %v4497_v55 = vpop.xlane.xlu0 %4496 }
 0xce2   :  { %v4503_v10 = vsub.f32 %v4410_v32, %v4497_v55 }
 0xce4   :  { %v4509_v56 = vmul.f32 1.442695, %v4503_v10 }
 0xce6   :  { %22417 = vpow2.f32 %v4509_v56 }
 0xce9   :  { %v22416_v22 = vpop.eup %22415 }
 0xcea   :  { %v4494_v57 = vpop.xlane.xlu1 %4493  ;;  %v4513_v58 = vsel %vm1050_vm2, %v22416_v22, 0.0 }
 0xceb   :  { %v4502_v0 = vsub.f32 %v4334_v48, %v4494_v57  ;;  %4514 = vadd.xlane.f32.xlu0 %v4513_v58 }
 0xced   :  { %v4507_v59 = vmul.f32 1.442695, %v4502_v0 }
 0xcef   :  { %22419 = vpow2.f32 %v4507_v59 }
 0xcf3   :  { %v22418_v60 = vpop.eup %22417 }
 0xcf4   :  { %v4500_v62 = vpop.xlane.xlu1 %4499  ;;  %v4519_v1 = vsel %vm1050_vm2, %v22418_v60, 0.0 }
 0xcf5   :  { %v4504_v2 = vsub.f32 %v4486_v6, %v4500_v62  ;;  %4520 = vadd.xlane.f32.xlu0 %v4519_v1  ;;  %v23712_v6 = vld [vmem:[%s26393_s7 + $0x3c0] sm:$0xff] }
 0xcf7   :  { %v4511_v3 = vmul.f32 1.442695, %v4504_v2  ;;  %v22625_v2 = vld [vmem:[%s26395_s2 + $0x30] sm:$0xff] }
 0xcf9   :  { %22421 = vpow2.f32 %v4511_v3 }
 0xcfc   :  { %v22420_v7 = vpop.eup %22419 }
 0xcfd   :  { %v4516_v17 = vsel %vm1050_vm2, %v22420_v7, 0.0 }
 0xcfe   :  { %4517 = vadd.xlane.f32.xlu1 %v4516_v17 }
 0xd06   :  { %v22422_v26 = vpop.eup %22421 }
 0xd07   :  { %v4522_v27 = vsel %vm1050_vm2, %v22422_v26, 0.0 }
 0xd08   :  { %4523 = vadd.xlane.f32.xlu1 %v4522_v27 }
 0xd74   :  { %v4515_v34 = vpop.xlane.xlu0 %4514 }
 0xd75   :  { %22423 = vrcp.f32 %v4515_v34 }
 0xd7e   :  { %v4521_v35 = vpop.xlane.xlu0 %4520 }
 0xd7f   :  { %22425 = vrcp.f32 %v4521_v35 }
 0xd82   :  { %v22424_v37 = vpop.eup %22423 }
 0xd83   :  { %v4529_v42 = vmul.f32 %v22424_v37, %v22416_v22 }
 0xd85   :  { %20947 = vmatmul.mubr.msk.f32.vlgmr.msra.gmra.mxu0 %vm1050_vm2, %v4529_v42  ;;  %v22626_v42 = vld [vmem:[%s26395_s2 + $0x28] sm:$0xff] }
 0xd86   :  { %20955 = vmatpush3.msra.mxu0 %v4101_v19  ;;  %20956 = vmatprep.mubr.msk.f32.mxu0 %vm22642_vm1, %v22641_v4 }
 0xd87   :  { %v4518_v43 = vpop.xlane.xlu1 %4517  ;;  %20964 = vmatprep.subr.mxu0 %v22641_v4 }
 0xd88   :  { %22427 = vrcp.f32 %v4518_v43 }
 0xd8c   :  { %v22426_v46 = vpop.eup %22425 }
 0xd8d   :  { %v4531_v15 = vmul.f32 %v22426_v46, %v22418_v60 }
 0xd8f   :  { %20957 = vmatmul.mubr.msk.f32.vlgmr.msra.gmra.mxu0 %vm1050_vm2, %v4531_v15 }
 0xd90   :  { %20965 = vmatpush3.xpose.msk.msra.mxu0 %vm1050_vm2, %v23610_v50  ;;  %20972 = vmatprep.mubr.msk.f32.mxu0 %vm22642_vm1, %v22641_v4 }
 0xd91   :  { %v4524_v19 = vpop.xlane.xlu1 %4523  ;;  %20966 = vmatprep.subr.mxu0 %v22641_v4 }
 0xd92   :  { %22429 = vrcp.f32 %v4524_v19 }
 0xd94   :  { %20967 = vmatpush3.xpose.msk.msra.mxu0 %vm1050_vm2, %v23621_v20 }
 0xd95   :  { %v22428_v51 = vpop.eup %22427  ;;  %20968 = vmatprep.subr.mxu0 %v22641_v4 }
 0xd96   :  { %v4530_v24 = vmul.f32 %v22428_v51, %v22420_v7  ;;  %v22627_v51 = vld [vmem:[%s26395_s2 + $0x38] sm:$0xff] }
 0xd98   :  { %20952 = vmatmul.mubr.msk.f32.vlgmr.msra.gmra.mxu1 %vm1050_vm2, %v4530_v24  ;;  %20969 = vmatpush3.xpose.msk.msra.mxu0 %vm1050_vm2, %v23629_v23 }
 0xd99   :  { %20960 = vmatpush3.msra.mxu1 %v23585_v30  ;;  %20961 = vmatprep.mubr.msk.f32.mxu1 %vm22642_vm1, %v22641_v4  ;;  %v23653_v30 = vld [vmem:[%s26393_s7 + $0x3b8] sm:$0xff] }
 0xd9a   :  { %20970 = vmatprep.subr.mxu0 %v22641_v4  ;;  %20975 = vmatprep.subr.mxu1 %v22641_v4 }
 0xd9c   :  { %20971 = vmatpush3.xpose.msk.msra.mxu0 %vm1050_vm2, %v23640_v31 }
 0xd9d   :  { %20986 = vmatprep.subr.mxu0 %v22641_v4 }
 0xd9f   :  { %v22430_v54 = vpop.eup %22429 }
 0xda0   :  { %v4532_v32 = vmul.f32 %v22430_v54, %v22422_v26 }
 0xda2   :  { %20962 = vmatmul.mubr.msk.f32.vlgmr.msra.gmra.mxu1 %vm1050_vm2, %v4532_v32 }
 0xda3   :  { %20983 = vmatprep.mubr.msk.f32.mxu1 %vm22642_vm1, %v22641_v4  ;;  %20976 = vmatpush3.xpose.msk.msra.mxu1 %vm1050_vm2, %v23653_v30 }
 0xda4   :  { %20977 = vmatprep.subr.mxu1 %v22641_v4 }
 0xda7   :  { %20978 = vmatpush3.xpose.msk.msra.mxu1 %vm1050_vm2, %v23661_v40 }
 0xda8   :  { %20979 = vmatprep.subr.mxu1 %v22641_v4 }
 0xdab   :  { %20980 = vmatpush3.xpose.msk.msra.mxu1 %vm1050_vm2, %v23669_v41 }
 0xdac   :  { %20981 = vmatprep.subr.mxu1 %v22641_v4 }
 0xdaf   :  { %20982 = vmatpush3.xpose.msk.msra.mxu1 %vm1050_vm2, %v23677_v44 }
 0xdb0   :  { %20997 = vmatprep.subr.mxu1 %v22641_v4 }
 0xe45   :  { %v4602_v48 = vpop.f32.mrf.mxu0 }
 0xe46   :  { %20973 = vmatmul.mubr.msk.f32.vlgmr.msra.gmra.mxu0 %vm1050_vm2, %v4602_v48 }
 0xe47   :  { %20987 = vmatpush3.xpose.msk.msra.mxu0 %vm1050_vm2, %v23685_v45  ;;  %v20948_v49 = vpop.f32.mrf.mxu0  ;;  %20994 = vmatprep.mubr.msk.f32.mxu0 %vm22642_vm1, %v22641_v4 }
 0xe48   :  { %20988 = vmatprep.subr.mxu0 %v22641_v4 }
 0xe4b   :  { %20989 = vmatpush3.xpose.msk.msra.mxu0 %vm1050_vm2, %v23696_v52 }
 0xe4c   :  { %20990 = vmatprep.subr.mxu0 %v22641_v4 }
 0xe4f   :  { %v4748_v5 = vpop.f32.mrf.mxu0  ;;  %20991 = vmatpush3.xpose.msk.msra.mxu0 %vm1050_vm2, %v23704_v53 }
 0xe50   :  { %20992 = vmatprep.subr.mxu0 %v22641_v4 }
 0xe51   :  { %v20958_v9 = vpop.f32.mrf.mxu0 }
 0xe53   :  { %20993 = vmatpush3.xpose.msk.msra.mxu0 %vm1050_vm2, %v23712_v6 }
 0xe54   :  { %21008 = vmatprep.subr.mxu0 %v22641_v4 }
 0xe56   :  { %20995 = vmatmul.mubr.msk.f32.vlgmr.msra.gmra.mxu0 %vm1050_vm2, %v4748_v5 }
 0xe57   :  { %21009 = vmatpush3.xpose.msk.msra.mxu0 %vm1050_vm2, %v23537_v11  ;;  %21010 = vmatprep.mubr.msk.f32.mxu0 %vm22642_vm1, %v22641_v4  ;;  %v23737_v11 = vld [vmem:[%s26393_s7 + $0x3f0] sm:$0xff] }
 0xe58   :  { %v4675_v14 = vpop.f32.mrf.mxu1  ;;  %21018 = vmatprep.subr.mxu0 %v22641_v4 }
 0xe59   :  { %20984 = vmatmul.mubr.msk.f32.vlgmr.msra.gmra.mxu1 %vm1050_vm2, %v4675_v14 }
 0xe5a   :  { %20998 = vmatpush3.xpose.msk.msra.mxu1 %vm1050_vm2, %v23721_v13  ;;  %v20953_v18 = vpop.f32.mrf.mxu1  ;;  %21011 = vmatmul.mubr.msk.f32.vlgmr.msra.gmra.mxu0 %vm1050_vm2, %v23539_v25  ;;  %v23754_v25 = vld [vmem:[%s26393_s7 + $0x3e8] sm:$0xff] }
 0xe5b   :  { %20999 = vmatprep.subr.mxu1 %v22641_v4  ;;  %21019 = vmatpush3.xpose.msk.msra.mxu0 %vm1050_vm2, %v23548_v28 }
 0xe5c   :  { %21020 = vmatprep.mubr.msk.f32.mxu0 %vm22642_vm1, %v22641_v4  ;;  %21028 = vmatprep.subr.mxu0 %v22641_v4 }
 0xe5d   :  { %21005 = vmatprep.mubr.msk.f32.mxu1 %vm22642_vm1, %v22641_v4 }
 0xe5e   :  { %21000 = vmatpush3.xpose.msk.msra.mxu1 %vm1050_vm2, %v23737_v11  ;;  %21021 = vmatmul.mubr.msk.f32.vlgmr.msra.gmra.mxu0 %vm1050_vm2, %v23535_v8  ;;  %v23766_v8 = vld [vmem:[%s26393_s7 + $0x3e0] sm:$0xff] }
 0xe5f   :  { %21001 = vmatprep.subr.mxu1 %v22641_v4  ;;  %21029 = vmatpush3.msra.mxu0 %v23559_v39 }
 0xe60   :  { %21030 = vmatprep.mubr.msk.f32.mxu0 %vm22642_vm1, %v22641_v4  ;;  %21038 = vmatprep.subr.mxu0 %v22641_v4 }
 0xe62   :  { %v4821_v28 = vpop.f32.mrf.mxu1  ;;  %21002 = vmatpush3.xpose.msk.msra.mxu1 %vm1050_vm2, %v23754_v25 }
 0xe63   :  { %21003 = vmatprep.subr.mxu1 %v22641_v4 }
 0xe64   :  { %v20963_v21 = vpop.f32.mrf.mxu1 }
 0xe66   :  { %21004 = vmatpush3.xpose.msk.msra.mxu1 %vm1050_vm2, %v23766_v8 }
 0xe67   :  { %21013 = vmatprep.subr.mxu1 %v22641_v4 }
 0xe69   :  { %21006 = vmatmul.mubr.msk.f32.vlgmr.msra.gmra.mxu1 %vm1050_vm2, %v4821_v28 }
 0xe6a   :  { %21014 = vmatpush3.xpose.msk.msra.mxu1 %vm1050_vm2, %v23557_v38  ;;  %21015 = vmatprep.mubr.msk.f32.mxu1 %vm22642_vm1, %v22641_v4 }
 0xe6b   :  { %21023 = vmatprep.subr.mxu1 %v22641_v4 }
 0xe6d   :  { %21016 = vmatmul.mubr.msk.f32.vlgmr.msra.gmra.mxu1 %vm1050_vm2, %v23544_v33 }
 0xe6e   :  { %21024 = vmatpush3.xpose.msk.msra.mxu1 %vm1050_vm2, %v23567_v12  ;;  %21025 = vmatprep.mubr.msk.f32.mxu1 %vm22642_vm1, %v22641_v4 }
 0xe6f   :  { %21033 = vmatprep.subr.mxu1 %v22641_v4 }
 0xe71   :  { %21026 = vmatmul.mubr.msk.f32.vlgmr.msra.gmra.mxu1 %vm1050_vm2, %v23550_v36  ;;  %v22624_v36 = vld [vmem:[%s26395_s2 + $0x20] sm:$0xff] }
 0xe72   :  { %21034 = vmatpush3.msra.mxu1 %v23574_v47  ;;  %21035 = vmatprep.mubr.msk.f32.mxu1 %vm22642_vm1, %v22641_v4 }
 0xe73   :  { %21043 = vmatprep.subr.mxu1 %v22641_v4 }
 0xf06   :  { %v4906_v38 = vpop.f32.mrf.mxu0 }
 0xf07   :  { %v5165_v10 = vsel %vm57_vm0, %v4906_v38, 0.0 }
 0xf08   :  { %v20974_v33 = vpop.f32.mrf.mxu0 }
 0xf16   :  { %v5076_v39 = vpop.f32.mrf.mxu0 }
 0xf17   :  { %v5168_v0 = vsel %vm57_vm0, %v5076_v39, 0.0 }
 0xf18   :  { %v20996_v55 = vpop.f32.mrf.mxu0 }
 0xf19   :  { %v4991_v12 = vpop.f32.mrf.mxu1 }
 0xf1a   :  { %v5166_v56 = vsel %vm57_vm0, %v4991_v12, 0.0  ;;  %v5244_v22 = vpop.f32.mrf.mxu0 }
 0xf1b   :  { %v5167_v57 = vadd.f32 %v5166_v56, %v5165_v10  ;;  %v20985_v58 = vpop.f32.mrf.mxu1  ;;  %v5245_v47 = vadd.f32 %v22624_v36, %v5244_v22 }
 0xf1c   :  { %v21012_v59 = vpop.f32.mrf.mxu0 }
 0xf1d   :  { %v5476_v60 = vsel %vm1050_vm2, %v5245_v47, -inf  ;;  %v5169_v62 = vadd.f32 %v5168_v0, %v5167_v57 }
 0xf1e   :  { %5477 = vmax.xlane.f32.xlu0 %v5476_v60  ;;  %v5396_v1 = vpop.f32.mrf.mxu0 }
 0xf1f   :  { %v5397_v3 = vadd.f32 %v22625_v2, %v5396_v1 }
 0xf20   :  { %v21022_v7 = vpop.f32.mrf.mxu0 }
 0xf21   :  { %v5482_v17 = vsel %vm1050_vm2, %v5397_v3, -inf }
 0xf22   :  { %5483 = vmax.xlane.f32.xlu0 %v5482_v17 }
 0xf29   :  { %v5161_v26 = vpop.f32.mrf.mxu1 }
 0xf2a   :  { %v5170_v27 = vsel %vm57_vm0, %v5161_v26, 0.0 }
 0xf2b   :  { %v5171_v34 = vadd.f32 %v5170_v27, %v5169_v62  ;;  %v21007_v35 = vpop.f32.mrf.mxu1 }
 0xf2c   :  { %v23876_v35 = vld [vmem:[%s26394_s6 + $0x3] ss:$0 sm:$0xff] }
 0xf2d   :  { %v5320_v37 = vpop.f32.mrf.mxu1  ;;  %v23811_v21 = vadd.f32 %v5171_v34, %v23320_v63 }
 0xf2e   :  { %v5321_v43 = vadd.f32 %v22626_v42, %v5320_v37 }
 0xf2f   :  { %v21017_v46 = vpop.f32.mrf.mxu1  ;;  %v6114_v22 = vmul.f32 %v23811_v21, %v23811_v21 }
 0xf30   :  { %v5479_v15 = vsel %vm1050_vm2, %v5321_v43, -inf }
 0xf31   :  { %5480 = vmax.xlane.f32.xlu1 %v5479_v15  ;;  %v5472_v19 = vpop.f32.mrf.mxu1  ;;  %v6116_v63 = vsel %vm57_vm0, %v6114_v22, 0.0  ;;  %v18886_v22 = vld [vmem:[%s26396_s8 + $0x40] sm:$0xff] }
 0xf32   :  { %v5473_v24 = vadd.f32 %v22627_v51, %v5472_v19 }
 0xf33   :  { %v21027_v54 = vpop.f32.mrf.mxu1 }
 0xf34   :  { %v5485_v32 = vsel %vm1050_vm2, %v5473_v24, -inf }
 0xf35   :  { %5486 = vmax.xlane.f32.xlu1 %v5485_v32 }
 0xfa7   :  { %v5478_v48 = vpop.xlane.xlu0 %5477 }
 0xfa8   :  { %v5488_v49 = vsub.f32 %v5245_v47, %v5478_v48 }
 0xfaa   :  { %v5492_v5 = vmul.f32 1.442695, %v5488_v49 }
 0xfab   :  { %v5484_v9 = vpop.xlane.xlu0 %5483 }
 0xfac   :  { %22431 = vpow2.f32 %v5492_v5  ;;  %v5490_v14 = vsub.f32 %v5397_v3, %v5484_v9 }
 0xfae   :  { %v5496_v18 = vmul.f32 1.442695, %v5490_v14 }
 0xfb0   :  { %22433 = vpow2.f32 %v5496_v18 }
 0xfb9   :  { %v22432_v28 = vpop.eup %22431 }
 0xfba   :  { %v5481_v38 = vpop.xlane.xlu1 %5480  ;;  %v5500_v33 = vsel %vm1050_vm2, %v22432_v28, 0.0 }
 0xfbb   :  { %v5489_v39 = vsub.f32 %v5321_v43, %v5481_v38  ;;  %5501 = vadd.xlane.f32.xlu0 %v5500_v33  ;;  %v6348_v33 = vld [vmem:[%s26397_s1 + $0x8] sm:$0xff] }
 0xfbd   :  { %v22434_v55 = vpop.eup %22433  ;;  %v5494_v12 = vmul.f32 1.442695, %v5489_v39  ;;  %v18888_v39 = vld [vmem:[%s26396_s8 + $0x50] sm:$0xff] }
 0xfbe   :  { %v5487_v10 = vpop.xlane.xlu1 %5486  ;;  %v5506_v56 = vsel %vm1050_vm2, %v22434_v55, 0.0 }
 0xfbf   :  { %22435 = vpow2.f32 %v5494_v12  ;;  %v5491_v57 = vsub.f32 %v5473_v24, %v5487_v10  ;;  %5507 = vadd.xlane.f32.xlu0 %v5506_v56  ;;  %v18887_v10 = vld [vmem:[%s26396_s8 + $0x48] sm:$0xff] }
 0xfc1   :  { %v5498_v58 = vmul.f32 1.442695, %v5491_v57  ;;  %v18907_v57 = vld [vmem:[%s26393_s7 + $0x418] sm:$0xff] }
 0xfc3   :  { %22437 = vpow2.f32 %v5498_v58  ;;  %6117 = vadd.xlane.f32.xlu0 %v6116_v63  ;;  %v18893_v58 = vld [vmem:[%s26396_s8 + $0x78] sm:$0xff]  ;;  %v18892_v63 = vld [vmem:[%s26396_s8 + $0x70] sm:$0xff] }
 0xfcc   :  { %v22436_v36 = vpop.eup %22435 }
 0xfcd   :  { %v5503_v47 = vsel %vm1050_vm2, %v22436_v36, 0.0 }
 0xfce   :  { %5504 = vadd.xlane.f32.xlu1 %v5503_v47 }
 0xfd0   :  { %v22438_v0 = vpop.eup %22437 }
 0xfd1   :  { %v5509_v59 = vsel %vm1050_vm2, %v22438_v0, 0.0 }
 0xfd2   :  { %5510 = vadd.xlane.f32.xlu1 %v5509_v59 }
0x1044   :  { %v5502_v60 = vpop.xlane.xlu0 %5501 }
0x1045   :  { %22439 = vrcp.f32 %v5502_v60 }
0x1048   :  { %v5508_v62 = vpop.xlane.xlu0 %5507 }
0x1049   :  { %22441 = vrcp.f32 %v5508_v62 }
0x1052   :  { %v22440_v1 = vpop.eup %22439 }
0x1053   :  { %v5516_v2 = vmul.f32 %v22440_v1, %v22432_v28  ;;  %v23911_v28 = vld [vmem:[%s26397_s1] sm:$0xff] }
0x1054   :  { %v6350_v38 = vmul.f32 %v23911_v28, %v23911_v28 }
0x1055   :  { %21031 = vmatmul.mubr.msk.f32.vlgmr.msra.gmra.mxu0 %vm1050_vm2, %v5516_v2 }
0x1056   :  { %v22442_v3 = vpop.eup %22441  ;;  %21039 = vmatpush3.msra.mxu0 %v23577_v16  ;;  %21040 = vmatprep.mubr.msk.f32.mxu0 %vm22642_vm1, %v22641_v4  ;;  %v6352_v12 = vsel %vm57_vm0, %v6350_v38, 0.0  ;;  %v18915_v38 = vld [vmem:[%s26393_s7 + $0x458] sm:$0xff] }
0x1057   :  { %v5505_v7 = vpop.xlane.xlu1 %5504  ;;  %v5518_v17 = vmul.f32 %v22442_v3, %v22434_v55  ;;  %21048 = vmatprep.subr.mxu0 %v22641_v4  ;;  %v6351_v55 = vmul.f32 %v6348_v33, %v6348_v33  ;;  %6353 = vadd.xlane.f32.xlu0 %v6352_v12  ;;  %v18914_v12 = vld [vmem:[%s26393_s7 + $0x450] sm:$0xff] }
0x1058   :  { %22443 = vrcp.f32 %v5505_v7 }
0x1059   :  { %21041 = vmatmul.mubr.msk.f32.vlgmr.msra.gmra.mxu0 %vm1050_vm2, %v5518_v17  ;;  %v6355_v56 = vsel %vm57_vm0, %v6351_v55, 0.0 }
0x105a   :  { %21049 = vmatpush3.xpose.msk.msra.mxu0 %vm1050_vm2, %v23610_v50  ;;  %21056 = vmatprep.mubr.msk.f32.mxu0 %vm22642_vm1, %v22641_v4 }
0x105b   :  { %v5511_v26 = vpop.xlane.xlu1 %5510  ;;  %21050 = vmatprep.subr.mxu0 %v22641_v4 }
0x105c   :  { %22445 = vrcp.f32 %v5511_v26 }
0x105e   :  { %21051 = vmatpush3.xpose.msk.msra.mxu0 %vm1050_vm2, %v23621_v20 }
0x105f   :  { %21052 = vmatprep.subr.mxu0 %v22641_v4 }
0x1062   :  { %21053 = vmatpush3.xpose.msk.msra.mxu0 %vm1050_vm2, %v23629_v23 }
0x1063   :  { %21054 = vmatprep.subr.mxu0 %v22641_v4 }
0x1065   :  { %v22444_v16 = vpop.eup %22443 }
0x1066   :  { %v5517_v27 = vmul.f32 %v22444_v16, %v22436_v36  ;;  %21055 = vmatpush3.xpose.msk.msra.mxu0 %vm1050_vm2, %v23640_v31  ;;  %v18891_v36 = vld [vmem:[%s26396_s8 + $0x68] sm:$0xff] }
0x1067   :  { %21070 = vmatprep.subr.mxu0 %v22641_v4 }
0x1068   :  { %21036 = vmatmul.mubr.msk.f32.vlgmr.msra.gmra.mxu1 %vm1050_vm2, %v5517_v27  ;;  %v18906_v27 = vld [vmem:[%s26393_s7 + $0x410] sm:$0xff] }
0x1069   :  { %v22446_v50 = vpop.eup %22445  ;;  %21044 = vmatpush3.msra.mxu1 %v23583_v29  ;;  %21045 = vmatprep.mubr.msk.f32.mxu1 %vm22642_vm1, %v22641_v4  ;;  %v6118_v29 = vpop.xlane.xlu0 %6117 }
0x106a   :  { %v5519_v20 = vmul.f32 %v22446_v50, %v22438_v0  ;;  %21059 = vmatprep.subr.mxu1 %v22641_v4  ;;  %v6122_v23 = vmul.f32 0.03125, %v6118_v29  ;;  %v18905_v50 = vld [vmem:[%s26393_s7 + $0x408] sm:$0xff]  ;;  %v18911_v29 = vld [vmem:[%s26393_s7 + $0x438] sm:$0xff] }
0x106c   :  { %21046 = vmatmul.mubr.msk.f32.vlgmr.msra.gmra.mxu1 %vm1050_vm2, %v5519_v20  ;;  %v6124_v31 = vadd.f32 1e-06, %v6122_v23  ;;  %v18904_v20 = vld [vmem:[%s26393_s7 + $0x400] sm:$0xff] }
0x106d   :  { %21060 = vmatpush3.xpose.msk.msra.mxu1 %vm1050_vm2, %v23653_v30  ;;  %21067 = vmatprep.mubr.msk.f32.mxu1 %vm22642_vm1, %v22641_v4 }
0x106e   :  { %21061 = vmatprep.subr.mxu1 %v22641_v4  ;;  %22447 = vrsqrt.f32 %v6124_v31  ;;  %v18903_v31 = vld [vmem:[%s26394_s6 + $0x5] ss:$0 sm:$0xff] }
0x1071   :  { %21062 = vmatpush3.xpose.msk.msra.mxu1 %vm1050_vm2, %v23661_v40 }
0x1072   :  { %21063 = vmatprep.subr.mxu1 %v22641_v4 }
0x1075   :  { %21064 = vmatpush3.xpose.msk.msra.mxu1 %vm1050_vm2, %v23669_v41 }
0x1076   :  { %21065 = vmatprep.subr.mxu1 %v22641_v4 }
0x1079   :  { %21066 = vmatpush3.xpose.msk.msra.mxu1 %vm1050_vm2, %v23677_v44 }
0x107a   :  { %21081 = vmatprep.subr.mxu1 %v22641_v4 }
0x107b   :  { %v22448_v34 = vpop.eup %22447 }
0x10e0   :  { %v6354_v60 = vpop.xlane.xlu0 %6353 }
0x10e1   :  { %v6358_v1 = vmul.f32 0.03125, %v6354_v60  ;;  %v18939_v60 = vld [vmem:[%s26393_s7 + $0x518] sm:$0xff] }
0x10e3   :  { %v6360_v17 = vadd.f32 1e-06, %v6358_v1  ;;  %v18937_v1 = vld [vmem:[%s26393_s7 + $0x508] sm:$0xff] }
0x1115   :  { %v5589_v30 = vpop.f32.mrf.mxu0 }
0x1116   :  { %21057 = vmatmul.mubr.msk.f32.vlgmr.msra.gmra.mxu0 %vm1050_vm2, %v5589_v30 }
0x1117   :  { %21071 = vmatpush3.xpose.msk.msra.mxu0 %vm1050_vm2, %v23685_v45  ;;  %v21032_v40 = vpop.f32.mrf.mxu0  ;;  %21078 = vmatprep.mubr.msk.f32.mxu0 %vm22642_vm1, %v22641_v4  ;;  %v6128_v45 = vmul.f32 %v22448_v34, %v23811_v21 }
0x1118   :  { %21072 = vmatprep.subr.mxu0 %v22641_v4 }
0x1119   :  { %v5735_v41 = vpop.f32.mrf.mxu0 }
0x111b   :  { %21073 = vmatpush3.xpose.msk.msra.mxu0 %vm1050_vm2, %v23696_v52  ;;  %v21042_v44 = vpop.f32.mrf.mxu0  ;;  %v6134_v52 = vmul.f32 %v23876_v35, %v6128_v45  ;;  %v18910_v45 = vld [vmem:[%s26393_s7 + $0x430] sm:$0xff] }
0x111c   :  { %21074 = vmatprep.subr.mxu0 %v22641_v4 }
0x111f   :  { %21075 = vmatpush3.xpose.msk.msra.mxu0 %vm1050_vm2, %v23704_v53 }
0x1120   :  { %21076 = vmatprep.subr.mxu0 %v22641_v4 }
0x1123   :  { %21077 = vmatpush3.xpose.msk.msra.mxu0 %vm1050_vm2, %v23712_v6 }
0x1126   :  { %21079 = vmatmul.mubr.msk.f32.vlgmr.msra.gmra.mxu0 %vm1050_vm2, %v5735_v41 }
0x1127   :  { %21100 = vmatprep.mubr.msk.f32.mxu0 %vm57_vm0, %v6134_v52  ;;  %v18908_v52 = vld [vmem:[%s26393_s7 + $0x420] sm:$0xff] }
0x1128   :  { %v5662_v37 = vpop.f32.mrf.mxu1 }
0x1129   :  { %21068 = vmatmul.mubr.msk.f32.vlgmr.msra.gmra.mxu1 %vm1050_vm2, %v5662_v37  ;;  %v18919_v37 = vld [vmem:[%s26393_s7 + $0x478] sm:$0xff] }
0x112a   :  { %21082 = vmatpush3.xpose.msk.msra.mxu1 %vm1050_vm2, %v23721_v13  ;;  %v21037_v53 = vpop.f32.mrf.mxu1  ;;  %21089 = vmatprep.mubr.msk.f32.mxu1 %vm22642_vm1, %v22641_v4 }
0x112b   :  { %21083 = vmatprep.subr.mxu1 %v22641_v4  ;;  %v18918_v53 = vld [vmem:[%s26393_s7 + $0x470] sm:$0xff] }
0x112c   :  { %v5808_v42 = vpop.f32.mrf.mxu1 }
0x112e   :  { %21084 = vmatpush3.xpose.msk.msra.mxu1 %vm1050_vm2, %v23737_v11  ;;  %v21047_v6 = vpop.f32.mrf.mxu1 }
0x112f   :  { %21085 = vmatprep.subr.mxu1 %v22641_v4  ;;  %v18916_v6 = vld [vmem:[%s26393_s7 + $0x460] sm:$0xff] }
0x1132   :  { %21086 = vmatpush3.xpose.msk.msra.mxu1 %vm1050_vm2, %v23754_v25 }
0x1133   :  { %21087 = vmatprep.subr.mxu1 %v22641_v4 }
0x1136   :  { %21088 = vmatpush3.xpose.msk.msra.mxu1 %vm1050_vm2, %v23766_v8 }
0x1137   :  { %21103 = vmatprep.subr.msk.mxu1 %vm3094_vm3, %v18893_v58 }
0x1139   :  { %21090 = vmatmul.mubr.msk.f32.vlgmr.msra.gmra.mxu1 %vm1050_vm2, %v5808_v42  ;;  %v18917_v42 = vld [vmem:[%s26393_s7 + $0x468] sm:$0xff] }
0x113a   :  { %21104 = vmatpush3.xpose.msk.msra.mxu1 %vm3094_vm3, %v18893_v58  ;;  %v18921_v58 = vld [vmem:[%s26393_s7 + $0x488] sm:$0xff] }
0x113b   :  { %21105 = vmatprep.subr.msk.mxu1 %vm3094_vm3, %v18892_v63 }
0x113e   :  { %21106 = vmatpush3.xpose.msk.msra.mxu1 %vm3094_vm3, %v18892_v63  ;;  %v18920_v63 = vld [vmem:[%s26393_s7 + $0x480] sm:$0xff] }
0x113f   :  { %21107 = vmatprep.subr.msk.mxu1 %vm3094_vm3, %v18891_v36 }
0x1142   :  { %21108 = vmatpush3.xpose.msk.msra.mxu1 %vm3094_vm3, %v18891_v36  ;;  %v18931_v36 = vld [vmem:[%s26393_s7 + $0x4d8] sm:$0xff] }
0x11d6   :  { %v5881_v13 = vpop.f32.mrf.mxu0 }
0x11d7   :  { %v6104_v24 = vsel %vm57_vm0, %v5881_v13, 0.0  ;;  %v18927_v13 = vld [vmem:[%s26393_s7 + $0x4b8] sm:$0xff] }
0x11d8   :  { %v21058_v43 = vpop.f32.mrf.mxu0 }
0x11d9   :  { %v18926_v43 = vld [vmem:[%s26393_s7 + $0x4b0] sm:$0xff] }
0x11e6   :  { %v6027_v46 = vpop.f32.mrf.mxu0 }
0x11e7   :  { %v6107_v25 = vsel %vm57_vm0, %v6027_v46, 0.0  ;;  %v18925_v46 = vld [vmem:[%s26393_s7 + $0x4a8] sm:$0xff] }
0x11e8   :  { %v21080_v15 = vpop.f32.mrf.mxu0 }
0x11e9   :  { %v5954_v19 = vpop.f32.mrf.mxu1  ;;  %v18924_v15 = vld [vmem:[%s26393_s7 + $0x4a0] sm:$0xff] }
0x11ea   :  { %v6105_v11 = vsel %vm57_vm0, %v5954_v19, 0.0  ;;  %v18935_v19 = vld [vmem:[%s26393_s7 + $0x4f8] sm:$0xff] }
0x11eb   :  { %v21069_v51 = vpop.f32.mrf.mxu1  ;;  %v6106_v54 = vadd.f32 %v6105_v11, %v6104_v24  ;;  %v18933_v11 = vld [vmem:[%s26393_s7 + $0x4e8] sm:$0xff]  ;;  %v18932_v24 = vld [vmem:[%s26393_s7 + $0x4e0] sm:$0xff] }
0x11ec   :  { %v18934_v51 = vld [vmem:[%s26393_s7 + $0x4f0] sm:$0xff] }
0x11ed   :  { %v6108_v48 = vadd.f32 %v6107_v25, %v6106_v54  ;;  %v18943_v54 = vld [vmem:[%s26393_s7 + $0x538] sm:$0xff]  ;;  %v18942_v25 = vld [vmem:[%s26393_s7 + $0x530] sm:$0xff] }
0x11f9   :  { %v6100_v32 = vpop.f32.mrf.mxu1 }
0x11fa   :  { %v6109_v49 = vsel %vm57_vm0, %v6100_v32, 0.0  ;;  %v18941_v32 = vld [vmem:[%s26393_s7 + $0x528] sm:$0xff] }
0x11fb   :  { %v6110_v8 = vadd.f32 %v6109_v49, %v6108_v48  ;;  %v21091_v5 = vpop.f32.mrf.mxu1  ;;  %v18940_v48 = vld [vmem:[%s26393_s7 + $0x520] sm:$0xff]  ;;  %v18951_v49 = vld [vmem:[%s26393_s7 + $0x578] sm:$0xff] }
0x11fc   :  { %v18949_v5 = vld [vmem:[%s26393_s7 + $0x568] sm:$0xff] }
0x11fd   :  { %v23903_v9 = vadd.f32 %v6110_v8, %v23317_v61  ;;  %v18889_v61 = vld [vmem:[%s26396_s8 + $0x58] sm:$0xff]  ;;  %v18950_v8 = vld [vmem:[%s26393_s7 + $0x570] sm:$0xff] }
0x11fe   :  { %21092 = vmatprep.subr.mxu0 %v18889_v61 }
0x11ff   :  { %v6115_v14 = vmul.f32 %v23903_v9, %v23903_v9  ;;  %21093 = vmatpush3.msra.mxu0 %v18889_v61 }
0x1200   :  { %21094 = vmatprep.subr.mxu0 %v18888_v39 }
0x1201   :  { %v6119_v18 = vsel %vm57_vm0, %v6115_v14, 0.0  ;;  %21095 = vmatpush3.msra.mxu0 %v18888_v39  ;;  %v18948_v14 = vld [vmem:[%s26393_s7 + $0x560] sm:$0xff] }
0x1202   :  { %6120 = vadd.xlane.f32.xlu1 %v6119_v18  ;;  %21096 = vmatprep.subr.mxu0 %v18887_v10  ;;  %v18890_v18 = vld [vmem:[%s26396_s8 + $0x60] sm:$0xff] }
0x1203   :  { %21097 = vmatpush3.msra.mxu0 %v18887_v10  ;;  %21109 = vmatprep.subr.msk.mxu1 %vm3094_vm3, %v18890_v18  ;;  %v18913_v10 = vld [vmem:[%s26393_s7 + $0x448] sm:$0xff] }
0x1204   :  { %21098 = vmatprep.subr.mxu0 %v18886_v22  ;;  %21110 = vmatpush3.xpose.msk.msra.mxu1 %vm3094_vm3, %v18890_v18  ;;  %v24231_v18 = vld [vmem:[%s26398_s4 + $0x10] sm:$0xff] }
0x1205   :  { %21099 = vmatpush3.msra.mxu0 %v18886_v22  ;;  %21136 = vmatprep.subr.mxu1 %v18915_v38  ;;  %v18923_v22 = vld [vmem:[%s26393_s7 + $0x498] sm:$0xff] }
0x1206   :  { %6356 = vadd.xlane.f32.xlu1 %v6355_v56  ;;  %21114 = vmatprep.subr.mxu0 %v18907_v57  ;;  %v18912_v56 = vld [vmem:[%s26393_s7 + $0x440] sm:$0xff] }
0x128b   :  { %v6121_v47 = vpop.xlane.xlu1 %6120 }
0x128c   :  { %v6123_v0 = vmul.f32 0.03125, %v6121_v47  ;;  %v18930_v47 = vld [vmem:[%s26393_s7 + $0x4d0] sm:$0xff] }
0x128e   :  { %v6125_v59 = vadd.f32 1e-06, %v6123_v0  ;;  %v18929_v0 = vld [vmem:[%s26393_s7 + $0x4c8] sm:$0xff] }
0x128f   :  { %v6357_v2 = vpop.xlane.xlu1 %6356 }
0x1290   :  { %22449 = vrsqrt.f32 %v6125_v59  ;;  %v6359_v7 = vmul.f32 0.03125, %v6357_v2  ;;  %v18928_v59 = vld [vmem:[%s26393_s7 + $0x4c0] sm:$0xff] }
0x1291   :  { %22451 = vrsqrt.f32 %v6360_v17  ;;  %v18936_v2 = vld [vmem:[%s26393_s7 + $0x500] sm:$0xff]  ;;  %v18945_v17 = vld [vmem:[%s26393_s7 + $0x548] sm:$0xff] }
0x1292   :  { %v6361_v16 = vadd.f32 1e-06, %v6359_v7  ;;  %v18946_v7 = vld [vmem:[%s26393_s7 + $0x550] sm:$0xff] }
0x1294   :  { %22453 = vrsqrt.f32 %v6361_v16 }
0x129d   :  { %v22450_v62 = vpop.eup %22449 }
0x129e   :  { %v6129_v3 = vmul.f32 %v22450_v62, %v23903_v9  ;;  %v22452_v23 = vpop.eup %22451  ;;  %v18938_v62 = vld [vmem:[%s26393_s7 + $0x510] sm:$0xff] }
0x129f   :  { %v6364_v40 = vmul.f32 %v22452_v23, %v23911_v28 }
0x12a0   :  { %v6135_v26 = vmul.f32 %v23876_v35, %v6129_v3  ;;  %v18909_v35 = vld [vmem:[%s26393_s7 + $0x428] sm:$0xff]  ;;  %v18947_v3 = vld [vmem:[%s26393_s7 + $0x558] sm:$0xff] }
0x12a1   :  { %v22454_v30 = vpop.eup %22453  ;;  %v23969_v44 = vmul.f32 %v18903_v31, %v6364_v40 }
0x12a2   :  { %21101 = vmatmul.mubr.msk.f32.vlgmr.msra.gmra.mxu0 %vm57_vm0, %v6135_v26  ;;  %v6365_v41 = vmul.f32 %v22454_v30, %v6348_v33  ;;  %v18944_v26 = vld [vmem:[%s26393_s7 + $0x540] sm:$0xff] }
0x12a3   :  { %21115 = vmatpush3.msra.mxu0 %v18907_v57  ;;  %21122 = vmatprep.mubr.msk.f32.mxu0 %vm57_vm0, %v23969_v44  ;;  %v18922_v57 = vld [vmem:[%s26393_s7 + $0x490] sm:$0xff] }
0x12a4   :  { %21116 = vmatprep.subr.mxu0 %v18906_v27  ;;  %v23971_v34 = vmul.f32 %v18903_v31, %v6365_v41 }
0x12a5   :  { %21117 = vmatpush3.msra.mxu0 %v18906_v27 }
0x12a6   :  { %21118 = vmatprep.subr.mxu0 %v18905_v50 }
0x12a7   :  { %21119 = vmatpush3.msra.mxu0 %v18905_v50 }
0x12a8   :  { %21120 = vmatprep.subr.mxu0 %v18904_v20 }
0x12a9   :  { %21121 = vmatpush3.msra.mxu0 %v18904_v20 }
0x12aa   :  { %21125 = vmatprep.subr.mxu0 %v18911_v29  ;;  %21123 = vmatmul.mubr.msk.f32.vlgmr.msra.gmra.mxu0 %vm57_vm0, %v23971_v34 }
0x12ab   :  { %21126 = vmatpush3.msra.mxu0 %v18911_v29  ;;  %21133 = vmatprep.mubr.msk.f32.mxu0 %vm57_vm0, %v23969_v44 }
0x12ac   :  { %21127 = vmatprep.subr.mxu0 %v18910_v45 }
0x12ad   :  { %21128 = vmatpush3.msra.mxu0 %v18910_v45 }
0x12ae   :  { %21129 = vmatprep.subr.mxu0 %v18909_v35 }
0x12af   :  { %21130 = vmatpush3.msra.mxu0 %v18909_v35 }
0x12b0   :  { %21131 = vmatprep.subr.mxu0 %v18908_v52 }
0x12b1   :  { %21132 = vmatpush3.msra.mxu0 %v18908_v52 }
0x12b2   :  { %21147 = vmatprep.subr.mxu0 %v18919_v37  ;;  %21134 = vmatmul.mubr.msk.f32.vlgmr.msra.gmra.mxu0 %vm57_vm0, %v23971_v34 }
0x12b3   :  { %21148 = vmatpush3.msra.mxu0 %v18919_v37  ;;  %21155 = vmatprep.mubr.msk.f32.mxu0 %vm57_vm0, %v23969_v44 }
0x12b4   :  { %21149 = vmatprep.subr.mxu0 %v18918_v53 }
0x12b5   :  { %21150 = vmatpush3.msra.mxu0 %v18918_v53 }
0x12b6   :  { %21151 = vmatprep.subr.mxu0 %v18917_v42 }
0x12b7   :  { %21152 = vmatpush3.msra.mxu0 %v18917_v42 }
0x12b8   :  { %21153 = vmatprep.subr.mxu0 %v18916_v6 }
0x12b9   :  { %21154 = vmatpush3.msra.mxu0 %v18916_v6 }
0x12ba   :  { %21169 = vmatprep.subr.mxu0 %v18927_v13  ;;  %21156 = vmatmul.mubr.msk.f32.vlgmr.msra.gmra.mxu0 %vm57_vm0, %v23971_v34 }
0x12bb   :  { %21170 = vmatpush3.msra.mxu0 %v18927_v13  ;;  %21177 = vmatprep.mubr.msk.f32.mxu0 %vm57_vm0, %v23969_v44 }
0x12bc   :  { %21171 = vmatprep.subr.mxu0 %v18926_v43 }
0x12bd   :  { %21172 = vmatpush3.msra.mxu0 %v18926_v43 }
0x12be   :  { %21173 = vmatprep.subr.mxu0 %v18925_v46 }
0x12bf   :  { %21174 = vmatpush3.msra.mxu0 %v18925_v46 }
0x12c0   :  { %21175 = vmatprep.subr.mxu0 %v18924_v15 }
0x12c1   :  { %21176 = vmatpush3.msra.mxu0 %v18924_v15 }
0x12c2   :  { %21191 = vmatprep.subr.mxu0 %v18935_v19  ;;  %21178 = vmatmul.mubr.msk.f32.vlgmr.msra.gmra.mxu0 %vm57_vm0, %v23971_v34 }
0x12c3   :  { %21192 = vmatpush3.msra.mxu0 %v18935_v19  ;;  %21199 = vmatprep.mubr.msk.f32.mxu0 %vm57_vm0, %v23969_v44 }
0x12c4   :  { %21193 = vmatprep.subr.mxu0 %v18934_v51 }
0x12c5   :  { %21194 = vmatpush3.msra.mxu0 %v18934_v51  ;;  %v24216_v51 = vld [vmem:[%s26398_s4] sm:$0xff] }
0x12c6   :  { %21195 = vmatprep.subr.mxu0 %v18933_v11 }
0x12c7   :  { %21196 = vmatpush3.msra.mxu0 %v18933_v11 }
0x12c8   :  { %21197 = vmatprep.subr.mxu0 %v18932_v24 }
0x12c9   :  { %21198 = vmatpush3.msra.mxu0 %v18932_v24 }
0x12ca   :  { %21213 = vmatprep.subr.mxu0 %v18943_v54  ;;  %21200 = vmatmul.mubr.msk.f32.vlgmr.msra.gmra.mxu0 %vm57_vm0, %v23971_v34 }
0x12cb   :  { %21214 = vmatpush3.msra.mxu0 %v18943_v54  ;;  %21221 = vmatprep.mubr.msk.f32.mxu0 %vm57_vm0, %v23969_v44 }
0x12cc   :  { %21215 = vmatprep.subr.mxu0 %v18942_v25 }
0x12cd   :  { %21216 = vmatpush3.msra.mxu0 %v18942_v25 }
0x12ce   :  { %21217 = vmatprep.subr.mxu0 %v18941_v32 }
0x12cf   :  { %21218 = vmatpush3.msra.mxu0 %v18941_v32  ;;  %v24224_v32 = vld [vmem:[%s26398_s4 + $0x8] sm:$0xff] }
0x12d0   :  { %21219 = vmatprep.subr.mxu0 %v18940_v48 }
0x12d1   :  { %21220 = vmatpush3.msra.mxu0 %v18940_v48 }
0x12d2   :  { %21235 = vmatprep.subr.mxu0 %v18951_v49  ;;  %21222 = vmatmul.mubr.msk.f32.vlgmr.msra.gmra.mxu0 %vm57_vm0, %v23971_v34 }
0x12d3   :  { %21236 = vmatpush3.msra.mxu0 %v18951_v49  ;;  %21243 = vmatprep.mubr.msk.f32.mxu0 %vm57_vm0, %v23969_v44 }
0x12d4   :  { %21237 = vmatprep.subr.mxu0 %v18950_v8 }
0x12d5   :  { %21238 = vmatpush3.msra.mxu0 %v18950_v8 }
0x12d6   :  { %21239 = vmatprep.subr.mxu0 %v18949_v5 }
0x12d7   :  { %21240 = vmatpush3.msra.mxu0 %v18949_v5 }
0x12d8   :  { %21241 = vmatprep.subr.mxu0 %v18948_v14 }
0x12d9   :  { %21242 = vmatpush3.msra.mxu0 %v18948_v14 }
0x12da   :  { %21244 = vmatmul.mubr.msk.f32.vlgmr.msra.gmra.mxu0 %vm57_vm0, %v23971_v34  ;;  %21256 = vmatprep.subr.mxu0 %v22641_v4 }
0x12db   :  { %21258 = vmatprep.mubr.msk.f32.mxu0 %vm22642_vm1, %v22641_v4 }
0x1362   :  { %v21102_v33 = vpop.f32.mrf.mxu0 }
0x1363   :  { %v6228_v55 = vmax.f32 %v21102_v33, 0.0 }
0x1364   :  { %v6218_v61 = vpop.f32.mrf.mxu0 }
0x1365   :  { %v6227_v39 = vmax.f32 %v6218_v61, 0.0 }
0x1367   :  { %21111 = vmatprep.mubr.msk.f32.mxu1 %vm3094_vm3, %v6227_v39 }
0x1368   :  { %21112 = vmatmul.mubr.msk.f32.vlgmr.msra.gmra.mxu1 %vm3094_vm3, %v6228_v55 }
0x1369   :  { %21137 = vmatpush3.msra.mxu1 %v18915_v38  ;;  %21144 = vmatprep.mubr.msk.f32.mxu1 %vm57_vm0, %v23969_v44  ;;  %v24236_v38 = vld [vmem:[%s26398_s4 + $0x18] sm:$0xff] }
0x136a   :  { %21138 = vmatprep.subr.mxu1 %v18914_v12  ;;  %v24163_v16 = vpop.f32.mrf.mxu0 }
0x136b   :  { %21139 = vmatpush3.msra.mxu1 %v18914_v12 }
0x136c   :  { %21140 = vmatprep.subr.mxu1 %v18913_v10  ;;  %v6510_v27 = vpop.f32.mrf.mxu0 }
0x136d   :  { %21141 = vmatpush3.msra.mxu1 %v18913_v10 }
0x136e   :  { %21142 = vmatprep.subr.mxu1 %v18912_v56 }
0x136f   :  { %21143 = vmatpush3.msra.mxu1 %v18912_v56 }
0x1370   :  { %21145 = vmatmul.mubr.msk.f32.vlgmr.msra.gmra.mxu1 %vm57_vm0, %v23971_v34  ;;  %21158 = vmatprep.subr.mxu1 %v18923_v22 }
0x1371   :  { %21159 = vmatpush3.msra.mxu1 %v18923_v22  ;;  %21166 = vmatprep.mubr.msk.f32.mxu1 %vm57_vm0, %v23969_v44 }
0x1372   :  { %21160 = vmatprep.subr.mxu1 %v18922_v57  ;;  %v24165_v50 = vpop.f32.mrf.mxu0 }
0x1373   :  { %21161 = vmatpush3.msra.mxu1 %v18922_v57 }
0x1374   :  { %21162 = vmatprep.subr.mxu1 %v18921_v58  ;;  %v6585_v20 = vpop.f32.mrf.mxu0 }
0x1375   :  { %21163 = vmatpush3.msra.mxu1 %v18921_v58 }
0x1376   :  { %21164 = vmatprep.subr.mxu1 %v18920_v63 }
0x1377   :  { %21165 = vmatpush3.msra.mxu1 %v18920_v63 }
0x1378   :  { %21167 = vmatmul.mubr.msk.f32.vlgmr.msra.gmra.mxu1 %vm57_vm0, %v23971_v34  ;;  %21180 = vmatprep.subr.mxu1 %v18931_v36 }
0x1379   :  { %21181 = vmatpush3.msra.mxu1 %v18931_v36  ;;  %21188 = vmatprep.mubr.msk.f32.mxu1 %vm57_vm0, %v23969_v44 }
0x137a   :  { %21182 = vmatprep.subr.mxu1 %v18930_v47  ;;  %v24167_v29 = vpop.f32.mrf.mxu0 }
0x137b   :  { %21183 = vmatpush3.msra.mxu1 %v18930_v47 }
0x137c   :  { %21184 = vmatprep.subr.mxu1 %v18929_v0  ;;  %v6735_v31 = vpop.f32.mrf.mxu0 }
0x137d   :  { %21185 = vmatpush3.msra.mxu1 %v18929_v0 }
0x137e   :  { %21186 = vmatprep.subr.mxu1 %v18928_v59 }
0x137f   :  { %21187 = vmatpush3.msra.mxu1 %v18928_v59 }
0x1380   :  { %21189 = vmatmul.mubr.msk.f32.vlgmr.msra.gmra.mxu1 %vm57_vm0, %v23971_v34  ;;  %21202 = vmatprep.subr.mxu1 %v18939_v60 }
0x1381   :  { %21203 = vmatpush3.msra.mxu1 %v18939_v60  ;;  %21210 = vmatprep.mubr.msk.f32.mxu1 %vm57_vm0, %v23969_v44 }
0x1382   :  { %21204 = vmatprep.subr.mxu1 %v18938_v62  ;;  %v24173_v40 = vpop.f32.mrf.mxu0 }
0x1383   :  { %21205 = vmatpush3.msra.mxu1 %v18938_v62 }
0x1384   :  { %21206 = vmatprep.subr.mxu1 %v18937_v1 }
0x1385   :  { %21207 = vmatpush3.msra.mxu1 %v18937_v1 }
0x1386   :  { %21208 = vmatprep.subr.mxu1 %v18936_v2 }
0x1387   :  { %21209 = vmatpush3.msra.mxu1 %v18936_v2 }
0x1388   :  { %21211 = vmatmul.mubr.msk.f32.vlgmr.msra.gmra.mxu1 %vm57_vm0, %v23971_v34  ;;  %21224 = vmatprep.subr.mxu1 %v18947_v3 }
0x1389   :  { %21225 = vmatpush3.msra.mxu1 %v18947_v3  ;;  %21232 = vmatprep.mubr.msk.f32.mxu1 %vm57_vm0, %v23969_v44  ;;  %v6885_v44 = vpop.f32.mrf.mxu0 }
0x138a   :  { %21226 = vmatprep.subr.mxu1 %v18946_v7 }
0x138b   :  { %21227 = vmatpush3.msra.mxu1 %v18946_v7  ;;  %v24179_v35 = vpop.f32.mrf.mxu0 }
0x138c   :  { %21228 = vmatprep.subr.mxu1 %v18945_v17 }
0x138d   :  { %21229 = vmatpush3.msra.mxu1 %v18945_v17  ;;  %v7035_v37 = vpop.f32.mrf.mxu0 }
0x138e   :  { %21230 = vmatprep.subr.mxu1 %v18944_v26 }
0x138f   :  { %21231 = vmatpush3.msra.mxu1 %v18944_v26 }
0x1390   :  { %21233 = vmatmul.mubr.msk.f32.vlgmr.msra.gmra.mxu1 %vm57_vm0, %v23971_v34  ;;  %21246 = vmatprep.subr.mxu1 %v22641_v4 }
0x1391   :  { %21248 = vmatprep.mubr.msk.f32.mxu1 %vm22642_vm1, %v22641_v4 }
0x1392   :  { %v24190_v42 = vpop.f32.mrf.mxu0 }
0x1394   :  { %v7185_v13 = vpop.f32.mrf.mxu0 }
0x139a   :  { %v24219_v54 = vpop.f32.mrf.mxu0 }
0x139c   :  { %v7335_v5 = vpop.f32.mrf.mxu0 }
0x1428   :  { %v24169_v23 = vpop.f32.mrf.mxu1 }
0x142a   :  { %v24171_v30 = vpop.f32.mrf.mxu1 }
0x1430   :  { %v24175_v41 = vpop.f32.mrf.mxu1 }
0x1432   :  { %v6660_v34 = vpop.f32.mrf.mxu1 }
0x1438   :  { %v24177_v45 = vpop.f32.mrf.mxu1 }
0x143a   :  { %v6810_v52 = vpop.f32.mrf.mxu1 }
0x143b   :  { %21247 = vmatpush3.xpose.msk.msra.mxu1 %vm1050_vm2, %v6810_v52 }
0x143c   :  { %21251 = vmatprep.subr.mxu1 %v22641_v4 }
0x143e   :  { %21249 = vmatmul.mubr.msk.f32.vlgmr.msra.gmra.mxu1 %vm1050_vm2, %v6510_v27 }
0x143f   :  { %21252 = vmatpush3.xpose.msk.msra.mxu1 %vm1050_vm2, %v6885_v44  ;;  %21253 = vmatprep.mubr.msk.f32.mxu1 %vm22642_vm1, %v22641_v4 }
0x1440   :  { %v24187_v53 = vpop.f32.mrf.mxu1  ;;  %21261 = vmatprep.subr.mxu1 %v22641_v4 }
0x1442   :  { %v6960_v6 = vpop.f32.mrf.mxu1  ;;  %21254 = vmatmul.mubr.msk.f32.vlgmr.msra.gmra.mxu1 %vm1050_vm2, %v6585_v20 }
0x1443   :  { %21257 = vmatpush3.xpose.msk.msra.mxu0 %vm1050_vm2, %v6960_v6  ;;  %21262 = vmatpush3.xpose.msk.msra.mxu1 %vm1050_vm2, %v7035_v37 }
0x1444   :  { %21263 = vmatprep.mubr.msk.f32.mxu1 %vm22642_vm1, %v22641_v4  ;;  %21271 = vmatprep.subr.mxu1 %v22641_v4 }
0x1445   :  { %21266 = vmatprep.subr.mxu0 %v22641_v4 }
0x1446   :  { %21259 = vmatmul.mubr.msk.f32.vlgmr.msra.gmra.mxu0 %vm1050_vm2, %v6660_v34  ;;  %21264 = vmatmul.mubr.msk.f32.vlgmr.msra.gmra.mxu1 %vm1050_vm2, %v6735_v31 }
0x1447   :  { %21272 = vmatpush3.msra.mxu1 %v7185_v13  ;;  %21268 = vmatprep.mubr.msk.f32.mxu0 %vm22642_vm1, %v22641_v4 }
0x1448   :  { %v24203_v43 = vpop.f32.mrf.mxu1  ;;  %21273 = vmatprep.mubr.msk.f32.mxu1 %vm22642_vm1, %v22641_v4  ;;  %21281 = vmatprep.subr.mxu1 %v22641_v4 }
0x144a   :  { %v7110_v46 = vpop.f32.mrf.mxu1 }
0x144b   :  { %21267 = vmatpush3.msra.mxu0 %v7110_v46 }
0x144c   :  { %21276 = vmatprep.subr.mxu0 %v22641_v4 }
0x1450   :  { %v24209_v15 = vpop.f32.mrf.mxu1 }
0x1452   :  { %v24211_v19 = vpop.f32.mrf.mxu1 }
0x14fe   :  { %v7416_v11 = vpop.f32.mrf.mxu1 }
0x14ff   :  { %v7417_v24 = vadd.f32 %v7416_v11, %v24216_v51 }
0x1500   :  { %v21250_v25 = vpop.f32.mrf.mxu1 }
0x1501   :  { %v7648_v48 = vsel %vm1050_vm2, %v7417_v24, -inf }
0x1502   :  { %7649 = vmax.xlane.f32.xlu0 %v7648_v48  ;;  %v7492_v49 = vpop.f32.mrf.mxu1 }
0x1503   :  { %v7493_v8 = vadd.f32 %v7492_v49, %v24224_v32 }
0x1504   :  { %v21255_v14 = vpop.f32.mrf.mxu1 }
0x1505   :  { %v7651_v33 = vsel %vm1050_vm2, %v7493_v8, -inf }
0x1506   :  { %v7568_v61 = vpop.f32.mrf.mxu0  ;;  %7652 = vmax.xlane.f32.xlu1 %v7651_v33  ;;  %v7644_v39 = vpop.f32.mrf.mxu1  ;;  %v24258_v33 = vld [vmem:[%s26393_s7 + $0x598] sm:$0xff] }
0x1507   :  { %v7569_v55 = vadd.f32 %v7568_v61, %v24231_v18  ;;  %v7645_v12 = vadd.f32 %v7644_v39, %v24236_v38  ;;  %v24264_v61 = vld [vmem:[%s26393_s7 + $0x5b8] sm:$0xff]  ;;  %v24282_v39 = vld [vmem:[%s26393_s7 + $0x5b0] sm:$0xff] }
0x1508   :  { %v21260_v10 = vpop.f32.mrf.mxu0  ;;  %v21265_v56 = vpop.f32.mrf.mxu1 }
0x1509   :  { %v7654_v22 = vsel %vm1050_vm2, %v7569_v55, -inf  ;;  %v7657_v57 = vsel %vm1050_vm2, %v7645_v12, -inf  ;;  %v24310_v10 = vld [vmem:[%s26393_s7 + $0x580] sm:$0xff] }
0x150a   :  { %7655 = vmax.xlane.f32.xlu0 %v7654_v22  ;;  %7658 = vmax.xlane.f32.xlu1 %v7657_v57  ;;  %v24321_v56 = vld [vmem:[%s26393_s7 + $0x5a0] sm:$0xff]  ;;  %v24329_v22 = vld [vmem:[%s26393_s7 + $0x5d8] sm:$0xff] }
0x158b   :  { %v7650_v58 = vpop.xlane.xlu0 %7649 }
0x158c   :  { %v7660_v63 = vsub.f32 %v7417_v24, %v7650_v58 }
0x158e   :  { %v7664_v36 = vmul.f32 1.442695, %v7660_v63  ;;  %v24340_v63 = vld [vmem:[%s26393_s7 + $0x5d0] sm:$0xff] }
0x158f   :  { %v7653_v47 = vpop.xlane.xlu1 %7652 }
0x1590   :  { %22455 = vpow2.f32 %v7664_v36  ;;  %v7661_v0 = vsub.f32 %v7493_v8, %v7653_v47  ;;  %v24345_v36 = vld [vmem:[%s26393_s7 + $0x5f8] sm:$0xff] }
0x1592   :  { %v7666_v59 = vmul.f32 1.442695, %v7661_v0 }
0x1593   :  { %v7656_v60 = vpop.xlane.xlu0 %7655  ;;  %v7659_v62 = vpop.xlane.xlu1 %7658 }
0x1594   :  { %22457 = vpow2.f32 %v7666_v59  ;;  %v7662_v1 = vsub.f32 %v7569_v55, %v7656_v60  ;;  %v7663_v2 = vsub.f32 %v7645_v12, %v7659_v62  ;;  %v24294_v55 = vld [vmem:[%s26393_s7 + $0x588] sm:$0xff]  ;;  %v24362_v60 = vld [vmem:[%s26393_s7 + $0x5f0] sm:$0xff] }
0x1595   :  { %v24302_v12 = vld [vmem:[%s26393_s7 + $0x5a8] sm:$0xff] }
0x1596   :  { %v7668_v3 = vmul.f32 1.442695, %v7662_v1  ;;  %v7670_v7 = vmul.f32 1.442695, %v7663_v2  ;;  %v24357_v59 = vld [vmem:[%s26393_s7 + $0x5c8] sm:$0xff] }
0x1598   :  { %22459 = vpow2.f32 %v7668_v3 }
0x1599   :  { %22461 = vpow2.f32 %v7670_v7  ;;  %v24375_v7 = vld [vmem:[%s26393_s7 + $0x5c0] sm:$0xff] }
0x159d   :  { %v22456_v17 = vpop.eup %22455 }
0x159e   :  { %v7672_v26 = vsel %vm1050_vm2, %v22456_v17, 0.0 }
0x159f   :  { %7673 = vadd.xlane.f32.xlu0 %v7672_v26  ;;  %v24391_v26 = vld [vmem:[%s26393_s7 + $0x5e0] sm:$0xff] }
0x15a1   :  { %v22458_v27 = vpop.eup %22457 }
0x15a2   :  { %v7675_v20 = vsel %vm1050_vm2, %v22458_v27, 0.0 }
0x15a3   :  { %7676 = vadd.xlane.f32.xlu1 %v7675_v20 }
0x15a5   :  { %v22460_v31 = vpop.eup %22459 }
0x15a6   :  { %v22462_v44 = vpop.eup %22461  ;;  %v7678_v34 = vsel %vm1050_vm2, %v22460_v31, 0.0 }
0x15a7   :  { %7679 = vadd.xlane.f32.xlu0 %v7678_v34  ;;  %v7681_v52 = vsel %vm1050_vm2, %v22462_v44, 0.0 }
0x15a8   :  { %7682 = vadd.xlane.f32.xlu1 %v7681_v52 }
0x1628   :  { %v7674_v37 = vpop.xlane.xlu0 %7673 }
0x1629   :  { %22463 = vrcp.f32 %v7674_v37 }
0x162c   :  { %v7677_v6 = vpop.xlane.xlu1 %7676 }
0x162d   :  { %22465 = vrcp.f32 %v7677_v6 }
0x1630   :  { %v7680_v13 = vpop.xlane.xlu0 %7679 }
0x1631   :  { %22467 = vrcp.f32 %v7680_v13  ;;  %v7683_v46 = vpop.xlane.xlu1 %7682 }
0x1632   :  { %22469 = vrcp.f32 %v7683_v46 }
0x1636   :  { %v22464_v11 = vpop.eup %22463 }
0x1637   :  { %v7688_v24 = vmul.f32 %v22464_v11, %v22456_v17  ;;  %v24380_v17 = vld [vmem:[%s26393_s7 + $0x5e8] sm:$0xff] }
0x1639   :  { %21269 = vmatmul.mubr.msk.f32.vlgmr.msra.gmra.mxu0 %vm1050_vm2, %v7688_v24 }
0x163a   :  { %v22466_v25 = vpop.eup %22465  ;;  %21277 = vmatpush3.msra.mxu0 %v24211_v19  ;;  %21278 = vmatprep.mubr.msk.f32.mxu0 %vm22642_vm1, %v22641_v4 }
0x163b   :  { %v7689_v48 = vmul.f32 %v22466_v25, %v22458_v27  ;;  %21286 = vmatprep.subr.mxu0 %v22641_v4 }
0x163d   :  { %21274 = vmatmul.mubr.msk.f32.vlgmr.msra.gmra.mxu1 %vm1050_vm2, %v7689_v48 }
0x163e   :  { %v22468_v49 = vpop.eup %22467  ;;  %21282 = vmatpush3.msra.mxu1 %v7335_v5  ;;  %21283 = vmatprep.mubr.msk.f32.mxu1 %vm22642_vm1, %v22641_v4  ;;  %v24274_v5 = vld [vmem:[%s26393_s7 + $0x590] sm:$0xff] }
0x163f   :  { %v22470_v8 = vpop.eup %22469  ;;  %v7690_v14 = vmul.f32 %v22468_v49, %v22460_v31  ;;  %21297 = vmatprep.subr.mxu1 %v22641_v4 }
0x1640   :  { %v7691_v19 = vmul.f32 %v22470_v8, %v22462_v44 }
0x1641   :  { %21279 = vmatmul.mubr.msk.f32.vlgmr.msra.gmra.mxu0 %vm1050_vm2, %v7690_v14 }
0x1642   :  { %21284 = vmatmul.mubr.msk.f32.vlgmr.msra.gmra.mxu1 %vm1050_vm2, %v7691_v19  ;;  %21287 = vmatpush3.xpose.msk.msra.mxu0 %vm1050_vm2, %v24258_v33 }
0x1643   :  { %21288 = vmatprep.subr.mxu0 %v22641_v4  ;;  %21298 = vmatpush3.xpose.msk.msra.mxu1 %vm1050_vm2, %v24264_v61 }
0x1644   :  { %21299 = vmatprep.subr.mxu1 %v22641_v4  ;;  %21294 = vmatprep.mubr.msk.f32.mxu0 %vm22642_vm1, %v22641_v4 }
0x1645   :  { %21305 = vmatprep.mubr.msk.f32.mxu1 %vm22642_vm1, %v22641_v4 }
0x1646   :  { %21289 = vmatpush3.xpose.msk.msra.mxu0 %vm1050_vm2, %v24274_v5 }
0x1647   :  { %21290 = vmatprep.subr.mxu0 %v22641_v4  ;;  %21300 = vmatpush3.xpose.msk.msra.mxu1 %vm1050_vm2, %v24282_v39 }
0x1648   :  { %21301 = vmatprep.subr.mxu1 %v22641_v4 }
0x164a   :  { %21291 = vmatpush3.xpose.msk.msra.mxu0 %vm1050_vm2, %v24294_v55 }
0x164b   :  { %21292 = vmatprep.subr.mxu0 %v22641_v4  ;;  %21302 = vmatpush3.xpose.msk.msra.mxu1 %vm1050_vm2, %v24302_v12 }
0x164c   :  { %21303 = vmatprep.subr.mxu1 %v22641_v4 }
0x164e   :  { %21293 = vmatpush3.xpose.msk.msra.mxu0 %vm1050_vm2, %v24310_v10 }
0x164f   :  { %21308 = vmatprep.subr.mxu0 %v22641_v4  ;;  %21304 = vmatpush3.xpose.msk.msra.mxu1 %vm1050_vm2, %v24321_v56 }
0x1650   :  { %21319 = vmatprep.subr.mxu1 %v22641_v4 }
0x16f9   :  { %v7761_v57 = vpop.f32.mrf.mxu0 }
0x16fa   :  { %21295 = vmatmul.mubr.msk.f32.vlgmr.msra.gmra.mxu0 %vm1050_vm2, %v7761_v57 }
0x16fb   :  { %21309 = vmatpush3.xpose.msk.msra.mxu0 %vm1050_vm2, %v24329_v22  ;;  %v21270_v58 = vpop.f32.mrf.mxu0  ;;  %21316 = vmatprep.mubr.msk.f32.mxu0 %vm22642_vm1, %v22641_v4 }
0x16fc   :  { %21310 = vmatprep.subr.mxu0 %v22641_v4 }
0x16fd   :  { %v7834_v47 = vpop.f32.mrf.mxu1 }
0x16fe   :  { %21306 = vmatmul.mubr.msk.f32.vlgmr.msra.gmra.mxu1 %vm1050_vm2, %v7834_v47 }
0x16ff   :  { %21311 = vmatpush3.xpose.msk.msra.mxu0 %vm1050_vm2, %v24340_v63  ;;  %21320 = vmatpush3.xpose.msk.msra.mxu1 %vm1050_vm2, %v24345_v36  ;;  %v21275_v0 = vpop.f32.mrf.mxu1 }
0x1700   :  { %21312 = vmatprep.subr.mxu0 %v22641_v4  ;;  %21321 = vmatprep.subr.mxu1 %v22641_v4 }
0x1701   :  { %v7907_v62 = vpop.f32.mrf.mxu0  ;;  %21327 = vmatprep.mubr.msk.f32.mxu1 %vm22642_vm1, %v22641_v4 }
0x1702   :  { %v7980_v1 = vpop.f32.mrf.mxu1 }
0x1703   :  { %21313 = vmatpush3.xpose.msk.msra.mxu0 %vm1050_vm2, %v24357_v59  ;;  %21322 = vmatpush3.xpose.msk.msra.mxu1 %vm1050_vm2, %v24362_v60  ;;  %v21280_v2 = vpop.f32.mrf.mxu0 }
0x1704   :  { %v21285_v3 = vpop.f32.mrf.mxu1  ;;  %21314 = vmatprep.subr.mxu0 %v22641_v4  ;;  %21323 = vmatprep.subr.mxu1 %v22641_v4 }
0x1707   :  { %21315 = vmatpush3.xpose.msk.msra.mxu0 %vm1050_vm2, %v24375_v7  ;;  %21324 = vmatpush3.xpose.msk.msra.mxu1 %vm1050_vm2, %v24380_v17 }
0x1708   :  { %21325 = vmatprep.subr.mxu1 %v22641_v4  ;;  %21330 = vmatprep.subr.mxu0 %v22641_v4 }
0x170a   :  { %21317 = vmatmul.mubr.msk.f32.vlgmr.msra.gmra.mxu0 %vm1050_vm2, %v7907_v62 }
0x170b   :  { %21326 = vmatpush3.xpose.msk.msra.mxu1 %vm1050_vm2, %v24391_v26  ;;  %21331 = vmatpush3.xpose.msk.msra.mxu0 %vm1050_vm2, %v24177_v45 }
0x170c   :  { %21332 = vmatprep.mubr.msk.f32.mxu0 %vm22642_vm1, %v22641_v4  ;;  %21335 = vmatprep.subr.mxu1 %v22641_v4 }
0x170d   :  { %21340 = vmatprep.subr.mxu0 %v22641_v4 }
0x170e   :  { %21328 = vmatmul.mubr.msk.f32.vlgmr.msra.gmra.mxu1 %vm1050_vm2, %v7980_v1  ;;  %21333 = vmatmul.mubr.msk.f32.vlgmr.msra.gmra.mxu0 %vm1050_vm2, %v24163_v16 }
0x170f   :  { %21336 = vmatpush3.xpose.msk.msra.mxu1 %vm1050_vm2, %v24173_v40  ;;  %21341 = vmatpush3.xpose.msk.msra.mxu0 %vm1050_vm2, %v24187_v53 }
0x1710   :  { %21337 = vmatprep.mubr.msk.f32.mxu1 %vm22642_vm1, %v22641_v4  ;;  %21342 = vmatprep.mubr.msk.f32.mxu0 %vm22642_vm1, %v22641_v4 }
0x1711   :  { %21345 = vmatprep.subr.mxu1 %v22641_v4  ;;  %21350 = vmatprep.subr.mxu0 %v22641_v4 }
0x1712   :  { %21338 = vmatmul.mubr.msk.f32.vlgmr.msra.gmra.mxu1 %vm1050_vm2, %v24165_v50  ;;  %21343 = vmatmul.mubr.msk.f32.vlgmr.msra.gmra.mxu0 %vm1050_vm2, %v24175_v41 }
0x1713   :  { %21346 = vmatpush3.xpose.msk.msra.mxu1 %vm1050_vm2, %v24179_v35  ;;  %21351 = vmatpush3.msra.mxu0 %v24203_v43 }
0x1714   :  { %21347 = vmatprep.mubr.msk.f32.mxu1 %vm22642_vm1, %v22641_v4  ;;  %21355 = vmatprep.subr.mxu1 %v22641_v4 }
0x1715   :  { %21352 = vmatprep.mubr.msk.f32.mxu0 %vm22642_vm1, %v22641_v4  ;;  %21360 = vmatprep.subr.mxu0 %v22641_v4 }
0x1716   :  { %21348 = vmatmul.mubr.msk.f32.vlgmr.msra.gmra.mxu1 %vm1050_vm2, %v24167_v29 }
0x1717   :  { %21356 = vmatpush3.msra.mxu1 %v24190_v42  ;;  %21357 = vmatprep.mubr.msk.f32.mxu1 %vm22642_vm1, %v22641_v4 }
0x1718   :  { %21365 = vmatprep.subr.mxu1 %v22641_v4 }
0x17ba   :  { %v8065_v16 = vpop.f32.mrf.mxu0 }
0x17bb   :  { %v8324_v41 = vsel %vm57_vm0, %v8065_v16, 0.0 }
0x17bc   :  { %v21296_v50 = vpop.f32.mrf.mxu0 }
0x17be   :  { %v8150_v40 = vpop.f32.mrf.mxu1 }
0x17bf   :  { %v8325_v45 = vsel %vm57_vm0, %v8150_v40, 0.0 }
0x17c0   :  { %v8326_v35 = vadd.f32 %v8325_v45, %v8324_v41  ;;  %v21307_v53 = vpop.f32.mrf.mxu1 }
0x17ca   :  { %v8235_v43 = vpop.f32.mrf.mxu0 }
0x17cb   :  { %v8327_v27 = vsel %vm57_vm0, %v8235_v43, 0.0 }
0x17cc   :  { %v8328_v29 = vadd.f32 %v8327_v27, %v8326_v35  ;;  %v21318_v20 = vpop.f32.mrf.mxu0  ;;  %v24452_v27 = vadd.f32 %v24171_v30, %v23811_v21 }
0x17ce   :  { %v8320_v42 = vpop.f32.mrf.mxu1  ;;  %v8403_v31 = vpop.f32.mrf.mxu0 }
0x17cf   :  { %v8329_v44 = vsel %vm57_vm0, %v8320_v42, 0.0  ;;  %v8404_v34 = vadd.f32 %v8403_v31, %v24216_v51 }
0x17d0   :  { %v8330_v52 = vadd.f32 %v8329_v44, %v8328_v29  ;;  %v21329_v37 = vpop.f32.mrf.mxu1  ;;  %v21334_v6 = vpop.f32.mrf.mxu0 }
0x17d1   :  { %v8635_v13 = vsel %vm1050_vm2, %v8404_v34, -inf }
0x17d2   :  { %8636 = vmax.xlane.f32.xlu0 %v8635_v13  ;;  %v8479_v46 = vpop.f32.mrf.mxu1  ;;  %v8555_v11 = vpop.f32.mrf.mxu0  ;;  %v24447_v45 = vadd.f32 %v8330_v52, %v23911_v28 }
0x17d3   :  { %v8480_v24 = vadd.f32 %v8479_v46, %v24224_v32  ;;  %v8556_v25 = vadd.f32 %v8555_v11, %v24231_v18 }
0x17d4   :  { %v21339_v48 = vpop.f32.mrf.mxu1  ;;  %v21344_v49 = vpop.f32.mrf.mxu0  ;;  %v9273_v20 = vmul.f32 %v24447_v45, %v24447_v45 }
0x17d5   :  { %v8641_v8 = vsel %vm1050_vm2, %v8556_v25, -inf  ;;  %v8638_v14 = vsel %vm1050_vm2, %v8480_v24, -inf }
0x17d6   :  { %8642 = vmax.xlane.f32.xlu0 %v8641_v8  ;;  %8639 = vmax.xlane.f32.xlu1 %v8638_v14  ;;  %v8631_v51 = vpop.f32.mrf.mxu1  ;;  %v9275_v31 = vsel %vm57_vm0, %v9273_v20, 0.0  ;;  %v24528_v14 = vld [vmem:[%s26394_s6 + $0x6] ss:$0 sm:$0xff]  ;;  %v19062_v20 = vld [vmem:[%s26393_s7 + $0x628] sm:$0xff] }
0x17d7   :  { %v8632_v19 = vadd.f32 %v8631_v51, %v24236_v38 }
0x17d8   :  { %v21349_v57 = vpop.f32.mrf.mxu1 }
0x17d9   :  { %v8644_v58 = vsel %vm1050_vm2, %v8632_v19, -inf }
0x17da   :  { %8645 = vmax.xlane.f32.xlu1 %v8644_v58 }
0x185b   :  { %v8637_v47 = vpop.xlane.xlu0 %8636 }
0x185c   :  { %v8647_v0 = vsub.f32 %v8404_v34, %v8637_v47  ;;  %v6325_v34 = vmul.f32 %v24452_v27, %v24452_v27 }
0x185e   :  { %v8651_v32 = vmul.f32 1.442695, %v8647_v0  ;;  %v6327_v21 = vsel %vm57_vm0, %v6325_v34, 0.0 }
0x185f   :  { %v8643_v62 = vpop.xlane.xlu0 %8642  ;;  %v8640_v18 = vpop.xlane.xlu1 %8639 }
0x1860   :  { %22471 = vpow2.f32 %v8651_v32  ;;  %v8649_v1 = vsub.f32 %v8556_v25, %v8643_v62  ;;  %v8648_v2 = vsub.f32 %v8480_v24, %v8640_v18 }
0x1862   :  { %v8655_v3 = vmul.f32 1.442695, %v8649_v1  ;;  %v8653_v16 = vmul.f32 1.442695, %v8648_v2 }
0x1863   :  { %v8646_v50 = vpop.xlane.xlu1 %8645 }
0x1864   :  { %22473 = vpow2.f32 %v8655_v3  ;;  %v8650_v40 = vsub.f32 %v8632_v19, %v8646_v50  ;;  %v24552_v3 = vadd.f32 %v24169_v23, %v23903_v9  ;;  %v19060_v9 = vld [vmem:[%s26393_s7 + $0x618] sm:$0xff] }
0x1865   :  { %22475 = vpow2.f32 %v8653_v16  ;;  %v22628_v16 = vld [vmem:[%s26397_s1 + $0x8] sm:$0xff]  ;;  %v19064_v23 = vld [vmem:[%s26393_s7 + $0x638] sm:$0xff] }
0x1866   :  { %v8657_v41 = vmul.f32 1.442695, %v8650_v40 }
0x1868   :  { %22477 = vpow2.f32 %v8657_v41 }
0x186d   :  { %v22472_v38 = vpop.eup %22471 }
0x186e   :  { %v8659_v35 = vsel %vm1050_vm2, %v22472_v38, 0.0 }
0x186f   :  { %8660 = vadd.xlane.f32.xlu0 %v8659_v35 }
0x1871   :  { %v22474_v53 = vpop.eup %22473 }
0x1872   :  { %v22476_v43 = vpop.eup %22475  ;;  %v8665_v29 = vsel %vm1050_vm2, %v22474_v53, 0.0 }
0x1873   :  { %8666 = vadd.xlane.f32.xlu0 %v8665_v29  ;;  %v8662_v42 = vsel %vm1050_vm2, %v22476_v43, 0.0  ;;  %v19058_v29 = vld [vmem:[%s26393_s7 + $0x608] sm:$0xff] }
0x1874   :  { %8663 = vadd.xlane.f32.xlu1 %v8662_v42  ;;  %v19057_v42 = vld [vmem:[%s26393_s7 + $0x600] sm:$0xff] }
0x1875   :  { %v22478_v28 = vpop.eup %22477 }
0x1876   :  { %v8668_v44 = vsel %vm1050_vm2, %v22478_v28, 0.0 }
0x1877   :  { %9276 = vadd.xlane.f32.xlu0 %v9275_v31  ;;  %v19068_v31 = vld [vmem:[%s26393_s7 + $0x658] sm:$0xff] }
0x1878   :  { %8669 = vadd.xlane.f32.xlu1 %v8668_v44  ;;  %v19072_v44 = vld [vmem:[%s26393_s7 + $0x678] sm:$0xff] }
0x187b   :  { %6328 = vadd.xlane.f32.xlu0 %v6327_v21 }
0x18f8   :  { %v8661_v30 = vpop.xlane.xlu0 %8660 }
0x18f9   :  { %22479 = vrcp.f32 %v8661_v30 }
0x18fc   :  { %v8667_v52 = vpop.xlane.xlu0 %8666 }
0x18fd   :  { %22481 = vrcp.f32 %v8667_v52  ;;  %v8664_v37 = vpop.xlane.xlu1 %8663 }
0x18fe   :  { %22483 = vrcp.f32 %v8664_v37 }
0x1901   :  { %v8670_v6 = vpop.xlane.xlu1 %8669 }
0x1902   :  { %22485 = vrcp.f32 %v8670_v6 }
0x1906   :  { %v22480_v13 = vpop.eup %22479 }
0x1907   :  { %v8675_v46 = vmul.f32 %v22480_v13, %v22472_v38  ;;  %v6326_v38 = vmul.f32 %v24552_v3, %v24552_v3 }
0x1909   :  { %21353 = vmatmul.mubr.msk.f32.vlgmr.msra.gmra.mxu0 %vm1050_vm2, %v8675_v46  ;;  %v6330_v35 = vsel %vm57_vm0, %v6326_v38, 0.0  ;;  %v19100_v38 = vld [vmem:[%s26393_s7 + $0x758] sm:$0xff] }
0x190a   :  { %v22482_v11 = vpop.eup %22481  ;;  %21361 = vmatpush3.msra.mxu0 %v24209_v15  ;;  %21362 = vmatprep.mubr.msk.f32.mxu0 %vm22642_vm1, %v22641_v4 }
0x190b   :  { %v22484_v24 = vpop.eup %22483  ;;  %v8677_v25 = vmul.f32 %v22482_v11, %v22474_v53  ;;  %21370 = vmatprep.subr.mxu0 %v22641_v4  ;;  %v19059_v53 = vld [vmem:[%s26393_s7 + $0x610] sm:$0xff] }
0x190c   :  { %v8676_v48 = vmul.f32 %v22484_v24, %v22476_v43  ;;  %v19063_v43 = vld [vmem:[%s26393_s7 + $0x630] sm:$0xff] }
0x190d   :  { %21363 = vmatmul.mubr.msk.f32.vlgmr.msra.gmra.mxu0 %vm1050_vm2, %v8677_v25 }
0x190e   :  { %21358 = vmatmul.mubr.msk.f32.vlgmr.msra.gmra.mxu1 %vm1050_vm2, %v8676_v48  ;;  %21371 = vmatpush3.xpose.msk.msra.mxu0 %vm1050_vm2, %v24258_v33 }
0x190f   :  { %v22486_v49 = vpop.eup %22485  ;;  %21366 = vmatpush3.msra.mxu1 %v24219_v54  ;;  %21367 = vmatprep.mubr.msk.f32.mxu1 %vm22642_vm1, %v22641_v4  ;;  %v9277_v54 = vpop.xlane.xlu0 %9276 }
0x1910   :  { %v8678_v15 = vmul.f32 %v22486_v49, %v22478_v28  ;;  %21372 = vmatprep.subr.mxu0 %v22641_v4  ;;  %21381 = vmatprep.subr.mxu1 %v22641_v4  ;;  %v9281_v33 = vmul.f32 0.03125, %v9277_v54  ;;  %v19061_v28 = vld [vmem:[%s26393_s7 + $0x620] sm:$0xff]  ;;  %v19067_v49 = vld [vmem:[%s26393_s7 + $0x650] sm:$0xff] }
0x1911   :  { %21378 = vmatprep.mubr.msk.f32.mxu0 %vm22642_vm1, %v22641_v4 }
0x1912   :  { %21368 = vmatmul.mubr.msk.f32.vlgmr.msra.gmra.mxu1 %vm1050_vm2, %v8678_v15  ;;  %21373 = vmatpush3.xpose.msk.msra.mxu0 %vm1050_vm2, %v24274_v5  ;;  %v19071_v15 = vld [vmem:[%s26393_s7 + $0x670] sm:$0xff] }
0x1913   :  { %21382 = vmatpush3.xpose.msk.msra.mxu1 %vm1050_vm2, %v24264_v61  ;;  %21374 = vmatprep.subr.mxu0 %v22641_v4  ;;  %v9283_v61 = vadd.f32 1e-06, %v9281_v33  ;;  %v6329_v21 = vpop.xlane.xlu0 %6328  ;;  %v19066_v33 = vld [vmem:[%s26393_s7 + $0x648] sm:$0xff] }
0x1914   :  { %21383 = vmatprep.subr.mxu1 %v22641_v4  ;;  %21389 = vmatprep.mubr.msk.f32.mxu1 %vm22642_vm1, %v22641_v4  ;;  %v6333_v37 = vmul.f32 0.03125, %v6329_v21 }
0x1915   :  { %22487 = vrsqrt.f32 %v9283_v61  ;;  %v19070_v61 = vld [vmem:[%s26393_s7 + $0x668] sm:$0xff] }
0x1916   :  { %21375 = vmatpush3.xpose.msk.msra.mxu0 %vm1050_vm2, %v24294_v55  ;;  %v6335_v6 = vadd.f32 1e-06, %v6333_v37 }
0x1917   :  { %21384 = vmatpush3.xpose.msk.msra.mxu1 %vm1050_vm2, %v24282_v39  ;;  %21376 = vmatprep.subr.mxu0 %v22641_v4 }
0x1918   :  { %21385 = vmatprep.subr.mxu1 %v22641_v4 }
0x191a   :  { %21377 = vmatpush3.xpose.msk.msra.mxu0 %vm1050_vm2, %v24310_v10 }
0x191b   :  { %21386 = vmatpush3.xpose.msk.msra.mxu1 %vm1050_vm2, %v24302_v12  ;;  %21392 = vmatprep.subr.mxu0 %v22641_v4 }
0x191c   :  { %21387 = vmatprep.subr.mxu1 %v22641_v4 }
0x191f   :  { %21388 = vmatpush3.xpose.msk.msra.mxu1 %vm1050_vm2, %v24321_v56 }
0x1920   :  { %21403 = vmatprep.subr.mxu1 %v22641_v4 }
0x19c9   :  { %v8748_v5 = vpop.f32.mrf.mxu0 }
0x19ca   :  { %21379 = vmatmul.mubr.msk.f32.vlgmr.msra.gmra.mxu0 %vm1050_vm2, %v8748_v5  ;;  %v19065_v5 = vld [vmem:[%s26393_s7 + $0x640] sm:$0xff] }
0x19cb   :  { %21393 = vmatpush3.xpose.msk.msra.mxu0 %vm1050_vm2, %v24329_v22  ;;  %v21354_v39 = vpop.f32.mrf.mxu0  ;;  %21400 = vmatprep.mubr.msk.f32.mxu0 %vm22642_vm1, %v22641_v4  ;;  %v22488_v22 = vpop.eup %22487 }
0x19cc   :  { %21394 = vmatprep.subr.mxu0 %v22641_v4  ;;  %v19069_v39 = vld [vmem:[%s26393_s7 + $0x660] sm:$0xff] }
0x19cd   :  { %v8894_v55 = vpop.f32.mrf.mxu0 }
0x19ce   :  { %v8821_v12 = vpop.f32.mrf.mxu1 }
0x19cf   :  { %21390 = vmatmul.mubr.msk.f32.vlgmr.msra.gmra.mxu1 %vm1050_vm2, %v8821_v12  ;;  %21395 = vmatpush3.xpose.msk.msra.mxu0 %vm1050_vm2, %v24340_v63  ;;  %v21364_v10 = vpop.f32.mrf.mxu0  ;;  %v18902_v12 = vld [vmem:[%s26394_s6 + $0x4] ss:$0 sm:$0xff] }
0x19d0   :  { %21404 = vmatpush3.xpose.msk.msra.mxu1 %vm1050_vm2, %v24345_v36  ;;  %v21359_v56 = vpop.f32.mrf.mxu1  ;;  %21396 = vmatprep.subr.mxu0 %v22641_v4  ;;  %v9287_v36 = vmul.f32 %v22488_v22, %v24447_v45  ;;  %v19076_v10 = vld [vmem:[%s26393_s7 + $0x698] sm:$0xff] }
0x19d1   :  { %21405 = vmatprep.subr.mxu1 %v22641_v4  ;;  %21411 = vmatprep.mubr.msk.f32.mxu1 %vm22642_vm1, %v22641_v4  ;;  %v19080_v56 = vld [vmem:[%s26393_s7 + $0x6b8] sm:$0xff] }
0x19d2   :  { %v8967_v8 = vpop.f32.mrf.mxu1 }
0x19d3   :  { %21397 = vmatpush3.xpose.msk.msra.mxu0 %vm1050_vm2, %v24357_v59  ;;  %v24536_v59 = vmul.f32 %v24528_v14, %v9287_v36  ;;  %v19074_v36 = vld [vmem:[%s26393_s7 + $0x688] sm:$0xff] }
0x19d4   :  { %21406 = vmatpush3.xpose.msk.msra.mxu1 %vm1050_vm2, %v24362_v60  ;;  %v21369_v63 = vpop.f32.mrf.mxu1  ;;  %21398 = vmatprep.subr.mxu0 %v22641_v4 }
0x19d5   :  { %21407 = vmatprep.subr.mxu1 %v22641_v4  ;;  %v19079_v63 = vld [vmem:[%s26393_s7 + $0x6b0] sm:$0xff] }
0x19d7   :  { %21399 = vmatpush3.xpose.msk.msra.mxu0 %vm1050_vm2, %v24375_v7 }
0x19d8   :  { %21408 = vmatpush3.xpose.msk.msra.mxu1 %vm1050_vm2, %v24380_v17  ;;  %21414 = vmatprep.subr.mxu0 %v19060_v9 }
0x19d9   :  { %21409 = vmatprep.subr.mxu1 %v22641_v4 }
0x19da   :  { %21401 = vmatmul.mubr.msk.f32.vlgmr.msra.gmra.mxu0 %vm1050_vm2, %v8894_v55 }
0x19db   :  { %21422 = vmatprep.mubr.msk.f32.mxu0 %vm57_vm0, %v24536_v59  ;;  %21415 = vmatpush3.msra.mxu0 %v19060_v9  ;;  %v19099_v9 = vld [vmem:[%s26393_s7 + $0x750] sm:$0xff] }
0x19dc   :  { %21410 = vmatpush3.xpose.msk.msra.mxu1 %vm1050_vm2, %v24391_v26  ;;  %21416 = vmatprep.subr.mxu0 %v19059_v53 }
0x19dd   :  { %21425 = vmatprep.subr.mxu1 %v19064_v23  ;;  %21417 = vmatpush3.msra.mxu0 %v19059_v53  ;;  %v19098_v53 = vld [vmem:[%s26393_s7 + $0x748] sm:$0xff] }
0x19de   :  { %21418 = vmatprep.subr.mxu0 %v19058_v29 }
0x19df   :  { %21412 = vmatmul.mubr.msk.f32.vlgmr.msra.gmra.mxu1 %vm1050_vm2, %v8967_v8  ;;  %21419 = vmatpush3.msra.mxu0 %v19058_v29  ;;  %v19075_v8 = vld [vmem:[%s26393_s7 + $0x690] sm:$0xff]  ;;  %v19097_v29 = vld [vmem:[%s26393_s7 + $0x740] sm:$0xff] }
0x19e0   :  { %21433 = vmatprep.mubr.msk.f32.mxu1 %vm57_vm0, %v24536_v59  ;;  %21426 = vmatpush3.msra.mxu1 %v19064_v23  ;;  %v19103_v23 = vld [vmem:[%s26393_s7 + $0x770] sm:$0xff] }
0x19e1   :  { %21427 = vmatprep.subr.mxu1 %v19063_v43  ;;  %21420 = vmatprep.subr.mxu0 %v19057_v42 }
0x19e2   :  { %21428 = vmatpush3.msra.mxu1 %v19063_v43  ;;  %21421 = vmatpush3.msra.mxu0 %v19057_v42  ;;  %v19102_v43 = vld [vmem:[%s26393_s7 + $0x768] sm:$0xff] }
0x19e3   :  { %21429 = vmatprep.subr.mxu1 %v19062_v20  ;;  %21436 = vmatprep.subr.mxu0 %v19068_v31 }
0x19e4   :  { %21430 = vmatpush3.msra.mxu1 %v19062_v20  ;;  %v19101_v20 = vld [vmem:[%s26393_s7 + $0x760] sm:$0xff] }
0x19e5   :  { %21431 = vmatprep.subr.mxu1 %v19061_v28 }
0x19e6   :  { %21432 = vmatpush3.msra.mxu1 %v19061_v28 }
0x19e7   :  { %21447 = vmatprep.subr.mxu1 %v19072_v44 }
0x1a8a   :  { %v9040_v60 = vpop.f32.mrf.mxu0 }
0x1a8b   :  { %v9263_v58 = vsel %vm57_vm0, %v9040_v60, 0.0  ;;  %v19073_v60 = vld [vmem:[%s26393_s7 + $0x680] sm:$0xff] }
0x1a8c   :  { %v21380_v7 = vpop.f32.mrf.mxu0 }
0x1a8d   :  { %v19077_v7 = vld [vmem:[%s26393_s7 + $0x6a0] sm:$0xff] }
0x1a8f   :  { %v9113_v17 = vpop.f32.mrf.mxu1 }
0x1a90   :  { %v9264_v19 = vsel %vm57_vm0, %v9113_v17, 0.0 }
0x1a91   :  { %v21391_v51 = vpop.f32.mrf.mxu1  ;;  %v9265_v32 = vadd.f32 %v9264_v19, %v9263_v58  ;;  %v19088_v19 = vld [vmem:[%s26393_s7 + $0x6f8] sm:$0xff]  ;;  %v19087_v58 = vld [vmem:[%s26393_s7 + $0x6f0] sm:$0xff] }
0x1a92   :  { %v19084_v51 = vld [vmem:[%s26393_s7 + $0x6d8] sm:$0xff] }
0x1a9a   :  { %v9186_v57 = vpop.f32.mrf.mxu0 }
0x1a9b   :  { %v9266_v47 = vsel %vm57_vm0, %v9186_v57, 0.0  ;;  %v19083_v57 = vld [vmem:[%s26393_s7 + $0x6d0] sm:$0xff] }
0x1a9c   :  { %v21402_v0 = vpop.f32.mrf.mxu0  ;;  %v9267_v62 = vadd.f32 %v9266_v47, %v9265_v32  ;;  %v19082_v47 = vld [vmem:[%s26393_s7 + $0x6c8] sm:$0xff]  ;;  %v19081_v32 = vld [vmem:[%s26393_s7 + $0x6c0] sm:$0xff] }
0x1a9d   :  { %v19086_v0 = vld [vmem:[%s26393_s7 + $0x6e8] sm:$0xff] }
0x1a9f   :  { %v9259_v26 = vpop.f32.mrf.mxu1 }
0x1aa0   :  { %v9268_v18 = vsel %vm57_vm0, %v9259_v26, 0.0  ;;  %v19092_v26 = vld [vmem:[%s26393_s7 + $0x718] sm:$0xff] }
0x1aa1   :  { %v9269_v1 = vadd.f32 %v9268_v18, %v9267_v62  ;;  %v21413_v2 = vpop.f32.mrf.mxu1  ;;  %v19085_v62 = vld [vmem:[%s26393_s7 + $0x6e0] sm:$0xff]  ;;  %v19096_v18 = vld [vmem:[%s26393_s7 + $0x738] sm:$0xff] }
0x1aa2   :  { %v19095_v2 = vld [vmem:[%s26393_s7 + $0x730] sm:$0xff] }
0x1aa3   :  { %v24557_v50 = vadd.f32 %v22628_v16, %v9269_v1  ;;  %v19091_v1 = vld [vmem:[%s26393_s7 + $0x710] sm:$0xff]  ;;  %v19094_v16 = vld [vmem:[%s26393_s7 + $0x728] sm:$0xff] }
0x1aa5   :  { %v9274_v40 = vmul.f32 %v24557_v50, %v24557_v50 }
0x1aa7   :  { %v9278_v41 = vsel %vm57_vm0, %v9274_v40, 0.0  ;;  %v19089_v40 = vld [vmem:[%s26393_s7 + $0x700] sm:$0xff] }
0x1aa8   :  { %9279 = vadd.xlane.f32.xlu1 %v9278_v41  ;;  %v19093_v41 = vld [vmem:[%s26393_s7 + $0x720] sm:$0xff] }
0x1aac   :  { %6331 = vadd.xlane.f32.xlu1 %v6330_v35  ;;  %v19104_v35 = vld [vmem:[%s26393_s7 + $0x778] sm:$0xff] }
0x1b31   :  { %v9280_v34 = vpop.xlane.xlu1 %9279 }
0x1b32   :  { %v9282_v30 = vmul.f32 0.03125, %v9280_v34 }
0x1b34   :  { %v9284_v52 = vadd.f32 1e-06, %v9282_v30 }
0x1b35   :  { %v6332_v13 = vpop.xlane.xlu1 %6331 }
0x1b36   :  { %22489 = vrsqrt.f32 %v9284_v52  ;;  %v6334_v46 = vmul.f32 0.03125, %v6332_v13 }
0x1b37   :  { %22491 = vrsqrt.f32 %v6335_v6 }
0x1b38   :  { %v6336_v11 = vadd.f32 1e-06, %v6334_v46 }
0x1b3a   :  { %22493 = vrsqrt.f32 %v6336_v11 }
0x1b43   :  { %v22490_v24 = vpop.eup %22489 }
0x1b44   :  { %v9288_v25 = vmul.f32 %v22490_v24, %v24557_v50  ;;  %v22492_v54 = vpop.eup %22491 }
0x1b45   :  { %v6339_v55 = vmul.f32 %v22492_v54, %v24452_v27 }
0x1b46   :  { %v9294_v48 = vmul.f32 %v24528_v14, %v9288_v25  ;;  %v19078_v14 = vld [vmem:[%s26393_s7 + $0x6a8] sm:$0xff] }
0x1b47   :  { %v24631_v27 = vmul.f32 %v18902_v12, %v6339_v55  ;;  %v22494_v22 = vpop.eup %22493 }
0x1b48   :  { %21423 = vmatmul.mubr.msk.f32.vlgmr.msra.gmra.mxu0 %vm57_vm0, %v9294_v48  ;;  %21434 = vmatmul.mubr.msk.f32.vlgmr.msra.gmra.mxu1 %vm57_vm0, %v9294_v48 }
0x1b49   :  { %21437 = vmatpush3.msra.mxu0 %v19068_v31  ;;  %21448 = vmatpush3.msra.mxu1 %v19072_v44 }
0x1b4a   :  { %21438 = vmatprep.subr.mxu0 %v19067_v49  ;;  %21444 = vmatprep.mubr.msk.f32.mxu0 %vm57_vm0, %v24536_v59 }
0x1b4b   :  { %21449 = vmatprep.subr.mxu1 %v19071_v15  ;;  %21455 = vmatprep.mubr.msk.f32.mxu1 %vm57_vm0, %v24536_v59  ;;  %v6340_v59 = vmul.f32 %v22494_v22, %v24552_v3  ;;  %v19090_v3 = vld [vmem:[%s26393_s7 + $0x708] sm:$0xff] }
0x1b4c   :  { %21439 = vmatpush3.msra.mxu0 %v19067_v49  ;;  %21450 = vmatpush3.msra.mxu1 %v19071_v15 }
0x1b4d   :  { %21440 = vmatprep.subr.mxu0 %v19066_v33  ;;  %21451 = vmatprep.subr.mxu1 %v19070_v61  ;;  %v24658_v17 = vmul.f32 %v18902_v12, %v6340_v59  ;;  %v40_v12 = vld [vmem:[%s26399_s3] sm:$0xff] }
0x1b4e   :  { %21441 = vmatpush3.msra.mxu0 %v19066_v33  ;;  %21452 = vmatpush3.msra.mxu1 %v19070_v61 }
0x1b4f   :  { %21442 = vmatprep.subr.mxu0 %v19065_v5  ;;  %21453 = vmatprep.subr.mxu1 %v19069_v39 }
0x1b50   :  { %21443 = vmatpush3.msra.mxu0 %v19065_v5  ;;  %21454 = vmatpush3.msra.mxu1 %v19069_v39 }
0x1b51   :  { %21445 = vmatmul.mubr.msk.f32.vlgmr.msra.gmra.mxu0 %vm57_vm0, %v9294_v48  ;;  %21456 = vmatmul.mubr.msk.f32.vlgmr.msra.gmra.mxu1 %vm57_vm0, %v9294_v48 }
0x1b52   :  { %21458 = vmatprep.subr.mxu0 %v19076_v10  ;;  %21469 = vmatprep.subr.mxu1 %v19080_v56 }
0x1b53   :  { %21459 = vmatpush3.msra.mxu0 %v19076_v10  ;;  %21466 = vmatprep.mubr.msk.f32.mxu0 %vm57_vm0, %v24631_v27  ;;  %v41_v10 = vld [vmem:[%s26399_s3 + $0x8] sm:$0xff] }
0x1b54   :  { %21470 = vmatpush3.msra.mxu1 %v19080_v56  ;;  %21477 = vmatprep.mubr.msk.f32.mxu1 %vm57_vm0, %v24631_v27 }
0x1b55   :  { %21460 = vmatprep.subr.mxu0 %v19075_v8  ;;  %21471 = vmatprep.subr.mxu1 %v19079_v63 }
0x1b56   :  { %21461 = vmatpush3.msra.mxu0 %v19075_v8  ;;  %21472 = vmatpush3.msra.mxu1 %v19079_v63 }
0x1b57   :  { %21462 = vmatprep.subr.mxu0 %v19074_v36  ;;  %21473 = vmatprep.subr.mxu1 %v19078_v14 }
0x1b58   :  { %21463 = vmatpush3.msra.mxu0 %v19074_v36  ;;  %21474 = vmatpush3.msra.mxu1 %v19078_v14 }
0x1b59   :  { %21464 = vmatprep.subr.mxu0 %v19073_v60  ;;  %21475 = vmatprep.subr.mxu1 %v19077_v7 }
0x1b5a   :  { %21465 = vmatpush3.msra.mxu0 %v19073_v60  ;;  %21476 = vmatpush3.msra.mxu1 %v19077_v7  ;;  %v42_v7 = vld [vmem:[%s26399_s3 + $0x10] sm:$0xff] }
0x1b5b   :  { %21467 = vmatmul.mubr.msk.f32.vlgmr.msra.gmra.mxu0 %vm57_vm0, %v24658_v17  ;;  %21478 = vmatmul.mubr.msk.f32.vlgmr.msra.gmra.mxu1 %vm57_vm0, %v24658_v17 }
0x1b5c   :  { %21480 = vmatprep.subr.mxu0 %v19084_v51  ;;  %21491 = vmatprep.subr.mxu1 %v19088_v19 }
0x1b5d   :  { %21481 = vmatpush3.msra.mxu0 %v19084_v51  ;;  %21488 = vmatprep.mubr.msk.f32.mxu0 %vm57_vm0, %v24631_v27  ;;  %v43_v51 = vld [vmem:[%s26399_s3 + $0x18] sm:$0xff] }
0x1b5e   :  { %21492 = vmatpush3.msra.mxu1 %v19088_v19  ;;  %21499 = vmatprep.mubr.msk.f32.mxu1 %vm57_vm0, %v24631_v27 }
0x1b5f   :  { %21482 = vmatprep.subr.mxu0 %v19083_v57  ;;  %21493 = vmatprep.subr.mxu1 %v19087_v58 }
0x1b60   :  { %21483 = vmatpush3.msra.mxu0 %v19083_v57  ;;  %21494 = vmatpush3.msra.mxu1 %v19087_v58 }
0x1b61   :  { %21484 = vmatprep.subr.mxu0 %v19082_v47  ;;  %21495 = vmatprep.subr.mxu1 %v19086_v0 }
0x1b62   :  { %21485 = vmatpush3.msra.mxu0 %v19082_v47  ;;  %21496 = vmatpush3.msra.mxu1 %v19086_v0 }
0x1b63   :  { %21486 = vmatprep.subr.mxu0 %v19081_v32  ;;  %21497 = vmatprep.subr.mxu1 %v19085_v62 }
0x1b64   :  { %21487 = vmatpush3.msra.mxu0 %v19081_v32  ;;  %21498 = vmatpush3.msra.mxu1 %v19085_v62 }
0x1b65   :  { %21489 = vmatmul.mubr.msk.f32.vlgmr.msra.gmra.mxu0 %vm57_vm0, %v24658_v17  ;;  %21500 = vmatmul.mubr.msk.f32.vlgmr.msra.gmra.mxu1 %vm57_vm0, %v24658_v17 }
0x1b66   :  { %21502 = vmatprep.subr.mxu0 %v19092_v26  ;;  %21513 = vmatprep.subr.mxu1 %v19096_v18 }
0x1b67   :  { %21503 = vmatpush3.msra.mxu0 %v19092_v26  ;;  %21510 = vmatprep.mubr.msk.f32.mxu0 %vm57_vm0, %v24631_v27 }
0x1b68   :  { %21514 = vmatpush3.msra.mxu1 %v19096_v18  ;;  %21521 = vmatprep.mubr.msk.f32.mxu1 %vm57_vm0, %v24631_v27 }
0x1b69   :  { %21504 = vmatprep.subr.mxu0 %v19091_v1  ;;  %21515 = vmatprep.subr.mxu1 %v19095_v2 }
0x1b6a   :  { %21505 = vmatpush3.msra.mxu0 %v19091_v1  ;;  %21516 = vmatpush3.msra.mxu1 %v19095_v2 }
0x1b6b   :  { %21506 = vmatprep.subr.mxu0 %v19090_v3  ;;  %21517 = vmatprep.subr.mxu1 %v19094_v16 }
0x1b6c   :  { %21507 = vmatpush3.msra.mxu0 %v19090_v3  ;;  %21518 = vmatpush3.msra.mxu1 %v19094_v16 }
0x1b6d   :  { %21508 = vmatprep.subr.mxu0 %v19089_v40  ;;  %21519 = vmatprep.subr.mxu1 %v19093_v41 }
0x1b6e   :  { %21509 = vmatpush3.msra.mxu0 %v19089_v40  ;;  %21520 = vmatpush3.msra.mxu1 %v19093_v41 }
0x1b6f   :  { %21511 = vmatmul.mubr.msk.f32.vlgmr.msra.gmra.mxu0 %vm57_vm0, %v24658_v17  ;;  %21522 = vmatmul.mubr.msk.f32.vlgmr.msra.gmra.mxu1 %vm57_vm0, %v24658_v17 }
0x1b70   :  { %21524 = vmatprep.subr.mxu0 %v19100_v38  ;;  %21535 = vmatprep.subr.mxu1 %v19104_v35 }
0x1b71   :  { %21525 = vmatpush3.msra.mxu0 %v19100_v38  ;;  %21532 = vmatprep.mubr.msk.f32.mxu0 %vm57_vm0, %v24631_v27 }
0x1b72   :  { %21536 = vmatpush3.msra.mxu1 %v19104_v35  ;;  %21543 = vmatprep.mubr.msk.f32.mxu1 %vm57_vm0, %v24631_v27 }
0x1b73   :  { %21526 = vmatprep.subr.mxu0 %v19099_v9  ;;  %21537 = vmatprep.subr.mxu1 %v19103_v23 }
0x1b74   :  { %21527 = vmatpush3.msra.mxu0 %v19099_v9  ;;  %21538 = vmatpush3.msra.mxu1 %v19103_v23 }
0x1b75   :  { %21528 = vmatprep.subr.mxu0 %v19098_v53  ;;  %21539 = vmatprep.subr.mxu1 %v19102_v43 }
0x1b76   :  { %21529 = vmatpush3.msra.mxu0 %v19098_v53  ;;  %21540 = vmatpush3.msra.mxu1 %v19102_v43 }
0x1b77   :  { %21530 = vmatprep.subr.mxu0 %v19097_v29  ;;  %21541 = vmatprep.subr.mxu1 %v19101_v20 }
0x1b78   :  { %21531 = vmatpush3.msra.mxu0 %v19097_v29  ;;  %21542 = vmatpush3.msra.mxu1 %v19101_v20 }
0x1b79   :  { %21533 = vmatmul.mubr.msk.f32.vlgmr.msra.gmra.mxu0 %vm57_vm0, %v24658_v17  ;;  %21544 = vmatmul.mubr.msk.f32.vlgmr.msra.gmra.mxu1 %vm57_vm0, %v24658_v17 }
0x1b7a   :  { %21546 = vmatprep.subr.mxu0 %v22641_v4  ;;  %21551 = vmatprep.subr.mxu1 %v22641_v4 }
0x1b7b   :  { %21548 = vmatprep.mubr.msk.f32.mxu0 %vm22642_vm1, %v22641_v4  ;;  %21553 = vmatprep.mubr.msk.f32.mxu1 %vm22642_vm1, %v22641_v4 }
0x1c08   :  { %v24766_v42 = vpop.f32.mrf.mxu0  ;;  %v24768_v28 = vpop.f32.mrf.mxu1 }
0x1c0a   :  { %v9434_v31 = vpop.f32.mrf.mxu0  ;;  %v9509_v44 = vpop.f32.mrf.mxu1 }
0x1c11   :  { %v24770_v34 = vpop.f32.mrf.mxu0  ;;  %v24772_v21 = vpop.f32.mrf.mxu1 }
0x1c13   :  { %v9584_v30 = vpop.f32.mrf.mxu0  ;;  %v9659_v52 = vpop.f32.mrf.mxu1 }
0x1c1b   :  { %v24774_v37 = vpop.f32.mrf.mxu0  ;;  %v24776_v6 = vpop.f32.mrf.mxu1 }
0x1c1d   :  { %v9740_v13 = vpop.f32.mrf.mxu0  ;;  %v9815_v46 = vpop.f32.mrf.mxu1 }
0x1c1e   :  { %21547 = vmatpush3.xpose.msk.msra.mxu0 %vm1050_vm2, %v9740_v13  ;;  %21552 = vmatpush3.xpose.msk.msra.mxu1 %vm1050_vm2, %v9815_v46 }
0x1c1f   :  { %21556 = vmatprep.subr.mxu0 %v22641_v4  ;;  %21561 = vmatprep.subr.mxu1 %v22641_v4 }
0x1c21   :  { %21549 = vmatmul.mubr.msk.f32.vlgmr.msra.gmra.mxu0 %vm1050_vm2, %v9434_v31  ;;  %21554 = vmatmul.mubr.msk.f32.vlgmr.msra.gmra.mxu1 %vm1050_vm2, %v9509_v44 }
0x1c22   :  { %21558 = vmatprep.mubr.msk.f32.mxu0 %vm22642_vm1, %v22641_v4  ;;  %21563 = vmatprep.mubr.msk.f32.mxu1 %vm22642_vm1, %v22641_v4 }
0x1c25   :  { %v24788_v11 = vpop.f32.mrf.mxu0  ;;  %v24790_v24 = vpop.f32.mrf.mxu1 }
0x1c27   :  { %v9890_v25 = vpop.f32.mrf.mxu0  ;;  %v9965_v48 = vpop.f32.mrf.mxu1 }
0x1c28   :  { %21557 = vmatpush3.xpose.msk.msra.mxu0 %vm1050_vm2, %v9890_v25  ;;  %21562 = vmatpush3.xpose.msk.msra.mxu1 %vm1050_vm2, %v9965_v48 }
0x1c29   :  { %21566 = vmatprep.subr.mxu0 %v22641_v4  ;;  %21571 = vmatprep.subr.mxu1 %v22641_v4 }
0x1c2b   :  { %21559 = vmatmul.mubr.msk.f32.vlgmr.msra.gmra.mxu0 %vm1050_vm2, %v9584_v30  ;;  %21564 = vmatmul.mubr.msk.f32.vlgmr.msra.gmra.mxu1 %vm1050_vm2, %v9659_v52 }
0x1c2c   :  { %21568 = vmatprep.mubr.msk.f32.mxu0 %vm22642_vm1, %v22641_v4  ;;  %21573 = vmatprep.mubr.msk.f32.mxu1 %vm22642_vm1, %v22641_v4 }
0x1c2f   :  { %v24802_v49 = vpop.f32.mrf.mxu0  ;;  %v24804_v15 = vpop.f32.mrf.mxu1 }
0x1c31   :  { %v10040_v54 = vpop.f32.mrf.mxu0  ;;  %v10115_v33 = vpop.f32.mrf.mxu1 }
0x1c32   :  { %21567 = vmatpush3.msra.mxu0 %v10040_v54  ;;  %21572 = vmatpush3.msra.mxu1 %v10115_v33 }
0x1c33   :  { %21576 = vmatprep.subr.mxu0 %v22641_v4  ;;  %21581 = vmatprep.subr.mxu1 %v22641_v4 }
0x1c39   :  { %v24808_v61 = vpop.f32.mrf.mxu0  ;;  %v24810_v5 = vpop.f32.mrf.mxu1 }
0x1c3b   :  { %v24812_v39 = vpop.f32.mrf.mxu0  ;;  %v24814_v55 = vpop.f32.mrf.mxu1 }
0x1ce1   :  { %v10346_v56 = vpop.f32.mrf.mxu0  ;;  %v10422_v22 = vpop.f32.mrf.mxu1 }
0x1ce2   :  { %v10347_v8 = vadd.f32 %v10346_v56, %v40_v12  ;;  %v10423_v63 = vadd.f32 %v10422_v22, %v41_v10 }
0x1ce3   :  { %v21550_v36 = vpop.f32.mrf.mxu0  ;;  %v21555_v14 = vpop.f32.mrf.mxu1 }
0x1ce4   :  { %v10581_v59 = vsel %vm1050_vm2, %v10423_v63, -inf  ;;  %v10578_v60 = vsel %vm1050_vm2, %v10347_v8, -inf  ;;  %v24849_v36 = vld [vmem:[%s26393_s7 + $0x7b8] sm:$0xff]  ;;  %v24866_v14 = vld [vmem:[%s26393_s7 + $0x7b0] sm:$0xff] }
0x1ce5   :  { %10582 = vmax.xlane.f32.xlu1 %v10581_v59  ;;  %10579 = vmax.xlane.f32.xlu0 %v10578_v60  ;;  %v24872_v59 = vld [vmem:[%s26393_s7 + $0x790] sm:$0xff]  ;;  %v24886_v60 = vld [vmem:[%s26393_s7 + $0x7a8] sm:$0xff] }
0x1ceb   :  { %v10498_v19 = vpop.f32.mrf.mxu0  ;;  %v10574_v57 = vpop.f32.mrf.mxu1 }
0x1cec   :  { %v10499_v58 = vadd.f32 %v10498_v19, %v42_v7  ;;  %v10575_v47 = vadd.f32 %v10574_v57, %v43_v51  ;;  %v24892_v7 = vld [vmem:[%s26393_s7 + $0x788] sm:$0xff]  ;;  %v24902_v51 = vld [vmem:[%s26393_s7 + $0x7a0] sm:$0xff]  ;;  %v24919_v57 = vld [vmem:[%s26393_s7 + $0x7f8] sm:$0xff] }
0x1ced   :  { %v21560_v0 = vpop.f32.mrf.mxu0  ;;  %v21565_v32 = vpop.f32.mrf.mxu1  ;;  %v24908_v19 = vld [vmem:[%s26393_s7 + $0x780] sm:$0xff] }
0x1cee   :  { %v10587_v62 = vsel %vm1050_vm2, %v10575_v47, -inf  ;;  %v10584_v26 = vsel %vm1050_vm2, %v10499_v58, -inf }
0x1cef   :  { %10588 = vmax.xlane.f32.xlu1 %v10587_v62  ;;  %10585 = vmax.xlane.f32.xlu0 %v10584_v26  ;;  %v24936_v26 = vld [vmem:[%s26393_s7 + $0x7f0] sm:$0xff] }
0x1d6e   :  { %v10583_v18 = vpop.xlane.xlu1 %10582  ;;  %v10580_v1 = vpop.xlane.xlu0 %10579 }
0x1d6f   :  { %v10591_v2 = vsub.f32 %v10423_v63, %v10583_v18  ;;  %v10590_v3 = vsub.f32 %v10347_v8, %v10580_v1  ;;  %v24942_v18 = vld [vmem:[%s26393_s7 + $0x7d0] sm:$0xff]  ;;  %v24956_v1 = vld [vmem:[%s26393_s7 + $0x7e8] sm:$0xff] }
0x1d71   :  { %v10596_v16 = vmul.f32 1.442695, %v10591_v2  ;;  %v10594_v40 = vmul.f32 1.442695, %v10590_v3  ;;  %v24962_v2 = vld [vmem:[%s26393_s7 + $0x7c8] sm:$0xff] }
0x1d73   :  { %22495 = vpow2.f32 %v10596_v16 }
0x1d74   :  { %22497 = vpow2.f32 %v10594_v40  ;;  %v24972_v40 = vld [vmem:[%s26393_s7 + $0x7e0] sm:$0xff] }
0x1d78   :  { %v10589_v41 = vpop.xlane.xlu1 %10588  ;;  %v10586_v38 = vpop.xlane.xlu0 %10585 }
0x1d79   :  { %v10593_v35 = vsub.f32 %v10575_v47, %v10589_v41  ;;  %v10592_v9 = vsub.f32 %v10499_v58, %v10586_v38  ;;  %v24924_v47 = vld [vmem:[%s26393_s7 + $0x7d8] sm:$0xff]  ;;  %v24978_v38 = vld [vmem:[%s26393_s7 + $0x7c0] sm:$0xff] }
0x1d7b   :  { %v10600_v23 = vmul.f32 1.442695, %v10593_v35  ;;  %v10598_v53 = vmul.f32 1.442695, %v10592_v9 }
0x1d7d   :  { %22499 = vpow2.f32 %v10600_v23  ;;  %v45_v23 = vld [vmem:[%s26399_s3 + $0x28] sm:$0xff] }
0x1d7e   :  { %22501 = vpow2.f32 %v10598_v53 }
0x1d80   :  { %v22496_v43 = vpop.eup %22495 }
0x1d81   :  { %v22498_v29 = vpop.eup %22497  ;;  %v10605_v20 = vsel %vm1050_vm2, %v22496_v43, 0.0 }
0x1d82   :  { %10606 = vadd.xlane.f32.xlu1 %v10605_v20  ;;  %v10602_v31 = vsel %vm1050_vm2, %v22498_v29, 0.0 }
0x1d83   :  { %10603 = vadd.xlane.f32.xlu0 %v10602_v31 }
0x1d8a   :  { %v22500_v44 = vpop.eup %22499 }
0x1d8b   :  { %v22502_v30 = vpop.eup %22501  ;;  %v10611_v52 = vsel %vm1050_vm2, %v22500_v44, 0.0 }
0x1d8c   :  { %10612 = vadd.xlane.f32.xlu1 %v10611_v52  ;;  %v10608_v13 = vsel %vm1050_vm2, %v22502_v30, 0.0 }
0x1d8d   :  { %10609 = vadd.xlane.f32.xlu0 %v10608_v13 }
0x1e0b   :  { %v10607_v46 = vpop.xlane.xlu1 %10606 }
0x1e0c   :  { %22503 = vrcp.f32 %v10607_v46  ;;  %v10604_v25 = vpop.xlane.xlu0 %10603 }
0x1e0d   :  { %22505 = vrcp.f32 %v10604_v25  ;;  %v47_v25 = vld [vmem:[%s26399_s3 + $0x38] sm:$0xff] }
0x1e15   :  { %v10613_v48 = vpop.xlane.xlu1 %10612 }
0x1e16   :  { %22507 = vrcp.f32 %v10613_v48  ;;  %v10610_v54 = vpop.xlane.xlu0 %10609 }
0x1e17   :  { %22509 = vrcp.f32 %v10610_v54 }
0x1e19   :  { %v22504_v33 = vpop.eup %22503 }
0x1e1a   :  { %v22506_v12 = vpop.eup %22505  ;;  %v10619_v10 = vmul.f32 %v22504_v33, %v22496_v43  ;;  %v46_v33 = vld [vmem:[%s26399_s3 + $0x30] sm:$0xff] }
0x1e1b   :  { %v10618_v56 = vmul.f32 %v22506_v12, %v22498_v29  ;;  %v44_v29 = vld [vmem:[%s26399_s3 + $0x20] sm:$0xff] }
0x1e1c   :  { %21574 = vmatmul.mubr.msk.f32.vlgmr.msra.gmra.mxu1 %vm1050_vm2, %v10619_v10 }
0x1e1d   :  { %21569 = vmatmul.mubr.msk.f32.vlgmr.msra.gmra.mxu0 %vm1050_vm2, %v10618_v56  ;;  %21582 = vmatpush3.msra.mxu1 %v24814_v55 }
0x1e1e   :  { %21577 = vmatpush3.msra.mxu0 %v24812_v39  ;;  %21578 = vmatprep.mubr.msk.f32.mxu0 %vm22642_vm1, %v22641_v4  ;;  %v24854_v39 = vld [vmem:[%s26393_s7 + $0x798] sm:$0xff] }
0x1e1f   :  { %21583 = vmatprep.mubr.msk.f32.mxu1 %vm22642_vm1, %v22641_v4  ;;  %21586 = vmatprep.subr.mxu0 %v22641_v4 }
0x1e20   :  { %21597 = vmatprep.subr.mxu1 %v22641_v4 }
0x1e23   :  { %v22508_v22 = vpop.eup %22507 }
0x1e24   :  { %v22510_v8 = vpop.eup %22509  ;;  %v10621_v63 = vmul.f32 %v22508_v22, %v22500_v44 }
0x1e25   :  { %v10620_v55 = vmul.f32 %v22510_v8, %v22502_v30 }
0x1e26   :  { %21584 = vmatmul.mubr.msk.f32.vlgmr.msra.gmra.mxu1 %vm1050_vm2, %v10621_v63 }
0x1e27   :  { %21579 = vmatmul.mubr.msk.f32.vlgmr.msra.gmra.mxu0 %vm1050_vm2, %v10620_v55  ;;  %21598 = vmatpush3.xpose.msk.msra.mxu1 %vm1050_vm2, %v24849_v36 }
0x1e28   :  { %21587 = vmatpush3.xpose.msk.msra.mxu0 %vm1050_vm2, %v24854_v39  ;;  %21599 = vmatprep.subr.mxu1 %v22641_v4 }
0x1e29   :  { %21588 = vmatprep.subr.mxu0 %v22641_v4  ;;  %21594 = vmatprep.mubr.msk.f32.mxu0 %vm22642_vm1, %v22641_v4 }
0x1e2a   :  { %21605 = vmatprep.mubr.msk.f32.mxu1 %vm22642_vm1, %v22641_v4 }
0x1e2b   :  { %21600 = vmatpush3.xpose.msk.msra.mxu1 %vm1050_vm2, %v24866_v14 }
0x1e2c   :  { %21589 = vmatpush3.xpose.msk.msra.mxu0 %vm1050_vm2, %v24872_v59  ;;  %21601 = vmatprep.subr.mxu1 %v22641_v4 }
0x1e2d   :  { %21590 = vmatprep.subr.mxu0 %v22641_v4 }
0x1e2f   :  { %21602 = vmatpush3.xpose.msk.msra.mxu1 %vm1050_vm2, %v24886_v60 }
0x1e30   :  { %21591 = vmatpush3.xpose.msk.msra.mxu0 %vm1050_vm2, %v24892_v7  ;;  %21603 = vmatprep.subr.mxu1 %v22641_v4 }
0x1e31   :  { %21592 = vmatprep.subr.mxu0 %v22641_v4 }
0x1e33   :  { %21604 = vmatpush3.xpose.msk.msra.mxu1 %vm1050_vm2, %v24902_v51 }
0x1e34   :  { %21593 = vmatpush3.xpose.msk.msra.mxu0 %vm1050_vm2, %v24908_v19  ;;  %21619 = vmatprep.subr.mxu1 %v22641_v4 }
0x1e35   :  { %21608 = vmatprep.subr.mxu0 %v22641_v4 }
0x1edc   :  { %v10764_v58 = vpop.f32.mrf.mxu1 }
0x1edd   :  { %v10691_v0 = vpop.f32.mrf.mxu0  ;;  %21606 = vmatmul.mubr.msk.f32.vlgmr.msra.gmra.mxu1 %vm1050_vm2, %v10764_v58 }
0x1ede   :  { %21595 = vmatmul.mubr.msk.f32.vlgmr.msra.gmra.mxu0 %vm1050_vm2, %v10691_v0  ;;  %21620 = vmatpush3.xpose.msk.msra.mxu1 %vm1050_vm2, %v24919_v57  ;;  %v21575_v32 = vpop.f32.mrf.mxu1 }
0x1edf   :  { %21609 = vmatpush3.xpose.msk.msra.mxu0 %vm1050_vm2, %v24924_v47  ;;  %v21570_v62 = vpop.f32.mrf.mxu0  ;;  %21621 = vmatprep.subr.mxu1 %v22641_v4 }
0x1ee0   :  { %21610 = vmatprep.subr.mxu0 %v22641_v4  ;;  %21616 = vmatprep.mubr.msk.f32.mxu0 %vm22642_vm1, %v22641_v4 }
0x1ee1   :  { %21627 = vmatprep.mubr.msk.f32.mxu1 %vm22642_vm1, %v22641_v4 }
0x1ee2   :  { %21622 = vmatpush3.xpose.msk.msra.mxu1 %vm1050_vm2, %v24936_v26 }
0x1ee3   :  { %21611 = vmatpush3.xpose.msk.msra.mxu0 %vm1050_vm2, %v24942_v18  ;;  %21623 = vmatprep.subr.mxu1 %v22641_v4 }
0x1ee4   :  { %21612 = vmatprep.subr.mxu0 %v22641_v4 }
0x1ee6   :  { %v10910_v3 = vpop.f32.mrf.mxu1  ;;  %21624 = vmatpush3.xpose.msk.msra.mxu1 %vm1050_vm2, %v24956_v1 }
0x1ee7   :  { %v10837_v16 = vpop.f32.mrf.mxu0  ;;  %21613 = vmatpush3.xpose.msk.msra.mxu0 %vm1050_vm2, %v24962_v2  ;;  %21625 = vmatprep.subr.mxu1 %v22641_v4 }
0x1ee8   :  { %v21585_v41 = vpop.f32.mrf.mxu1  ;;  %21614 = vmatprep.subr.mxu0 %v22641_v4 }
0x1ee9   :  { %v21580_v35 = vpop.f32.mrf.mxu0 }
0x1eea   :  { %21626 = vmatpush3.xpose.msk.msra.mxu1 %vm1050_vm2, %v24972_v40 }
0x1eeb   :  { %21615 = vmatpush3.xpose.msk.msra.mxu0 %vm1050_vm2, %v24978_v38  ;;  %21635 = vmatprep.subr.mxu1 %v22641_v4 }
0x1eec   :  { %21630 = vmatprep.subr.mxu0 %v22641_v4 }
0x1eed   :  { %21628 = vmatmul.mubr.msk.f32.vlgmr.msra.gmra.mxu1 %vm1050_vm2, %v10910_v3 }
0x1eee   :  { %21617 = vmatmul.mubr.msk.f32.vlgmr.msra.gmra.mxu0 %vm1050_vm2, %v10837_v16  ;;  %21636 = vmatpush3.xpose.msk.msra.mxu1 %vm1050_vm2, %v24776_v6 }
0x1eef   :  { %21631 = vmatpush3.xpose.msk.msra.mxu0 %vm1050_vm2, %v24774_v37  ;;  %21632 = vmatprep.mubr.msk.f32.mxu0 %vm22642_vm1, %v22641_v4 }
0x1ef0   :  { %21637 = vmatprep.mubr.msk.f32.mxu1 %vm22642_vm1, %v22641_v4  ;;  %21640 = vmatprep.subr.mxu0 %v22641_v4 }
0x1ef1   :  { %21638 = vmatmul.mubr.msk.f32.vlgmr.msra.gmra.mxu1 %vm1050_vm2, %v24768_v28  ;;  %21645 = vmatprep.subr.mxu1 %v22641_v4 }
0x1ef2   :  { %21633 = vmatmul.mubr.msk.f32.vlgmr.msra.gmra.mxu0 %vm1050_vm2, %v24766_v42  ;;  %21646 = vmatpush3.xpose.msk.msra.mxu1 %vm1050_vm2, %v24790_v24 }
0x1ef3   :  { %21641 = vmatpush3.xpose.msk.msra.mxu0 %vm1050_vm2, %v24788_v11  ;;  %21642 = vmatprep.mubr.msk.f32.mxu0 %vm22642_vm1, %v22641_v4 }
0x1ef4   :  { %21647 = vmatprep.mubr.msk.f32.mxu1 %vm22642_vm1, %v22641_v4  ;;  %21650 = vmatprep.subr.mxu0 %v22641_v4 }
0x1ef5   :  { %21648 = vmatmul.mubr.msk.f32.vlgmr.msra.gmra.mxu1 %vm1050_vm2, %v24772_v21  ;;  %21655 = vmatprep.subr.mxu1 %v22641_v4 }
0x1ef6   :  { %21643 = vmatmul.mubr.msk.f32.vlgmr.msra.gmra.mxu0 %vm1050_vm2, %v24770_v34  ;;  %21656 = vmatpush3.msra.mxu1 %v24804_v15 }
0x1ef7   :  { %21651 = vmatpush3.msra.mxu0 %v24802_v49  ;;  %21652 = vmatprep.mubr.msk.f32.mxu0 %vm22642_vm1, %v22641_v4 }
0x1ef8   :  { %21657 = vmatprep.mubr.msk.f32.mxu1 %vm22642_vm1, %v22641_v4  ;;  %21660 = vmatprep.subr.mxu0 %v22641_v4 }
0x1ef9   :  { %21665 = vmatprep.subr.mxu1 %v22641_v4 }
0x1f9d   :  { %v11080_v42 = vpop.f32.mrf.mxu1 }
0x1f9e   :  { %v10995_v28 = vpop.f32.mrf.mxu0  ;;  %v11255_v21 = vsel %vm57_vm0, %v11080_v42, 0.0 }
0x1f9f   :  { %v11254_v34 = vsel %vm57_vm0, %v10995_v28, 0.0  ;;  %v21607_v37 = vpop.f32.mrf.mxu1 }
0x1fa0   :  { %v11256_v6 = vadd.f32 %v11255_v21, %v11254_v34  ;;  %v21596_v11 = vpop.f32.mrf.mxu0 }
0x1fad   :  { %v11250_v24 = vpop.f32.mrf.mxu1 }
0x1fae   :  { %v11165_v49 = vpop.f32.mrf.mxu0  ;;  %v11259_v20 = vsel %vm57_vm0, %v11250_v24, 0.0 }
0x1faf   :  { %v11257_v15 = vsel %vm57_vm0, %v11165_v49, 0.0  ;;  %v21629_v9 = vpop.f32.mrf.mxu1 }
0x1fb0   :  { %v11258_v53 = vadd.f32 %v11257_v15, %v11256_v6  ;;  %v21618_v43 = vpop.f32.mrf.mxu0 }
0x1fb1   :  { %v11409_v31 = vpop.f32.mrf.mxu1 }
0x1fb2   :  { %v11260_v44 = vadd.f32 %v11259_v20, %v11258_v53  ;;  %v11333_v30 = vpop.f32.mrf.mxu0  ;;  %v11410_v52 = vadd.f32 %v11409_v31, %v45_v23 }
0x1fb3   :  { %v11334_v13 = vadd.f32 %v11333_v30, %v44_v29  ;;  %v21639_v46 = vpop.f32.mrf.mxu1 }
0x1fb4   :  { %v21634_v48 = vpop.f32.mrf.mxu0  ;;  %v11568_v54 = vsel %vm1050_vm2, %v11410_v52, -inf  ;;  %v25046_v15 = vadd.f32 %v11260_v44, %v24447_v45 }
0x1fb5   :  { %11569 = vmax.xlane.f32.xlu1 %v11568_v54  ;;  %v11561_v12 = vpop.f32.mrf.mxu1  ;;  %v11565_v10 = vsel %vm1050_vm2, %v11334_v13, -inf }
0x1fb6   :  { %v11562_v56 = vadd.f32 %v11561_v12, %v47_v25  ;;  %11566 = vmax.xlane.f32.xlu0 %v11565_v10  ;;  %v11485_v22 = vpop.f32.mrf.mxu0  ;;  %v12203_v20 = vmul.f32 %v25046_v15, %v25046_v15 }
0x1fb7   :  { %v11486_v8 = vadd.f32 %v11485_v22, %v46_v33  ;;  %v21649_v63 = vpop.f32.mrf.mxu1 }
0x1fb8   :  { %v21644_v55 = vpop.f32.mrf.mxu0  ;;  %v11574_v58 = vsel %vm1050_vm2, %v11562_v56, -inf  ;;  %v12205_v31 = vsel %vm57_vm0, %v12203_v20, 0.0  ;;  %v19214_v20 = vld [vmem:[%s26396_s8 + $0xa0] sm:$0xff] }
0x1fb9   :  { %11575 = vmax.xlane.f32.xlu1 %v11574_v58  ;;  %v11571_v0 = vsel %vm1050_vm2, %v11486_v8, -inf }
0x1fba   :  { %11572 = vmax.xlane.f32.xlu0 %v11571_v0 }
0x203e   :  { %v11570_v32 = vpop.xlane.xlu1 %11569 }
0x203f   :  { %v11578_v62 = vsub.f32 %v11410_v52, %v11570_v32  ;;  %v11567_v3 = vpop.xlane.xlu0 %11566 }
0x2040   :  { %v11577_v16 = vsub.f32 %v11334_v13, %v11567_v3 }
0x2041   :  { %v11583_v41 = vmul.f32 1.442695, %v11578_v62 }
0x2042   :  { %v11581_v35 = vmul.f32 1.442695, %v11577_v16  ;;  %v11576_v42 = vpop.xlane.xlu1 %11575 }
0x2043   :  { %22511 = vpow2.f32 %v11583_v41  ;;  %v11580_v28 = vsub.f32 %v11562_v56, %v11576_v42  ;;  %v11573_v21 = vpop.xlane.xlu0 %11572 }
0x2044   :  { %22513 = vpow2.f32 %v11581_v35  ;;  %v11579_v34 = vsub.f32 %v11486_v8, %v11573_v21  ;;  %v19213_v21 = vld [vmem:[%s26396_s8 + $0x98] sm:$0xff] }
0x2045   :  { %v11587_v37 = vmul.f32 1.442695, %v11580_v28 }
0x2046   :  { %v11585_v6 = vmul.f32 1.442695, %v11579_v34  ;;  %v19212_v34 = vld [vmem:[%s26396_s8 + $0x90] sm:$0xff] }
0x2047   :  { %22515 = vpow2.f32 %v11587_v37  ;;  %v19211_v37 = vld [vmem:[%s26396_s8 + $0x88] sm:$0xff] }
0x2048   :  { %22517 = vpow2.f32 %v11585_v6  ;;  %v19217_v6 = vld [vmem:[%s26396_s8 + $0xb8] sm:$0xff] }
0x2050   :  { %v22512_v11 = vpop.eup %22511 }
0x2051   :  { %v22514_v24 = vpop.eup %22513  ;;  %v11592_v49 = vsel %vm1050_vm2, %v22512_v11, 0.0 }
0x2052   :  { %11593 = vadd.xlane.f32.xlu1 %v11592_v49  ;;  %v11589_v9 = vsel %vm1050_vm2, %v22514_v24, 0.0 }
0x2053   :  { %11590 = vadd.xlane.f32.xlu0 %v11589_v9 }
0x2054   :  { %v22516_v23 = vpop.eup %22515 }
0x2055   :  { %v22518_v53 = vpop.eup %22517  ;;  %v11598_v43 = vsel %vm1050_vm2, %v22516_v23, 0.0 }
0x2056   :  { %11599 = vadd.xlane.f32.xlu1 %v11598_v43  ;;  %v11595_v29 = vsel %vm1050_vm2, %v22518_v53, 0.0 }
0x2057   :  { %11596 = vadd.xlane.f32.xlu0 %v11595_v29 }
0x205b   :  { %12206 = vadd.xlane.f32.xlu0 %v12205_v31 }
0x20db   :  { %v11594_v45 = vpop.xlane.xlu1 %11593 }
0x20dc   :  { %22519 = vrcp.f32 %v11594_v45  ;;  %v11591_v44 = vpop.xlane.xlu0 %11590 }
0x20dd   :  { %22521 = vrcp.f32 %v11591_v44 }
0x20df   :  { %v11600_v30 = vpop.xlane.xlu1 %11599 }
0x20e0   :  { %22523 = vrcp.f32 %v11600_v30  ;;  %v11597_v52 = vpop.xlane.xlu0 %11596 }
0x20e1   :  { %22525 = vrcp.f32 %v11597_v52 }
0x20e9   :  { %v22520_v13 = vpop.eup %22519 }
0x20ea   :  { %v22522_v46 = vpop.eup %22521  ;;  %v11606_v25 = vmul.f32 %v22520_v13, %v22512_v11  ;;  %v19216_v11 = vld [vmem:[%s26396_s8 + $0xb0] sm:$0xff] }
0x20eb   :  { %v11605_v48 = vmul.f32 %v22522_v46, %v22514_v24  ;;  %v19215_v24 = vld [vmem:[%s26396_s8 + $0xa8] sm:$0xff] }
0x20ec   :  { %21658 = vmatmul.mubr.msk.f32.vlgmr.msra.gmra.mxu1 %vm1050_vm2, %v11606_v25 }
0x20ed   :  { %v22524_v54 = vpop.eup %22523  ;;  %21653 = vmatmul.mubr.msk.f32.vlgmr.msra.gmra.mxu0 %vm1050_vm2, %v11605_v48  ;;  %21666 = vmatpush3.msra.mxu1 %v24810_v5 }
0x20ee   :  { %v22526_v33 = vpop.eup %22525  ;;  %v11608_v12 = vmul.f32 %v22524_v54, %v22516_v23  ;;  %21661 = vmatpush3.msra.mxu0 %v24808_v61  ;;  %21662 = vmatprep.mubr.msk.f32.mxu0 %vm22642_vm1, %v22641_v4  ;;  %v12207_v61 = vpop.xlane.xlu0 %12206 }
0x20ef   :  { %v11607_v10 = vmul.f32 %v22526_v33, %v22518_v53  ;;  %21667 = vmatprep.mubr.msk.f32.mxu1 %vm22642_vm1, %v22641_v4  ;;  %21670 = vmatprep.subr.mxu0 %v22641_v4  ;;  %v12211_v5 = vmul.f32 0.03125, %v12207_v61  ;;  %v19229_v61 = vld [vmem:[%s26393_s7 + $0x810] sm:$0xff] }
0x20f0   :  { %21668 = vmatmul.mubr.msk.f32.vlgmr.msra.gmra.mxu1 %vm1050_vm2, %v11608_v12  ;;  %21681 = vmatprep.subr.mxu1 %v22641_v4 }
0x20f1   :  { %21663 = vmatmul.mubr.msk.f32.vlgmr.msra.gmra.mxu0 %vm1050_vm2, %v11607_v10  ;;  %21682 = vmatpush3.xpose.msk.msra.mxu1 %vm1050_vm2, %v24849_v36  ;;  %v12213_v36 = vadd.f32 1e-06, %v12211_v5  ;;  %v19230_v10 = vld [vmem:[%s26393_s7 + $0x818] sm:$0xff]  ;;  %v19237_v5 = vld [vmem:[%s26393_s7 + $0x850] sm:$0xff] }
0x20f2   :  { %21671 = vmatpush3.xpose.msk.msra.mxu0 %vm1050_vm2, %v24854_v39  ;;  %21683 = vmatprep.subr.mxu1 %v22641_v4 }
0x20f3   :  { %21672 = vmatprep.subr.mxu0 %v22641_v4  ;;  %21678 = vmatprep.mubr.msk.f32.mxu0 %vm22642_vm1, %v22641_v4  ;;  %22527 = vrsqrt.f32 %v12213_v36  ;;  %v19228_v36 = vld [vmem:[%s26393_s7 + $0x808] sm:$0xff] }
0x20f4   :  { %21689 = vmatprep.mubr.msk.f32.mxu1 %vm22642_vm1, %v22641_v4 }
0x20f5   :  { %21684 = vmatpush3.xpose.msk.msra.mxu1 %vm1050_vm2, %v24866_v14 }
0x20f6   :  { %21673 = vmatpush3.xpose.msk.msra.mxu0 %vm1050_vm2, %v24872_v59  ;;  %21685 = vmatprep.subr.mxu1 %v22641_v4 }
0x20f7   :  { %21674 = vmatprep.subr.mxu0 %v22641_v4 }
0x20f9   :  { %21686 = vmatpush3.xpose.msk.msra.mxu1 %vm1050_vm2, %v24886_v60 }
0x20fa   :  { %21675 = vmatpush3.xpose.msk.msra.mxu0 %vm1050_vm2, %v24892_v7  ;;  %21687 = vmatprep.subr.mxu1 %v22641_v4 }
0x20fb   :  { %21676 = vmatprep.subr.mxu0 %v22641_v4 }
0x20fd   :  { %21688 = vmatpush3.xpose.msk.msra.mxu1 %vm1050_vm2, %v24902_v51 }
0x20fe   :  { %21677 = vmatpush3.xpose.msk.msra.mxu0 %vm1050_vm2, %v24908_v19  ;;  %21703 = vmatprep.subr.mxu1 %v22641_v4 }
0x20ff   :  { %21692 = vmatprep.subr.mxu0 %v22641_v4 }
0x21ac   :  { %v11751_v39 = vpop.f32.mrf.mxu1 }
0x21ad   :  { %v11678_v14 = vpop.f32.mrf.mxu0  ;;  %21690 = vmatmul.mubr.msk.f32.vlgmr.msra.gmra.mxu1 %vm1050_vm2, %v11751_v39  ;;  %v19236_v39 = vld [vmem:[%s26393_s7 + $0x848] sm:$0xff] }
0x21ae   :  { %21679 = vmatmul.mubr.msk.f32.vlgmr.msra.gmra.mxu0 %vm1050_vm2, %v11678_v14  ;;  %21704 = vmatpush3.xpose.msk.msra.mxu1 %vm1050_vm2, %v24919_v57  ;;  %v21659_v59 = vpop.f32.mrf.mxu1  ;;  %v19227_v14 = vld [vmem:[%s26393_s7 + $0x800] sm:$0xff] }
0x21af   :  { %21693 = vmatpush3.xpose.msk.msra.mxu0 %vm1050_vm2, %v24924_v47  ;;  %v21654_v60 = vpop.f32.mrf.mxu0  ;;  %21705 = vmatprep.subr.mxu1 %v22641_v4  ;;  %v22528_v47 = vpop.eup %22527  ;;  %v19235_v59 = vld [vmem:[%s26393_s7 + $0x840] sm:$0xff] }
0x21b0   :  { %v11897_v7 = vpop.f32.mrf.mxu1  ;;  %21694 = vmatprep.subr.mxu0 %v22641_v4  ;;  %21700 = vmatprep.mubr.msk.f32.mxu0 %vm22642_vm1, %v22641_v4  ;;  %v19234_v60 = vld [vmem:[%s26393_s7 + $0x838] sm:$0xff] }
0x21b1   :  { %v11824_v51 = vpop.f32.mrf.mxu0  ;;  %21711 = vmatprep.mubr.msk.f32.mxu1 %vm22642_vm1, %v22641_v4 }
0x21b2   :  { %21706 = vmatpush3.xpose.msk.msra.mxu1 %vm1050_vm2, %v24936_v26  ;;  %v21669_v19 = vpop.f32.mrf.mxu1  ;;  %v12217_v26 = vmul.f32 %v22528_v47, %v25046_v15 }
0x21b3   :  { %21695 = vmatpush3.xpose.msk.msra.mxu0 %vm1050_vm2, %v24942_v18  ;;  %v21664_v57 = vpop.f32.mrf.mxu0  ;;  %21707 = vmatprep.subr.mxu1 %v22641_v4  ;;  %v19209_v18 = vld [vmem:[%s26394_s6 + $0x7] ss:$0 sm:$0xff] }
0x21b4   :  { %21696 = vmatprep.subr.mxu0 %v22641_v4 }
0x21b6   :  { %21708 = vmatpush3.xpose.msk.msra.mxu1 %vm1050_vm2, %v24956_v1  ;;  %v12223_v1 = vmul.f32 %v19209_v18, %v12217_v26 }
0x21b7   :  { %21697 = vmatpush3.xpose.msk.msra.mxu0 %vm1050_vm2, %v24962_v2  ;;  %21709 = vmatprep.subr.mxu1 %v22641_v4 }
0x21b8   :  { %21698 = vmatprep.subr.mxu0 %v22641_v4 }
0x21ba   :  { %21710 = vmatpush3.xpose.msk.msra.mxu1 %vm1050_vm2, %v24972_v40 }
0x21bb   :  { %21699 = vmatpush3.xpose.msk.msra.mxu0 %vm1050_vm2, %v24978_v38  ;;  %21725 = vmatprep.subr.msk.mxu1 %vm3094_vm3, %v19217_v6 }
0x21bc   :  { %21714 = vmatprep.subr.mxu0 %v19213_v21 }
0x21bd   :  { %21712 = vmatmul.mubr.msk.f32.vlgmr.msra.gmra.mxu1 %vm1050_vm2, %v11897_v7  ;;  %v19246_v7 = vld [vmem:[%s26393_s7 + $0x898] sm:$0xff] }
0x21be   :  { %21701 = vmatmul.mubr.msk.f32.vlgmr.msra.gmra.mxu0 %vm1050_vm2, %v11824_v51  ;;  %21726 = vmatpush3.xpose.msk.msra.mxu1 %vm3094_vm3, %v19217_v6  ;;  %v19249_v6 = vld [vmem:[%s26393_s7 + $0x8b0] sm:$0xff] }
0x21bf   :  { %21722 = vmatprep.mubr.msk.f32.mxu0 %vm57_vm0, %v12223_v1  ;;  %21715 = vmatpush3.msra.mxu0 %v19213_v21  ;;  %v19239_v21 = vld [vmem:[%s26393_s7 + $0x860] sm:$0xff] }
0x21c0   :  { %21716 = vmatprep.subr.mxu0 %v19212_v34  ;;  %21727 = vmatprep.subr.msk.mxu1 %vm3094_vm3, %v19216_v11 }
0x21c1   :  { %21717 = vmatpush3.msra.mxu0 %v19212_v34  ;;  %v19251_v34 = vld [vmem:[%s26393_s7 + $0x8c0] sm:$0xff] }
0x21c2   :  { %21718 = vmatprep.subr.mxu0 %v19211_v37  ;;  %21728 = vmatpush3.xpose.msk.msra.mxu1 %vm3094_vm3, %v19216_v11  ;;  %v19261_v11 = vld [vmem:[%s26393_s7 + $0x910] sm:$0xff] }
0x21c3   :  { %21719 = vmatpush3.msra.mxu0 %v19211_v37  ;;  %21729 = vmatprep.subr.msk.mxu1 %vm3094_vm3, %v19215_v24  ;;  %v19250_v37 = vld [vmem:[%s26393_s7 + $0x8b8] sm:$0xff] }
0x21c6   :  { %21730 = vmatpush3.xpose.msk.msra.mxu1 %vm3094_vm3, %v19215_v24  ;;  %v19248_v24 = vld [vmem:[%s26393_s7 + $0x8a8] sm:$0xff] }
0x21c7   :  { %21731 = vmatprep.subr.msk.mxu1 %vm3094_vm3, %v19214_v20 }
0x21ca   :  { %21732 = vmatpush3.xpose.msk.msra.mxu1 %vm3094_vm3, %v19214_v20  ;;  %v19269_v20 = vld [vmem:[%s26393_s7 + $0x950] sm:$0xff] }
0x226d   :  { %v12043_v2 = vpop.f32.mrf.mxu1 }
0x226e   :  { %v11970_v56 = vpop.f32.mrf.mxu0  ;;  %v12194_v63 = vsel %vm57_vm0, %v12043_v2, 0.0 }
0x226f   :  { %v21691_v22 = vpop.f32.mrf.mxu1  ;;  %v12193_v40 = vsel %vm57_vm0, %v11970_v56, 0.0 }
0x2270   :  { %v21680_v8 = vpop.f32.mrf.mxu0  ;;  %v12195_v58 = vadd.f32 %v12194_v63, %v12193_v40  ;;  %v19226_v22 = vld [vmem:[%s26394_s6 + $0x8] ss:$0 sm:$0xff] }
0x227d   :  { %v12189_v55 = vpop.f32.mrf.mxu1 }
0x227e   :  { %v12116_v0 = vpop.f32.mrf.mxu0  ;;  %v12198_v16 = vsel %vm57_vm0, %v12189_v55, 0.0  ;;  %v19233_v55 = vld [vmem:[%s26393_s7 + $0x830] sm:$0xff] }
0x227f   :  { %v12196_v38 = vsel %vm57_vm0, %v12116_v0, 0.0  ;;  %v21713_v32 = vpop.f32.mrf.mxu1  ;;  %v19232_v0 = vld [vmem:[%s26393_s7 + $0x828] sm:$0xff] }
0x2280   :  { %v12197_v62 = vadd.f32 %v12196_v38, %v12195_v58  ;;  %v21702_v3 = vpop.f32.mrf.mxu0  ;;  %v19245_v58 = vld [vmem:[%s26393_s7 + $0x890] sm:$0xff]  ;;  %v19244_v38 = vld [vmem:[%s26393_s7 + $0x888] sm:$0xff]  ;;  %v19231_v32 = vld [vmem:[%s26393_s7 + $0x820] sm:$0xff] }
0x2281   :  { %v19242_v3 = vld [vmem:[%s26393_s7 + $0x878] sm:$0xff] }
0x2282   :  { %v12199_v41 = vadd.f32 %v12198_v16, %v12197_v62  ;;  %v19243_v62 = vld [vmem:[%s26393_s7 + $0x880] sm:$0xff]  ;;  %v19254_v16 = vld [vmem:[%s26393_s7 + $0x8d8] sm:$0xff] }
0x2284   :  { %v12201_v35 = vadd.f32 %v12199_v41, %v24557_v50  ;;  %v19210_v50 = vld [vmem:[%s26396_s8 + $0x80] sm:$0xff]  ;;  %v19241_v41 = vld [vmem:[%s26393_s7 + $0x870] sm:$0xff] }
0x2285   :  { %21720 = vmatprep.subr.mxu0 %v19210_v50 }
0x2286   :  { %v12204_v42 = vmul.f32 %v12201_v35, %v12201_v35  ;;  %21721 = vmatpush3.msra.mxu0 %v19210_v50  ;;  %v19262_v50 = vld [vmem:[%s26393_s7 + $0x918] sm:$0xff] }
0x2287   :  { %21736 = vmatprep.subr.mxu0 %v19230_v10 }
0x2288   :  { %v12208_v28 = vsel %vm57_vm0, %v12204_v42, 0.0  ;;  %v19240_v42 = vld [vmem:[%s26393_s7 + $0x868] sm:$0xff] }
0x2289   :  { %12209 = vadd.xlane.f32.xlu1 %v12208_v28  ;;  %v19252_v28 = vld [vmem:[%s26393_s7 + $0x8c8] sm:$0xff] }
0x2312   :  { %v12210_v49 = vpop.xlane.xlu1 %12209 }
0x2313   :  { %v12212_v9 = vmul.f32 0.03125, %v12210_v49  ;;  %v19260_v49 = vld [vmem:[%s26393_s7 + $0x908] sm:$0xff] }
0x2315   :  { %v12214_v23 = vadd.f32 1e-06, %v12212_v9  ;;  %v19247_v9 = vld [vmem:[%s26393_s7 + $0x8a0] sm:$0xff] }
0x2317   :  { %22529 = vrsqrt.f32 %v12214_v23  ;;  %v19259_v23 = vld [vmem:[%s26393_s7 + $0x900] sm:$0xff] }
0x2324   :  { %v22530_v53 = vpop.eup %22529 }
0x2325   :  { %v12218_v43 = vmul.f32 %v22530_v53, %v12201_v35  ;;  %v19258_v53 = vld [vmem:[%s26393_s7 + $0x8f8] sm:$0xff] }
0x2327   :  { %v12224_v29 = vmul.f32 %v19209_v18, %v12218_v43  ;;  %v19270_v43 = vld [vmem:[%s26393_s7 + $0x958] sm:$0xff] }
0x2329   :  { %21723 = vmatmul.mubr.msk.f32.vlgmr.msra.gmra.mxu0 %vm57_vm0, %v12224_v29  ;;  %v19257_v29 = vld [vmem:[%s26393_s7 + $0x8f0] sm:$0xff] }
0x232a   :  { %21737 = vmatpush3.msra.mxu0 %v19230_v10  ;;  %v19272_v10 = vld [vmem:[%s26393_s7 + $0x968] sm:$0xff] }
0x232b   :  { %21738 = vmatprep.subr.mxu0 %v19229_v61 }
0x232c   :  { %21739 = vmatpush3.msra.mxu0 %v19229_v61 }
0x232d   :  { %21740 = vmatprep.subr.mxu0 %v19228_v36 }
0x232e   :  { %21741 = vmatpush3.msra.mxu0 %v19228_v36 }
0x232f   :  { %21742 = vmatprep.subr.mxu0 %v19227_v14 }
0x2330   :  { %21743 = vmatpush3.msra.mxu0 %v19227_v14 }
0x2331   :  { %21747 = vmatprep.subr.mxu0 %v19234_v60 }
0x23e9   :  { %v21724_v31 = vpop.f32.mrf.mxu0 }
0x23ea   :  { %v12317_v30 = vmax.f32 %v21724_v31, 0.0  ;;  %v19256_v31 = vld [vmem:[%s26393_s7 + $0x8e8] sm:$0xff] }
0x23eb   :  { %v12307_v45 = vpop.f32.mrf.mxu0 }
0x23ec   :  { %v12316_v44 = vmax.f32 %v12307_v45, 0.0  ;;  %v19268_v45 = vld [vmem:[%s26393_s7 + $0x948] sm:$0xff] }
0x23ee   :  { %21733 = vmatprep.mubr.msk.f32.mxu1 %vm3094_vm3, %v12316_v44  ;;  %v19255_v44 = vld [vmem:[%s26393_s7 + $0x8e0] sm:$0xff] }
0x23ef   :  { %21734 = vmatmul.mubr.msk.f32.vlgmr.msra.gmra.mxu1 %vm3094_vm3, %v12317_v30  ;;  %v19267_v30 = vld [vmem:[%s26393_s7 + $0x940] sm:$0xff] }
0x24af   :  { %v21735_v52 = vpop.f32.mrf.mxu1 }
0x24b0   :  { %v25170_v13 = vadd.f32 %v21735_v52, %v12201_v35  ;;  %v19253_v35 = vld [vmem:[%s26393_s7 + $0x8d0] sm:$0xff]  ;;  %v19266_v52 = vld [vmem:[%s26393_s7 + $0x938] sm:$0xff] }
0x24b1   :  { %v12402_v46 = vpop.f32.mrf.mxu1 }
0x24b2   :  { %v25173_v25 = vadd.f32 %v12402_v46, %v25046_v15  ;;  %v12415_v48 = vmul.f32 %v25170_v13, %v25170_v13  ;;  %v19238_v15 = vld [vmem:[%s26393_s7 + $0x858] sm:$0xff]  ;;  %v19265_v46 = vld [vmem:[%s26393_s7 + $0x930] sm:$0xff] }
0x24b3   :  { %21758 = vmatprep.subr.mxu1 %v19238_v15 }
0x24b4   :  { %v12419_v54 = vsel %vm57_vm0, %v12415_v48, 0.0  ;;  %v12414_v33 = vmul.f32 %v25173_v25, %v25173_v25  ;;  %21759 = vmatpush3.msra.mxu1 %v19238_v15  ;;  %v19264_v48 = vld [vmem:[%s26393_s7 + $0x928] sm:$0xff]  ;;  %v19271_v15 = vld [vmem:[%s26393_s7 + $0x960] sm:$0xff] }
0x24b5   :  { %12420 = vadd.xlane.f32.xlu1 %v12419_v54  ;;  %21760 = vmatprep.subr.mxu1 %v19237_v5  ;;  %v19263_v54 = vld [vmem:[%s26393_s7 + $0x920] sm:$0xff] }
0x24b6   :  { %v12416_v12 = vsel %vm57_vm0, %v12414_v33, 0.0  ;;  %21761 = vmatpush3.msra.mxu1 %v19237_v5  ;;  %v19274_v33 = vld [vmem:[%s26393_s7 + $0x978] sm:$0xff] }
0x24b7   :  { %12417 = vadd.xlane.f32.xlu0 %v12416_v12  ;;  %21762 = vmatprep.subr.mxu1 %v19236_v39  ;;  %v19273_v12 = vld [vmem:[%s26393_s7 + $0x970] sm:$0xff] }
0x24b8   :  { %21763 = vmatpush3.msra.mxu1 %v19236_v39 }
0x24b9   :  { %21764 = vmatprep.subr.mxu1 %v19235_v59 }
0x24ba   :  { %21765 = vmatpush3.msra.mxu1 %v19235_v59 }
0x24bb   :  { %21780 = vmatprep.subr.mxu1 %v19246_v7 }
0x253e   :  { %v12421_v51 = vpop.xlane.xlu1 %12420 }
0x253f   :  { %v12423_v19 = vmul.f32 0.03125, %v12421_v51 }
0x2540   :  { %v12418_v57 = vpop.xlane.xlu0 %12417 }
0x2541   :  { %v12425_v47 = vadd.f32 1e-06, %v12423_v19  ;;  %v12422_v26 = vmul.f32 0.03125, %v12418_v57 }
0x2543   :  { %22531 = vrsqrt.f32 %v12425_v47  ;;  %v12424_v18 = vadd.f32 1e-06, %v12422_v26 }
0x2545   :  { %22533 = vrsqrt.f32 %v12424_v18 }
0x2550   :  { %v22532_v1 = vpop.eup %22531 }
0x2551   :  { %v12429_v56 = vmul.f32 %v22532_v1, %v25170_v13 }
0x2552   :  { %v22534_v2 = vpop.eup %22533 }
0x2553   :  { %v12428_v8 = vmul.f32 %v22534_v2, %v25173_v25  ;;  %v25218_v63 = vmul.f32 %v19226_v22, %v12429_v56 }
0x2555   :  { %v25216_v40 = vmul.f32 %v19226_v22, %v12428_v8 }
0x2557   :  { %21744 = vmatprep.mubr.msk.f32.mxu0 %vm57_vm0, %v25216_v40  ;;  %21766 = vmatprep.mubr.msk.f32.mxu1 %vm57_vm0, %v25216_v40 }
0x2558   :  { %21745 = vmatmul.mubr.msk.f32.vlgmr.msra.gmra.mxu0 %vm57_vm0, %v25218_v63  ;;  %21767 = vmatmul.mubr.msk.f32.vlgmr.msra.gmra.mxu1 %vm57_vm0, %v25218_v63 }
0x2559   :  { %21748 = vmatpush3.msra.mxu0 %v19234_v60  ;;  %21781 = vmatpush3.msra.mxu1 %v19246_v7 }
0x255a   :  { %21749 = vmatprep.subr.mxu0 %v19233_v55  ;;  %21755 = vmatprep.mubr.msk.f32.mxu0 %vm57_vm0, %v25216_v40 }
0x255b   :  { %21782 = vmatprep.subr.mxu1 %v19245_v58  ;;  %21788 = vmatprep.mubr.msk.f32.mxu1 %vm57_vm0, %v25216_v40 }
0x255c   :  { %21750 = vmatpush3.msra.mxu0 %v19233_v55  ;;  %21783 = vmatpush3.msra.mxu1 %v19245_v58 }
0x255d   :  { %21751 = vmatprep.subr.mxu0 %v19232_v0  ;;  %21784 = vmatprep.subr.mxu1 %v19244_v38 }
0x255e   :  { %21752 = vmatpush3.msra.mxu0 %v19232_v0  ;;  %21785 = vmatpush3.msra.mxu1 %v19244_v38  ;;  %v25435_v0 = vld [vmem:[%s26398_s4] sm:$0xff] }
0x255f   :  { %21753 = vmatprep.subr.mxu0 %v19231_v32  ;;  %21786 = vmatprep.subr.mxu1 %v19243_v62 }
0x2560   :  { %21754 = vmatpush3.msra.mxu0 %v19231_v32  ;;  %21787 = vmatpush3.msra.mxu1 %v19243_v62 }
0x2561   :  { %21756 = vmatmul.mubr.msk.f32.vlgmr.msra.gmra.mxu0 %vm57_vm0, %v25218_v63  ;;  %21769 = vmatprep.subr.mxu0 %v19242_v3 }
0x2562   :  { %21789 = vmatmul.mubr.msk.f32.vlgmr.msra.gmra.mxu1 %vm57_vm0, %v25218_v63  ;;  %21802 = vmatprep.subr.mxu1 %v19254_v16 }
0x2563   :  { %21770 = vmatpush3.msra.mxu0 %v19242_v3  ;;  %21777 = vmatprep.mubr.msk.f32.mxu0 %vm57_vm0, %v25216_v40 }
0x2564   :  { %21803 = vmatpush3.msra.mxu1 %v19254_v16  ;;  %21810 = vmatprep.mubr.msk.f32.mxu1 %vm57_vm0, %v25216_v40 }
0x2565   :  { %21771 = vmatprep.subr.mxu0 %v19241_v41  ;;  %21804 = vmatprep.subr.mxu1 %v19253_v35 }
0x2566   :  { %21772 = vmatpush3.msra.mxu0 %v19241_v41  ;;  %21805 = vmatpush3.msra.mxu1 %v19253_v35  ;;  %v25446_v35 = vld [vmem:[%s26398_s4 + $0x10] sm:$0xff] }
0x2567   :  { %21773 = vmatprep.subr.mxu0 %v19240_v42  ;;  %21806 = vmatprep.subr.mxu1 %v19252_v28 }
0x2568   :  { %21774 = vmatpush3.msra.mxu0 %v19240_v42  ;;  %21807 = vmatpush3.msra.mxu1 %v19252_v28 }
0x2569   :  { %21775 = vmatprep.subr.mxu0 %v19239_v21  ;;  %21808 = vmatprep.subr.mxu1 %v19251_v34 }
0x256a   :  { %21776 = vmatpush3.msra.mxu0 %v19239_v21  ;;  %21809 = vmatpush3.msra.mxu1 %v19251_v34 }
0x256b   :  { %21778 = vmatmul.mubr.msk.f32.vlgmr.msra.gmra.mxu0 %vm57_vm0, %v25218_v63  ;;  %21791 = vmatprep.subr.mxu0 %v19250_v37 }
0x256c   :  { %21811 = vmatmul.mubr.msk.f32.vlgmr.msra.gmra.mxu1 %vm57_vm0, %v25218_v63  ;;  %21824 = vmatprep.subr.mxu1 %v19262_v50 }
0x256d   :  { %21792 = vmatpush3.msra.mxu0 %v19250_v37  ;;  %21799 = vmatprep.mubr.msk.f32.mxu0 %vm57_vm0, %v25216_v40  ;;  %v25453_v37 = vld [vmem:[%s26398_s4 + $0x8] sm:$0xff] }
0x256e   :  { %21825 = vmatpush3.msra.mxu1 %v19262_v50  ;;  %21832 = vmatprep.mubr.msk.f32.mxu1 %vm57_vm0, %v25216_v40 }
0x256f   :  { %21793 = vmatprep.subr.mxu0 %v19249_v6  ;;  %21826 = vmatprep.subr.mxu1 %v19261_v11 }
0x2570   :  { %21794 = vmatpush3.msra.mxu0 %v19249_v6  ;;  %21827 = vmatpush3.msra.mxu1 %v19261_v11 }
0x2571   :  { %21795 = vmatprep.subr.mxu0 %v19248_v24  ;;  %21828 = vmatprep.subr.mxu1 %v19260_v49 }
0x2572   :  { %21796 = vmatpush3.msra.mxu0 %v19248_v24  ;;  %21829 = vmatpush3.msra.mxu1 %v19260_v49  ;;  %v25460_v49 = vld [vmem:[%s26398_s4 + $0x18] sm:$0xff] }
0x2573   :  { %21797 = vmatprep.subr.mxu0 %v19247_v9  ;;  %21830 = vmatprep.subr.mxu1 %v19259_v23 }
0x2574   :  { %21798 = vmatpush3.msra.mxu0 %v19247_v9  ;;  %21831 = vmatpush3.msra.mxu1 %v19259_v23 }
0x2575   :  { %21800 = vmatmul.mubr.msk.f32.vlgmr.msra.gmra.mxu0 %vm57_vm0, %v25218_v63  ;;  %21813 = vmatprep.subr.mxu0 %v19258_v53 }
0x2576   :  { %21833 = vmatmul.mubr.msk.f32.vlgmr.msra.gmra.mxu1 %vm57_vm0, %v25218_v63  ;;  %21846 = vmatprep.subr.mxu1 %v19270_v43 }
0x2577   :  { %21814 = vmatpush3.msra.mxu0 %v19258_v53  ;;  %21821 = vmatprep.mubr.msk.f32.mxu0 %vm57_vm0, %v25216_v40 }
0x2578   :  { %21847 = vmatpush3.msra.mxu1 %v19270_v43  ;;  %21854 = vmatprep.mubr.msk.f32.mxu1 %vm57_vm0, %v25216_v40 }
0x2579   :  { %21815 = vmatprep.subr.mxu0 %v19257_v29  ;;  %21848 = vmatprep.subr.mxu1 %v19269_v20 }
0x257a   :  { %21816 = vmatpush3.msra.mxu0 %v19257_v29  ;;  %21849 = vmatpush3.msra.mxu1 %v19269_v20 }
0x257b   :  { %21817 = vmatprep.subr.mxu0 %v19256_v31  ;;  %21850 = vmatprep.subr.mxu1 %v19268_v45 }
0x257c   :  { %21818 = vmatpush3.msra.mxu0 %v19256_v31  ;;  %21851 = vmatpush3.msra.mxu1 %v19268_v45 }
0x257d   :  { %21819 = vmatprep.subr.mxu0 %v19255_v44  ;;  %21852 = vmatprep.subr.mxu1 %v19267_v30 }
0x257e   :  { %21820 = vmatpush3.msra.mxu0 %v19255_v44  ;;  %21853 = vmatpush3.msra.mxu1 %v19267_v30 }
0x257f   :  { %21822 = vmatmul.mubr.msk.f32.vlgmr.msra.gmra.mxu0 %vm57_vm0, %v25218_v63  ;;  %21835 = vmatprep.subr.mxu0 %v19266_v52 }
0x2580   :  { %21855 = vmatmul.mubr.msk.f32.vlgmr.msra.gmra.mxu1 %vm57_vm0, %v25218_v63  ;;  %21836 = vmatpush3.msra.mxu0 %v19266_v52 }
0x2581   :  { %21843 = vmatprep.mubr.msk.f32.mxu0 %vm57_vm0, %v25216_v40  ;;  %21837 = vmatprep.subr.mxu0 %v19265_v46 }
0x2582   :  { %21838 = vmatpush3.msra.mxu0 %v19265_v46  ;;  %21868 = vmatprep.subr.mxu1 %v22641_v4 }
0x2583   :  { %21839 = vmatprep.subr.mxu0 %v19264_v48  ;;  %21870 = vmatprep.mubr.msk.f32.mxu1 %vm22642_vm1, %v22641_v4 }
0x2584   :  { %21840 = vmatpush3.msra.mxu0 %v19264_v48 }
0x2585   :  { %21841 = vmatprep.subr.mxu0 %v19263_v54 }
0x2586   :  { %21842 = vmatpush3.msra.mxu0 %v19263_v54 }
0x2587   :  { %21844 = vmatmul.mubr.msk.f32.vlgmr.msra.gmra.mxu0 %vm57_vm0, %v25218_v63  ;;  %21857 = vmatprep.subr.mxu0 %v19274_v33 }
0x2588   :  { %21858 = vmatpush3.msra.mxu0 %v19274_v33  ;;  %21865 = vmatprep.mubr.msk.f32.mxu0 %vm57_vm0, %v25216_v40 }
0x2589   :  { %21859 = vmatprep.subr.mxu0 %v19273_v12 }
0x258a   :  { %21860 = vmatpush3.msra.mxu0 %v19273_v12 }
0x258b   :  { %21861 = vmatprep.subr.mxu0 %v19272_v10 }
0x258c   :  { %21862 = vmatpush3.msra.mxu0 %v19272_v10 }
0x258d   :  { %21863 = vmatprep.subr.mxu0 %v19271_v15 }
0x258e   :  { %21864 = vmatpush3.msra.mxu0 %v19271_v15 }
0x258f   :  { %21866 = vmatmul.mubr.msk.f32.vlgmr.msra.gmra.mxu0 %vm57_vm0, %v25218_v63  ;;  %21878 = vmatprep.subr.mxu0 %v22641_v4 }
0x2590   :  { %21880 = vmatprep.mubr.msk.f32.mxu0 %vm22642_vm1, %v22641_v4 }
0x2618   :  { %v25388_v61 = vpop.f32.mrf.mxu1  ;;  %v25392_v39 = vpop.f32.mrf.mxu0 }
0x261a   :  { %v12724_v5 = vpop.f32.mrf.mxu1  ;;  %v12574_v59 = vpop.f32.mrf.mxu0 }
0x2621   :  { %v25397_v60 = vpop.f32.mrf.mxu0 }
0x2622   :  { %v25390_v36 = vpop.f32.mrf.mxu1 }
0x2623   :  { %v12649_v51 = vpop.f32.mrf.mxu0 }
0x2624   :  { %v12874_v14 = vpop.f32.mrf.mxu1 }
0x2625   :  { %21869 = vmatpush3.xpose.msk.msra.mxu1 %vm1050_vm2, %v12874_v14 }
0x2626   :  { %21873 = vmatprep.subr.mxu1 %v22641_v4 }
0x2628   :  { %21871 = vmatmul.mubr.msk.f32.vlgmr.msra.gmra.mxu1 %vm1050_vm2, %v12574_v59 }
0x2629   :  { %21875 = vmatprep.mubr.msk.f32.mxu1 %vm22642_vm1, %v22641_v4 }
0x262b   :  { %v25403_v57 = vpop.f32.mrf.mxu0 }
0x262c   :  { %v25401_v7 = vpop.f32.mrf.mxu1 }
0x262d   :  { %v12799_v47 = vpop.f32.mrf.mxu0 }
0x262e   :  { %v13024_v19 = vpop.f32.mrf.mxu1 }
0x262f   :  { %21879 = vmatpush3.xpose.msk.msra.mxu0 %vm1050_vm2, %v13024_v19 }
0x2630   :  { %21888 = vmatprep.subr.mxu0 %v22641_v4 }
0x2632   :  { %21881 = vmatmul.mubr.msk.f32.vlgmr.msra.gmra.mxu0 %vm1050_vm2, %v12724_v5 }
0x2633   :  { %21890 = vmatprep.mubr.msk.f32.mxu0 %vm22642_vm1, %v22641_v4 }
0x2635   :  { %v25410_v26 = vpop.f32.mrf.mxu0 }
0x2636   :  { %v25412_v18 = vpop.f32.mrf.mxu1 }
0x2637   :  { %v12949_v1 = vpop.f32.mrf.mxu0 }
0x2638   :  { %v13174_v2 = vpop.f32.mrf.mxu1  ;;  %21874 = vmatpush3.xpose.msk.msra.mxu1 %vm1050_vm2, %v12949_v1 }
0x2639   :  { %21889 = vmatpush3.msra.mxu0 %v13174_v2  ;;  %21883 = vmatprep.subr.mxu1 %v22641_v4 }
0x263a   :  { %21898 = vmatprep.subr.mxu0 %v22641_v4 }
0x263b   :  { %21876 = vmatmul.mubr.msk.f32.vlgmr.msra.gmra.mxu1 %vm1050_vm2, %v12649_v51 }
0x263c   :  { %21885 = vmatprep.mubr.msk.f32.mxu1 %vm22642_vm1, %v22641_v4 }
0x263f   :  { %v25420_v56 = vpop.f32.mrf.mxu0 }
0x2640   :  { %v25430_v63 = vpop.f32.mrf.mxu1 }
0x2641   :  { %v13099_v22 = vpop.f32.mrf.mxu0 }
0x2642   :  { %21884 = vmatpush3.xpose.msk.msra.mxu1 %vm1050_vm2, %v13099_v22  ;;  %v13324_v55 = vpop.f32.mrf.mxu1 }
0x2643   :  { %21893 = vmatprep.subr.mxu1 %v22641_v4 }
0x2645   :  { %21886 = vmatmul.mubr.msk.f32.vlgmr.msra.gmra.mxu1 %vm1050_vm2, %v12799_v47 }
0x2646   :  { %21895 = vmatprep.mubr.msk.f32.mxu1 %vm22642_vm1, %v22641_v4 }
0x2647   :  { %v25427_v8 = vpop.f32.mrf.mxu0 }
0x2649   :  { %v13249_v40 = vpop.f32.mrf.mxu0 }
0x264a   :  { %21894 = vmatpush3.msra.mxu1 %v13249_v40 }
0x264b   :  { %21903 = vmatprep.subr.mxu1 %v22641_v4 }
0x264f   :  { %v25439_v3 = vpop.f32.mrf.mxu0 }
0x2651   :  { %v25441_v16 = vpop.f32.mrf.mxu0 }
0x26e8   :  { %v13480_v58 = vpop.f32.mrf.mxu1 }
0x26e9   :  { %v13481_v38 = vadd.f32 %v25435_v0, %v13480_v58 }
0x26ea   :  { %v21872_v32 = vpop.f32.mrf.mxu1 }
0x26eb   :  { %v13712_v62 = vsel %vm1050_vm2, %v13481_v38, -inf  ;;  %v25475_v32 = vld [vmem:[%s26393_s7 + $0x998] sm:$0xff] }
0x26ec   :  { %13713 = vmax.xlane.f32.xlu0 %v13712_v62  ;;  %v25486_v62 = vld [vmem:[%s26393_s7 + $0x990] sm:$0xff] }
0x26f2   :  { %v13632_v41 = vpop.f32.mrf.mxu0 }
0x26f3   :  { %v13633_v42 = vadd.f32 %v25446_v35, %v13632_v41 }
0x26f4   :  { %v21882_v28 = vpop.f32.mrf.mxu0 }
0x26f5   :  { %v13718_v21 = vsel %vm1050_vm2, %v13633_v42, -inf }
0x26f6   :  { %13719 = vmax.xlane.f32.xlu0 %v13718_v21  ;;  %v25505_v21 = vld [vmem:[%s26393_s7 + $0x980] sm:$0xff] }
0x26fb   :  { %v13556_v34 = vpop.f32.mrf.mxu1 }
0x26fc   :  { %v13557_v50 = vadd.f32 %v25453_v37, %v13556_v34 }
0x26fd   :  { %v21877_v6 = vpop.f32.mrf.mxu1 }
0x26fe   :  { %v13715_v11 = vsel %vm1050_vm2, %v13557_v50, -inf  ;;  %v25526_v6 = vld [vmem:[%s26393_s7 + $0x9b0] sm:$0xff] }
0x26ff   :  { %13716 = vmax.xlane.f32.xlu1 %v13715_v11  ;;  %v25534_v11 = vld [vmem:[%s26393_s7 + $0x9a8] sm:$0xff] }
0x2705   :  { %v13708_v24 = vpop.f32.mrf.mxu1 }
0x2706   :  { %v13709_v9 = vadd.f32 %v25460_v49, %v13708_v24  ;;  %v25542_v24 = vld [vmem:[%s26393_s7 + $0x9a0] sm:$0xff] }
0x2707   :  { %v21887_v23 = vpop.f32.mrf.mxu1 }
0x2708   :  { %v13721_v53 = vsel %vm1050_vm2, %v13709_v9, -inf }
0x2709   :  { %13722 = vmax.xlane.f32.xlu1 %v13721_v53 }
0x2775   :  { %v13714_v43 = vpop.xlane.xlu0 %13713 }
0x2776   :  { %v13724_v29 = vsub.f32 %v13481_v38, %v13714_v43  ;;  %v25561_v43 = vld [vmem:[%s26393_s7 + $0x9d0] sm:$0xff] }
0x2778   :  { %v13728_v20 = vmul.f32 1.442695, %v13724_v29  ;;  %v25569_v29 = vld [vmem:[%s26393_s7 + $0x9c8] sm:$0xff] }
0x277a   :  { %22535 = vpow2.f32 %v13728_v20 }
0x277f   :  { %v13720_v31 = vpop.xlane.xlu0 %13719 }
0x2780   :  { %v13726_v45 = vsub.f32 %v13633_v42, %v13720_v31  ;;  %v25494_v42 = vld [vmem:[%s26393_s7 + $0x988] sm:$0xff]  ;;  %v25577_v31 = vld [vmem:[%s26393_s7 + $0x9c0] sm:$0xff] }
0x2782   :  { %v13732_v44 = vmul.f32 1.442695, %v13726_v45 }
0x2784   :  { %22537 = vpow2.f32 %v13732_v44  ;;  %v25586_v44 = vld [vmem:[%s26393_s7 + $0x9f8] sm:$0xff] }
0x2787   :  { %v22536_v30 = vpop.eup %22535 }
0x2788   :  { %v13717_v52 = vpop.xlane.xlu1 %13716  ;;  %v13736_v46 = vsel %vm1050_vm2, %v22536_v30, 0.0 }
0x2789   :  { %v13725_v48 = vsub.f32 %v13557_v50, %v13717_v52  ;;  %13737 = vadd.xlane.f32.xlu0 %v13736_v46 }
0x278b   :  { %v13730_v54 = vmul.f32 1.442695, %v13725_v48 }
0x278d   :  { %22539 = vpow2.f32 %v13730_v54 }
0x2791   :  { %v22538_v33 = vpop.eup %22537 }
0x2792   :  { %v13723_v12 = vpop.xlane.xlu1 %13722  ;;  %v13742_v10 = vsel %vm1050_vm2, %v22538_v33, 0.0 }
0x2793   :  { %v13727_v15 = vsub.f32 %v13709_v9, %v13723_v12  ;;  %13743 = vadd.xlane.f32.xlu0 %v13742_v10  ;;  %v25550_v9 = vld [vmem:[%s26393_s7 + $0x9d8] sm:$0xff] }
0x2795   :  { %v13734_v5 = vmul.f32 1.442695, %v13727_v15 }
0x2797   :  { %22541 = vpow2.f32 %v13734_v5 }
0x279a   :  { %v22540_v14 = vpop.eup %22539 }
0x279b   :  { %v13739_v59 = vsel %vm1050_vm2, %v22540_v14, 0.0 }
0x279c   :  { %13740 = vadd.xlane.f32.xlu1 %v13739_v59 }
0x27a4   :  { %v22542_v51 = vpop.eup %22541 }
0x27a5   :  { %v13745_v19 = vsel %vm1050_vm2, %v22542_v51, 0.0 }
0x27a6   :  { %13746 = vadd.xlane.f32.xlu1 %v13745_v19 }
0x2812   :  { %v13738_v47 = vpop.xlane.xlu0 %13737 }
0x2813   :  { %22543 = vrcp.f32 %v13738_v47 }
0x281c   :  { %v13744_v1 = vpop.xlane.xlu0 %13743 }
0x281d   :  { %22545 = vrcp.f32 %v13744_v1 }
0x2820   :  { %v22544_v2 = vpop.eup %22543 }
0x2821   :  { %v13752_v22 = vmul.f32 %v22544_v2, %v22536_v30 }
0x2823   :  { %21891 = vmatmul.mubr.msk.f32.vlgmr.msra.gmra.mxu0 %vm1050_vm2, %v13752_v22 }
0x2824   :  { %21899 = vmatpush3.msra.mxu0 %v13324_v55  ;;  %21900 = vmatprep.mubr.msk.f32.mxu0 %vm22642_vm1, %v22641_v4 }
0x2825   :  { %v13741_v40 = vpop.xlane.xlu1 %13740  ;;  %21908 = vmatprep.subr.mxu0 %v22641_v4 }
0x2826   :  { %22547 = vrcp.f32 %v13741_v40 }
0x282a   :  { %v22546_v58 = vpop.eup %22545 }
0x282b   :  { %v13754_v38 = vmul.f32 %v22546_v58, %v22538_v33 }
0x282d   :  { %21901 = vmatmul.mubr.msk.f32.vlgmr.msra.gmra.mxu0 %vm1050_vm2, %v13754_v38 }
0x282e   :  { %21909 = vmatpush3.xpose.msk.msra.mxu0 %vm1050_vm2, %v25475_v32  ;;  %21916 = vmatprep.mubr.msk.f32.mxu0 %vm22642_vm1, %v22641_v4 }
0x282f   :  { %v13747_v55 = vpop.xlane.xlu1 %13746  ;;  %21910 = vmatprep.subr.mxu0 %v22641_v4 }
0x2830   :  { %22549 = vrcp.f32 %v13747_v55 }
0x2832   :  { %21911 = vmatpush3.xpose.msk.msra.mxu0 %vm1050_vm2, %v25486_v62 }
0x2833   :  { %v22548_v41 = vpop.eup %22547  ;;  %21912 = vmatprep.subr.mxu0 %v22641_v4 }
0x2834   :  { %v13753_v28 = vmul.f32 %v22548_v41, %v22540_v14 }
0x2836   :  { %21896 = vmatmul.mubr.msk.f32.vlgmr.msra.gmra.mxu1 %vm1050_vm2, %v13753_v28  ;;  %21913 = vmatpush3.xpose.msk.msra.mxu0 %vm1050_vm2, %v25494_v42 }
0x2837   :  { %21904 = vmatpush3.msra.mxu1 %v25441_v16  ;;  %21905 = vmatprep.mubr.msk.f32.mxu1 %vm22642_vm1, %v22641_v4  ;;  %v25518_v16 = vld [vmem:[%s26393_s7 + $0x9b8] sm:$0xff] }
0x2838   :  { %21914 = vmatprep.subr.mxu0 %v22641_v4  ;;  %21919 = vmatprep.subr.mxu1 %v22641_v4 }
0x283a   :  { %21915 = vmatpush3.xpose.msk.msra.mxu0 %vm1050_vm2, %v25505_v21 }
0x283b   :  { %21930 = vmatprep.subr.mxu0 %v22641_v4 }
0x283d   :  { %v22550_v34 = vpop.eup %22549 }
0x283e   :  { %v13755_v50 = vmul.f32 %v22550_v34, %v22542_v51 }
0x2840   :  { %21906 = vmatmul.mubr.msk.f32.vlgmr.msra.gmra.mxu1 %vm1050_vm2, %v13755_v50 }
0x2841   :  { %21927 = vmatprep.mubr.msk.f32.mxu1 %vm22642_vm1, %v22641_v4  ;;  %21920 = vmatpush3.xpose.msk.msra.mxu1 %vm1050_vm2, %v25518_v16 }
0x2842   :  { %21921 = vmatprep.subr.mxu1 %v22641_v4 }
0x2845   :  { %21922 = vmatpush3.xpose.msk.msra.mxu1 %vm1050_vm2, %v25526_v6 }
0x2846   :  { %21923 = vmatprep.subr.mxu1 %v22641_v4 }
0x2849   :  { %21924 = vmatpush3.xpose.msk.msra.mxu1 %vm1050_vm2, %v25534_v11 }
0x284a   :  { %21925 = vmatprep.subr.mxu1 %v22641_v4 }
0x284d   :  { %21926 = vmatpush3.xpose.msk.msra.mxu1 %vm1050_vm2, %v25542_v24 }
0x284e   :  { %21941 = vmatprep.subr.mxu1 %v22641_v4 }
0x28e3   :  { %v13825_v23 = vpop.f32.mrf.mxu0 }
0x28e4   :  { %21917 = vmatmul.mubr.msk.f32.vlgmr.msra.gmra.mxu0 %vm1050_vm2, %v13825_v23 }
0x28e5   :  { %21931 = vmatpush3.xpose.msk.msra.mxu0 %vm1050_vm2, %v25550_v9  ;;  %v21892_v53 = vpop.f32.mrf.mxu0  ;;  %21938 = vmatprep.mubr.msk.f32.mxu0 %vm22642_vm1, %v22641_v4 }
0x28e6   :  { %21932 = vmatprep.subr.mxu0 %v22641_v4 }
0x28e9   :  { %21933 = vmatpush3.xpose.msk.msra.mxu0 %vm1050_vm2, %v25561_v43 }
0x28ea   :  { %21934 = vmatprep.subr.mxu0 %v22641_v4 }
0x28ed   :  { %v13971_v20 = vpop.f32.mrf.mxu0  ;;  %21935 = vmatpush3.xpose.msk.msra.mxu0 %vm1050_vm2, %v25569_v29 }
0x28ee   :  { %21936 = vmatprep.subr.mxu0 %v22641_v4 }
0x28ef   :  { %v21902_v45 = vpop.f32.mrf.mxu0 }
0x28f1   :  { %21937 = vmatpush3.xpose.msk.msra.mxu0 %vm1050_vm2, %v25577_v31 }
0x28f2   :  { %21952 = vmatprep.subr.mxu0 %v22641_v4 }
0x28f4   :  { %21939 = vmatmul.mubr.msk.f32.vlgmr.msra.gmra.mxu0 %vm1050_vm2, %v13971_v20 }
0x28f5   :  { %21953 = vmatpush3.xpose.msk.msra.mxu0 %vm1050_vm2, %v25390_v36  ;;  %21954 = vmatprep.mubr.msk.f32.mxu0 %vm22642_vm1, %v22641_v4  ;;  %v25602_v36 = vld [vmem:[%s26393_s7 + $0x9f0] sm:$0xff] }
0x28f6   :  { %v13898_v30 = vpop.f32.mrf.mxu1  ;;  %21962 = vmatprep.subr.mxu0 %v22641_v4 }
0x28f7   :  { %21928 = vmatmul.mubr.msk.f32.vlgmr.msra.gmra.mxu1 %vm1050_vm2, %v13898_v30 }
0x28f8   :  { %21942 = vmatpush3.xpose.msk.msra.mxu1 %vm1050_vm2, %v25586_v44  ;;  %v21897_v52 = vpop.f32.mrf.mxu1  ;;  %21955 = vmatmul.mubr.msk.f32.vlgmr.msra.gmra.mxu0 %vm1050_vm2, %v25392_v39  ;;  %v25619_v39 = vld [vmem:[%s26393_s7 + $0x9e8] sm:$0xff] }
0x28f9   :  { %21943 = vmatprep.subr.mxu1 %v22641_v4  ;;  %21963 = vmatpush3.xpose.msk.msra.mxu0 %vm1050_vm2, %v25401_v7 }
0x28fa   :  { %21964 = vmatprep.mubr.msk.f32.mxu0 %vm22642_vm1, %v22641_v4  ;;  %21972 = vmatprep.subr.mxu0 %v22641_v4 }
0x28fb   :  { %21949 = vmatprep.mubr.msk.f32.mxu1 %vm22642_vm1, %v22641_v4 }
0x28fc   :  { %21944 = vmatpush3.xpose.msk.msra.mxu1 %vm1050_vm2, %v25602_v36  ;;  %21965 = vmatmul.mubr.msk.f32.vlgmr.msra.gmra.mxu0 %vm1050_vm2, %v25388_v61  ;;  %v25631_v61 = vld [vmem:[%s26393_s7 + $0x9e0] sm:$0xff] }
0x28fd   :  { %21945 = vmatprep.subr.mxu1 %v22641_v4  ;;  %21973 = vmatpush3.msra.mxu0 %v25412_v18 }
0x28fe   :  { %21974 = vmatprep.mubr.msk.f32.mxu0 %vm22642_vm1, %v22641_v4  ;;  %21982 = vmatprep.subr.mxu0 %v22641_v4 }
0x2900   :  { %v14044_v7 = vpop.f32.mrf.mxu1  ;;  %21946 = vmatpush3.xpose.msk.msra.mxu1 %vm1050_vm2, %v25619_v39 }
0x2901   :  { %21947 = vmatprep.subr.mxu1 %v22641_v4 }
0x2902   :  { %v21907_v46 = vpop.f32.mrf.mxu1 }
0x2904   :  { %21948 = vmatpush3.xpose.msk.msra.mxu1 %vm1050_vm2, %v25631_v61 }
0x2905   :  { %21957 = vmatprep.subr.mxu1 %v22641_v4 }
0x2907   :  { %21950 = vmatmul.mubr.msk.f32.vlgmr.msra.gmra.mxu1 %vm1050_vm2, %v14044_v7 }
0x2908   :  { %21958 = vmatpush3.xpose.msk.msra.mxu1 %vm1050_vm2, %v25410_v26  ;;  %21959 = vmatprep.mubr.msk.f32.mxu1 %vm22642_vm1, %v22641_v4 }
0x2909   :  { %21967 = vmatprep.subr.mxu1 %v22641_v4 }
0x290b   :  { %21960 = vmatmul.mubr.msk.f32.vlgmr.msra.gmra.mxu1 %vm1050_vm2, %v25397_v60 }
0x290c   :  { %21968 = vmatpush3.xpose.msk.msra.mxu1 %vm1050_vm2, %v25420_v56  ;;  %21969 = vmatprep.mubr.msk.f32.mxu1 %vm22642_vm1, %v22641_v4 }
0x290d   :  { %21977 = vmatprep.subr.mxu1 %v22641_v4 }
0x290f   :  { %21970 = vmatmul.mubr.msk.f32.vlgmr.msra.gmra.mxu1 %vm1050_vm2, %v25403_v57 }
0x2910   :  { %21978 = vmatpush3.msra.mxu1 %v25427_v8  ;;  %21979 = vmatprep.mubr.msk.f32.mxu1 %vm22642_vm1, %v22641_v4 }
0x2911   :  { %21987 = vmatprep.subr.mxu1 %v22641_v4 }
0x29a4   :  { %v14129_v26 = vpop.f32.mrf.mxu0 }
0x29a5   :  { %v14388_v54 = vsel %vm57_vm0, %v14129_v26, 0.0 }
0x29a6   :  { %v21918_v60 = vpop.f32.mrf.mxu0 }
0x29b4   :  { %v14299_v18 = vpop.f32.mrf.mxu0 }
0x29b5   :  { %v14391_v8 = vsel %vm57_vm0, %v14299_v18, 0.0 }
0x29b6   :  { %v21940_v48 = vpop.f32.mrf.mxu0 }
0x29b7   :  { %v14214_v56 = vpop.f32.mrf.mxu1 }
0x29b8   :  { %v14389_v33 = vsel %vm57_vm0, %v14214_v56, 0.0  ;;  %v14467_v12 = vpop.f32.mrf.mxu0 }
0x29b9   :  { %v14390_v10 = vadd.f32 %v14389_v33, %v14388_v54  ;;  %v21929_v15 = vpop.f32.mrf.mxu1  ;;  %v14468_v57 = vadd.f32 %v25435_v0, %v14467_v12 }
0x29ba   :  { %v21956_v5 = vpop.f32.mrf.mxu0 }
0x29bb   :  { %v14699_v14 = vsel %vm1050_vm2, %v14468_v57, -inf  ;;  %v14392_v59 = vadd.f32 %v14391_v8, %v14390_v10 }
0x29bc   :  { %14700 = vmax.xlane.f32.xlu0 %v14699_v14  ;;  %v14619_v51 = vpop.f32.mrf.mxu0 }
0x29bd   :  { %v14620_v19 = vadd.f32 %v25446_v35, %v14619_v51 }
0x29be   :  { %v21966_v47 = vpop.f32.mrf.mxu0 }
0x29bf   :  { %v14705_v1 = vsel %vm1050_vm2, %v14620_v19, -inf }
0x29c0   :  { %14706 = vmax.xlane.f32.xlu0 %v14705_v1 }
0x29c7   :  { %v14384_v2 = vpop.f32.mrf.mxu1 }
0x29c8   :  { %v14393_v22 = vsel %vm57_vm0, %v14384_v2, 0.0 }
0x29c9   :  { %v14394_v40 = vadd.f32 %v14393_v22, %v14392_v59  ;;  %v21951_v58 = vpop.f32.mrf.mxu1 }
0x29ca   :  { %v25733_v58 = vld [vmem:[%s26394_s6 + $0x9] ss:$0 sm:$0xff] }
0x29cb   :  { %v14543_v0 = vpop.f32.mrf.mxu1  ;;  %v25668_v7 = vadd.f32 %v14394_v40, %v25173_v25 }
0x29cc   :  { %v14544_v38 = vadd.f32 %v25453_v37, %v14543_v0 }
0x29cd   :  { %v21961_v55 = vpop.f32.mrf.mxu1  ;;  %v15337_v54 = vmul.f32 %v25668_v7, %v25668_v7 }
0x29ce   :  { %v14702_v41 = vsel %vm1050_vm2, %v14544_v38, -inf }
0x29cf   :  { %14703 = vmax.xlane.f32.xlu1 %v14702_v41  ;;  %v14695_v28 = vpop.f32.mrf.mxu1  ;;  %v15339_v25 = vsel %vm57_vm0, %v15337_v54, 0.0  ;;  %v19384_v54 = vld [vmem:[%s26393_s7 + $0xa20] sm:$0xff] }
0x29d0   :  { %v14696_v34 = vadd.f32 %v25460_v49, %v14695_v28 }
0x29d1   :  { %v21971_v35 = vpop.f32.mrf.mxu1 }
0x29d2   :  { %v14708_v50 = vsel %vm1050_vm2, %v14696_v34, -inf }
0x29d3   :  { %14709 = vmax.xlane.f32.xlu1 %v14708_v50 }
0x2a45   :  { %v14701_v23 = vpop.xlane.xlu0 %14700 }
0x2a46   :  { %v14711_v53 = vsub.f32 %v14468_v57, %v14701_v23 }
0x2a48   :  { %v14715_v20 = vmul.f32 1.442695, %v14711_v53 }
0x2a49   :  { %v14707_v45 = vpop.xlane.xlu0 %14706 }
0x2a4a   :  { %22551 = vpow2.f32 %v14715_v20  ;;  %v14713_v30 = vsub.f32 %v14620_v19, %v14707_v45 }
0x2a4c   :  { %v14719_v52 = vmul.f32 1.442695, %v14713_v30 }
0x2a4e   :  { %22553 = vpow2.f32 %v14719_v52 }
0x2a57   :  { %v22552_v37 = vpop.eup %22551 }
0x2a58   :  { %v14704_v46 = vpop.xlane.xlu1 %14703  ;;  %v14723_v26 = vsel %vm1050_vm2, %v22552_v37, 0.0 }
0x2a59   :  { %v14712_v49 = vsub.f32 %v14544_v38, %v14704_v46  ;;  %14724 = vadd.xlane.f32.xlu0 %v14723_v26  ;;  %v19383_v26 = vld [vmem:[%s26393_s7 + $0xa18] sm:$0xff] }
0x2a5b   :  { %v22554_v60 = vpop.eup %22553  ;;  %v14717_v18 = vmul.f32 1.442695, %v14712_v49  ;;  %v19387_v49 = vld [vmem:[%s26393_s7 + $0xa38] sm:$0xff] }
0x2a5c   :  { %v14710_v48 = vpop.xlane.xlu1 %14709  ;;  %v14729_v56 = vsel %vm1050_vm2, %v22554_v60, 0.0 }
0x2a5d   :  { %22555 = vpow2.f32 %v14717_v18  ;;  %v14714_v33 = vsub.f32 %v14696_v34, %v14710_v48  ;;  %14730 = vadd.xlane.f32.xlu0 %v14729_v56  ;;  %v19381_v18 = vld [vmem:[%s26393_s7 + $0xa08] sm:$0xff]  ;;  %v19380_v56 = vld [vmem:[%s26393_s7 + $0xa00] sm:$0xff] }
0x2a5e   :  { %v19385_v48 = vld [vmem:[%s26393_s7 + $0xa28] sm:$0xff] }
0x2a5f   :  { %v14721_v12 = vmul.f32 1.442695, %v14714_v33  ;;  %v19391_v33 = vld [vmem:[%s26393_s7 + $0xa58] sm:$0xff] }
0x2a61   :  { %22557 = vpow2.f32 %v14721_v12  ;;  %15340 = vadd.xlane.f32.xlu0 %v15339_v25  ;;  %v19395_v12 = vld [vmem:[%s26393_s7 + $0xa78] sm:$0xff] }
0x2a6a   :  { %v22556_v10 = vpop.eup %22555 }
0x2a6b   :  { %v14726_v15 = vsel %vm1050_vm2, %v22556_v10, 0.0 }
0x2a6c   :  { %14727 = vadd.xlane.f32.xlu1 %v14726_v15 }
0x2a6e   :  { %v22558_v57 = vpop.eup %22557 }
0x2a6f   :  { %v14732_v8 = vsel %vm1050_vm2, %v22558_v57, 0.0 }
0x2a70   :  { %14733 = vadd.xlane.f32.xlu1 %v14732_v8 }
0x2ae2   :  { %v14725_v5 = vpop.xlane.xlu0 %14724 }
0x2ae3   :  { %22559 = vrcp.f32 %v14725_v5 }
0x2ae6   :  { %v14731_v14 = vpop.xlane.xlu0 %14730 }
0x2ae7   :  { %22561 = vrcp.f32 %v14731_v14  ;;  %v19390_v14 = vld [vmem:[%s26393_s7 + $0xa50] sm:$0xff] }
0x2af0   :  { %v22560_v59 = vpop.eup %22559 }
0x2af1   :  { %v14739_v51 = vmul.f32 %v22560_v59, %v22552_v37  ;;  %v19394_v59 = vld [vmem:[%s26393_s7 + $0xa70] sm:$0xff] }
0x2af3   :  { %21975 = vmatmul.mubr.msk.f32.vlgmr.msra.gmra.mxu0 %vm1050_vm2, %v14739_v51  ;;  %v19389_v51 = vld [vmem:[%s26393_s7 + $0xa48] sm:$0xff] }
0x2af4   :  { %v22562_v19 = vpop.eup %22561  ;;  %21983 = vmatpush3.msra.mxu0 %v25430_v63  ;;  %21984 = vmatprep.mubr.msk.f32.mxu0 %vm22642_vm1, %v22641_v4 }
0x2af5   :  { %v14741_v47 = vmul.f32 %v22562_v19, %v22554_v60  ;;  %v14728_v1 = vpop.xlane.xlu1 %14727  ;;  %21992 = vmatprep.subr.mxu0 %v22641_v4  ;;  %v19386_v60 = vld [vmem:[%s26393_s7 + $0xa30] sm:$0xff]  ;;  %v19393_v19 = vld [vmem:[%s26393_s7 + $0xa68] sm:$0xff] }
0x2af6   :  { %22563 = vrcp.f32 %v14728_v1  ;;  %v19392_v1 = vld [vmem:[%s26393_s7 + $0xa60] sm:$0xff] }
0x2af7   :  { %21985 = vmatmul.mubr.msk.f32.vlgmr.msra.gmra.mxu0 %vm1050_vm2, %v14741_v47  ;;  %v19388_v47 = vld [vmem:[%s26393_s7 + $0xa40] sm:$0xff] }
0x2af8   :  { %21993 = vmatpush3.xpose.msk.msra.mxu0 %vm1050_vm2, %v25475_v32  ;;  %22000 = vmatprep.mubr.msk.f32.mxu0 %vm22642_vm1, %v22641_v4 }
0x2af9   :  { %v14734_v2 = vpop.xlane.xlu1 %14733  ;;  %21994 = vmatprep.subr.mxu0 %v22641_v4 }
0x2afa   :  { %22565 = vrcp.f32 %v14734_v2  ;;  %v19399_v2 = vld [vmem:[%s26393_s7 + $0xa98] sm:$0xff] }
0x2afc   :  { %21995 = vmatpush3.xpose.msk.msra.mxu0 %vm1050_vm2, %v25486_v62 }
0x2afd   :  { %21996 = vmatprep.subr.mxu0 %v22641_v4 }
0x2b00   :  { %21997 = vmatpush3.xpose.msk.msra.mxu0 %vm1050_vm2, %v25494_v42 }
0x2b01   :  { %21998 = vmatprep.subr.mxu0 %v22641_v4 }
0x2b03   :  { %v22564_v63 = vpop.eup %22563 }
0x2b04   :  { %v14740_v22 = vmul.f32 %v22564_v63, %v22556_v10  ;;  %21999 = vmatpush3.xpose.msk.msra.mxu0 %vm1050_vm2, %v25505_v21  ;;  %v19403_v63 = vld [vmem:[%s26393_s7 + $0xab8] sm:$0xff] }
0x2b05   :  { %22014 = vmatprep.subr.mxu0 %v22641_v4 }
0x2b06   :  { %21980 = vmatmul.mubr.msk.f32.vlgmr.msra.gmra.mxu1 %vm1050_vm2, %v14740_v22  ;;  %v19398_v22 = vld [vmem:[%s26393_s7 + $0xa90] sm:$0xff] }
0x2b07   :  { %v22566_v32 = vpop.eup %22565  ;;  %21988 = vmatpush3.msra.mxu1 %v25439_v3  ;;  %21989 = vmatprep.mubr.msk.f32.mxu1 %vm22642_vm1, %v22641_v4  ;;  %v15341_v3 = vpop.xlane.xlu0 %15340 }
0x2b08   :  { %v14742_v62 = vmul.f32 %v22566_v32, %v22558_v57  ;;  %22003 = vmatprep.subr.mxu1 %v22641_v4  ;;  %v15345_v42 = vmul.f32 0.03125, %v15341_v3  ;;  %v19402_v32 = vld [vmem:[%s26393_s7 + $0xab0] sm:$0xff]  ;;  %v19401_v3 = vld [vmem:[%s26393_s7 + $0xaa8] sm:$0xff] }
0x2b0a   :  { %21990 = vmatmul.mubr.msk.f32.vlgmr.msra.gmra.mxu1 %vm1050_vm2, %v14742_v62  ;;  %v15347_v21 = vadd.f32 1e-06, %v15345_v42  ;;  %v19397_v62 = vld [vmem:[%s26393_s7 + $0xa88] sm:$0xff]  ;;  %v19396_v42 = vld [vmem:[%s26393_s7 + $0xa80] sm:$0xff] }
0x2b0b   :  { %22004 = vmatpush3.xpose.msk.msra.mxu1 %vm1050_vm2, %v25518_v16  ;;  %22011 = vmatprep.mubr.msk.f32.mxu1 %vm22642_vm1, %v22641_v4 }
0x2b0c   :  { %22005 = vmatprep.subr.mxu1 %v22641_v4  ;;  %22567 = vrsqrt.f32 %v15347_v21  ;;  %v19400_v21 = vld [vmem:[%s26393_s7 + $0xaa0] sm:$0xff] }
0x2b0f   :  { %22006 = vmatpush3.xpose.msk.msra.mxu1 %vm1050_vm2, %v25526_v6 }
0x2b10   :  { %22007 = vmatprep.subr.mxu1 %v22641_v4 }
0x2b13   :  { %22008 = vmatpush3.xpose.msk.msra.mxu1 %vm1050_vm2, %v25534_v11 }
0x2b14   :  { %22009 = vmatprep.subr.mxu1 %v22641_v4 }
0x2b17   :  { %22010 = vmatpush3.xpose.msk.msra.mxu1 %vm1050_vm2, %v25542_v24 }
0x2b18   :  { %22025 = vmatprep.subr.mxu1 %v22641_v4 }
0x2b19   :  { %v22568_v40 = vpop.eup %22567 }
0x2bb3   :  { %v14812_v16 = vpop.f32.mrf.mxu0 }
0x2bb4   :  { %22001 = vmatmul.mubr.msk.f32.vlgmr.msra.gmra.mxu0 %vm1050_vm2, %v14812_v16  ;;  %v19407_v16 = vld [vmem:[%s26393_s7 + $0xad8] sm:$0xff] }
0x2bb5   :  { %22015 = vmatpush3.xpose.msk.msra.mxu0 %vm1050_vm2, %v25550_v9  ;;  %v21976_v6 = vpop.f32.mrf.mxu0  ;;  %22022 = vmatprep.mubr.msk.f32.mxu0 %vm22642_vm1, %v22641_v4  ;;  %v15351_v9 = vmul.f32 %v22568_v40, %v25668_v7  ;;  %v19405_v40 = vld [vmem:[%s26393_s7 + $0xac8] sm:$0xff] }
0x2bb6   :  { %22016 = vmatprep.subr.mxu0 %v22641_v4  ;;  %v19411_v6 = vld [vmem:[%s26393_s7 + $0xaf8] sm:$0xff] }
0x2bb7   :  { %v14958_v11 = vpop.f32.mrf.mxu0 }
0x2bb9   :  { %22017 = vmatpush3.xpose.msk.msra.mxu0 %vm1050_vm2, %v25561_v43  ;;  %v21986_v24 = vpop.f32.mrf.mxu0  ;;  %v25738_v43 = vmul.f32 %v25733_v58, %v15351_v9  ;;  %v19409_v9 = vld [vmem:[%s26393_s7 + $0xae8] sm:$0xff] }
0x2bba   :  { %22018 = vmatprep.subr.mxu0 %v22641_v4  ;;  %v19410_v24 = vld [vmem:[%s26393_s7 + $0xaf0] sm:$0xff] }
0x2bbd   :  { %22019 = vmatpush3.xpose.msk.msra.mxu0 %vm1050_vm2, %v25569_v29 }
0x2bbe   :  { %22020 = vmatprep.subr.mxu0 %v22641_v4 }
0x2bc1   :  { %22021 = vmatpush3.xpose.msk.msra.mxu0 %vm1050_vm2, %v25577_v31 }
0x2bc2   :  { %22036 = vmatprep.subr.mxu0 %v19383_v26 }
0x2bc4   :  { %22023 = vmatmul.mubr.msk.f32.vlgmr.msra.gmra.mxu0 %vm1050_vm2, %v14958_v11  ;;  %v19406_v11 = vld [vmem:[%s26393_s7 + $0xad0] sm:$0xff] }
0x2bc5   :  { %22044 = vmatprep.mubr.msk.f32.mxu0 %vm57_vm0, %v25738_v43  ;;  %22037 = vmatpush3.msra.mxu0 %v19383_v26 }
0x2bc6   :  { %v14885_v29 = vpop.f32.mrf.mxu1 }
0x2bc7   :  { %22012 = vmatmul.mubr.msk.f32.vlgmr.msra.gmra.mxu1 %vm1050_vm2, %v14885_v29  ;;  %v19415_v29 = vld [vmem:[%s26393_s7 + $0xb18] sm:$0xff] }
0x2bc8   :  { %22026 = vmatpush3.xpose.msk.msra.mxu1 %vm1050_vm2, %v25586_v44  ;;  %v21981_v0 = vpop.f32.mrf.mxu1  ;;  %22033 = vmatprep.mubr.msk.f32.mxu1 %vm22642_vm1, %v22641_v4 }
0x2bc9   :  { %22027 = vmatprep.subr.mxu1 %v22641_v4  ;;  %v19419_v0 = vld [vmem:[%s26393_s7 + $0xb38] sm:$0xff] }
0x2bca   :  { %v15031_v31 = vpop.f32.mrf.mxu1 }
0x2bcc   :  { %22028 = vmatpush3.xpose.msk.msra.mxu1 %vm1050_vm2, %v25602_v36  ;;  %v21991_v38 = vpop.f32.mrf.mxu1 }
0x2bcd   :  { %22029 = vmatprep.subr.mxu1 %v22641_v4  ;;  %v19418_v38 = vld [vmem:[%s26393_s7 + $0xb30] sm:$0xff] }
0x2bd0   :  { %22030 = vmatpush3.xpose.msk.msra.mxu1 %vm1050_vm2, %v25619_v39 }
0x2bd1   :  { %22031 = vmatprep.subr.mxu1 %v22641_v4 }
0x2bd4   :  { %22032 = vmatpush3.xpose.msk.msra.mxu1 %vm1050_vm2, %v25631_v61 }
0x2bd5   :  { %22047 = vmatprep.subr.mxu1 %v19387_v49 }
0x2bd7   :  { %22034 = vmatmul.mubr.msk.f32.vlgmr.msra.gmra.mxu1 %vm1050_vm2, %v15031_v31  ;;  %v19414_v31 = vld [vmem:[%s26393_s7 + $0xb10] sm:$0xff] }
0x2bd8   :  { %22055 = vmatprep.mubr.msk.f32.mxu1 %vm57_vm0, %v25738_v43  ;;  %22048 = vmatpush3.msra.mxu1 %v19387_v49 }
0x2bd9   :  { %22049 = vmatprep.subr.mxu1 %v19386_v60 }
0x2bda   :  { %22050 = vmatpush3.msra.mxu1 %v19386_v60 }
0x2bdb   :  { %22051 = vmatprep.subr.mxu1 %v19385_v48 }
0x2bdc   :  { %22052 = vmatpush3.msra.mxu1 %v19385_v48 }
0x2bdd   :  { %22053 = vmatprep.subr.mxu1 %v19384_v54 }
0x2bde   :  { %22054 = vmatpush3.msra.mxu1 %v19384_v54 }
0x2bdf   :  { %22069 = vmatprep.subr.mxu1 %v19395_v12 }
0x2c74   :  { %v15104_v44 = vpop.f32.mrf.mxu0 }
0x2c75   :  { %v15327_v39 = vsel %vm57_vm0, %v15104_v44, 0.0  ;;  %v19413_v44 = vld [vmem:[%s26393_s7 + $0xb08] sm:$0xff] }
0x2c76   :  { %v22002_v55 = vpop.f32.mrf.mxu0 }
0x2c77   :  { %v19417_v55 = vld [vmem:[%s26393_s7 + $0xb28] sm:$0xff] }
0x2c84   :  { %v15250_v41 = vpop.f32.mrf.mxu0 }
0x2c85   :  { %v15330_v23 = vsel %vm57_vm0, %v15250_v41, 0.0  ;;  %v19412_v41 = vld [vmem:[%s26393_s7 + $0xb00] sm:$0xff] }
0x2c86   :  { %v22024_v36 = vpop.f32.mrf.mxu0 }
0x2c87   :  { %v15177_v28 = vpop.f32.mrf.mxu1  ;;  %v19416_v36 = vld [vmem:[%s26393_s7 + $0xb20] sm:$0xff] }
0x2c88   :  { %v15328_v35 = vsel %vm57_vm0, %v15177_v28, 0.0  ;;  %v19423_v28 = vld [vmem:[%s26393_s7 + $0xb58] sm:$0xff] }
0x2c89   :  { %v22013_v34 = vpop.f32.mrf.mxu1  ;;  %v15329_v50 = vadd.f32 %v15328_v35, %v15327_v39  ;;  %v19422_v35 = vld [vmem:[%s26393_s7 + $0xb50] sm:$0xff] }
0x2c8a   :  { %v19427_v34 = vld [vmem:[%s26393_s7 + $0xb78] sm:$0xff]  ;;  %v19426_v39 = vld [vmem:[%s26393_s7 + $0xb70] sm:$0xff] }
0x2c8b   :  { %v15331_v61 = vadd.f32 %v15330_v23, %v15329_v50  ;;  %v19421_v50 = vld [vmem:[%s26393_s7 + $0xb48] sm:$0xff] }
0x2c8c   :  { %v19425_v23 = vld [vmem:[%s26393_s7 + $0xb68] sm:$0xff] }
0x2c97   :  { %v15323_v53 = vpop.f32.mrf.mxu1 }
0x2c98   :  { %v15332_v20 = vsel %vm57_vm0, %v15323_v53, 0.0  ;;  %v19420_v53 = vld [vmem:[%s26393_s7 + $0xb40] sm:$0xff] }
0x2c99   :  { %v15333_v45 = vadd.f32 %v15332_v20, %v15331_v61  ;;  %v22035_v30 = vpop.f32.mrf.mxu1 }
0x2c9b   :  { %v25765_v52 = vadd.f32 %v15333_v45, %v25170_v13  ;;  %v19382_v13 = vld [vmem:[%s26393_s7 + $0xa10] sm:$0xff] }
0x2c9c   :  { %22038 = vmatprep.subr.mxu0 %v19382_v13 }
0x2c9d   :  { %v15338_v37 = vmul.f32 %v25765_v52, %v25765_v52  ;;  %22039 = vmatpush3.msra.mxu0 %v19382_v13 }
0x2c9e   :  { %22040 = vmatprep.subr.mxu0 %v19381_v18 }
0x2c9f   :  { %v15342_v46 = vsel %vm57_vm0, %v15338_v37, 0.0  ;;  %22041 = vmatpush3.msra.mxu0 %v19381_v18 }
0x2ca0   :  { %15343 = vadd.xlane.f32.xlu1 %v15342_v46  ;;  %22042 = vmatprep.subr.mxu0 %v19380_v56 }
0x2ca1   :  { %22043 = vmatpush3.msra.mxu0 %v19380_v56 }
0x2ca2   :  { %22058 = vmatprep.subr.mxu0 %v19391_v33 }
0x2d29   :  { %v15344_v25 = vpop.xlane.xlu1 %15343 }
0x2d2a   :  { %v15346_v10 = vmul.f32 0.03125, %v15344_v25 }
0x2d2c   :  { %v15348_v15 = vadd.f32 1e-06, %v15346_v10 }
0x2d2e   :  { %22569 = vrsqrt.f32 %v15348_v15 }
0x2d3b   :  { %v22570_v57 = vpop.eup %22569 }
0x2d3c   :  { %v15352_v8 = vmul.f32 %v22570_v57, %v25765_v52 }
0x2d3e   :  { %v15358_v5 = vmul.f32 %v25733_v58, %v15352_v8  ;;  %v19404_v58 = vld [vmem:[%s26393_s7 + $0xac0] sm:$0xff] }
0x2d40   :  { %22045 = vmatmul.mubr.msk.f32.vlgmr.msra.gmra.mxu0 %vm57_vm0, %v15358_v5  ;;  %22056 = vmatmul.mubr.msk.f32.vlgmr.msra.gmra.mxu1 %vm57_vm0, %v15358_v5 }
0x2d41   :  { %22059 = vmatpush3.msra.mxu0 %v19391_v33  ;;  %22070 = vmatpush3.msra.mxu1 %v19395_v12 }
0x2d42   :  { %22060 = vmatprep.subr.mxu0 %v19390_v14  ;;  %22066 = vmatprep.mubr.msk.f32.mxu0 %vm57_vm0, %v25738_v43 }
0x2d43   :  { %22071 = vmatprep.subr.mxu1 %v19394_v59  ;;  %22077 = vmatprep.mubr.msk.f32.mxu1 %vm57_vm0, %v25738_v43  ;;  %v19408_v43 = vld [vmem:[%s26393_s7 + $0xae0] sm:$0xff] }
0x2d44   :  { %22061 = vmatpush3.msra.mxu0 %v19390_v14  ;;  %22072 = vmatpush3.msra.mxu1 %v19394_v59 }
0x2d45   :  { %22062 = vmatprep.subr.mxu0 %v19389_v51  ;;  %22073 = vmatprep.subr.mxu1 %v19393_v19 }
0x2d46   :  { %22063 = vmatpush3.msra.mxu0 %v19389_v51  ;;  %22074 = vmatpush3.msra.mxu1 %v19393_v19  ;;  %v22633_v19 = vld [vmem:[%s26399_s3] sm:$0xff] }
0x2d47   :  { %22064 = vmatprep.subr.mxu0 %v19388_v47  ;;  %22075 = vmatprep.subr.mxu1 %v19392_v1 }
0x2d48   :  { %22065 = vmatpush3.msra.mxu0 %v19388_v47  ;;  %22076 = vmatpush3.msra.mxu1 %v19392_v1  ;;  %v22634_v1 = vld [vmem:[%s26399_s3 + $0x8] sm:$0xff] }
0x2d49   :  { %22067 = vmatmul.mubr.msk.f32.vlgmr.msra.gmra.mxu0 %vm57_vm0, %v15358_v5  ;;  %22078 = vmatmul.mubr.msk.f32.vlgmr.msra.gmra.mxu1 %vm57_vm0, %v15358_v5 }
0x2d4a   :  { %22080 = vmatprep.subr.mxu0 %v19399_v2  ;;  %22091 = vmatprep.subr.mxu1 %v19403_v63 }
0x2d4b   :  { %22081 = vmatpush3.msra.mxu0 %v19399_v2  ;;  %22088 = vmatprep.mubr.msk.f32.mxu0 %vm57_vm0, %v24631_v27 }
0x2d4c   :  { %22092 = vmatpush3.msra.mxu1 %v19403_v63  ;;  %22099 = vmatprep.mubr.msk.f32.mxu1 %vm57_vm0, %v24631_v27 }
0x2d4d   :  { %22082 = vmatprep.subr.mxu0 %v19398_v22  ;;  %22093 = vmatprep.subr.mxu1 %v19402_v32 }
0x2d4e   :  { %22083 = vmatpush3.msra.mxu0 %v19398_v22  ;;  %22094 = vmatpush3.msra.mxu1 %v19402_v32 }
0x2d4f   :  { %22084 = vmatprep.subr.mxu0 %v19397_v62  ;;  %22095 = vmatprep.subr.mxu1 %v19401_v3 }
0x2d50   :  { %22085 = vmatpush3.msra.mxu0 %v19397_v62  ;;  %22096 = vmatpush3.msra.mxu1 %v19401_v3 }
0x2d51   :  { %22086 = vmatprep.subr.mxu0 %v19396_v42  ;;  %22097 = vmatprep.subr.mxu1 %v19400_v21 }
0x2d52   :  { %22087 = vmatpush3.msra.mxu0 %v19396_v42  ;;  %22098 = vmatpush3.msra.mxu1 %v19400_v21  ;;  %v22635_v21 = vld [vmem:[%s26399_s3 + $0x10] sm:$0xff] }
0x2d53   :  { %22089 = vmatmul.mubr.msk.f32.vlgmr.msra.gmra.mxu0 %vm57_vm0, %v24658_v17  ;;  %22100 = vmatmul.mubr.msk.f32.vlgmr.msra.gmra.mxu1 %vm57_vm0, %v24658_v17 }
0x2d54   :  { %22102 = vmatprep.subr.mxu0 %v19407_v16  ;;  %22113 = vmatprep.subr.mxu1 %v19411_v6 }
0x2d55   :  { %22103 = vmatpush3.msra.mxu0 %v19407_v16  ;;  %22110 = vmatprep.mubr.msk.f32.mxu0 %vm57_vm0, %v24631_v27 }
0x2d56   :  { %22114 = vmatpush3.msra.mxu1 %v19411_v6  ;;  %22121 = vmatprep.mubr.msk.f32.mxu1 %vm57_vm0, %v24631_v27  ;;  %v22636_v6 = vld [vmem:[%s26399_s3 + $0x18] sm:$0xff] }
0x2d57   :  { %22104 = vmatprep.subr.mxu0 %v19406_v11  ;;  %22115 = vmatprep.subr.mxu1 %v19410_v24 }
0x2d58   :  { %22105 = vmatpush3.msra.mxu0 %v19406_v11  ;;  %22116 = vmatpush3.msra.mxu1 %v19410_v24 }
0x2d59   :  { %22106 = vmatprep.subr.mxu0 %v19405_v40  ;;  %22117 = vmatprep.subr.mxu1 %v19409_v9 }
0x2d5a   :  { %22107 = vmatpush3.msra.mxu0 %v19405_v40  ;;  %22118 = vmatpush3.msra.mxu1 %v19409_v9 }
0x2d5b   :  { %22108 = vmatprep.subr.mxu0 %v19404_v58  ;;  %22119 = vmatprep.subr.mxu1 %v19408_v43 }
0x2d5c   :  { %22109 = vmatpush3.msra.mxu0 %v19404_v58  ;;  %22120 = vmatpush3.msra.mxu1 %v19408_v43 }
0x2d5d   :  { %22111 = vmatmul.mubr.msk.f32.vlgmr.msra.gmra.mxu0 %vm57_vm0, %v24658_v17  ;;  %22122 = vmatmul.mubr.msk.f32.vlgmr.msra.gmra.mxu1 %vm57_vm0, %v24658_v17 }
0x2d5e   :  { %22124 = vmatprep.subr.mxu0 %v19415_v29  ;;  %22135 = vmatprep.subr.mxu1 %v19419_v0 }
0x2d5f   :  { %22125 = vmatpush3.msra.mxu0 %v19415_v29  ;;  %22132 = vmatprep.mubr.msk.f32.mxu0 %vm57_vm0, %v24631_v27 }
0x2d60   :  { %22136 = vmatpush3.msra.mxu1 %v19419_v0  ;;  %22143 = vmatprep.mubr.msk.f32.mxu1 %vm57_vm0, %v24631_v27 }
0x2d61   :  { %22126 = vmatprep.subr.mxu0 %v19414_v31  ;;  %22137 = vmatprep.subr.mxu1 %v19418_v38 }
0x2d62   :  { %22127 = vmatpush3.msra.mxu0 %v19414_v31  ;;  %22138 = vmatpush3.msra.mxu1 %v19418_v38 }
0x2d63   :  { %22128 = vmatprep.subr.mxu0 %v19413_v44  ;;  %22139 = vmatprep.subr.mxu1 %v19417_v55 }
0x2d64   :  { %22129 = vmatpush3.msra.mxu0 %v19413_v44  ;;  %22140 = vmatpush3.msra.mxu1 %v19417_v55 }
0x2d65   :  { %22130 = vmatprep.subr.mxu0 %v19412_v41  ;;  %22141 = vmatprep.subr.mxu1 %v19416_v36 }
0x2d66   :  { %22131 = vmatpush3.msra.mxu0 %v19412_v41  ;;  %22142 = vmatpush3.msra.mxu1 %v19416_v36 }
0x2d67   :  { %22133 = vmatmul.mubr.msk.f32.vlgmr.msra.gmra.mxu0 %vm57_vm0, %v24658_v17  ;;  %22144 = vmatmul.mubr.msk.f32.vlgmr.msra.gmra.mxu1 %vm57_vm0, %v24658_v17 }
0x2d68   :  { %22146 = vmatprep.subr.mxu0 %v19423_v28  ;;  %22157 = vmatprep.subr.mxu1 %v19427_v34 }
0x2d69   :  { %22147 = vmatpush3.msra.mxu0 %v19423_v28  ;;  %22154 = vmatprep.mubr.msk.f32.mxu0 %vm57_vm0, %v24631_v27 }
0x2d6a   :  { %22158 = vmatpush3.msra.mxu1 %v19427_v34  ;;  %22165 = vmatprep.mubr.msk.f32.mxu1 %vm57_vm0, %v24631_v27  ;;  %v19424_v27 = vld [vmem:[%s26393_s7 + $0xb60] sm:$0xff] }
0x2d6b   :  { %22148 = vmatprep.subr.mxu0 %v19422_v35  ;;  %22159 = vmatprep.subr.mxu1 %v19426_v39 }
0x2d6c   :  { %22149 = vmatpush3.msra.mxu0 %v19422_v35  ;;  %22160 = vmatpush3.msra.mxu1 %v19426_v39 }
0x2d6d   :  { %22150 = vmatprep.subr.mxu0 %v19421_v50  ;;  %22161 = vmatprep.subr.mxu1 %v19425_v23 }
0x2d6e   :  { %22151 = vmatpush3.msra.mxu0 %v19421_v50  ;;  %22162 = vmatpush3.msra.mxu1 %v19425_v23 }
0x2d6f   :  { %22152 = vmatprep.subr.mxu0 %v19420_v53  ;;  %22163 = vmatprep.subr.mxu1 %v19424_v27 }
0x2d70   :  { %22153 = vmatpush3.msra.mxu0 %v19420_v53  ;;  %22164 = vmatpush3.msra.mxu1 %v19424_v27 }
0x2d71   :  { %22155 = vmatmul.mubr.msk.f32.vlgmr.msra.gmra.mxu0 %vm57_vm0, %v24658_v17  ;;  %22166 = vmatmul.mubr.msk.f32.vlgmr.msra.gmra.mxu1 %vm57_vm0, %v24658_v17 }
0x2d72   :  { %22168 = vmatprep.subr.mxu0 %v22641_v4  ;;  %22173 = vmatprep.subr.mxu1 %v22641_v4 }
0x2d73   :  { %22170 = vmatprep.mubr.msk.f32.mxu0 %vm22642_vm1, %v22641_v4  ;;  %22175 = vmatprep.mubr.msk.f32.mxu1 %vm22642_vm1, %v22641_v4 }
0x2e00   :  { %v25962_v61 = vpop.f32.mrf.mxu0  ;;  %v25964_v20 = vpop.f32.mrf.mxu1 }
0x2e02   :  { %v15498_v45 = vpop.f32.mrf.mxu0  ;;  %v15573_v30 = vpop.f32.mrf.mxu1 }
0x2e09   :  { %v25966_v37 = vpop.f32.mrf.mxu0  ;;  %v25968_v46 = vpop.f32.mrf.mxu1 }
0x2e0b   :  { %v15648_v17 = vpop.f32.mrf.mxu0  ;;  %v15723_v26 = vpop.f32.mrf.mxu1 }
0x2e13   :  { %v25970_v49 = vpop.f32.mrf.mxu0  ;;  %v25972_v13 = vpop.f32.mrf.mxu1 }
0x2e15   :  { %v15798_v60 = vpop.f32.mrf.mxu0  ;;  %v15873_v18 = vpop.f32.mrf.mxu1 }
0x2e16   :  { %22169 = vmatpush3.xpose.msk.msra.mxu0 %vm1050_vm2, %v15798_v60  ;;  %22174 = vmatpush3.xpose.msk.msra.mxu1 %vm1050_vm2, %v15873_v18 }
0x2e17   :  { %22178 = vmatprep.subr.mxu0 %v22641_v4  ;;  %22183 = vmatprep.subr.mxu1 %v22641_v4 }
0x2e19   :  { %22171 = vmatmul.mubr.msk.f32.vlgmr.msra.gmra.mxu0 %vm1050_vm2, %v15498_v45  ;;  %22176 = vmatmul.mubr.msk.f32.vlgmr.msra.gmra.mxu1 %vm1050_vm2, %v15573_v30 }
0x2e1a   :  { %22180 = vmatprep.mubr.msk.f32.mxu0 %vm22642_vm1, %v22641_v4  ;;  %22185 = vmatprep.mubr.msk.f32.mxu1 %vm22642_vm1, %v22641_v4 }
0x2e1d   :  { %v25984_v48 = vpop.f32.mrf.mxu0  ;;  %v25986_v56 = vpop.f32.mrf.mxu1 }
0x2e1f   :  { %v15948_v54 = vpop.f32.mrf.mxu0  ;;  %v16023_v33 = vpop.f32.mrf.mxu1 }
0x2e20   :  { %22179 = vmatpush3.xpose.msk.msra.mxu0 %vm1050_vm2, %v15948_v54  ;;  %22184 = vmatpush3.xpose.msk.msra.mxu1 %vm1050_vm2, %v16023_v33 }
0x2e21   :  { %22188 = vmatprep.subr.mxu0 %v22641_v4  ;;  %22193 = vmatprep.subr.mxu1 %v22641_v4 }
0x2e23   :  { %22181 = vmatmul.mubr.msk.f32.vlgmr.msra.gmra.mxu0 %vm1050_vm2, %v15648_v17  ;;  %22186 = vmatmul.mubr.msk.f32.vlgmr.msra.gmra.mxu1 %vm1050_vm2, %v15723_v26 }
0x2e24   :  { %22190 = vmatprep.mubr.msk.f32.mxu0 %vm22642_vm1, %v22641_v4  ;;  %22195 = vmatprep.mubr.msk.f32.mxu1 %vm22642_vm1, %v22641_v4 }
0x2e27   :  { %v25998_v12 = vpop.f32.mrf.mxu0  ;;  %v26000_v25 = vpop.f32.mrf.mxu1 }
0x2e29   :  { %v16098_v10 = vpop.f32.mrf.mxu0  ;;  %v16173_v15 = vpop.f32.mrf.mxu1 }
0x2e2a   :  { %22189 = vmatpush3.msra.mxu0 %v16098_v10  ;;  %22194 = vmatpush3.msra.mxu1 %v16173_v15 }
0x2e2b   :  { %22198 = vmatprep.subr.mxu0 %v22641_v4  ;;  %22203 = vmatprep.subr.mxu1 %v22641_v4 }
0x2e31   :  { %v26004_v57 = vpop.f32.mrf.mxu0  ;;  %v26006_v8 = vpop.f32.mrf.mxu1 }
0x2e33   :  { %v26008_v5 = vpop.f32.mrf.mxu0  ;;  %v26010_v14 = vpop.f32.mrf.mxu1 }
0x2ed9   :  { %v16404_v59 = vpop.f32.mrf.mxu0  ;;  %v16480_v51 = vpop.f32.mrf.mxu1 }
0x2eda   :  { %v16405_v47 = vadd.f32 %v22633_v19, %v16404_v59  ;;  %v16481_v2 = vadd.f32 %v22634_v1, %v16480_v51  ;;  %v26045_v1 = vld [vmem:[%s26393_s7 + $0xbb8] sm:$0xff] }
0x2edb   :  { %v22172_v63 = vpop.f32.mrf.mxu0  ;;  %v22177_v22 = vpop.f32.mrf.mxu1 }
0x2edc   :  { %v16639_v32 = vsel %vm1050_vm2, %v16481_v2, -inf  ;;  %v16636_v62 = vsel %vm1050_vm2, %v16405_v47, -inf  ;;  %v26068_v63 = vld [vmem:[%s26393_s7 + $0xb90] sm:$0xff]  ;;  %v26082_v22 = vld [vmem:[%s26393_s7 + $0xba8] sm:$0xff] }
0x2edd   :  { %16640 = vmax.xlane.f32.xlu1 %v16639_v32  ;;  %16637 = vmax.xlane.f32.xlu0 %v16636_v62  ;;  %v26088_v32 = vld [vmem:[%s26393_s7 + $0xb88] sm:$0xff]  ;;  %v26098_v62 = vld [vmem:[%s26393_s7 + $0xba0] sm:$0xff] }
0x2ee3   :  { %v16556_v3 = vpop.f32.mrf.mxu0  ;;  %v16632_v42 = vpop.f32.mrf.mxu1 }
0x2ee4   :  { %v16557_v16 = vadd.f32 %v22635_v21, %v16556_v3  ;;  %v16633_v11 = vadd.f32 %v22636_v6, %v16632_v42  ;;  %v26104_v3 = vld [vmem:[%s26393_s7 + $0xb80] sm:$0xff]  ;;  %v26115_v42 = vld [vmem:[%s26393_s7 + $0xbf8] sm:$0xff] }
0x2ee5   :  { %v22182_v24 = vpop.f32.mrf.mxu0  ;;  %v22187_v40 = vpop.f32.mrf.mxu1 }
0x2ee6   :  { %v16645_v9 = vsel %vm1050_vm2, %v16633_v11, -inf  ;;  %v16642_v58 = vsel %vm1050_vm2, %v16557_v16, -inf  ;;  %v26132_v40 = vld [vmem:[%s26393_s7 + $0xbf0] sm:$0xff] }
0x2ee7   :  { %16646 = vmax.xlane.f32.xlu1 %v16645_v9  ;;  %16643 = vmax.xlane.f32.xlu0 %v16642_v58  ;;  %v26138_v9 = vld [vmem:[%s26393_s7 + $0xbd0] sm:$0xff]  ;;  %v26152_v58 = vld [vmem:[%s26393_s7 + $0xbe8] sm:$0xff] }
0x2f66   :  { %v16641_v43 = vpop.xlane.xlu1 %16640  ;;  %v16638_v29 = vpop.xlane.xlu0 %16637 }
0x2f67   :  { %v16649_v0 = vsub.f32 %v16481_v2, %v16641_v43  ;;  %v16648_v31 = vsub.f32 %v16405_v47, %v16638_v29  ;;  %v26062_v2 = vld [vmem:[%s26393_s7 + $0xbb0] sm:$0xff]  ;;  %v26158_v43 = vld [vmem:[%s26393_s7 + $0xbc8] sm:$0xff] }
0x2f69   :  { %v16654_v38 = vmul.f32 1.442695, %v16649_v0  ;;  %v16652_v44 = vmul.f32 1.442695, %v16648_v31  ;;  %v26168_v31 = vld [vmem:[%s26393_s7 + $0xbe0] sm:$0xff] }
0x2f6b   :  { %22571 = vpow2.f32 %v16654_v38 }
0x2f6c   :  { %22573 = vpow2.f32 %v16652_v44  ;;  %v26174_v44 = vld [vmem:[%s26393_s7 + $0xbc0] sm:$0xff] }
0x2f70   :  { %v16647_v55 = vpop.xlane.xlu1 %16646  ;;  %v16644_v41 = vpop.xlane.xlu0 %16643 }
0x2f71   :  { %v16651_v36 = vsub.f32 %v16633_v11, %v16647_v55  ;;  %v16650_v28 = vsub.f32 %v16557_v16, %v16644_v41  ;;  %v26120_v16 = vld [vmem:[%s26393_s7 + $0xbd8] sm:$0xff] }
0x2f73   :  { %v16658_v34 = vmul.f32 1.442695, %v16651_v36  ;;  %v16656_v35 = vmul.f32 1.442695, %v16650_v28 }
0x2f75   :  { %22575 = vpow2.f32 %v16658_v34 }
0x2f76   :  { %22577 = vpow2.f32 %v16656_v35 }
0x2f78   :  { %v22572_v39 = vpop.eup %22571 }
0x2f79   :  { %v22574_v50 = vpop.eup %22573  ;;  %v16663_v23 = vsel %vm1050_vm2, %v22572_v39, 0.0 }
0x2f7a   :  { %16664 = vadd.xlane.f32.xlu1 %v16663_v23  ;;  %v16660_v53 = vsel %vm1050_vm2, %v22574_v50, 0.0  ;;  %v22637_v23 = vld [vmem:[%s26399_s3 + $0x28] sm:$0xff] }
0x2f7b   :  { %16661 = vadd.xlane.f32.xlu0 %v16660_v53 }
0x2f82   :  { %v22576_v27 = vpop.eup %22575 }
0x2f83   :  { %v22578_v45 = vpop.eup %22577  ;;  %v16669_v30 = vsel %vm1050_vm2, %v22576_v27, 0.0 }
0x2f84   :  { %16670 = vadd.xlane.f32.xlu1 %v16669_v30  ;;  %v16666_v17 = vsel %vm1050_vm2, %v22578_v45, 0.0 }
0x2f85   :  { %16667 = vadd.xlane.f32.xlu0 %v16666_v17 }
0x3003   :  { %v16665_v26 = vpop.xlane.xlu1 %16664 }
0x3004   :  { %22579 = vrcp.f32 %v16665_v26  ;;  %v16662_v60 = vpop.xlane.xlu0 %16661 }
0x3005   :  { %22581 = vrcp.f32 %v16662_v60 }
0x300d   :  { %v16671_v18 = vpop.xlane.xlu1 %16670 }
0x300e   :  { %22583 = vrcp.f32 %v16671_v18  ;;  %v16668_v54 = vpop.xlane.xlu0 %16667 }
0x300f   :  { %22585 = vrcp.f32 %v16668_v54  ;;  %v22639_v54 = vld [vmem:[%s26399_s3 + $0x38] sm:$0xff] }
0x3011   :  { %v22580_v33 = vpop.eup %22579 }
0x3012   :  { %v22582_v10 = vpop.eup %22581  ;;  %v16677_v15 = vmul.f32 %v22580_v33, %v22572_v39 }
0x3013   :  { %v16676_v59 = vmul.f32 %v22582_v10, %v22574_v50 }
0x3014   :  { %22196 = vmatmul.mubr.msk.f32.vlgmr.msra.gmra.mxu1 %vm1050_vm2, %v16677_v15  ;;  %v22640_v15 = vld [vmem:[%s26399_s3 + $0x30] sm:$0xff] }
0x3015   :  { %22191 = vmatmul.mubr.msk.f32.vlgmr.msra.gmra.mxu0 %vm1050_vm2, %v16676_v59  ;;  %22204 = vmatpush3.msra.mxu1 %v26010_v14 }
0x3016   :  { %22199 = vmatpush3.msra.mxu0 %v26008_v5  ;;  %22200 = vmatprep.mubr.msk.f32.mxu0 %vm22642_vm1, %v22641_v4  ;;  %v26050_v5 = vld [vmem:[%s26393_s7 + $0xb98] sm:$0xff] }
0x3017   :  { %22205 = vmatprep.mubr.msk.f32.mxu1 %vm22642_vm1, %v22641_v4  ;;  %22208 = vmatprep.subr.mxu0 %v22641_v4 }
0x3018   :  { %22219 = vmatprep.subr.mxu1 %v22641_v4 }
0x301b   :  { %v22584_v51 = vpop.eup %22583 }
0x301c   :  { %v22586_v19 = vpop.eup %22585  ;;  %v16679_v47 = vmul.f32 %v22584_v51, %v22576_v27  ;;  %v22638_v27 = vld [vmem:[%s26399_s3 + $0x20] sm:$0xff] }
0x301d   :  { %v16678_v14 = vmul.f32 %v22586_v19, %v22578_v45 }
0x301e   :  { %22206 = vmatmul.mubr.msk.f32.vlgmr.msra.gmra.mxu1 %vm1050_vm2, %v16679_v47 }
0x301f   :  { %22201 = vmatmul.mubr.msk.f32.vlgmr.msra.gmra.mxu0 %vm1050_vm2, %v16678_v14  ;;  %22220 = vmatpush3.xpose.msk.msra.mxu1 %vm1050_vm2, %v26045_v1 }
0x3020   :  { %22209 = vmatpush3.xpose.msk.msra.mxu0 %vm1050_vm2, %v26050_v5  ;;  %22221 = vmatprep.subr.mxu1 %v22641_v4 }
0x3021   :  { %22210 = vmatprep.subr.mxu0 %v22641_v4  ;;  %22216 = vmatprep.mubr.msk.f32.mxu0 %vm22642_vm1, %v22641_v4 }
0x3022   :  { %22227 = vmatprep.mubr.msk.f32.mxu1 %vm22642_vm1, %v22641_v4 }
0x3023   :  { %22222 = vmatpush3.xpose.msk.msra.mxu1 %vm1050_vm2, %v26062_v2 }
0x3024   :  { %22211 = vmatpush3.xpose.msk.msra.mxu0 %vm1050_vm2, %v26068_v63  ;;  %22223 = vmatprep.subr.mxu1 %v22641_v4 }
0x3025   :  { %22212 = vmatprep.subr.mxu0 %v22641_v4 }
0x3027   :  { %22224 = vmatpush3.xpose.msk.msra.mxu1 %vm1050_vm2, %v26082_v22 }
0x3028   :  { %22213 = vmatpush3.xpose.msk.msra.mxu0 %vm1050_vm2, %v26088_v32  ;;  %22225 = vmatprep.subr.mxu1 %v22641_v4 }
0x3029   :  { %22214 = vmatprep.subr.mxu0 %v22641_v4 }
0x302b   :  { %22226 = vmatpush3.xpose.msk.msra.mxu1 %vm1050_vm2, %v26098_v62 }
0x302c   :  { %22215 = vmatpush3.xpose.msk.msra.mxu0 %vm1050_vm2, %v26104_v3  ;;  %22241 = vmatprep.subr.mxu1 %v22641_v4 }
0x302d   :  { %22230 = vmatprep.subr.mxu0 %v22641_v4 }
0x30d4   :  { %v16822_v21 = vpop.f32.mrf.mxu1 }
0x30d5   :  { %v16749_v6 = vpop.f32.mrf.mxu0  ;;  %22228 = vmatmul.mubr.msk.f32.vlgmr.msra.gmra.mxu1 %vm1050_vm2, %v16822_v21 }
0x30d6   :  { %22217 = vmatmul.mubr.msk.f32.vlgmr.msra.gmra.mxu0 %vm1050_vm2, %v16749_v6  ;;  %22242 = vmatpush3.xpose.msk.msra.mxu1 %vm1050_vm2, %v26115_v42  ;;  %v22197_v11 = vpop.f32.mrf.mxu1 }
0x30d7   :  { %22231 = vmatpush3.xpose.msk.msra.mxu0 %vm1050_vm2, %v26120_v16  ;;  %v22192_v24 = vpop.f32.mrf.mxu0  ;;  %22243 = vmatprep.subr.mxu1 %v22641_v4 }
0x30d8   :  { %22232 = vmatprep.subr.mxu0 %v22641_v4  ;;  %22238 = vmatprep.mubr.msk.f32.mxu0 %vm22642_vm1, %v22641_v4 }
0x30d9   :  { %22249 = vmatprep.mubr.msk.f32.mxu1 %vm22642_vm1, %v22641_v4 }
0x30da   :  { %22244 = vmatpush3.xpose.msk.msra.mxu1 %vm1050_vm2, %v26132_v40 }
0x30db   :  { %22233 = vmatpush3.xpose.msk.msra.mxu0 %vm1050_vm2, %v26138_v9  ;;  %22245 = vmatprep.subr.mxu1 %v22641_v4 }
0x30dc   :  { %22234 = vmatprep.subr.mxu0 %v22641_v4 }
0x30de   :  { %v16968_v29 = vpop.f32.mrf.mxu1  ;;  %22246 = vmatpush3.xpose.msk.msra.mxu1 %vm1050_vm2, %v26152_v58 }
0x30df   :  { %v16895_v0 = vpop.f32.mrf.mxu0  ;;  %22235 = vmatpush3.xpose.msk.msra.mxu0 %vm1050_vm2, %v26158_v43  ;;  %22247 = vmatprep.subr.mxu1 %v22641_v4 }
0x30e0   :  { %v22207_v38 = vpop.f32.mrf.mxu1  ;;  %22236 = vmatprep.subr.mxu0 %v22641_v4 }
0x30e1   :  { %v22202_v55 = vpop.f32.mrf.mxu0 }
0x30e2   :  { %22248 = vmatpush3.xpose.msk.msra.mxu1 %vm1050_vm2, %v26168_v31 }
0x30e3   :  { %22237 = vmatpush3.xpose.msk.msra.mxu0 %vm1050_vm2, %v26174_v44  ;;  %22257 = vmatprep.subr.mxu1 %v22641_v4 }
0x30e4   :  { %22252 = vmatprep.subr.mxu0 %v22641_v4 }
0x30e5   :  { %22250 = vmatmul.mubr.msk.f32.vlgmr.msra.gmra.mxu1 %vm1050_vm2, %v16968_v29 }
0x30e6   :  { %22239 = vmatmul.mubr.msk.f32.vlgmr.msra.gmra.mxu0 %vm1050_vm2, %v16895_v0  ;;  %22258 = vmatpush3.xpose.msk.msra.mxu1 %vm1050_vm2, %v25972_v13 }
0x30e7   :  { %22253 = vmatpush3.xpose.msk.msra.mxu0 %vm1050_vm2, %v25970_v49  ;;  %22254 = vmatprep.mubr.msk.f32.mxu0 %vm22642_vm1, %v22641_v4 }
0x30e8   :  { %22259 = vmatprep.mubr.msk.f32.mxu1 %vm22642_vm1, %v22641_v4  ;;  %22262 = vmatprep.subr.mxu0 %v22641_v4 }
0x30e9   :  { %22260 = vmatmul.mubr.msk.f32.vlgmr.msra.gmra.mxu1 %vm1050_vm2, %v25964_v20  ;;  %22267 = vmatprep.subr.mxu1 %v22641_v4 }
0x30ea   :  { %22255 = vmatmul.mubr.msk.f32.vlgmr.msra.gmra.mxu0 %vm1050_vm2, %v25962_v61  ;;  %22268 = vmatpush3.xpose.msk.msra.mxu1 %vm1050_vm2, %v25986_v56 }
0x30eb   :  { %22263 = vmatpush3.xpose.msk.msra.mxu0 %vm1050_vm2, %v25984_v48  ;;  %22264 = vmatprep.mubr.msk.f32.mxu0 %vm22642_vm1, %v22641_v4 }
0x30ec   :  { %22269 = vmatprep.mubr.msk.f32.mxu1 %vm22642_vm1, %v22641_v4  ;;  %22272 = vmatprep.subr.mxu0 %v22641_v4 }
0x30ed   :  { %22270 = vmatmul.mubr.msk.f32.vlgmr.msra.gmra.mxu1 %vm1050_vm2, %v25968_v46  ;;  %22277 = vmatprep.subr.mxu1 %v22641_v4 }
0x30ee   :  { %22265 = vmatmul.mubr.msk.f32.vlgmr.msra.gmra.mxu0 %vm1050_vm2, %v25966_v37  ;;  %22278 = vmatpush3.msra.mxu1 %v26000_v25 }
0x30ef   :  { %22273 = vmatpush3.msra.mxu0 %v25998_v12  ;;  %22274 = vmatprep.mubr.msk.f32.mxu0 %vm22642_vm1, %v22641_v4 }
0x30f0   :  { %22279 = vmatprep.mubr.msk.f32.mxu1 %vm22642_vm1, %v22641_v4  ;;  %22282 = vmatprep.subr.mxu0 %v22641_v4 }
0x30f1   :  { %22287 = vmatprep.subr.mxu1 %v22641_v4 }
0x3195   :  { %v17138_v61 = vpop.f32.mrf.mxu1 }
0x3196   :  { %v17053_v20 = vpop.f32.mrf.mxu0  ;;  %v17313_v46 = vsel %vm57_vm0, %v17138_v61, 0.0 }
0x3197   :  { %v17312_v37 = vsel %vm57_vm0, %v17053_v20, 0.0  ;;  %v22229_v49 = vpop.f32.mrf.mxu1 }
0x3198   :  { %v17314_v13 = vadd.f32 %v17313_v46, %v17312_v37  ;;  %v22218_v48 = vpop.f32.mrf.mxu0 }
0x31a5   :  { %v17308_v56 = vpop.f32.mrf.mxu1 }
0x31a6   :  { %v17223_v12 = vpop.f32.mrf.mxu0  ;;  %v17317_v34 = vsel %vm57_vm0, %v17308_v56, 0.0 }
0x31a7   :  { %v17315_v25 = vsel %vm57_vm0, %v17223_v12, 0.0  ;;  %v22251_v41 = vpop.f32.mrf.mxu1 }
0x31a8   :  { %v17316_v36 = vadd.f32 %v17315_v25, %v17314_v13  ;;  %v22240_v28 = vpop.f32.mrf.mxu0 }
0x31a9   :  { %v17467_v35 = vpop.f32.mrf.mxu1 }
0x31aa   :  { %v17318_v39 = vadd.f32 %v17317_v34, %v17316_v36  ;;  %v17391_v50 = vpop.f32.mrf.mxu0  ;;  %v17468_v53 = vadd.f32 %v22637_v23, %v17467_v35 }
0x31ab   :  { %v17392_v45 = vadd.f32 %v22638_v27, %v17391_v50  ;;  %v22261_v30 = vpop.f32.mrf.mxu1 }
0x31ac   :  { %v22256_v17 = vpop.f32.mrf.mxu0  ;;  %v17626_v26 = vsel %vm1050_vm2, %v17468_v53, -inf  ;;  %v26242_v56 = vadd.f32 %v17318_v39, %v25668_v7 }
0x31ad   :  { %17627 = vmax.xlane.f32.xlu1 %v17626_v26  ;;  %v17619_v60 = vpop.f32.mrf.mxu1  ;;  %v17623_v18 = vsel %vm1050_vm2, %v17392_v45, -inf }
0x31ae   :  { %v17620_v33 = vadd.f32 %v22639_v54, %v17619_v60  ;;  %17624 = vmax.xlane.f32.xlu0 %v17623_v18  ;;  %v17543_v10 = vpop.f32.mrf.mxu0  ;;  %v18261_v34 = vmul.f32 %v26242_v56, %v26242_v56 }
0x31af   :  { %v17544_v59 = vadd.f32 %v22640_v15, %v17543_v10  ;;  %v22271_v51 = vpop.f32.mrf.mxu1 }
0x31b0   :  { %v22266_v19 = vpop.f32.mrf.mxu0  ;;  %v17632_v47 = vsel %vm1050_vm2, %v17620_v33, -inf  ;;  %v18263_v35 = vsel %vm57_vm0, %v18261_v34, 0.0 }
0x31b1   :  { %17633 = vmax.xlane.f32.xlu1 %v17632_v47  ;;  %v17629_v14 = vsel %vm1050_vm2, %v17544_v59, -inf }
0x31b2   :  { %17630 = vmax.xlane.f32.xlu0 %v17629_v14 }
0x3236   :  { %v17628_v21 = vpop.xlane.xlu1 %17627 }
0x3237   :  { %v17636_v6 = vsub.f32 %v17468_v53, %v17628_v21  ;;  %v17625_v11 = vpop.xlane.xlu0 %17624 }
0x3238   :  { %v17635_v24 = vsub.f32 %v17392_v45, %v17625_v11 }
0x3239   :  { %v17641_v29 = vmul.f32 1.442695, %v17636_v6 }
0x323a   :  { %v17639_v0 = vmul.f32 1.442695, %v17635_v24  ;;  %v17634_v38 = vpop.xlane.xlu1 %17633 }
0x323b   :  { %22587 = vpow2.f32 %v17641_v29  ;;  %v17638_v55 = vsub.f32 %v17620_v33, %v17634_v38  ;;  %v17631_v61 = vpop.xlane.xlu0 %17630  ;;  %v19535_v38 = vld [vmem:[%s26396_s8 + $0xd0] sm:$0xff] }
0x323c   :  { %22589 = vpow2.f32 %v17639_v0  ;;  %v17637_v20 = vsub.f32 %v17544_v59, %v17631_v61  ;;  %v19536_v0 = vld [vmem:[%s26396_s8 + $0xd8] sm:$0xff] }
0x323d   :  { %v17645_v46 = vmul.f32 1.442695, %v17638_v55  ;;  %v19534_v55 = vld [vmem:[%s26396_s8 + $0xc8] sm:$0xff]  ;;  %v19540_v61 = vld [vmem:[%s26396_s8 + $0xf8] sm:$0xff] }
0x323e   :  { %v17643_v37 = vmul.f32 1.442695, %v17637_v20  ;;  %v19539_v20 = vld [vmem:[%s26396_s8 + $0xf0] sm:$0xff] }
0x323f   :  { %22591 = vpow2.f32 %v17645_v46  ;;  %v19538_v46 = vld [vmem:[%s26396_s8 + $0xe8] sm:$0xff] }
0x3240   :  { %22593 = vpow2.f32 %v17643_v37 }
0x3248   :  { %v22588_v49 = vpop.eup %22587 }
0x3249   :  { %v22590_v13 = vpop.eup %22589  ;;  %v17650_v48 = vsel %vm1050_vm2, %v22588_v49, 0.0 }
0x324a   :  { %17651 = vadd.xlane.f32.xlu1 %v17650_v48  ;;  %v17647_v12 = vsel %vm1050_vm2, %v22590_v13, 0.0 }
0x324b   :  { %17648 = vadd.xlane.f32.xlu0 %v17647_v12 }
0x324c   :  { %v22592_v25 = vpop.eup %22591 }
0x324d   :  { %v22594_v41 = vpop.eup %22593  ;;  %v17656_v36 = vsel %vm1050_vm2, %v22592_v25, 0.0 }
0x324e   :  { %17657 = vadd.xlane.f32.xlu1 %v17656_v36  ;;  %v17653_v28 = vsel %vm1050_vm2, %v22594_v41, 0.0 }
0x324f   :  { %17654 = vadd.xlane.f32.xlu0 %v17653_v28 }
0x3253   :  { %18264 = vadd.xlane.f32.xlu0 %v18263_v35 }
0x32d3   :  { %v17652_v7 = vpop.xlane.xlu1 %17651 }
0x32d4   :  { %22595 = vrcp.f32 %v17652_v7  ;;  %v17649_v39 = vpop.xlane.xlu0 %17648 }
0x32d5   :  { %22597 = vrcp.f32 %v17649_v39 }
0x32d7   :  { %v17658_v50 = vpop.xlane.xlu1 %17657 }
0x32d8   :  { %22599 = vrcp.f32 %v17658_v50  ;;  %v17655_v23 = vpop.xlane.xlu0 %17654 }
0x32d9   :  { %22601 = vrcp.f32 %v17655_v23 }
0x32e1   :  { %v22596_v53 = vpop.eup %22595 }
0x32e2   :  { %v22598_v27 = vpop.eup %22597  ;;  %v17664_v45 = vmul.f32 %v22596_v53, %v22588_v49 }
0x32e3   :  { %v17663_v30 = vmul.f32 %v22598_v27, %v22590_v13 }
0x32e4   :  { %22280 = vmatmul.mubr.msk.f32.vlgmr.msra.gmra.mxu1 %vm1050_vm2, %v17664_v45 }
0x32e5   :  { %v22600_v17 = vpop.eup %22599  ;;  %22275 = vmatmul.mubr.msk.f32.vlgmr.msra.gmra.mxu0 %vm1050_vm2, %v17663_v30  ;;  %22288 = vmatpush3.msra.mxu1 %v26006_v8 }
0x32e6   :  { %v22602_v26 = vpop.eup %22601  ;;  %v17666_v60 = vmul.f32 %v22600_v17, %v22592_v25  ;;  %22283 = vmatpush3.msra.mxu0 %v26004_v57  ;;  %22284 = vmatprep.mubr.msk.f32.mxu0 %vm22642_vm1, %v22641_v4  ;;  %v18265_v57 = vpop.xlane.xlu0 %18264  ;;  %v18499_v17 = vld [vmem:[%s26400_s5 + $0x18] sm:$0xff] }
0x32e7   :  { %v17665_v18 = vmul.f32 %v22602_v26, %v22594_v41  ;;  %22289 = vmatprep.mubr.msk.f32.mxu1 %vm22642_vm1, %v22641_v4  ;;  %22292 = vmatprep.subr.mxu0 %v22641_v4  ;;  %v18269_v8 = vmul.f32 0.03125, %v18265_v57  ;;  %v19537_v41 = vld [vmem:[%s26396_s8 + $0xe0] sm:$0xff]  ;;  %v18498_v26 = vld [vmem:[%s26400_s5 + $0x10] sm:$0xff] }
0x32e8   :  { %22290 = vmatmul.mubr.msk.f32.vlgmr.msra.gmra.mxu1 %vm1050_vm2, %v17666_v60  ;;  %22303 = vmatprep.subr.mxu1 %v22641_v4  ;;  %v18496_v60 = vld [vmem:[%s26400_s5] sm:$0xff] }
0x32e9   :  { %22285 = vmatmul.mubr.msk.f32.vlgmr.msra.gmra.mxu0 %vm1050_vm2, %v17665_v18  ;;  %22304 = vmatpush3.xpose.msk.msra.mxu1 %vm1050_vm2, %v26045_v1  ;;  %v18271_v1 = vadd.f32 1e-06, %v18269_v8 }
0x32ea   :  { %22293 = vmatpush3.xpose.msk.msra.mxu0 %vm1050_vm2, %v26050_v5  ;;  %22305 = vmatprep.subr.mxu1 %v22641_v4 }
0x32eb   :  { %22294 = vmatprep.subr.mxu0 %v22641_v4  ;;  %22300 = vmatprep.mubr.msk.f32.mxu0 %vm22642_vm1, %v22641_v4  ;;  %22603 = vrsqrt.f32 %v18271_v1 }
0x32ec   :  { %22311 = vmatprep.mubr.msk.f32.mxu1 %vm22642_vm1, %v22641_v4 }
0x32ed   :  { %22306 = vmatpush3.xpose.msk.msra.mxu1 %vm1050_vm2, %v26062_v2 }
0x32ee   :  { %22295 = vmatpush3.xpose.msk.msra.mxu0 %vm1050_vm2, %v26068_v63  ;;  %22307 = vmatprep.subr.mxu1 %v22641_v4 }
0x32ef   :  { %22296 = vmatprep.subr.mxu0 %v22641_v4 }
0x32f1   :  { %22308 = vmatpush3.xpose.msk.msra.mxu1 %vm1050_vm2, %v26082_v22 }
0x32f2   :  { %22297 = vmatpush3.xpose.msk.msra.mxu0 %vm1050_vm2, %v26088_v32  ;;  %22309 = vmatprep.subr.mxu1 %v22641_v4 }
0x32f3   :  { %22298 = vmatprep.subr.mxu0 %v22641_v4 }
0x32f5   :  { %22310 = vmatpush3.xpose.msk.msra.mxu1 %vm1050_vm2, %v26098_v62 }
0x32f6   :  { %22299 = vmatpush3.xpose.msk.msra.mxu0 %vm1050_vm2, %v26104_v3  ;;  %22325 = vmatprep.subr.mxu1 %v22641_v4 }
0x32f7   :  { %22314 = vmatprep.subr.mxu0 %v22641_v4 }
0x33a4   :  { %v17809_v5 = vpop.f32.mrf.mxu1 }
0x33a5   :  { %v17736_v2 = vpop.f32.mrf.mxu0  ;;  %22312 = vmatmul.mubr.msk.f32.vlgmr.msra.gmra.mxu1 %vm1050_vm2, %v17809_v5 }
0x33a6   :  { %22301 = vmatmul.mubr.msk.f32.vlgmr.msra.gmra.mxu0 %vm1050_vm2, %v17736_v2  ;;  %22326 = vmatpush3.xpose.msk.msra.mxu1 %vm1050_vm2, %v26115_v42  ;;  %v22281_v63 = vpop.f32.mrf.mxu1 }
0x33a7   :  { %22315 = vmatpush3.xpose.msk.msra.mxu0 %vm1050_vm2, %v26120_v16  ;;  %v22276_v22 = vpop.f32.mrf.mxu0  ;;  %22327 = vmatprep.subr.mxu1 %v22641_v4  ;;  %v22604_v16 = vpop.eup %22603 }
0x33a8   :  { %v17955_v32 = vpop.f32.mrf.mxu1  ;;  %22316 = vmatprep.subr.mxu0 %v22641_v4  ;;  %22322 = vmatprep.mubr.msk.f32.mxu0 %vm22642_vm1, %v22641_v4  ;;  %v19549_v22 = vld [vmem:[%s26394_s6 + $0xb] ss:$0 sm:$0xff] }
0x33a9   :  { %v17882_v62 = vpop.f32.mrf.mxu0  ;;  %22333 = vmatprep.mubr.msk.f32.mxu1 %vm22642_vm1, %v22641_v4 }
0x33aa   :  { %22328 = vmatpush3.xpose.msk.msra.mxu1 %vm1050_vm2, %v26132_v40  ;;  %v22291_v3 = vpop.f32.mrf.mxu1  ;;  %v18275_v40 = vmul.f32 %v22604_v16, %v26242_v56 }
0x33ab   :  { %22317 = vmatpush3.xpose.msk.msra.mxu0 %vm1050_vm2, %v26138_v9  ;;  %v22286_v42 = vpop.f32.mrf.mxu0  ;;  %22329 = vmatprep.subr.mxu1 %v22641_v4  ;;  %v19532_v9 = vld [vmem:[%s26394_s6 + $0xa] ss:$0 sm:$0xff] }
0x33ac   :  { %22318 = vmatprep.subr.mxu0 %v22641_v4 }
0x33ae   :  { %22330 = vmatpush3.xpose.msk.msra.mxu1 %vm1050_vm2, %v26152_v58  ;;  %v18281_v58 = vmul.f32 %v19532_v9, %v18275_v40 }
0x33af   :  { %22319 = vmatpush3.xpose.msk.msra.mxu0 %vm1050_vm2, %v26158_v43  ;;  %22331 = vmatprep.subr.mxu1 %v22641_v4 }
0x33b0   :  { %22320 = vmatprep.subr.mxu0 %v22641_v4 }
0x33b2   :  { %22332 = vmatpush3.xpose.msk.msra.mxu1 %vm1050_vm2, %v26168_v31 }
0x33b3   :  { %22321 = vmatpush3.xpose.msk.msra.mxu0 %vm1050_vm2, %v26174_v44  ;;  %22347 = vmatprep.subr.msk.mxu1 %vm3094_vm3, %v19540_v61 }
0x33b4   :  { %22336 = vmatprep.subr.mxu0 %v19536_v0 }
0x33b5   :  { %22334 = vmatmul.mubr.msk.f32.vlgmr.msra.gmra.mxu1 %vm1050_vm2, %v17955_v32 }
0x33b6   :  { %22323 = vmatmul.mubr.msk.f32.vlgmr.msra.gmra.mxu0 %vm1050_vm2, %v17882_v62  ;;  %22348 = vmatpush3.xpose.msk.msra.mxu1 %vm3094_vm3, %v19540_v61 }
0x33b7   :  { %22344 = vmatprep.mubr.msk.f32.mxu0 %vm57_vm0, %v18281_v58  ;;  %22337 = vmatpush3.msra.mxu0 %v19536_v0  ;;  %v18581_v58 = vlaneseq }
0x33b8   :  { %22338 = vmatprep.subr.mxu0 %v19535_v38  ;;  %22349 = vmatprep.subr.msk.mxu1 %vm3094_vm3, %v19539_v20 }
0x33b9   :  { %22339 = vmatpush3.msra.mxu0 %v19535_v38 }
0x33ba   :  { %22340 = vmatprep.subr.mxu0 %v19534_v55  ;;  %22350 = vmatpush3.xpose.msk.msra.mxu1 %vm3094_vm3, %v19539_v20 }
0x33bb   :  { %22341 = vmatpush3.msra.mxu0 %v19534_v55  ;;  %22351 = vmatprep.subr.msk.mxu1 %vm3094_vm3, %v19538_v46 }
0x33be   :  { %22352 = vmatpush3.xpose.msk.msra.mxu1 %vm3094_vm3, %v19538_v46 }
0x33bf   :  { %22353 = vmatprep.subr.msk.mxu1 %vm3094_vm3, %v19537_v41 }
0x33c2   :  { %22354 = vmatpush3.xpose.msk.msra.mxu1 %vm3094_vm3, %v19537_v41 }
0x3465   :  { %v18101_v4 = vpop.f32.mrf.mxu1 }
0x3466   :  { %v18028_v43 = vpop.f32.mrf.mxu0  ;;  %v18252_v10 = vsel %vm57_vm0, %v18101_v4, 0.0  ;;  %v18582_v4 = vand.u32 127, %v18581_v58 }
0x3467   :  { %v22313_v54 = vpop.f32.mrf.mxu1  ;;  %v18251_v31 = vsel %vm57_vm0, %v18028_v43, 0.0 }
0x3468   :  { %v22302_v33 = vpop.f32.mrf.mxu0  ;;  %v18253_v59 = vadd.f32 %v18252_v10, %v18251_v31  ;;  %vm18583_vm4 = vcmp.lt.s32.totalorder %v18582_v4, 64 }
0x3475   :  { %v18247_v15 = vpop.f32.mrf.mxu1 }
0x3476   :  { %v18174_v51 = vpop.f32.mrf.mxu0  ;;  %v18256_v21 = vsel %vm57_vm0, %v18247_v15, 0.0 }
0x3477   :  { %v18254_v44 = vsel %vm57_vm0, %v18174_v51, 0.0  ;;  %v22335_v19 = vpop.f32.mrf.mxu1 }
0x3478   :  { %v18255_v47 = vadd.f32 %v18254_v44, %v18253_v59  ;;  %v22324_v14 = vpop.f32.mrf.mxu0 }
0x347a   :  { %v18257_v6 = vadd.f32 %v18256_v21, %v18255_v47 }
0x347c   :  { %v18259_v11 = vadd.f32 %v18257_v6, %v25765_v52  ;;  %v19533_v52 = vld [vmem:[%s26396_s8 + $0xc0] sm:$0xff] }
0x347d   :  { %22342 = vmatprep.subr.mxu0 %v19533_v52 }
0x347e   :  { %v18262_v24 = vmul.f32 %v18259_v11, %v18259_v11  ;;  %22343 = vmatpush3.msra.mxu0 %v19533_v52 }
0x347f   :  { %22358 = vmatprep.subr.mxu0 %v18499_v17 }
0x3480   :  { %v18266_v29 = vsel %vm57_vm0, %v18262_v24, 0.0 }
0x3481   :  { %18267 = vadd.xlane.f32.xlu1 %v18266_v29 }
0x350a   :  { %v18268_v37 = vpop.xlane.xlu1 %18267 }
0x350b   :  { %v18270_v49 = vmul.f32 0.03125, %v18268_v37 }
0x350d   :  { %v18272_v13 = vadd.f32 1e-06, %v18270_v49 }
0x350f   :  { %22605 = vrsqrt.f32 %v18272_v13 }
0x351c   :  { %v22606_v48 = vpop.eup %22605 }
0x351d   :  { %v18276_v12 = vmul.f32 %v22606_v48, %v18259_v11 }
0x351f   :  { %v18282_v25 = vmul.f32 %v19532_v9, %v18276_v12 }
0x3521   :  { %22345 = vmatmul.mubr.msk.f32.vlgmr.msra.gmra.mxu0 %vm57_vm0, %v18282_v25 }
0x3522   :  { %22359 = vmatpush3.msra.mxu0 %v18499_v17 }
0x3523   :  { %22360 = vmatprep.subr.mxu0 %v18498_v26 }
0x3524   :  { %22361 = vmatpush3.msra.mxu0 %v18498_v26 }
0x35e1   :  { %v22346_v36 = vpop.f32.mrf.mxu0 }
0x35e2   :  { %v18375_v35 = vmax.f32 %v22346_v36, 0.0 }
0x35e3   :  { %v18365_v28 = vpop.f32.mrf.mxu0 }
0x35e4   :  { %v18374_v34 = vmax.f32 %v18365_v28, 0.0 }
0x35e6   :  { %22355 = vmatprep.mubr.msk.f32.mxu1 %vm3094_vm3, %v18374_v34 }
0x35e7   :  { %22356 = vmatmul.mubr.msk.f32.vlgmr.msra.gmra.mxu1 %vm3094_vm3, %v18375_v35 }
0x36a7   :  { %v22357_v7 = vpop.f32.mrf.mxu1 }
0x36a8   :  { %v18470_v39 = vadd.f32 %v22357_v7, %v18259_v11 }
0x36a9   :  { %v18460_v50 = vpop.f32.mrf.mxu1 }
0x36aa   :  { %v18473_v23 = vmul.f32 %v18470_v39, %v18470_v39  ;;  %v18469_v53 = vadd.f32 %v18460_v50, %v26242_v56  ;;  %v18497_v56 = vld [vmem:[%s26400_s5 + $0x8] sm:$0xff] }
0x36ab   :  { %22362 = vmatprep.subr.mxu0 %v18497_v56 }
0x36ac   :  { %v18472_v27 = vmul.f32 %v18469_v53, %v18469_v53  ;;  %v18477_v45 = vsel %vm57_vm0, %v18473_v23, 0.0  ;;  %22363 = vmatpush3.msra.mxu0 %v18497_v56 }
0x36ad   :  { %18478 = vadd.xlane.f32.xlu1 %v18477_v45  ;;  %22364 = vmatprep.subr.mxu0 %v18496_v60 }
0x36ae   :  { %v18474_v30 = vsel %vm57_vm0, %v18472_v27, 0.0  ;;  %22365 = vmatpush3.msra.mxu0 %v18496_v60 }
0x36af   :  { %18475 = vadd.xlane.f32.xlu0 %v18474_v30 }
0x3736   :  { %v18479_v18 = vpop.xlane.xlu1 %18478 }
0x3737   :  { %v18481_v57 = vmul.f32 0.03125, %v18479_v18 }
0x3738   :  { %v18476_v8 = vpop.xlane.xlu0 %18475 }
0x3739   :  { %v18483_v1 = vadd.f32 1e-06, %v18481_v57  ;;  %v18480_v5 = vmul.f32 0.03125, %v18476_v8 }
0x373b   :  { %22607 = vrsqrt.f32 %v18483_v1  ;;  %v18482_v2 = vadd.f32 1e-06, %v18480_v5 }
0x373d   :  { %22609 = vrsqrt.f32 %v18482_v2 }
0x3748   :  { %v22608_v63 = vpop.eup %22607 }
0x3749   :  { %v18487_v32 = vmul.f32 %v22608_v63, %v18470_v39 }
0x374a   :  { %v22610_v62 = vpop.eup %22609 }
0x374b   :  { %v18486_v3 = vmul.f32 %v22610_v62, %v18469_v53  ;;  %v18493_v42 = vmul.f32 %v19549_v22, %v18487_v32 }
0x374d   :  { %v18492_v16 = vmul.f32 %v19549_v22, %v18486_v3  ;;  %v18495_v9 = vmul.f32 0.17677669, %v18493_v42 }
0x374f   :  { %v18494_v40 = vmul.f32 0.17677669, %v18492_v16 }
0x3751   :  { %22366 = vmatprep.mubr.msk.f32.mxu0 %vm57_vm0, %v18494_v40 }
0x3752   :  { %22367 = vmatmul.mubr.msk.f32.vlgmr.msra.gmra.mxu0 %vm57_vm0, %v18495_v9 }
0x3812   :  { %v22368_v43 = vpop.f32.mrf.mxu0 }
0x3813   :  { %v18587_v54 = vsel %vm18583_vm4, %v22368_v43, -1e+30 }
0x3814   :  { %18590 = vmax.xlane.f32.xlu1 %v18587_v54  ;;  %v18572_v33 = vpop.f32.mrf.mxu0 }
0x3815   :  { %v18586_v31 = vsel %vm18583_vm4, %v18572_v33, -1e+30 }
0x3816   :  { %18588 = vmax.xlane.f32.xlu0 %v18586_v31 }
0x389d   :  { %v18591_v10 = vpop.xlane.xlu1 %18590 }
0x389e   :  { %v18593_v15 = vsub.f32 %v18587_v54, %v18591_v10 }
0x389f   :  { %v18589_v59 = vpop.xlane.xlu0 %18588 }
0x38a0   :  { %v18596_v51 = vmul.f32 1.442695, %v18593_v15  ;;  %v18592_v44 = vsub.f32 %v18586_v31, %v18589_v59 }
0x38a2   :  { %22611 = vpow2.f32 %v18596_v51  ;;  %v18594_v19 = vmul.f32 1.442695, %v18592_v44 }
0x38a4   :  { %22613 = vpow2.f32 %v18594_v19 }
0x38af   :  { %v22612_v47 = vpop.eup %22611 }
0x38b0   :  { %18600 = vadd.xlane.f32.xlu1 %v22612_v47 }
0x38b1   :  { %v22614_v14 = vpop.eup %22613 }
0x38b2   :  { %18598 = vadd.xlane.f32.xlu0 %v22614_v14 }
0x3939   :  { %v18601_v21 = vpop.xlane.xlu1 %18600 }
0x393a   :  { %22615 = vlog2.f32 %v18601_v21 }
0x393b   :  { %v18599_v6 = vpop.xlane.xlu0 %18598 }
0x393c   :  { %22617 = vlog2.f32 %v18599_v6 }
0x3947   :  { %v22616_v11 = vpop.eup %22615 }
0x3948   :  { %v18605_v24 = vmul.f32 0.6931472, %v22616_v11 }
0x3949   :  { %v22618_v29 = vpop.eup %22617 }
0x394a   :  { %v18607_v0 = vsub.f32 %v18593_v15, %v18605_v24  ;;  %v18603_v38 = vmul.f32 0.6931472, %v22618_v29 }
0x394c   :  { %18609 = vst [vmem:[%s26401_s9 + $0x8] sm:$0xff] %v18607_v0  ;;  %v18606_v55 = vsub.f32 %v18592_v44, %v18603_v38 }
0x394e   :  { %18608 = vst [vmem:[%s26401_s9] sm:$0xff] %v18606_v55 }

</bundles_post_ra>
